<compile_context>
chip_gen: v5e
topology: v5e:2x2
jax: 0.10.0
libtpu: 0.0.40
codegen_flags: <defaults>
</compile_context>

<pallas_src>
import functools

import jax
import jax.numpy as jnp
from jax import lax
from jax.experimental import pallas as pl
from jax.experimental.pallas import tpu as pltpu


def _rup(x, m):
    return ((x + m - 1) // m) * m


# ----------------------------------------------------------------------------
# Pallas kernels: weight-resident bf16 matmul, fp32 accumulation,
# fused shift (+ residual) + ReLU epilogue.
# ----------------------------------------------------------------------------
def _mm_kernel(a_ref, b_ref, shift_ref, o_ref, *, relu):
    y = jnp.dot(a_ref[...], b_ref[...], preferred_element_type=jnp.float32)
    y = y + shift_ref[...]
    if relu:
        y = jnp.maximum(y, 0.0)
    o_ref[...] = y.astype(o_ref.dtype)


def _mm_res_kernel(a_ref, b_ref, shift_ref, res_ref, o_ref, *, relu):
    y = jnp.dot(a_ref[...], b_ref[...], preferred_element_type=jnp.float32)
    y = y + shift_ref[...] + res_ref[...].astype(jnp.float32)
    if relu:
        y = jnp.maximum(y, 0.0)
    o_ref[...] = y.astype(o_ref.dtype)


_PALLAS_MIN_ROWS = 128   # below this, one-block pallas_call overhead dominates


def matmul_shift(a, b, shift, residual=None, relu=False, out_dtype=jnp.bfloat16):
    """out = maybe_relu(a @ b + shift [+ residual]).

    a:        (M, K) float -> bf16, streamed as row panels (K pre-aligned to 128).
    b:        (K, N) bf16 weight, BN/bias *scale* pre-folded, fully VMEM-resident.
    shift:    (1, N) fp32 per-output-channel shift (conv bias / folded BN).
    residual: optional (M, N), fused into the epilogue before the ReLU.
    """
    M, K = a.shape
    K2, N = b.shape
    assert K == K2
    shift = shift.reshape(1, N).astype(jnp.float32)

    if M < _PALLAS_MIN_ROWS:
        # Tiny problems (PSP pyramid stages, deep layers at toy sizes): plain XLA.
        y = jnp.dot(a.astype(jnp.bfloat16), b,
                    preferred_element_type=jnp.float32) + shift
        if residual is not None:
            y = y + residual.astype(jnp.float32)
        if relu:
            y = jnp.maximum(y, 0.0)
        return y.astype(out_dtype)

    a = a.astype(jnp.bfloat16)

    # ---- row-panel height ---------------------------------------------------
    # Weights stay fully VMEM-resident; only A / residual / output panels stream.
    if K >= 4608:
        tm = 128          # cap VMEM for the widest-K convs (v7x: 64 MiB / TC)
    elif N <= 64:
        tm = 512          # narrow output -> taller panel keeps the MXU fed
    else:
        tm = 256
    if M <= tm:
        tm = M            # single block; full-dim exemption from the (8,128) rule
    else:
        while tm > 128 and -(-M // tm) < 2:
            tm //= 2      # >=2 blocks on the parallel axis (megacore / v7x 2 TCs)
    grid_m = pl.cdiv(M, tm)

    n_abuf = 3 if grid_m >= 3 else 2
    if grid_m >= 3:
        a_spec = pl.BlockSpec((tm, K), lambda i: (i, 0),
                              pipeline_mode=pl.Buffered(3))
    else:
        a_spec = pl.BlockSpec((tm, K), lambda i: (i, 0))

    in_specs = [a_spec,
                pl.BlockSpec((K, N), lambda i: (0, 0)),   # resident weights
                pl.BlockSpec((1, N), lambda i: (0, 0))]   # resident shift
    operands = [a, b, shift]
    if residual is not None:
        assert residual.shape == (M, N)
        in_specs.append(pl.BlockSpec((tm, N), lambda i: (i, 0)))
        operands.append(residual.astype(jnp.bfloat16))
        kernel = functools.partial(_mm_res_kernel, relu=relu)
    else:
        kernel = functools.partial(_mm_kernel, relu=relu)

    # Scoped-VMEM budget: resident weights + streamed panels + fp32 epilogue temp.
    need = (K * N * 2 * 2 + tm * K * 2 * n_abuf + tm * N * 2 * 2 + tm * N * 4
            + (tm * N * 2 * 2 if residual is not None else 0))
    vmem_limit = min(max(32 << 20, int(need * 1.5) + (4 << 20)), 56 << 20)

    return pl.pallas_call(
        kernel,
        out_shape=jax.ShapeDtypeStruct((M, N), out_dtype),
        grid_spec=pltpu.PrefetchScalarGridSpec(
            num_scalar_prefetch=0,
            grid=(grid_m,),
            in_specs=in_specs,
            out_specs=pl.BlockSpec((tm, N), lambda i: (i, 0)),
        ),
        compiler_params=pltpu.CompilerParams(
            dimension_semantics=("parallel",),
            vmem_limit_bytes=vmem_limit),
    )(*operands)


# ----------------------------------------------------------------------------
# Conv2d = bf16 im2col (JAX glue; skipped for 1x1) + Pallas matmul (hot path)
# ----------------------------------------------------------------------------
def im2col(x, kh, kw, stride, padding, dilation):
    n, h, w, c = x.shape
    xp = jnp.pad(x, ((0, 0), (padding, padding), (padding, padding), (0, 0)))
    oh = (h + 2 * padding - dilation * (kh - 1) - 1) // stride + 1
    ow = (w + 2 * padding - dilation * (kw - 1) - 1) // stride + 1
    cols = []
    for dy in range(kh):
        for dx in range(kw):
            ys = dy * dilation
            xs = dx * dilation
            patch = xp[:, ys: ys + stride * (oh - 1) + 1: stride,
                          xs: xs + stride * (ow - 1) + 1: stride, :]
            cols.append(patch)
    col = jnp.stack(cols, axis=3)                     # (n, oh, ow, kh*kw, c)
    return col.reshape(n * oh * ow, kh * kw * c), oh, ow


def make_bn(c, eps=1e-5):
    # eval-mode BatchNorm2d with default running stats (mean=0, var=1).
    return {'gamma': jnp.ones((c,), jnp.float32), 'beta': jnp.zeros((c,), jnp.float32),
            'mean': jnp.zeros((c,), jnp.float32), 'var': jnp.ones((c,), jnp.float32),
            'eps': eps}


def fold_conv(w, bias=None, bn=None):
    """Pre-fold BN/bias: (Kp, Cout) bf16 weights (K padded to 128) + (1,Cout) fp32 shift."""
    cout, cin, kh, kw = w.shape
    scale = jnp.ones((cout,), jnp.float32)
    shift = bias.astype(jnp.float32) if bias is not None else jnp.zeros((cout,), jnp.float32)
    if bn is not None:
        s = bn['gamma'] / jnp.sqrt(bn['var'] + bn['eps'])
        scale = scale * s
        shift = (shift - bn['mean']) * s + bn['beta']
    k = kh * kw * cin
    kp = _rup(k, 128)
    wmat = jnp.transpose(w, (2, 3, 1, 0)).reshape(k, cout)
    wmat = (wmat * scale[None, :]).astype(jnp.bfloat16)     # scale folded into weights
    wmat = jnp.pad(wmat, ((0, kp - k), (0, 0)))             # K padded once, at build time
    return {'wmat': wmat, 'shift': shift.reshape(1, cout).astype(jnp.float32),
            'kh': kh, 'kw': kw, 'k': k}


def _pad_k(col, kp):
    if col.shape[1] != kp:
        col = jnp.pad(col, ((0, 0), (0, kp - col.shape[1])))
    return col


def conv2d(x, cw, stride=1, padding=0, dilation=1, relu=False, residual=None):
    """x: NHWC, cw: prepared {'wmat','shift','kh','kw'}. Returns bf16 NHWC."""
    n = x.shape[0]
    kh, kw = cw['kh'], cw['kw']
    if kh == 1 and kw == 1:
        xs = x if stride == 1 else x[:, ::stride, ::stride, :]
        oh, ow = xs.shape[1], xs.shape[2]
        col = xs.reshape(n * oh * ow, xs.shape[-1]).astype(jnp.bfloat16)  # no im2col
    else:
        col, oh, ow = im2col(x.astype(jnp.bfloat16), kh, kw, stride, padding, dilation)
    col = _pad_k(col, cw['wmat'].shape[0])
    out = matmul_shift(col, cw['wmat'], cw['shift'], residual=residual, relu=relu)
    return out.reshape(n, oh, ow, cw['wmat'].shape[1])


def conv2d_jnp(x, w, b, stride=1, padding=0, dilation=1):
    """Plain-JAX conv for the tiny cout==1 layers (a 128-lane Pallas tile is ~99% padding)."""
    n = x.shape[0]
    cout, cin, kh, kw = w.shape
    col, oh, ow = im2col(x.astype(jnp.float32), kh, kw, stride, padding, dilation)
    wmat = jnp.transpose(w, (2, 3, 1, 0)).reshape(kh * kw * cin, cout).astype(jnp.float32)
    out = col @ wmat + b.astype(jnp.float32)[None, :]
    return out.reshape(n, oh, ow, cout)


# ----------------------------------------------------------------------------
# Pooling / resize glue (exact PyTorch semantics)
# ----------------------------------------------------------------------------
def max_pool_3x3_s2_p1(x):
    neg_inf = jnp.array(-jnp.inf, dtype=x.dtype)
    return lax.reduce_window(x, neg_inf, lax.max, (1, 3, 3, 1), (1, 2, 2, 1),
                             ((0, 0), (1, 1), (1, 1), (0, 0)))


def adaptive_avg_pool(x, out_size):
    n, h, w, c = x.shape
    xf = x.astype(jnp.float32)
    rows = []
    for i in range(out_size):
        h0, h1 = (i * h) // out_size, ((i + 1) * h + out_size - 1) // out_size
        cols = []
        for j in range(out_size):
            w0, w1 = (j * w) // out_size, ((j + 1) * w + out_size - 1) // out_size
            cols.append(jnp.mean(xf[:, h0:h1, w0:w1, :], axis=(1, 2)))
        rows.append(jnp.stack(cols, axis=1))
    return jnp.stack(rows, axis=1).astype(x.dtype)          # (n, out, out, c)


def _interp_matrix(out_size, in_size, align_corners):
    """Dense (out_size, in_size) 1-D bilinear interpolation matrix (PyTorch semantics)."""
    if align_corners:
        if out_size == 1:
            src = jnp.zeros((1,), jnp.float32)
        else:
            src = jnp.arange(out_size, dtype=jnp.float32) * ((in_size - 1) / (out_size - 1))
    else:
        src = (jnp.arange(out_size, dtype=jnp.float32) + 0.5) * (in_size / out_size) - 0.5
        src = jnp.maximum(src, 0.0)
    i0 = jnp.clip(jnp.floor(src).astype(jnp.int32), 0, in_size - 1)
    i1 = jnp.minimum(i0 + 1, in_size - 1)
    w = src - i0.astype(jnp.float32)
    return (jax.nn.one_hot(i0, in_size, dtype=jnp.float32) * (1.0 - w)[:, None]
            + jax.nn.one_hot(i1, in_size, dtype=jnp.float32) * w[:, None])


def interp_bilinear(x, out_h, out_w, align_corners):
    """Bilinear resize as two dense matmuls (MXU-friendly, no gathers)."""
    n, h, w, c = x.shape
    ry = _interp_matrix(out_h, h, align_corners)             # (out_h, h)
    rx = _interp_matrix(out_w, w, align_corners)             # (out_w, w)
    xf = x.astype(jnp.float32)
    y = jnp.einsum('oh,nhwc->nowc', ry, xf)
    y = jnp.einsum('pw,nowc->nopc', rx, y)
    return y.astype(x.dtype)


# ----------------------------------------------------------------------------
# Parameters (deterministic synthetic init; BN/bias pre-folded, pre-padded)
# ----------------------------------------------------------------------------
class PInit:
    def __init__(self, seed=0):
        self._key = jax.random.PRNGKey(seed)

    def _next(self):
        self._key, sub = jax.random.split(self._key)
        return sub

    def conv(self, cout, cin, kh, kw, std=0.05):
        return std * jax.random.normal(self._next(), (cout, cin, kh, kw), jnp.float32)

    def bias(self, c, std=0.01):
        return std * jax.random.normal(self._next(), (c,), jnp.float32)


FEATURE_CHANNELS = [64, 128, 256, 512]       # resnet18 / resnet34 branch
FPN_OUT = FEATURE_CHANNELS[0]
NUM_CLASSES = 1
# output_stride=16 -> layer4 dilated (stride 1, dilation 2), downsample stride 1.
LAYER_CFG = [
    dict(stride=1, dil=1, down=None),
    dict(stride=2, dil=1, down=2),
    dict(stride=2, dil=1, down=2),
    dict(stride=1, dil=2, down=1),
]


def build_params(seed=0):
    pi = PInit(seed)
    p = {}
    # --- ResNet-18 backbone (Conv+BN folded at build time) ---
    p['stem'] = fold_conv(pi.conv(64, 3, 7, 7), bn=make_bn(64))

    def block(cin, cout, down):
        b = {'conv1': fold_conv(pi.conv(cout, cin, 3, 3), bn=make_bn(cout)),
             'conv2': fold_conv(pi.conv(cout, cout, 3, 3), bn=make_bn(cout))}
        if down:
            b['down'] = fold_conv(pi.conv(cout, cin, 1, 1), bn=make_bn(cout))
        return b

    p['layers'] = [
        [block(64, 64, False), block(64, 64, False)],
        [block(64, 128, True), block(128, 128, False)],
        [block(128, 256, True), block(256, 256, False)],
        [block(256, 512, True), block(512, 512, False)],
    ]
    # --- PSPModule on 512 channels, bins [1,2,4,6] ---
    psp_out = 512 // 4
    p['psp_stages'] = [fold_conv(pi.conv(psp_out, 512, 1, 1), bn=make_bn(psp_out))
                       for _ in range(4)]
    p['psp_bneck'] = fold_conv(pi.conv(512, 512 + psp_out * 4, 3, 3), bn=make_bn(512))
    # --- FPN_fuse ---
    p['fpn_c1x1'] = [fold_conv(pi.conv(FPN_OUT, c, 1, 1), bias=pi.bias(FPN_OUT))
                     for c in FEATURE_CHANNELS[1:]]
    # PyTorch builds smooth_conv as [Conv2d(...)] * 3 -> SAME module 3x (shared weights)
    p['fpn_smooth'] = fold_conv(pi.conv(FPN_OUT, FPN_OUT, 3, 3), bias=pi.bias(FPN_OUT))
    p['fpn_fuse'] = fold_conv(pi.conv(FPN_OUT, 4 * FPN_OUT, 3, 3), bn=make_bn(FPN_OUT))
    # --- head + OutConv(Sigmoid): cout=1 -> plain-JAX path, keep raw weights ---
    p['head_w'] = pi.conv(NUM_CLASSES, FPN_OUT, 3, 3)
    p['head_b'] = pi.bias(NUM_CLASSES)
    p['outc_w'] = pi.conv(NUM_CLASSES, NUM_CLASSES, 1, 1)
    p['outc_b'] = pi.bias(NUM_CLASSES)
    return p


# ----------------------------------------------------------------------------
# Module forwards
# ----------------------------------------------------------------------------
def basic_block(x, blk, stride, dilation, down_stride):
    if down_stride is not None:
        identity = conv2d(x, blk['down'], stride=down_stride)   # 1x1 + BN (no relu)
    else:
        identity = x
    out = conv2d(x, blk['conv1'], stride=stride, padding=dilation, dilation=dilation,
                 relu=True)
    # conv2: residual add + final ReLU fused into the matmul epilogue.
    res = identity.reshape(-1, identity.shape[-1])
    return conv2d(out, blk['conv2'], stride=1, padding=dilation, dilation=dilation,
                  relu=True, residual=res)


def resnet18_backbone(x, p):
    y = conv2d(x, p['stem'], stride=2, padding=3, relu=True)
    y = max_pool_3x3_s2_p1(y)
    feats = []
    for cfg, layer in zip(LAYER_CFG, p['layers']):
        y = basic_block(y, layer[0], cfg['stride'], cfg['dil'], cfg['down'])
        y = basic_block(y, layer[1], 1, cfg['dil'], None)
        feats.append(y)
    return feats


def psp_module(feat, p):
    n, h, w, c = feat.shape
    pyramids = [feat]
    for bin_sz, st in zip([1, 2, 4, 6], p['psp_stages']):
        y = adaptive_avg_pool(feat, bin_sz)
        y = conv2d(y, st, relu=True)             # 1x1, bias=False (tiny -> jnp fallback)
        pyramids.append(interp_bilinear(y, h, w, align_corners=True))
    y = jnp.concatenate(pyramids, axis=-1)
    y = conv2d(y, p['psp_bneck'], padding=1, relu=True)
    # TODO(synk): nn.Dropout2d(0.1) is stochastic in train mode; identity here (eval mode).
    return y


def fpn_fuse(features, p):
    feats = list(features)
    for idx in range(1, 4):
        feats[idx] = conv2d(feats[idx], p['fpn_c1x1'][idx - 1])        # 1x1, no im2col
    P = []
    for i in reversed(range(1, 4)):                # up_and_add(features[i], features[i-1])
        tgt = feats[i - 1]
        up = interp_bilinear(feats[i], tgt.shape[1], tgt.shape[2], align_corners=True)
        P.append((up + tgt).astype(jnp.bfloat16))
    # Shared smooth conv: all three maps batched into ONE matmul (weights DMAed once).
    sm = p['fpn_smooth']
    kp = sm['wmat'].shape[0]
    cols, metas = [], []
    for t in P:
        col, oh, ow = im2col(t.astype(jnp.bfloat16), 3, 3, 1, 1, 1)
        cols.append(_pad_k(col, kp))
        metas.append((t.shape[0], oh, ow, col.shape[0]))
    smooth_out = matmul_shift(jnp.concatenate(cols, axis=0), sm['wmat'], sm['shift'])
    P_s, off = [], 0
    for nb, oh, ow, rows in metas:
        P_s.append(smooth_out[off:off + rows].reshape(nb, oh, ow, -1))
        off += rows
    P = list(reversed(P_s))
    P.append(feats[-1])
    H, W = P[0].shape[1], P[0].shape[2]
    P = [P[0]] + [interp_bilinear(f, H, W, align_corners=True) for f in P[1:]]
    y = jnp.concatenate(P, axis=-1)
    y = conv2d(y, p['fpn_fuse'], padding=1, relu=True)
    return y


def upernet_forward(x_nchw, p):
    x = jnp.transpose(x_nchw, (0, 2, 3, 1)).astype(jnp.bfloat16)     # NCHW -> NHWC bf16
    in_h, in_w = x.shape[1], x.shape[2]
    features = resnet18_backbone(x, p)
    features[-1] = psp_module(features[-1], p)
    y = fpn_fuse(features, p)
    y = conv2d_jnp(y, p['head_w'], p['head_b'], padding=1)           # cout=1: plain JAX
    y = interp_bilinear(y, in_h, in_w, align_corners=False)          # F.interpolate default
    y = conv2d_jnp(y, p['outc_w'], p['outc_b'])                      # 1x1, cout=1
    logits = jax.nn.sigmoid(y.astype(jnp.float32))                   # activation=nn.Sigmoid()
    return jnp.transpose(logits, (0, 3, 1, 2))                       # NHWC -> NCHW


# TODO(synk): convnext / efficientnet backbone variants and pretrained-checkpoint
# loading are not translated; BatchNorm uses eval-mode running statistics.

if __name__ == "__main__":
    key = jax.random.PRNGKey(0)
    x = jax.random.normal(key, (2, 3, 32, 32), dtype=jnp.float32)    # NCHW input
    params = build_params(seed=0)
    fwd = jax.jit(lambda inp: upernet_forward(inp, params))
    out = fwd(x)
    out = jax.block_until_ready(out)
    assert out.shape == (2, 1, 32, 32), out.shape
    assert bool(jnp.all(jnp.isfinite(out)))
    print("KERNEL_OK")
</pallas_src>

<mosaic_0001>
module attributes {stable_mosaic.version = 11 : i64} {
  func.func @_mm_kernel(%arg0: i32, %arg1: memref<512x256xbf16, #tpu.memory_space<vmem>>, %arg2: memref<256x64xbf16, #tpu.memory_space<vmem>>, %arg3: memref<1x64xf32, #tpu.memory_space<vmem>>, %arg4: memref<512x64xbf16, #tpu.memory_space<vmem>>) attributes {dimension_semantics = [#tpu.dimension_semantics<parallel>], iteration_bounds = array<i64: 1>, scalar_prefetch = 0 : i64, scratch_operands = 0 : i64, tpu.core_type = #tpu.core_type<tc>, window_params = [{transform_indices = @transform_0, window_bounds = array<i64: 512, 256>}, {pipeline_mode = #tpu.pipeline_mode<synchronous>, transform_indices = @transform_1, window_bounds = array<i64: 256, 64>}, {pipeline_mode = #tpu.pipeline_mode<synchronous>, transform_indices = @transform_2, window_bounds = array<i64: 1, 64>}, {transform_indices = @transform_3, window_bounds = array<i64: 512, 64>}]} {
    %c0 = arith.constant 0 : index
    %c0_0 = arith.constant 0 : index
    %0 = vector.load %arg1[%c0, %c0_0] : memref<512x256xbf16, #tpu.memory_space<vmem>>, vector<512x256xbf16>
    %c0_1 = arith.constant 0 : index
    %c0_2 = arith.constant 0 : index
    %1 = vector.load %arg2[%c0_1, %c0_2] : memref<256x64xbf16, #tpu.memory_space<vmem>>, vector<256x64xbf16>
    %cst = arith.constant dense<0.000000e+00> : vector<512x64xf32>
    %2 = tpu.matmul %0, %1, %cst {dimension_numbers = #tpu.dot_dimension_numbers<[1], [0], [0], [1], [0, 0, 1, 1], [], []>} : vector<512x256xbf16>, vector<256x64xbf16>, vector<512x64xf32> -> vector<512x64xf32>
    %c0_3 = arith.constant 0 : index
    %c0_4 = arith.constant 0 : index
    %3 = vector.load %arg3[%c0_3, %c0_4] : memref<1x64xf32, #tpu.memory_space<vmem>>, vector<1x64xf32>
    %4 = vector.broadcast %3 : vector<1x64xf32> to vector<512x64xf32>
    %5 = arith.addf %2, %4 : vector<512x64xf32>
    %cst_5 = arith.constant 0.000000e+00 : f32
    %6 = vector.broadcast %cst_5 : f32 to vector<512x64xf32>
    %7 = arith.maximumf %5, %6 : vector<512x64xf32>
    %8 = arith.truncf %7 : vector<512x64xf32> to vector<512x64xbf16>
    %c0_6 = arith.constant 0 : index
    %c0_7 = arith.constant 0 : index
    %9 = vector.load %arg4[%c0_6, %c0_7] : memref<512x64xbf16, #tpu.memory_space<vmem>>, vector<512x64xbf16>
    tpu.vector_store %arg4[%c0_6, %c0_7], %8 {strides = array<i32>} : memref<512x64xbf16, #tpu.memory_space<vmem>>, vector<512x64xbf16>,
    return
  }
  func.func @transform_0(%arg0: i32) -> (i32, i32) {
    %c0_i32 = arith.constant 0 : i32
    %c0_i32_0 = arith.constant 0 : i32
    return %arg0, %c0_i32 : i32, i32
  }
  func.func @transform_1(%arg0: i32) -> (i32, i32) {
    %c0_i32 = arith.constant 0 : i32
    %c0_i32_0 = arith.constant 0 : i32
    %c0_i32_1 = arith.constant 0 : i32
    return %c0_i32, %c0_i32_0 : i32, i32
  }
  func.func @transform_2(%arg0: i32) -> (i32, i32) {
    %c0_i32 = arith.constant 0 : i32
    %c0_i32_0 = arith.constant 0 : i32
    %c0_i32_1 = arith.constant 0 : i32
    return %c0_i32, %c0_i32_0 : i32, i32
  }
  func.func @transform_3(%arg0: i32) -> (i32, i32) {
    %c0_i32 = arith.constant 0 : i32
    %c0_i32_0 = arith.constant 0 : i32
    return %arg0, %c0_i32 : i32, i32
  }
}

module attributes {stable_mosaic.version = 11 : i64} {
  func.func @_mm_kernel(%arg0: i32, %arg1: memref<128x640xbf16, #tpu.memory_space<vmem>>, %arg2: memref<640x64xbf16, #tpu.memory_space<vmem>>, %arg3: memref<1x64xf32, #tpu.memory_space<vmem>>, %arg4: memref<128x64xbf16, #tpu.memory_space<vmem>>) attributes {dimension_semantics = [#tpu.dimension_semantics<parallel>], iteration_bounds = array<i64: 1>, scalar_prefetch = 0 : i64, scratch_operands = 0 : i64, tpu.core_type = #tpu.core_type<tc>, window_params = [{transform_indices = @transform_0, window_bounds = array<i64: 128, 640>}, {pipeline_mode = #tpu.pipeline_mode<synchronous>, transform_indices = @transform_1, window_bounds = array<i64: 640, 64>}, {pipeline_mode = #tpu.pipeline_mode<synchronous>, transform_indices = @transform_2, window_bounds = array<i64: 1, 64>}, {transform_indices = @transform_3, window_bounds = array<i64: 128, 64>}]} {
    %c0 = arith.constant 0 : index
    %c0_0 = arith.constant 0 : index
    %0 = vector.load %arg1[%c0, %c0_0] : memref<128x640xbf16, #tpu.memory_space<vmem>>, vector<128x640xbf16>
    %c0_1 = arith.constant 0 : index
    %c0_2 = arith.constant 0 : index
    %1 = vector.load %arg2[%c0_1, %c0_2] : memref<640x64xbf16, #tpu.memory_space<vmem>>, vector<640x64xbf16>
    %cst = arith.constant dense<0.000000e+00> : vector<128x64xf32>
    %2 = tpu.matmul %0, %1, %cst {dimension_numbers = #tpu.dot_dimension_numbers<[1], [0], [0], [1], [0, 0, 1, 1], [], []>} : vector<128x640xbf16>, vector<640x64xbf16>, vector<128x64xf32> -> vector<128x64xf32>
    %c0_3 = arith.constant 0 : index
    %c0_4 = arith.constant 0 : index
    %3 = vector.load %arg3[%c0_3, %c0_4] : memref<1x64xf32, #tpu.memory_space<vmem>>, vector<1x64xf32>
    %4 = vector.broadcast %3 : vector<1x64xf32> to vector<128x64xf32>
    %5 = arith.addf %2, %4 : vector<128x64xf32>
    %cst_5 = arith.constant 0.000000e+00 : f32
    %6 = vector.broadcast %cst_5 : f32 to vector<128x64xf32>
    %7 = arith.maximumf %5, %6 : vector<128x64xf32>
    %8 = arith.truncf %7 : vector<128x64xf32> to vector<128x64xbf16>
    %c0_6 = arith.constant 0 : index
    %c0_7 = arith.constant 0 : index
    %9 = vector.load %arg4[%c0_6, %c0_7] : memref<128x64xbf16, #tpu.memory_space<vmem>>, vector<128x64xbf16>
    tpu.vector_store %arg4[%c0_6, %c0_7], %8 {strides = array<i32>} : memref<128x64xbf16, #tpu.memory_space<vmem>>, vector<128x64xbf16>,
    return
  }
  func.func @transform_0(%arg0: i32) -> (i32, i32) {
    %c0_i32 = arith.constant 0 : i32
    %c0_i32_0 = arith.constant 0 : i32
    return %arg0, %c0_i32 : i32, i32
  }
  func.func @transform_1(%arg0: i32) -> (i32, i32) {
    %c0_i32 = arith.constant 0 : i32
    %c0_i32_0 = arith.constant 0 : i32
    %c0_i32_1 = arith.constant 0 : i32
    return %c0_i32, %c0_i32_0 : i32, i32
  }
  func.func @transform_2(%arg0: i32) -> (i32, i32) {
    %c0_i32 = arith.constant 0 : i32
    %c0_i32_0 = arith.constant 0 : i32
    %c0_i32_1 = arith.constant 0 : i32
    return %c0_i32, %c0_i32_0 : i32, i32
  }
  func.func @transform_3(%arg0: i32) -> (i32, i32) {
    %c0_i32 = arith.constant 0 : i32
    %c0_i32_0 = arith.constant 0 : i32
    return %arg0, %c0_i32 : i32, i32
  }
}

module attributes {stable_mosaic.version = 11 : i64} {
  func.func @_mm_res_kernel(%arg0: i32, %arg1: memref<128x640xbf16, #tpu.memory_space<vmem>>, %arg2: memref<640x64xbf16, #tpu.memory_space<vmem>>, %arg3: memref<1x64xf32, #tpu.memory_space<vmem>>, %arg4: memref<128x64xbf16, #tpu.memory_space<vmem>>, %arg5: memref<128x64xbf16, #tpu.memory_space<vmem>>) attributes {dimension_semantics = [#tpu.dimension_semantics<parallel>], iteration_bounds = array<i64: 1>, scalar_prefetch = 0 : i64, scratch_operands = 0 : i64, tpu.core_type = #tpu.core_type<tc>, window_params = [{transform_indices = @transform_0, window_bounds = array<i64: 128, 640>}, {pipeline_mode = #tpu.pipeline_mode<synchronous>, transform_indices = @transform_1, window_bounds = array<i64: 640, 64>}, {pipeline_mode = #tpu.pipeline_mode<synchronous>, transform_indices = @transform_2, window_bounds = array<i64: 1, 64>}, {transform_indices = @transform_3, window_bounds = array<i64: 128, 64>}, {transform_indices = @transform_4, window_bounds = array<i64: 128, 64>}]} {
    %c0 = arith.constant 0 : index
    %c0_0 = arith.constant 0 : index
    %0 = vector.load %arg1[%c0, %c0_0] : memref<128x640xbf16, #tpu.memory_space<vmem>>, vector<128x640xbf16>
    %c0_1 = arith.constant 0 : index
    %c0_2 = arith.constant 0 : index
    %1 = vector.load %arg2[%c0_1, %c0_2] : memref<640x64xbf16, #tpu.memory_space<vmem>>, vector<640x64xbf16>
    %cst = arith.constant dense<0.000000e+00> : vector<128x64xf32>
    %2 = tpu.matmul %0, %1, %cst {dimension_numbers = #tpu.dot_dimension_numbers<[1], [0], [0], [1], [0, 0, 1, 1], [], []>} : vector<128x640xbf16>, vector<640x64xbf16>, vector<128x64xf32> -> vector<128x64xf32>
    %c0_3 = arith.constant 0 : index
    %c0_4 = arith.constant 0 : index
    %3 = vector.load %arg3[%c0_3, %c0_4] : memref<1x64xf32, #tpu.memory_space<vmem>>, vector<1x64xf32>
    %4 = vector.broadcast %3 : vector<1x64xf32> to vector<128x64xf32>
    %5 = arith.addf %2, %4 : vector<128x64xf32>
    %c0_5 = arith.constant 0 : index
    %c0_6 = arith.constant 0 : index
    %6 = vector.load %arg4[%c0_5, %c0_6] : memref<128x64xbf16, #tpu.memory_space<vmem>>, vector<128x64xbf16>
    %7 = arith.extf %6 : vector<128x64xbf16> to vector<128x64xf32>
    %8 = arith.addf %5, %7 : vector<128x64xf32>
    %cst_7 = arith.constant 0.000000e+00 : f32
    %9 = vector.broadcast %cst_7 : f32 to vector<128x64xf32>
    %10 = arith.maximumf %8, %9 : vector<128x64xf32>
    %11 = arith.truncf %10 : vector<128x64xf32> to vector<128x64xbf16>
    %c0_8 = arith.constant 0 : index
    %c0_9 = arith.constant 0 : index
    %12 = vector.load %arg5[%c0_8, %c0_9] : memref<128x64xbf16, #tpu.memory_space<vmem>>, vector<128x64xbf16>
    tpu.vector_store %arg5[%c0_8, %c0_9], %11 {strides = array<i32>} : memref<128x64xbf16, #tpu.memory_space<vmem>>, vector<128x64xbf16>,
    return
  }
  func.func @transform_0(%arg0: i32) -> (i32, i32) {
    %c0_i32 = arith.constant 0 : i32
    %c0_i32_0 = arith.constant 0 : i32
    return %arg0, %c0_i32 : i32, i32
  }
  func.func @transform_1(%arg0: i32) -> (i32, i32) {
    %c0_i32 = arith.constant 0 : i32
    %c0_i32_0 = arith.constant 0 : i32
    %c0_i32_1 = arith.constant 0 : i32
    return %c0_i32, %c0_i32_0 : i32, i32
  }
  func.func @transform_2(%arg0: i32) -> (i32, i32) {
    %c0_i32 = arith.constant 0 : i32
    %c0_i32_0 = arith.constant 0 : i32
    %c0_i32_1 = arith.constant 0 : i32
    return %c0_i32, %c0_i32_0 : i32, i32
  }
  func.func @transform_3(%arg0: i32) -> (i32, i32) {
    %c0_i32 = arith.constant 0 : i32
    %c0_i32_0 = arith.constant 0 : i32
    return %arg0, %c0_i32 : i32, i32
  }
  func.func @transform_4(%arg0: i32) -> (i32, i32) {
    %c0_i32 = arith.constant 0 : i32
    %c0_i32_0 = arith.constant 0 : i32
    return %arg0, %c0_i32 : i32, i32
  }
}

module attributes {stable_mosaic.version = 11 : i64} {
  func.func @_mm_kernel(%arg0: i32, %arg1: memref<168x640xbf16, #tpu.memory_space<vmem>>, %arg2: memref<640x64xbf16, #tpu.memory_space<vmem>>, %arg3: memref<1x64xf32, #tpu.memory_space<vmem>>, %arg4: memref<168x64xbf16, #tpu.memory_space<vmem>>) attributes {dimension_semantics = [#tpu.dimension_semantics<parallel>], iteration_bounds = array<i64: 1>, scalar_prefetch = 0 : i64, scratch_operands = 0 : i64, tpu.core_type = #tpu.core_type<tc>, window_params = [{transform_indices = @transform_0, window_bounds = array<i64: 168, 640>}, {pipeline_mode = #tpu.pipeline_mode<synchronous>, transform_indices = @transform_1, window_bounds = array<i64: 640, 64>}, {pipeline_mode = #tpu.pipeline_mode<synchronous>, transform_indices = @transform_2, window_bounds = array<i64: 1, 64>}, {transform_indices = @transform_3, window_bounds = array<i64: 168, 64>}]} {
    %c0 = arith.constant 0 : index
    %c0_0 = arith.constant 0 : index
    %0 = vector.load %arg1[%c0, %c0_0] : memref<168x640xbf16, #tpu.memory_space<vmem>>, vector<168x640xbf16>
    %c0_1 = arith.constant 0 : index
    %c0_2 = arith.constant 0 : index
    %1 = vector.load %arg2[%c0_1, %c0_2] : memref<640x64xbf16, #tpu.memory_space<vmem>>, vector<640x64xbf16>
    %cst = arith.constant dense<0.000000e+00> : vector<168x64xf32>
    %2 = tpu.matmul %0, %1, %cst {dimension_numbers = #tpu.dot_dimension_numbers<[1], [0], [0], [1], [0, 0, 1, 1], [], []>} : vector<168x640xbf16>, vector<640x64xbf16>, vector<168x64xf32> -> vector<168x64xf32>
    %c0_3 = arith.constant 0 : index
    %c0_4 = arith.constant 0 : index
    %3 = vector.load %arg3[%c0_3, %c0_4] : memref<1x64xf32, #tpu.memory_space<vmem>>, vector<1x64xf32>
    %4 = vector.broadcast %3 : vector<1x64xf32> to vector<168x64xf32>
    %5 = arith.addf %2, %4 : vector<168x64xf32>
    %6 = arith.truncf %5 : vector<168x64xf32> to vector<168x64xbf16>
    %c0_5 = arith.constant 0 : index
    %c0_6 = arith.constant 0 : index
    %7 = vector.load %arg4[%c0_5, %c0_6] : memref<168x64xbf16, #tpu.memory_space<vmem>>, vector<168x64xbf16>
    tpu.vector_store %arg4[%c0_5, %c0_6], %6 {strides = array<i32>} : memref<168x64xbf16, #tpu.memory_space<vmem>>, vector<168x64xbf16>,
    return
  }
  func.func @transform_0(%arg0: i32) -> (i32, i32) {
    %c0_i32 = arith.constant 0 : i32
    %c0_i32_0 = arith.constant 0 : i32
    return %arg0, %c0_i32 : i32, i32
  }
  func.func @transform_1(%arg0: i32) -> (i32, i32) {
    %c0_i32 = arith.constant 0 : i32
    %c0_i32_0 = arith.constant 0 : i32
    %c0_i32_1 = arith.constant 0 : i32
    return %c0_i32, %c0_i32_0 : i32, i32
  }
  func.func @transform_2(%arg0: i32) -> (i32, i32) {
    %c0_i32 = arith.constant 0 : i32
    %c0_i32_0 = arith.constant 0 : i32
    %c0_i32_1 = arith.constant 0 : i32
    return %c0_i32, %c0_i32_0 : i32, i32
  }
  func.func @transform_3(%arg0: i32) -> (i32, i32) {
    %c0_i32 = arith.constant 0 : i32
    %c0_i32_0 = arith.constant 0 : i32
    return %arg0, %c0_i32 : i32, i32
  }
}

module attributes {stable_mosaic.version = 11 : i64} {
  func.func @_mm_kernel(%arg0: i32, %arg1: memref<128x2304xbf16, #tpu.memory_space<vmem>>, %arg2: memref<2304x64xbf16, #tpu.memory_space<vmem>>, %arg3: memref<1x64xf32, #tpu.memory_space<vmem>>, %arg4: memref<128x64xbf16, #tpu.memory_space<vmem>>) attributes {dimension_semantics = [#tpu.dimension_semantics<parallel>], iteration_bounds = array<i64: 1>, scalar_prefetch = 0 : i64, scratch_operands = 0 : i64, tpu.core_type = #tpu.core_type<tc>, window_params = [{transform_indices = @transform_0, window_bounds = array<i64: 128, 2304>}, {pipeline_mode = #tpu.pipeline_mode<synchronous>, transform_indices = @transform_1, window_bounds = array<i64: 2304, 64>}, {pipeline_mode = #tpu.pipeline_mode<synchronous>, transform_indices = @transform_2, window_bounds = array<i64: 1, 64>}, {transform_indices = @transform_3, window_bounds = array<i64: 128, 64>}]} {
    %c0 = arith.constant 0 : index
    %c0_0 = arith.constant 0 : index
    %0 = vector.load %arg1[%c0, %c0_0] : memref<128x2304xbf16, #tpu.memory_space<vmem>>, vector<128x2304xbf16>
    %c0_1 = arith.constant 0 : index
    %c0_2 = arith.constant 0 : index
    %1 = vector.load %arg2[%c0_1, %c0_2] : memref<2304x64xbf16, #tpu.memory_space<vmem>>, vector<2304x64xbf16>
    %cst = arith.constant dense<0.000000e+00> : vector<128x64xf32>
    %2 = tpu.matmul %0, %1, %cst {dimension_numbers = #tpu.dot_dimension_numbers<[1], [0], [0], [1], [0, 0, 1, 1], [], []>} : vector<128x2304xbf16>, vector<2304x64xbf16>, vector<128x64xf32> -> vector<128x64xf32>
    %c0_3 = arith.constant 0 : index
    %c0_4 = arith.constant 0 : index
    %3 = vector.load %arg3[%c0_3, %c0_4] : memref<1x64xf32, #tpu.memory_space<vmem>>, vector<1x64xf32>
    %4 = vector.broadcast %3 : vector<1x64xf32> to vector<128x64xf32>
    %5 = arith.addf %2, %4 : vector<128x64xf32>
    %cst_5 = arith.constant 0.000000e+00 : f32
    %6 = vector.broadcast %cst_5 : f32 to vector<128x64xf32>
    %7 = arith.maximumf %5, %6 : vector<128x64xf32>
    %8 = arith.truncf %7 : vector<128x64xf32> to vector<128x64xbf16>
    %c0_6 = arith.constant 0 : index
    %c0_7 = arith.constant 0 : index
    %9 = vector.load %arg4[%c0_6, %c0_7] : memref<128x64xbf16, #tpu.memory_space<vmem>>, vector<128x64xbf16>
    tpu.vector_store %arg4[%c0_6, %c0_7], %8 {strides = array<i32>} : memref<128x64xbf16, #tpu.memory_space<vmem>>, vector<128x64xbf16>,
    return
  }
  func.func @transform_0(%arg0: i32) -> (i32, i32) {
    %c0_i32 = arith.constant 0 : i32
    %c0_i32_0 = arith.constant 0 : i32
    return %arg0, %c0_i32 : i32, i32
  }
  func.func @transform_1(%arg0: i32) -> (i32, i32) {
    %c0_i32 = arith.constant 0 : i32
    %c0_i32_0 = arith.constant 0 : i32
    %c0_i32_1 = arith.constant 0 : i32
    return %c0_i32, %c0_i32_0 : i32, i32
  }
  func.func @transform_2(%arg0: i32) -> (i32, i32) {
    %c0_i32 = arith.constant 0 : i32
    %c0_i32_0 = arith.constant 0 : i32
    %c0_i32_1 = arith.constant 0 : i32
    return %c0_i32, %c0_i32_0 : i32, i32
  }
  func.func @transform_3(%arg0: i32) -> (i32, i32) {
    %c0_i32 = arith.constant 0 : i32
    %c0_i32_0 = arith.constant 0 : i32
    return %arg0, %c0_i32 : i32, i32
  }
}

</mosaic_0001>

<bundles_post_ra>
// kernel: _lambda_.7
= control target key start
LH: loop header
LB: loop body
LE: loop exit
PB: predicated region body
PF: predicated region fallthrough
CT: control target
= control target key end

     0   :  { %vm996_vm0 = vcmask 519168   ;;  %s2254_s1 = inlined_call_operand.vmem [shape: bf16[256,64], index: 1, kind: input, shape index: {}]   ;;  %s2255_s2 = inlined_call_operand.vmem [shape: f32[1,64], index: 2, kind: input, shape index: {}]   ;;  %s2256_s0 = inlined_call_operand.vmem [shape: bf16[512,256], index: 0, kind: input, shape index: {}]   ;;  %s2257_s3 = inlined_call_operand.vmem [shape: bf16[512,64], index: 3, kind: output, shape index: {}]  }
   0x1   :  { %v1456_v0 = vld [vmem:[%s2254_s1 + $0x38] sm:$0xff]  ;;  %v1455_v2 = vld [vmem:[%s2254_s1 + $0x30] sm:$0xff]  ;;  %v1454_v4 = vld [vmem:[%s2254_s1 + $0x28] sm:$0xff] }
   0x2   :  { %v1464_v1 = vld [vmem:[%s2254_s1 + $0x78] sm:$0xff]  ;;  %530 = vmatpush.bf16.msra.mxu0 %v1456_v0  ;;  %1465 = vmatpush.bf16.msra.mxu2 %v1456_v0  ;;  %v1463_v3 = vld [vmem:[%s2254_s1 + $0x70] sm:$0xff]  ;;  %v1462_v5 = vld [vmem:[%s2254_s1 + $0x68] sm:$0xff] }
   0x3   :  { %699 = vmatpush.bf16.msra.mxu1 %v1464_v1  ;;  %1473 = vmatpush.bf16.msra.mxu3 %v1464_v1  ;;  %v1453_v6 = vld [vmem:[%s2254_s1 + $0x20] sm:$0xff]  ;;  %v1452_v8 = vld [vmem:[%s2254_s1 + $0x18] sm:$0xff]  ;;  %v1451_v10 = vld [vmem:[%s2254_s1 + $0x10] sm:$0xff] }
   0x4   :  { %v1461_v7 = vld [vmem:[%s2254_s1 + $0x60] sm:$0xff]  ;;  %v1460_v9 = vld [vmem:[%s2254_s1 + $0x58] sm:$0xff]  ;;  %v1459_v11 = vld [vmem:[%s2254_s1 + $0x50] sm:$0xff] }
   0x5   :  { %v1450_v12 = vld [vmem:[%s2254_s1 + $0x8] sm:$0xff]  ;;  %v1449_v14 = vld [vmem:[%s2254_s1] sm:$0xff]  ;;  %v1075_v28 = vld [vmem:[%s2256_s0 + $0x10] sm:$0xf] }
   0x6   :  { %531 = vmatpush.bf16.msra.mxu0 %v1455_v2  ;;  %1466 = vmatpush.bf16.msra.mxu2 %v1455_v2  ;;  %v1458_v13 = vld [vmem:[%s2254_s1 + $0x48] sm:$0xff]  ;;  %v1457_v15 = vld [vmem:[%s2254_s1 + $0x40] sm:$0xff]  ;;  %v1388_v29 = vld [vmem:[%s2256_s0 + $0x14] sm:$0xf0] }
   0x7   :  { %700 = vmatpush.bf16.msra.mxu1 %v1463_v3  ;;  %1474 = vmatpush.bf16.msra.mxu3 %v1463_v3  ;;  %v1067_v16 = vld [vmem:[%s2256_s0] sm:$0xf]  ;;  %v1386_v17 = vld [vmem:[%s2256_s0 + $0x4] sm:$0xf0]  ;;  %v1385_v20 = vld [vmem:[%s2256_s0 + $0x4] sm:$0xf]  ;;  %v1076_v36 = vor.u32 %v1388_v29, %v1075_v28 }
   0x8   :  { %v1195_v18 = vld [vmem:[%s2256_s0 + $0x100] sm:$0xf]  ;;  %v1418_v19 = vld [vmem:[%s2256_s0 + $0x104] sm:$0xf0]  ;;  %v1069_v21 = vld [vmem:[%s2256_s0 + $0x8] sm:$0xf0]  ;;  %v1068_v24 = vor.u32 %v1386_v17, %v1067_v16 }
   0x9   :  { %v1417_v22 = vld [vmem:[%s2256_s0 + $0x104] sm:$0xf]  ;;  %v1197_v23 = vld [vmem:[%s2256_s0 + $0x108] sm:$0xf0]  ;;  %v1196_v25 = vor.u32 %v1418_v19, %v1195_v18  ;;  %v1072_v26 = vor.u32 %v1385_v20, %v1069_v21  ;;  %v1203_v30 = vld [vmem:[%s2256_s0 + $0x110] sm:$0xf] }
   0xa   :  { %532 = vmatpush.bf16.msra.mxu0 %v1454_v4  ;;  %1467 = vmatpush.bf16.msra.mxu2 %v1454_v4  ;;  %v1200_v27 = vor.u32 %v1417_v22, %v1197_v23  ;;  %v1420_v31 = vld [vmem:[%s2256_s0 + $0x114] sm:$0xf0]  ;;  %v1387_v32 = vld [vmem:[%s2256_s0 + $0x14] sm:$0xf]  ;;  %v1077_v33 = vld [vmem:[%s2256_s0 + $0x18] sm:$0xf0] }
   0xb   :  { %701 = vmatpush.bf16.msra.mxu1 %v1462_v5  ;;  %1475 = vmatpush.bf16.msra.mxu3 %v1462_v5  ;;  %v1419_v34 = vld [vmem:[%s2256_s0 + $0x114] sm:$0xf]  ;;  %v1205_v35 = vld [vmem:[%s2256_s0 + $0x118] sm:$0xf0]  ;;  %v1204_v37 = vor.u32 %v1420_v31, %v1203_v30  ;;  %v1080_v38 = vor.u32 %v1387_v32, %v1077_v33  ;;  %v1083_v40 = vld [vmem:[%s2256_s0 + $0x20] sm:$0xf] }
   0xc   :  { %v1208_v39 = vor.u32 %v1419_v34, %v1205_v35  ;;  %v1390_v41 = vld [vmem:[%s2256_s0 + $0x24] sm:$0xf0]  ;;  %v1211_v42 = vld [vmem:[%s2256_s0 + $0x120] sm:$0xf]  ;;  %v1389_v44 = vld [vmem:[%s2256_s0 + $0x24] sm:$0xf] }
   0xd   :  { %v1422_v43 = vld [vmem:[%s2256_s0 + $0x124] sm:$0xf0]  ;;  %v1085_v45 = vld [vmem:[%s2256_s0 + $0x28] sm:$0xf0]  ;;  %v1421_v46 = vld [vmem:[%s2256_s0 + $0x124] sm:$0xf]  ;;  %v1084_v48 = vor.u32 %v1390_v41, %v1083_v40 }
   0xe   :  { %533 = vmatpush.bf16.msra.mxu0 %v1453_v6  ;;  %1468 = vmatpush.bf16.msra.mxu2 %v1453_v6  ;;  %v1213_v47 = vld [vmem:[%s2256_s0 + $0x128] sm:$0xf0]  ;;  %v1212_v49 = vor.u32 %v1422_v43, %v1211_v42  ;;  %v1088_v50 = vor.u32 %v1389_v44, %v1085_v45  ;;  %v1091_v52 = vld [vmem:[%s2256_s0 + $0x30] sm:$0xf]  ;;  %v1392_v53 = vld [vmem:[%s2256_s0 + $0x34] sm:$0xf0] }
   0xf   :  { %702 = vmatpush.bf16.msra.mxu1 %v1461_v7  ;;  %1476 = vmatpush.bf16.msra.mxu3 %v1461_v7  ;;  %v1216_v51 = vor.u32 %v1421_v46, %v1213_v47  ;;  %v1219_v54 = vld [vmem:[%s2256_s0 + $0x130] sm:$0xf]  ;;  %v1424_v55 = vld [vmem:[%s2256_s0 + $0x134] sm:$0xf0]  ;;  %v1391_v56 = vld [vmem:[%s2256_s0 + $0x34] sm:$0xf]  ;;  %v1092_v60 = vor.u32 %v1392_v53, %v1091_v52 }
  0x10   :  { %v1093_v57 = vld [vmem:[%s2256_s0 + $0x38] sm:$0xf0]  ;;  %v1423_v58 = vld [vmem:[%s2256_s0 + $0x134] sm:$0xf]  ;;  %v1220_v61 = vor.u32 %v1424_v55, %v1219_v54  ;;  %v1099_v0 = vld [vmem:[%s2256_s0 + $0x40] sm:$0xf] }
  0x11   :  { %v1221_v59 = vld [vmem:[%s2256_s0 + $0x138] sm:$0xf0]  ;;  %v1096_v62 = vor.u32 %v1391_v56, %v1093_v57  ;;  %v1394_v1 = vld [vmem:[%s2256_s0 + $0x44] sm:$0xf0]  ;;  %v1227_v2 = vld [vmem:[%s2256_s0 + $0x140] sm:$0xf] }
  0x12   :  { %534 = vmatpush.bf16.msra.mxu0 %v1452_v8  ;;  %1469 = vmatpush.bf16.msra.mxu2 %v1452_v8  ;;  %v1224_v63 = vor.u32 %v1423_v58, %v1221_v59  ;;  %v1426_v3 = vld [vmem:[%s2256_s0 + $0x144] sm:$0xf0]  ;;  %v1393_v4 = vld [vmem:[%s2256_s0 + $0x44] sm:$0xf]  ;;  %v1101_v5 = vld [vmem:[%s2256_s0 + $0x48] sm:$0xf0]  ;;  %v1100_v8 = vor.u32 %v1394_v1, %v1099_v0 }
  0x13   :  { %703 = vmatpush.bf16.msra.mxu1 %v1460_v9  ;;  %1477 = vmatpush.bf16.msra.mxu3 %v1460_v9  ;;  %v1425_v6 = vld [vmem:[%s2256_s0 + $0x144] sm:$0xf]  ;;  %v1229_v7 = vld [vmem:[%s2256_s0 + $0x148] sm:$0xf0]  ;;  %v1228_v9 = vor.u32 %v1426_v3, %v1227_v2  ;;  %v1395_v16 = vld [vmem:[%s2256_s0 + $0x54] sm:$0xf] }
  0x14   :  { %v1109_v17 = vld [vmem:[%s2256_s0 + $0x58] sm:$0xf0]  ;;  %v1427_v18 = vld [vmem:[%s2256_s0 + $0x154] sm:$0xf]  ;;  %v1397_v28 = vld [vmem:[%s2256_s0 + $0x64] sm:$0xf] }
  0x15   :  { %v1237_v19 = vld [vmem:[%s2256_s0 + $0x158] sm:$0xf0]  ;;  %v1112_v22 = vor.u32 %v1395_v16, %v1109_v17  ;;  %v1117_v29 = vld [vmem:[%s2256_s0 + $0x68] sm:$0xf0]  ;;  %v1429_v30 = vld [vmem:[%s2256_s0 + $0x164] sm:$0xf] }
  0x16   :  { %535 = vmatpush.bf16.msra.mxu0 %v1451_v10  ;;  %1470 = vmatpush.bf16.msra.mxu2 %v1451_v10  ;;  %v1104_v10 = vor.u32 %v1393_v4, %v1101_v5  ;;  %v1240_v23 = vor.u32 %v1427_v18, %v1237_v19  ;;  %v1245_v31 = vld [vmem:[%s2256_s0 + $0x168] sm:$0xf0]  ;;  %v1120_v34 = vor.u32 %v1397_v28, %v1117_v29  ;;  %v1399_v40 = vld [vmem:[%s2256_s0 + $0x74] sm:$0xf]  ;;  %v1125_v41 = vld [vmem:[%s2256_s0 + $0x78] sm:$0xf0] }
  0x17   :  { %704 = vmatpush.bf16.msra.mxu1 %v1459_v11  ;;  %1478 = vmatpush.bf16.msra.mxu3 %v1459_v11  ;;  %v1232_v11 = vor.u32 %v1425_v6, %v1229_v7  ;;  %v1248_v35 = vor.u32 %v1429_v30, %v1245_v31  ;;  %v1431_v42 = vld [vmem:[%s2256_s0 + $0x174] sm:$0xf]  ;;  %v1253_v43 = vld [vmem:[%s2256_s0 + $0x178] sm:$0xf0]  ;;  %v1128_v46 = vor.u32 %v1399_v40, %v1125_v41  ;;  %v1434_v52 = vld [vmem:[%s2256_s0 + $0x184] sm:$0xf0] }
  0x18   :  { %v1256_v47 = vor.u32 %v1431_v42, %v1253_v43  ;;  %v1401_v53 = vld [vmem:[%s2256_s0 + $0x84] sm:$0xf]  ;;  %v1133_v54 = vld [vmem:[%s2256_s0 + $0x88] sm:$0xf0]  ;;  %v1403_v16 = vld [vmem:[%s2256_s0 + $0x94] sm:$0xf] }
  0x19   :  { %v1433_v55 = vld [vmem:[%s2256_s0 + $0x184] sm:$0xf]  ;;  %v1261_v56 = vld [vmem:[%s2256_s0 + $0x188] sm:$0xf0]  ;;  %v1141_v17 = vld [vmem:[%s2256_s0 + $0x98] sm:$0xf0] }
  0x1a   :  { %536 = vmatpush.bf16.msra.mxu0 %v1450_v12  ;;  %1471 = vmatpush.bf16.msra.mxu2 %v1450_v12  ;;  %v1107_v12 = vld [vmem:[%s2256_s0 + $0x50] sm:$0xf]  ;;  %v1144_v29 = vor.u32 %v1403_v16, %v1141_v17 }
  0x1b   :  { %705 = vmatpush.bf16.msra.mxu1 %v1458_v13  ;;  %1479 = vmatpush.bf16.msra.mxu3 %v1458_v13  ;;  %v1396_v13 = vld [vmem:[%s2256_s0 + $0x54] sm:$0xf0] }
  0x1c   :  { %v1108_v20 = vor.u32 %v1396_v13, %v1107_v12  ;;  %v1404_v13 = vld [vmem:[%s2256_s0 + $0x94] sm:$0xf0] }
  0x1e   :  { %537 = vmatpush.bf16.msra.mxu0 %v1449_v14  ;;  %1472 = vmatpush.bf16.msra.mxu2 %v1449_v14  ;;  %v1235_v14 = vld [vmem:[%s2256_s0 + $0x150] sm:$0xf] }
  0x1f   :  { %706 = vmatpush.bf16.msra.mxu1 %v1457_v15  ;;  %1480 = vmatpush.bf16.msra.mxu3 %v1457_v15  ;;  %v1428_v15 = vld [vmem:[%s2256_s0 + $0x154] sm:$0xf0] }
  0x20   :  { %v1236_v21 = vor.u32 %v1428_v15, %v1235_v14  ;;  %v1267_v14 = vld [vmem:[%s2256_s0 + $0x190] sm:$0xf]  ;;  %v1436_v15 = vld [vmem:[%s2256_s0 + $0x194] sm:$0xf0] }
  0x21   :  { %538 = vmatmul.bf16.vlgmr.msra.gmra.mxu0 %v1068_v24  ;;  %618 = vmatmul.bf16.vlgmr.msra.gmra.mxu2 %v1196_v25  ;;  %v1115_v24 = vld [vmem:[%s2256_s0 + $0x60] sm:$0xf]  ;;  %v1398_v25 = vld [vmem:[%s2256_s0 + $0x64] sm:$0xf0] }
  0x22   :  { %707 = vmatmul.bf16.vlgmr.msra.gmra.mxu1 %v1072_v26  ;;  %787 = vmatmul.bf16.vlgmr.msra.gmra.mxu3 %v1200_v27  ;;  %v1243_v26 = vld [vmem:[%s2256_s0 + $0x160] sm:$0xf]  ;;  %v1430_v27 = vld [vmem:[%s2256_s0 + $0x164] sm:$0xf0]  ;;  %v1116_v32 = vor.u32 %v1398_v25, %v1115_v24 }
  0x23   :  { %v1244_v33 = vor.u32 %v1430_v27, %v1243_v26  ;;  %v1268_v27 = vor.u32 %v1436_v15, %v1267_v14 }
  0x31   :  { %543 = vmatmul.bf16.gmra.mxu0 %v1076_v36  ;;  %623 = vmatmul.bf16.gmra.mxu2 %v1204_v37  ;;  %v1123_v36 = vld [vmem:[%s2256_s0 + $0x70] sm:$0xf]  ;;  %v1400_v37 = vld [vmem:[%s2256_s0 + $0x74] sm:$0xf0] }
  0x32   :  { %712 = vmatmul.bf16.gmra.mxu1 %v1080_v38  ;;  %792 = vmatmul.bf16.gmra.mxu3 %v1208_v39  ;;  %v1251_v38 = vld [vmem:[%s2256_s0 + $0x170] sm:$0xf]  ;;  %v1432_v39 = vld [vmem:[%s2256_s0 + $0x174] sm:$0xf0]  ;;  %v1124_v44 = vor.u32 %v1400_v37, %v1123_v36 }
  0x33   :  { %v1252_v45 = vor.u32 %v1432_v39, %v1251_v38 }
  0x41   :  { %548 = vmatmul.bf16.gmra.mxu0 %v1084_v48  ;;  %628 = vmatmul.bf16.gmra.mxu2 %v1212_v49  ;;  %v1746_v48 = vld [vmem:[%s2255_s2] ss:$0 sm:$0xff] }
  0x42   :  { %717 = vmatmul.bf16.gmra.mxu1 %v1088_v50  ;;  %797 = vmatmul.bf16.gmra.mxu3 %v1216_v51  ;;  %v1131_v49 = vld [vmem:[%s2256_s0 + $0x80] sm:$0xf]  ;;  %v1402_v50 = vld [vmem:[%s2256_s0 + $0x84] sm:$0xf0] }
  0x43   :  { %v1259_v51 = vld [vmem:[%s2256_s0 + $0x180] sm:$0xf]  ;;  %v1132_v57 = vor.u32 %v1402_v50, %v1131_v49  ;;  %v1406_v50 = vld [vmem:[%s2256_s0 + $0xa4] sm:$0xf0] }
  0x44   :  { %v1260_v58 = vor.u32 %v1434_v52, %v1259_v51  ;;  %v1275_v51 = vld [vmem:[%s2256_s0 + $0x1a0] sm:$0xf]  ;;  %v1438_v52 = vld [vmem:[%s2256_s0 + $0x1a4] sm:$0xf0] }
  0x51   :  { %553 = vmatmul.bf16.gmra.mxu0 %v1092_v60  ;;  %633 = vmatmul.bf16.gmra.mxu2 %v1220_v61  ;;  %v1136_v60 = vor.u32 %v1401_v53, %v1133_v54  ;;  %v1264_v61 = vor.u32 %v1433_v55, %v1261_v56  ;;  %v1405_v53 = vld [vmem:[%s2256_s0 + $0xa4] sm:$0xf]  ;;  %v1149_v54 = vld [vmem:[%s2256_s0 + $0xa8] sm:$0xf0] }
  0x52   :  { %722 = vmatmul.bf16.gmra.mxu1 %v1096_v62  ;;  %802 = vmatmul.bf16.gmra.mxu3 %v1224_v63 }
  0x61   :  { %558 = vmatmul.bf16.gmra.mxu0 %v1100_v8  ;;  %638 = vmatmul.bf16.gmra.mxu2 %v1228_v9 }
  0x62   :  { %727 = vmatmul.bf16.gmra.mxu1 %v1104_v10  ;;  %807 = vmatmul.bf16.gmra.mxu3 %v1232_v11  ;;  %v1139_v10 = vld [vmem:[%s2256_s0 + $0x90] sm:$0xf] }
  0x63   :  { %v1140_v26 = vor.u32 %v1404_v13, %v1139_v10 }
  0x71   :  { %563 = vmatmul.bf16.gmra.mxu0 %v1108_v20  ;;  %643 = vmatmul.bf16.gmra.mxu2 %v1236_v21  ;;  %v1435_v20 = vld [vmem:[%s2256_s0 + $0x194] sm:$0xf]  ;;  %v1269_v21 = vld [vmem:[%s2256_s0 + $0x198] sm:$0xf0] }
  0x72   :  { %732 = vmatmul.bf16.gmra.mxu1 %v1112_v22  ;;  %812 = vmatmul.bf16.gmra.mxu3 %v1240_v23  ;;  %v1272_v30 = vor.u32 %v1435_v20, %v1269_v21 }
  0x81   :  { %568 = vmatmul.bf16.gmra.mxu0 %v1116_v32  ;;  %648 = vmatmul.bf16.gmra.mxu2 %v1244_v33 }
  0x82   :  { %737 = vmatmul.bf16.gmra.mxu1 %v1120_v34  ;;  %817 = vmatmul.bf16.gmra.mxu3 %v1248_v35 }
  0x91   :  { %573 = vmatmul.bf16.gmra.mxu0 %v1124_v44  ;;  %653 = vmatmul.bf16.gmra.mxu2 %v1252_v45 }
  0x92   :  { %742 = vmatmul.bf16.gmra.mxu1 %v1128_v46  ;;  %822 = vmatmul.bf16.gmra.mxu3 %v1256_v47  ;;  %v1147_v46 = vld [vmem:[%s2256_s0 + $0xa0] sm:$0xf] }
  0x9e   :  { %v539_v59 = vpop.f32.mrf.mxu0 }
  0x9f   :  { %v540_v62 = vadd.f32 %v1746_v48, %v539_v59  ;;  %v708_v63 = vpop.f32.mrf.mxu1 }
  0xa1   :  { %v709_v0 = vadd.f32 %v708_v63, %v540_v62  ;;  %578 = vmatmul.bf16.gmra.mxu0 %v1132_v57  ;;  %658 = vmatmul.bf16.gmra.mxu2 %v1260_v58  ;;  %v1437_v57 = vld [vmem:[%s2256_s0 + $0x1a4] sm:$0xf]  ;;  %v1277_v58 = vld [vmem:[%s2256_s0 + $0x1a8] sm:$0xf0]  ;;  %v1148_v63 = vor.u32 %v1406_v50, %v1147_v46 }
  0xa2   :  { %747 = vmatmul.bf16.gmra.mxu1 %v1136_v60  ;;  %827 = vmatmul.bf16.gmra.mxu3 %v1264_v61 }
  0xa3   :  { %v868_v1 = vmax.f32 %v709_v0, 0.0  ;;  %v1276_v0 = vor.u32 %v1438_v52, %v1275_v51 }
  0xa4   :  { %v619_v2 = vpop.f32.mrf.mxu2 }
  0xa5   :  { %v932_v3 = vpack.c.bf16 %v868_v1, %v868_v1  ;;  %v620_v4 = vadd.f32 %v1746_v48, %v619_v2  ;;  %v788_v5 = vpop.f32.mrf.mxu3  ;;  %v1152_v2 = vor.u32 %v1405_v53, %v1149_v54 }
  0xa6   :  { %v541_v6 = vpop.f32.mrf.mxu0 }
  0xa7   :  { %997 = vst.msk [vmem:[%s2257_s3] sm:$0xf] %vm996_vm0, %v932_v3  ;;  %v789_v7 = vadd.f32 %v788_v5, %v620_v4  ;;  %v542_v8 = vadd.f32 %v1746_v48, %v541_v6  ;;  %v710_v9 = vpop.f32.mrf.mxu1  ;;  %v1280_v3 = vor.u32 %v1437_v57, %v1277_v58 }
  0xa9   :  { %v900_v11 = vmax.f32 %v789_v7, 0.0  ;;  %v711_v12 = vadd.f32 %v710_v9, %v542_v8 }
  0xab   :  { %v964_v18 = vpack.c.bf16 %v900_v11, %v900_v11  ;;  %v869_v19 = vmax.f32 %v711_v12, 0.0 }
  0xac   :  { %v621_v22 = vpop.f32.mrf.mxu2 }
  0xad   :  { %1029 = vst.msk [vmem:[%s2257_s3 + $0x80] sm:$0xf] %vm996_vm0, %v964_v18  ;;  %v933_v23 = vpack.c.bf16 %v869_v19, %v869_v19  ;;  %v622_v24 = vadd.f32 %v1746_v48, %v621_v22  ;;  %v790_v25 = vpop.f32.mrf.mxu3  ;;  %v1155_v19 = vld [vmem:[%s2256_s0 + $0xb0] sm:$0xf]  ;;  %v1408_v22 = vld [vmem:[%s2256_s0 + $0xb4] sm:$0xf0] }
  0xae   :  { %v544_v28 = vpop.f32.mrf.mxu0 }
  0xaf   :  { %998 = vst.msk [vmem:[%s2257_s3 + $0x4] sm:$0xf] %vm996_vm0, %v933_v23  ;;  %v791_v31 = vadd.f32 %v790_v25, %v622_v24  ;;  %v545_v32 = vadd.f32 %v1746_v48, %v544_v28  ;;  %v713_v33 = vpop.f32.mrf.mxu1  ;;  %v1283_v23 = vld [vmem:[%s2256_s0 + $0x1b0] sm:$0xf]  ;;  %v1440_v24 = vld [vmem:[%s2256_s0 + $0x1b4] sm:$0xf0] }
  0xb0   :  { %v1407_v25 = vld [vmem:[%s2256_s0 + $0xb4] sm:$0xf] }
  0xb1   :  { %v901_v34 = vmax.f32 %v791_v31, 0.0  ;;  %v714_v35 = vadd.f32 %v713_v33, %v545_v32  ;;  %583 = vmatmul.bf16.gmra.mxu0 %v1140_v26  ;;  %663 = vmatmul.bf16.gmra.mxu2 %v1268_v27  ;;  %v1157_v26 = vld [vmem:[%s2256_s0 + $0xb8] sm:$0xf0] }
  0xb2   :  { %752 = vmatmul.bf16.gmra.mxu1 %v1144_v29  ;;  %832 = vmatmul.bf16.gmra.mxu3 %v1272_v30  ;;  %v1439_v29 = vld [vmem:[%s2256_s0 + $0x1b4] sm:$0xf]  ;;  %v1285_v30 = vld [vmem:[%s2256_s0 + $0x1b8] sm:$0xf0] }
  0xb3   :  { %v965_v36 = vpack.c.bf16 %v901_v34, %v901_v34  ;;  %v870_v37 = vmax.f32 %v714_v35, 0.0  ;;  %v1156_v35 = vor.u32 %v1408_v22, %v1155_v19 }
  0xb4   :  { %v624_v38 = vpop.f32.mrf.mxu2 }
  0xb5   :  { %1030 = vst.msk [vmem:[%s2257_s3 + $0x84] sm:$0xf] %vm996_vm0, %v965_v36  ;;  %v934_v39 = vpack.c.bf16 %v870_v37, %v870_v37  ;;  %v625_v40 = vadd.f32 %v1746_v48, %v624_v38  ;;  %v793_v41 = vpop.f32.mrf.mxu3  ;;  %v1284_v36 = vor.u32 %v1440_v24, %v1283_v23  ;;  %v1160_v38 = vor.u32 %v1407_v25, %v1157_v26 }
  0xb6   :  { %v546_v42 = vpop.f32.mrf.mxu0 }
  0xb7   :  { %999 = vst.msk [vmem:[%s2257_s3 + $0x8] sm:$0xf] %vm996_vm0, %v934_v39  ;;  %v794_v43 = vadd.f32 %v793_v41, %v625_v40  ;;  %v547_v44 = vadd.f32 %v1746_v48, %v546_v42  ;;  %v715_v45 = vpop.f32.mrf.mxu1  ;;  %v1288_v39 = vor.u32 %v1439_v29, %v1285_v30 }
  0xb9   :  { %v902_v47 = vmax.f32 %v794_v43, 0.0  ;;  %v716_v49 = vadd.f32 %v715_v45, %v547_v44 }
  0xbb   :  { %v966_v55 = vpack.c.bf16 %v902_v47, %v902_v47  ;;  %v871_v56 = vmax.f32 %v716_v49, 0.0 }
  0xbc   :  { %v626_v59 = vpop.f32.mrf.mxu2 }
  0xbd   :  { %1031 = vst.msk [vmem:[%s2257_s3 + $0x88] sm:$0xf] %vm996_vm0, %v966_v55  ;;  %v935_v60 = vpack.c.bf16 %v871_v56, %v871_v56  ;;  %v627_v61 = vadd.f32 %v1746_v48, %v626_v59  ;;  %v795_v62 = vpop.f32.mrf.mxu3  ;;  %v1163_v56 = vld [vmem:[%s2256_s0 + $0xc0] sm:$0xf]  ;;  %v1410_v59 = vld [vmem:[%s2256_s0 + $0xc4] sm:$0xf0] }
  0xbe   :  { %v549_v1 = vpop.f32.mrf.mxu0 }
  0xbf   :  { %1000 = vst.msk [vmem:[%s2257_s3 + $0xc] sm:$0xf] %vm996_vm0, %v935_v60  ;;  %v796_v4 = vadd.f32 %v795_v62, %v627_v61  ;;  %v550_v5 = vadd.f32 %v1746_v48, %v549_v1  ;;  %v718_v6 = vpop.f32.mrf.mxu1  ;;  %v1291_v60 = vld [vmem:[%s2256_s0 + $0x1c0] sm:$0xf]  ;;  %v1442_v61 = vld [vmem:[%s2256_s0 + $0x1c4] sm:$0xf0] }
  0xc0   :  { %v1409_v62 = vld [vmem:[%s2256_s0 + $0xc4] sm:$0xf] }
  0xc1   :  { %v903_v7 = vmax.f32 %v796_v4, 0.0  ;;  %v719_v8 = vadd.f32 %v718_v6, %v550_v5  ;;  %588 = vmatmul.bf16.gmra.mxu0 %v1148_v63  ;;  %668 = vmatmul.bf16.gmra.mxu2 %v1276_v0  ;;  %v1165_v63 = vld [vmem:[%s2256_s0 + $0xc8] sm:$0xf0] }
  0xc2   :  { %757 = vmatmul.bf16.gmra.mxu1 %v1152_v2  ;;  %837 = vmatmul.bf16.gmra.mxu3 %v1280_v3  ;;  %v1441_v2 = vld [vmem:[%s2256_s0 + $0x1c4] sm:$0xf]  ;;  %v1293_v3 = vld [vmem:[%s2256_s0 + $0x1c8] sm:$0xf0] }
  0xc3   :  { %v967_v9 = vpack.c.bf16 %v903_v7, %v903_v7  ;;  %v872_v10 = vmax.f32 %v719_v8, 0.0  ;;  %v1164_v8 = vor.u32 %v1410_v59, %v1163_v56 }
  0xc4   :  { %v629_v11 = vpop.f32.mrf.mxu2 }
  0xc5   :  { %1032 = vst.msk [vmem:[%s2257_s3 + $0x8c] sm:$0xf] %vm996_vm0, %v967_v9  ;;  %v936_v12 = vpack.c.bf16 %v872_v10, %v872_v10  ;;  %v630_v13 = vadd.f32 %v1746_v48, %v629_v11  ;;  %v798_v14 = vpop.f32.mrf.mxu3  ;;  %v1292_v9 = vor.u32 %v1442_v61, %v1291_v60  ;;  %v1168_v11 = vor.u32 %v1409_v62, %v1165_v63 }
  0xc6   :  { %v551_v15 = vpop.f32.mrf.mxu0 }
  0xc7   :  { %1001 = vst.msk [vmem:[%s2257_s3 + $0x10] sm:$0xf] %vm996_vm0, %v936_v12  ;;  %v799_v16 = vadd.f32 %v798_v14, %v630_v13  ;;  %v552_v17 = vadd.f32 %v1746_v48, %v551_v15  ;;  %v720_v18 = vpop.f32.mrf.mxu1  ;;  %v1296_v12 = vor.u32 %v1441_v2, %v1293_v3 }
  0xc9   :  { %v904_v20 = vmax.f32 %v799_v16, 0.0  ;;  %v721_v21 = vadd.f32 %v720_v18, %v552_v17 }
  0xcb   :  { %v968_v27 = vpack.c.bf16 %v904_v20, %v904_v20  ;;  %v873_v28 = vmax.f32 %v721_v21, 0.0 }
  0xcc   :  { %v631_v31 = vpop.f32.mrf.mxu2 }
  0xcd   :  { %1033 = vst.msk [vmem:[%s2257_s3 + $0x90] sm:$0xf] %vm996_vm0, %v968_v27  ;;  %v937_v32 = vpack.c.bf16 %v873_v28, %v873_v28  ;;  %v632_v33 = vadd.f32 %v1746_v48, %v631_v31  ;;  %v800_v34 = vpop.f32.mrf.mxu3  ;;  %v1171_v28 = vld [vmem:[%s2256_s0 + $0xd0] sm:$0xf]  ;;  %v1412_v31 = vld [vmem:[%s2256_s0 + $0xd4] sm:$0xf0] }
  0xce   :  { %v554_v37 = vpop.f32.mrf.mxu0 }
  0xcf   :  { %1002 = vst.msk [vmem:[%s2257_s3 + $0x14] sm:$0xf] %vm996_vm0, %v937_v32  ;;  %v801_v40 = vadd.f32 %v800_v34, %v632_v33  ;;  %v555_v41 = vadd.f32 %v1746_v48, %v554_v37  ;;  %v723_v42 = vpop.f32.mrf.mxu1  ;;  %v1299_v32 = vld [vmem:[%s2256_s0 + $0x1d0] sm:$0xf]  ;;  %v1444_v33 = vld [vmem:[%s2256_s0 + $0x1d4] sm:$0xf0] }
  0xd0   :  { %v1411_v34 = vld [vmem:[%s2256_s0 + $0xd4] sm:$0xf] }
  0xd1   :  { %v905_v43 = vmax.f32 %v801_v40, 0.0  ;;  %v724_v44 = vadd.f32 %v723_v42, %v555_v41  ;;  %593 = vmatmul.bf16.gmra.mxu0 %v1156_v35  ;;  %673 = vmatmul.bf16.gmra.mxu2 %v1284_v36  ;;  %v1173_v35 = vld [vmem:[%s2256_s0 + $0xd8] sm:$0xf0] }
  0xd2   :  { %762 = vmatmul.bf16.gmra.mxu1 %v1160_v38  ;;  %842 = vmatmul.bf16.gmra.mxu3 %v1288_v39  ;;  %v1443_v38 = vld [vmem:[%s2256_s0 + $0x1d4] sm:$0xf]  ;;  %v1301_v39 = vld [vmem:[%s2256_s0 + $0x1d8] sm:$0xf0] }
  0xd3   :  { %v969_v45 = vpack.c.bf16 %v905_v43, %v905_v43  ;;  %v874_v46 = vmax.f32 %v724_v44, 0.0  ;;  %v1172_v44 = vor.u32 %v1412_v31, %v1171_v28 }
  0xd4   :  { %v634_v47 = vpop.f32.mrf.mxu2 }
  0xd5   :  { %1034 = vst.msk [vmem:[%s2257_s3 + $0x94] sm:$0xf] %vm996_vm0, %v969_v45  ;;  %v938_v49 = vpack.c.bf16 %v874_v46, %v874_v46  ;;  %v635_v50 = vadd.f32 %v1746_v48, %v634_v47  ;;  %v803_v51 = vpop.f32.mrf.mxu3  ;;  %v1300_v45 = vor.u32 %v1444_v33, %v1299_v32  ;;  %v1176_v47 = vor.u32 %v1411_v34, %v1173_v35 }
  0xd6   :  { %v556_v52 = vpop.f32.mrf.mxu0 }
  0xd7   :  { %1003 = vst.msk [vmem:[%s2257_s3 + $0x18] sm:$0xf] %vm996_vm0, %v938_v49  ;;  %v804_v53 = vadd.f32 %v803_v51, %v635_v50  ;;  %v557_v54 = vadd.f32 %v1746_v48, %v556_v52  ;;  %v725_v55 = vpop.f32.mrf.mxu1  ;;  %v1304_v49 = vor.u32 %v1443_v38, %v1301_v39 }
  0xd9   :  { %v906_v57 = vmax.f32 %v804_v53, 0.0  ;;  %v726_v58 = vadd.f32 %v725_v55, %v557_v54 }
  0xdb   :  { %v970_v0 = vpack.c.bf16 %v906_v57, %v906_v57  ;;  %v875_v1 = vmax.f32 %v726_v58, 0.0 }
  0xdc   :  { %v636_v4 = vpop.f32.mrf.mxu2 }
  0xdd   :  { %1035 = vst.msk [vmem:[%s2257_s3 + $0x98] sm:$0xf] %vm996_vm0, %v970_v0  ;;  %v939_v5 = vpack.c.bf16 %v875_v1, %v875_v1  ;;  %v637_v6 = vadd.f32 %v1746_v48, %v636_v4  ;;  %v805_v7 = vpop.f32.mrf.mxu3  ;;  %v1179_v1 = vld [vmem:[%s2256_s0 + $0xe0] sm:$0xf]  ;;  %v1414_v4 = vld [vmem:[%s2256_s0 + $0xe4] sm:$0xf0] }
  0xde   :  { %v559_v10 = vpop.f32.mrf.mxu0 }
  0xdf   :  { %1004 = vst.msk [vmem:[%s2257_s3 + $0x1c] sm:$0xf] %vm996_vm0, %v939_v5  ;;  %v806_v13 = vadd.f32 %v805_v7, %v637_v6  ;;  %v560_v14 = vadd.f32 %v1746_v48, %v559_v10  ;;  %v728_v15 = vpop.f32.mrf.mxu1  ;;  %v1307_v5 = vld [vmem:[%s2256_s0 + $0x1e0] sm:$0xf]  ;;  %v1446_v6 = vld [vmem:[%s2256_s0 + $0x1e4] sm:$0xf0] }
  0xe0   :  { %v1413_v7 = vld [vmem:[%s2256_s0 + $0xe4] sm:$0xf] }
  0xe1   :  { %v907_v16 = vmax.f32 %v806_v13, 0.0  ;;  %v729_v17 = vadd.f32 %v728_v15, %v560_v14  ;;  %598 = vmatmul.bf16.gmra.mxu0 %v1164_v8  ;;  %678 = vmatmul.bf16.gmra.mxu2 %v1292_v9  ;;  %v1181_v8 = vld [vmem:[%s2256_s0 + $0xe8] sm:$0xf0] }
  0xe2   :  { %767 = vmatmul.bf16.gmra.mxu1 %v1168_v11  ;;  %847 = vmatmul.bf16.gmra.mxu3 %v1296_v12  ;;  %v1445_v11 = vld [vmem:[%s2256_s0 + $0x1e4] sm:$0xf]  ;;  %v1309_v12 = vld [vmem:[%s2256_s0 + $0x1e8] sm:$0xf0] }
  0xe3   :  { %v971_v18 = vpack.c.bf16 %v907_v16, %v907_v16  ;;  %v876_v19 = vmax.f32 %v729_v17, 0.0  ;;  %v1180_v17 = vor.u32 %v1414_v4, %v1179_v1 }
  0xe4   :  { %v639_v20 = vpop.f32.mrf.mxu2 }
  0xe5   :  { %1036 = vst.msk [vmem:[%s2257_s3 + $0x9c] sm:$0xf] %vm996_vm0, %v971_v18  ;;  %v940_v21 = vpack.c.bf16 %v876_v19, %v876_v19  ;;  %v640_v22 = vadd.f32 %v1746_v48, %v639_v20  ;;  %v808_v23 = vpop.f32.mrf.mxu3  ;;  %v1308_v18 = vor.u32 %v1446_v6, %v1307_v5  ;;  %v1184_v20 = vor.u32 %v1413_v7, %v1181_v8 }
  0xe6   :  { %v561_v24 = vpop.f32.mrf.mxu0 }
  0xe7   :  { %1005 = vst.msk [vmem:[%s2257_s3 + $0x20] sm:$0xf] %vm996_vm0, %v940_v21  ;;  %v809_v25 = vadd.f32 %v808_v23, %v640_v22  ;;  %v562_v26 = vadd.f32 %v1746_v48, %v561_v24  ;;  %v730_v27 = vpop.f32.mrf.mxu1  ;;  %v1312_v21 = vor.u32 %v1445_v11, %v1309_v12 }
  0xe9   :  { %v908_v29 = vmax.f32 %v809_v25, 0.0  ;;  %v731_v30 = vadd.f32 %v730_v27, %v562_v26 }
  0xeb   :  { %v972_v36 = vpack.c.bf16 %v908_v29, %v908_v29  ;;  %v877_v37 = vmax.f32 %v731_v30, 0.0 }
  0xec   :  { %v641_v40 = vpop.f32.mrf.mxu2 }
  0xed   :  { %1037 = vst.msk [vmem:[%s2257_s3 + $0xa0] sm:$0xf] %vm996_vm0, %v972_v36  ;;  %v941_v41 = vpack.c.bf16 %v877_v37, %v877_v37  ;;  %v642_v42 = vadd.f32 %v1746_v48, %v641_v40  ;;  %v810_v43 = vpop.f32.mrf.mxu3  ;;  %v1187_v37 = vld [vmem:[%s2256_s0 + $0xf0] sm:$0xf]  ;;  %v1416_v40 = vld [vmem:[%s2256_s0 + $0xf4] sm:$0xf0] }
  0xee   :  { %v564_v46 = vpop.f32.mrf.mxu0 }
  0xef   :  { %1006 = vst.msk [vmem:[%s2257_s3 + $0x24] sm:$0xf] %vm996_vm0, %v941_v41  ;;  %v811_v50 = vadd.f32 %v810_v43, %v642_v42  ;;  %v565_v51 = vadd.f32 %v1746_v48, %v564_v46  ;;  %v733_v52 = vpop.f32.mrf.mxu1  ;;  %v1315_v41 = vld [vmem:[%s2256_s0 + $0x1f0] sm:$0xf]  ;;  %v1448_v42 = vld [vmem:[%s2256_s0 + $0x1f4] sm:$0xf0] }
  0xf0   :  { %v1415_v43 = vld [vmem:[%s2256_s0 + $0xf4] sm:$0xf] }
  0xf1   :  { %v909_v53 = vmax.f32 %v811_v50, 0.0  ;;  %v734_v54 = vadd.f32 %v733_v52, %v565_v51  ;;  %603 = vmatmul.bf16.gmra.mxu0 %v1172_v44  ;;  %683 = vmatmul.bf16.gmra.mxu2 %v1300_v45  ;;  %v1189_v44 = vld [vmem:[%s2256_s0 + $0xf8] sm:$0xf0] }
  0xf2   :  { %772 = vmatmul.bf16.gmra.mxu1 %v1176_v47  ;;  %852 = vmatmul.bf16.gmra.mxu3 %v1304_v49  ;;  %v1447_v47 = vld [vmem:[%s2256_s0 + $0x1f4] sm:$0xf]  ;;  %v1317_v49 = vld [vmem:[%s2256_s0 + $0x1f8] sm:$0xf0] }
  0xf3   :  { %v973_v55 = vpack.c.bf16 %v909_v53, %v909_v53  ;;  %v878_v56 = vmax.f32 %v734_v54, 0.0  ;;  %v1188_v54 = vor.u32 %v1416_v40, %v1187_v37 }
  0xf4   :  { %v644_v57 = vpop.f32.mrf.mxu2 }
  0xf5   :  { %1038 = vst.msk [vmem:[%s2257_s3 + $0xa4] sm:$0xf] %vm996_vm0, %v973_v55  ;;  %v942_v58 = vpack.c.bf16 %v878_v56, %v878_v56  ;;  %v645_v59 = vadd.f32 %v1746_v48, %v644_v57  ;;  %v813_v60 = vpop.f32.mrf.mxu3  ;;  %v1316_v55 = vor.u32 %v1448_v42, %v1315_v41  ;;  %v1192_v57 = vor.u32 %v1415_v43, %v1189_v44 }
  0xf6   :  { %v566_v61 = vpop.f32.mrf.mxu0 }
  0xf7   :  { %1007 = vst.msk [vmem:[%s2257_s3 + $0x28] sm:$0xf] %vm996_vm0, %v942_v58  ;;  %v814_v62 = vadd.f32 %v813_v60, %v645_v59  ;;  %v567_v63 = vadd.f32 %v1746_v48, %v566_v61  ;;  %v735_v0 = vpop.f32.mrf.mxu1  ;;  %v1320_v58 = vor.u32 %v1447_v47, %v1317_v49 }
  0xf9   :  { %v910_v2 = vmax.f32 %v814_v62, 0.0  ;;  %v736_v3 = vadd.f32 %v735_v0, %v567_v63 }
  0xfb   :  { %v974_v9 = vpack.c.bf16 %v910_v2, %v910_v2  ;;  %v879_v10 = vmax.f32 %v736_v3, 0.0 }
  0xfc   :  { %v646_v13 = vpop.f32.mrf.mxu2 }
  0xfd   :  { %1039 = vst.msk [vmem:[%s2257_s3 + $0xa8] sm:$0xf] %vm996_vm0, %v974_v9  ;;  %v943_v14 = vpack.c.bf16 %v879_v10, %v879_v10  ;;  %v647_v15 = vadd.f32 %v1746_v48, %v646_v13  ;;  %v815_v16 = vpop.f32.mrf.mxu3 }
  0xfe   :  { %v569_v19 = vpop.f32.mrf.mxu0 }
  0xff   :  { %1008 = vst.msk [vmem:[%s2257_s3 + $0x2c] sm:$0xf] %vm996_vm0, %v943_v14  ;;  %v816_v22 = vadd.f32 %v815_v16, %v647_v15  ;;  %v570_v23 = vadd.f32 %v1746_v48, %v569_v19  ;;  %v738_v24 = vpop.f32.mrf.mxu1 }
 0x101   :  { %v911_v25 = vmax.f32 %v816_v22, 0.0  ;;  %v739_v26 = vadd.f32 %v738_v24, %v570_v23  ;;  %608 = vmatmul.bf16.gmra.mxu0 %v1180_v17  ;;  %688 = vmatmul.bf16.gmra.mxu2 %v1308_v18 }
 0x102   :  { %777 = vmatmul.bf16.gmra.mxu1 %v1184_v20  ;;  %857 = vmatmul.bf16.gmra.mxu3 %v1312_v21 }
 0x103   :  { %v975_v27 = vpack.c.bf16 %v911_v25, %v911_v25  ;;  %v880_v28 = vmax.f32 %v739_v26, 0.0 }
 0x104   :  { %v649_v29 = vpop.f32.mrf.mxu2 }
 0x105   :  { %1040 = vst.msk [vmem:[%s2257_s3 + $0xac] sm:$0xf] %vm996_vm0, %v975_v27  ;;  %v944_v30 = vpack.c.bf16 %v880_v28, %v880_v28  ;;  %v650_v31 = vadd.f32 %v1746_v48, %v649_v29  ;;  %v818_v32 = vpop.f32.mrf.mxu3 }
 0x106   :  { %v571_v33 = vpop.f32.mrf.mxu0 }
 0x107   :  { %1009 = vst.msk [vmem:[%s2257_s3 + $0x30] sm:$0xf] %vm996_vm0, %v944_v30  ;;  %v819_v34 = vadd.f32 %v818_v32, %v650_v31  ;;  %v572_v35 = vadd.f32 %v1746_v48, %v571_v33  ;;  %v740_v36 = vpop.f32.mrf.mxu1 }
 0x109   :  { %v912_v38 = vmax.f32 %v819_v34, 0.0  ;;  %v741_v39 = vadd.f32 %v740_v36, %v572_v35 }
 0x10b   :  { %v976_v45 = vpack.c.bf16 %v912_v38, %v912_v38  ;;  %v881_v46 = vmax.f32 %v741_v39, 0.0 }
 0x10c   :  { %v651_v50 = vpop.f32.mrf.mxu2 }
 0x10d   :  { %1041 = vst.msk [vmem:[%s2257_s3 + $0xb0] sm:$0xf] %vm996_vm0, %v976_v45  ;;  %v945_v51 = vpack.c.bf16 %v881_v46, %v881_v46  ;;  %v652_v52 = vadd.f32 %v1746_v48, %v651_v50  ;;  %v820_v53 = vpop.f32.mrf.mxu3 }
 0x10e   :  { %v574_v56 = vpop.f32.mrf.mxu0 }
 0x10f   :  { %1010 = vst.msk [vmem:[%s2257_s3 + $0x34] sm:$0xf] %vm996_vm0, %v945_v51  ;;  %v821_v59 = vadd.f32 %v820_v53, %v652_v52  ;;  %v575_v60 = vadd.f32 %v1746_v48, %v574_v56  ;;  %v743_v61 = vpop.f32.mrf.mxu1 }
 0x111   :  { %v913_v62 = vmax.f32 %v821_v59, 0.0  ;;  %v744_v63 = vadd.f32 %v743_v61, %v575_v60  ;;  %613 = vmatmul.bf16.gmra.mxu0 %v1188_v54  ;;  %693 = vmatmul.bf16.gmra.mxu2 %v1316_v55 }
 0x112   :  { %782 = vmatmul.bf16.gmra.mxu1 %v1192_v57  ;;  %862 = vmatmul.bf16.gmra.mxu3 %v1320_v58 }
 0x113   :  { %v977_v0 = vpack.c.bf16 %v913_v62, %v913_v62  ;;  %v882_v1 = vmax.f32 %v744_v63, 0.0 }
 0x114   :  { %v654_v2 = vpop.f32.mrf.mxu2 }
 0x115   :  { %1042 = vst.msk [vmem:[%s2257_s3 + $0xb4] sm:$0xf] %vm996_vm0, %v977_v0  ;;  %v946_v3 = vpack.c.bf16 %v882_v1, %v882_v1  ;;  %v655_v4 = vadd.f32 %v1746_v48, %v654_v2  ;;  %v823_v5 = vpop.f32.mrf.mxu3 }
 0x116   :  { %v576_v6 = vpop.f32.mrf.mxu0 }
 0x117   :  { %1011 = vst.msk [vmem:[%s2257_s3 + $0x38] sm:$0xf] %vm996_vm0, %v946_v3  ;;  %v824_v7 = vadd.f32 %v823_v5, %v655_v4  ;;  %v577_v8 = vadd.f32 %v1746_v48, %v576_v6  ;;  %v745_v9 = vpop.f32.mrf.mxu1 }
 0x119   :  { %v914_v10 = vmax.f32 %v824_v7, 0.0  ;;  %v746_v11 = vadd.f32 %v745_v9, %v577_v8 }
 0x11b   :  { %v978_v12 = vpack.c.bf16 %v914_v10, %v914_v10  ;;  %v883_v13 = vmax.f32 %v746_v11, 0.0 }
 0x11c   :  { %v656_v14 = vpop.f32.mrf.mxu2 }
 0x11d   :  { %1043 = vst.msk [vmem:[%s2257_s3 + $0xb8] sm:$0xf] %vm996_vm0, %v978_v12  ;;  %v947_v15 = vpack.c.bf16 %v883_v13, %v883_v13  ;;  %v657_v16 = vadd.f32 %v1746_v48, %v656_v14  ;;  %v825_v17 = vpop.f32.mrf.mxu3 }
 0x11e   :  { %v579_v18 = vpop.f32.mrf.mxu0 }
 0x11f   :  { %1012 = vst.msk [vmem:[%s2257_s3 + $0x3c] sm:$0xf] %vm996_vm0, %v947_v15  ;;  %v826_v19 = vadd.f32 %v825_v17, %v657_v16  ;;  %v580_v20 = vadd.f32 %v1746_v48, %v579_v18  ;;  %v748_v21 = vpop.f32.mrf.mxu1 }
 0x121   :  { %v915_v22 = vmax.f32 %v826_v19, 0.0  ;;  %v749_v23 = vadd.f32 %v748_v21, %v580_v20 }
 0x123   :  { %v979_v24 = vpack.c.bf16 %v915_v22, %v915_v22  ;;  %v884_v25 = vmax.f32 %v749_v23, 0.0 }
 0x124   :  { %v659_v26 = vpop.f32.mrf.mxu2 }
 0x125   :  { %1044 = vst.msk [vmem:[%s2257_s3 + $0xbc] sm:$0xf] %vm996_vm0, %v979_v24  ;;  %v948_v27 = vpack.c.bf16 %v884_v25, %v884_v25  ;;  %v660_v28 = vadd.f32 %v1746_v48, %v659_v26  ;;  %v828_v29 = vpop.f32.mrf.mxu3 }
 0x126   :  { %v581_v30 = vpop.f32.mrf.mxu0 }
 0x127   :  { %1013 = vst.msk [vmem:[%s2257_s3 + $0x40] sm:$0xf] %vm996_vm0, %v948_v27  ;;  %v829_v31 = vadd.f32 %v828_v29, %v660_v28  ;;  %v582_v32 = vadd.f32 %v1746_v48, %v581_v30  ;;  %v750_v33 = vpop.f32.mrf.mxu1 }
 0x129   :  { %v916_v34 = vmax.f32 %v829_v31, 0.0  ;;  %v751_v35 = vadd.f32 %v750_v33, %v582_v32 }
 0x12b   :  { %v980_v36 = vpack.c.bf16 %v916_v34, %v916_v34  ;;  %v885_v37 = vmax.f32 %v751_v35, 0.0 }
 0x12c   :  { %v661_v38 = vpop.f32.mrf.mxu2 }
 0x12d   :  { %1045 = vst.msk [vmem:[%s2257_s3 + $0xc0] sm:$0xf] %vm996_vm0, %v980_v36  ;;  %v949_v39 = vpack.c.bf16 %v885_v37, %v885_v37  ;;  %v662_v40 = vadd.f32 %v1746_v48, %v661_v38  ;;  %v830_v41 = vpop.f32.mrf.mxu3 }
 0x12e   :  { %v584_v42 = vpop.f32.mrf.mxu0 }
 0x12f   :  { %1014 = vst.msk [vmem:[%s2257_s3 + $0x44] sm:$0xf] %vm996_vm0, %v949_v39  ;;  %v831_v43 = vadd.f32 %v830_v41, %v662_v40  ;;  %v585_v44 = vadd.f32 %v1746_v48, %v584_v42  ;;  %v753_v45 = vpop.f32.mrf.mxu1 }
 0x131   :  { %v917_v46 = vmax.f32 %v831_v43, 0.0  ;;  %v754_v47 = vadd.f32 %v753_v45, %v585_v44 }
 0x133   :  { %v981_v49 = vpack.c.bf16 %v917_v46, %v917_v46  ;;  %v886_v50 = vmax.f32 %v754_v47, 0.0 }
 0x134   :  { %v664_v51 = vpop.f32.mrf.mxu2 }
 0x135   :  { %1046 = vst.msk [vmem:[%s2257_s3 + $0xc4] sm:$0xf] %vm996_vm0, %v981_v49  ;;  %v950_v52 = vpack.c.bf16 %v886_v50, %v886_v50  ;;  %v665_v53 = vadd.f32 %v1746_v48, %v664_v51  ;;  %v833_v54 = vpop.f32.mrf.mxu3 }
 0x136   :  { %v586_v55 = vpop.f32.mrf.mxu0 }
 0x137   :  { %1015 = vst.msk [vmem:[%s2257_s3 + $0x48] sm:$0xf] %vm996_vm0, %v950_v52  ;;  %v834_v56 = vadd.f32 %v833_v54, %v665_v53  ;;  %v587_v57 = vadd.f32 %v1746_v48, %v586_v55  ;;  %v755_v58 = vpop.f32.mrf.mxu1 }
 0x139   :  { %v918_v59 = vmax.f32 %v834_v56, 0.0  ;;  %v756_v60 = vadd.f32 %v755_v58, %v587_v57 }
 0x13b   :  { %v982_v61 = vpack.c.bf16 %v918_v59, %v918_v59  ;;  %v887_v62 = vmax.f32 %v756_v60, 0.0 }
 0x13c   :  { %v666_v63 = vpop.f32.mrf.mxu2 }
 0x13d   :  { %1047 = vst.msk [vmem:[%s2257_s3 + $0xc8] sm:$0xf] %vm996_vm0, %v982_v61  ;;  %v951_v0 = vpack.c.bf16 %v887_v62, %v887_v62  ;;  %v667_v1 = vadd.f32 %v1746_v48, %v666_v63  ;;  %v835_v2 = vpop.f32.mrf.mxu3 }
 0x13e   :  { %v589_v3 = vpop.f32.mrf.mxu0 }
 0x13f   :  { %1016 = vst.msk [vmem:[%s2257_s3 + $0x4c] sm:$0xf] %vm996_vm0, %v951_v0  ;;  %v836_v4 = vadd.f32 %v835_v2, %v667_v1  ;;  %v590_v5 = vadd.f32 %v1746_v48, %v589_v3  ;;  %v758_v6 = vpop.f32.mrf.mxu1 }
 0x141   :  { %v919_v7 = vmax.f32 %v836_v4, 0.0  ;;  %v759_v8 = vadd.f32 %v758_v6, %v590_v5 }
 0x143   :  { %v983_v9 = vpack.c.bf16 %v919_v7, %v919_v7  ;;  %v888_v10 = vmax.f32 %v759_v8, 0.0 }
 0x144   :  { %v669_v11 = vpop.f32.mrf.mxu2 }
 0x145   :  { %1048 = vst.msk [vmem:[%s2257_s3 + $0xcc] sm:$0xf] %vm996_vm0, %v983_v9  ;;  %v952_v12 = vpack.c.bf16 %v888_v10, %v888_v10  ;;  %v670_v13 = vadd.f32 %v1746_v48, %v669_v11  ;;  %v838_v14 = vpop.f32.mrf.mxu3 }
 0x146   :  { %v591_v15 = vpop.f32.mrf.mxu0 }
 0x147   :  { %1017 = vst.msk [vmem:[%s2257_s3 + $0x50] sm:$0xf] %vm996_vm0, %v952_v12  ;;  %v839_v16 = vadd.f32 %v838_v14, %v670_v13  ;;  %v592_v17 = vadd.f32 %v1746_v48, %v591_v15  ;;  %v760_v18 = vpop.f32.mrf.mxu1 }
 0x149   :  { %v920_v19 = vmax.f32 %v839_v16, 0.0  ;;  %v761_v20 = vadd.f32 %v760_v18, %v592_v17 }
 0x14b   :  { %v984_v21 = vpack.c.bf16 %v920_v19, %v920_v19  ;;  %v889_v22 = vmax.f32 %v761_v20, 0.0 }
 0x14c   :  { %v671_v23 = vpop.f32.mrf.mxu2 }
 0x14d   :  { %1049 = vst.msk [vmem:[%s2257_s3 + $0xd0] sm:$0xf] %vm996_vm0, %v984_v21  ;;  %v953_v24 = vpack.c.bf16 %v889_v22, %v889_v22  ;;  %v672_v25 = vadd.f32 %v1746_v48, %v671_v23  ;;  %v840_v26 = vpop.f32.mrf.mxu3 }
 0x14e   :  { %v594_v27 = vpop.f32.mrf.mxu0 }
 0x14f   :  { %1018 = vst.msk [vmem:[%s2257_s3 + $0x54] sm:$0xf] %vm996_vm0, %v953_v24  ;;  %v841_v28 = vadd.f32 %v840_v26, %v672_v25  ;;  %v595_v29 = vadd.f32 %v1746_v48, %v594_v27  ;;  %v763_v30 = vpop.f32.mrf.mxu1 }
 0x151   :  { %v921_v31 = vmax.f32 %v841_v28, 0.0  ;;  %v764_v32 = vadd.f32 %v763_v30, %v595_v29 }
 0x153   :  { %v985_v33 = vpack.c.bf16 %v921_v31, %v921_v31  ;;  %v890_v34 = vmax.f32 %v764_v32, 0.0 }
 0x154   :  { %v674_v35 = vpop.f32.mrf.mxu2 }
 0x155   :  { %1050 = vst.msk [vmem:[%s2257_s3 + $0xd4] sm:$0xf] %vm996_vm0, %v985_v33  ;;  %v954_v36 = vpack.c.bf16 %v890_v34, %v890_v34  ;;  %v675_v37 = vadd.f32 %v1746_v48, %v674_v35  ;;  %v843_v38 = vpop.f32.mrf.mxu3  ;;  %v1482_v34 = vld [vmem:[%s2255_s2] ss:$0 sm:$0xff] }
 0x156   :  { %v596_v39 = vpop.f32.mrf.mxu0 }
 0x157   :  { %1019 = vst.msk [vmem:[%s2257_s3 + $0x58] sm:$0xf] %vm996_vm0, %v954_v36  ;;  %v844_v40 = vadd.f32 %v843_v38, %v675_v37  ;;  %v597_v41 = vadd.f32 %v1746_v48, %v596_v39  ;;  %v765_v42 = vpop.f32.mrf.mxu1 }
 0x159   :  { %v922_v43 = vmax.f32 %v844_v40, 0.0  ;;  %v766_v44 = vadd.f32 %v765_v42, %v597_v41 }
 0x15b   :  { %v986_v45 = vpack.c.bf16 %v922_v43, %v922_v43  ;;  %v891_v46 = vmax.f32 %v766_v44, 0.0 }
 0x15c   :  { %v676_v47 = vpop.f32.mrf.mxu2 }
 0x15d   :  { %1051 = vst.msk [vmem:[%s2257_s3 + $0xd8] sm:$0xf] %vm996_vm0, %v986_v45  ;;  %v955_v49 = vpack.c.bf16 %v891_v46, %v891_v46  ;;  %v677_v50 = vadd.f32 %v1746_v48, %v676_v47  ;;  %v845_v51 = vpop.f32.mrf.mxu3 }
 0x15e   :  { %v599_v52 = vpop.f32.mrf.mxu0 }
 0x15f   :  { %1020 = vst.msk [vmem:[%s2257_s3 + $0x5c] sm:$0xf] %vm996_vm0, %v955_v49  ;;  %v846_v53 = vadd.f32 %v845_v51, %v677_v50  ;;  %v600_v54 = vadd.f32 %v1746_v48, %v599_v52  ;;  %v768_v55 = vpop.f32.mrf.mxu1 }
 0x161   :  { %v923_v56 = vmax.f32 %v846_v53, 0.0  ;;  %v769_v57 = vadd.f32 %v768_v55, %v600_v54 }
 0x163   :  { %v987_v58 = vpack.c.bf16 %v923_v56, %v923_v56  ;;  %v892_v59 = vmax.f32 %v769_v57, 0.0 }
 0x164   :  { %v679_v60 = vpop.f32.mrf.mxu2 }
 0x165   :  { %1052 = vst.msk [vmem:[%s2257_s3 + $0xdc] sm:$0xf] %vm996_vm0, %v987_v58  ;;  %v956_v61 = vpack.c.bf16 %v892_v59, %v892_v59  ;;  %v680_v62 = vadd.f32 %v1746_v48, %v679_v60  ;;  %v848_v63 = vpop.f32.mrf.mxu3 }
 0x166   :  { %v601_v0 = vpop.f32.mrf.mxu0 }
 0x167   :  { %1021 = vst.msk [vmem:[%s2257_s3 + $0x60] sm:$0xf] %vm996_vm0, %v956_v61  ;;  %v849_v1 = vadd.f32 %v848_v63, %v680_v62  ;;  %v602_v2 = vadd.f32 %v1746_v48, %v601_v0  ;;  %v770_v3 = vpop.f32.mrf.mxu1 }
 0x169   :  { %v924_v4 = vmax.f32 %v849_v1, 0.0  ;;  %v771_v5 = vadd.f32 %v770_v3, %v602_v2 }
 0x16b   :  { %v988_v6 = vpack.c.bf16 %v924_v4, %v924_v4  ;;  %v893_v7 = vmax.f32 %v771_v5, 0.0 }
 0x16c   :  { %v681_v8 = vpop.f32.mrf.mxu2 }
 0x16d   :  { %1053 = vst.msk [vmem:[%s2257_s3 + $0xe0] sm:$0xf] %vm996_vm0, %v988_v6  ;;  %v957_v9 = vpack.c.bf16 %v893_v7, %v893_v7  ;;  %v682_v10 = vadd.f32 %v1746_v48, %v681_v8  ;;  %v850_v11 = vpop.f32.mrf.mxu3 }
 0x16e   :  { %v604_v12 = vpop.f32.mrf.mxu0 }
 0x16f   :  { %1022 = vst.msk [vmem:[%s2257_s3 + $0x64] sm:$0xf] %vm996_vm0, %v957_v9  ;;  %v851_v13 = vadd.f32 %v850_v11, %v682_v10  ;;  %v605_v14 = vadd.f32 %v1746_v48, %v604_v12  ;;  %v773_v15 = vpop.f32.mrf.mxu1 }
 0x171   :  { %v925_v16 = vmax.f32 %v851_v13, 0.0  ;;  %v774_v17 = vadd.f32 %v773_v15, %v605_v14 }
 0x173   :  { %v989_v18 = vpack.c.bf16 %v925_v16, %v925_v16  ;;  %v894_v19 = vmax.f32 %v774_v17, 0.0 }
 0x174   :  { %v684_v20 = vpop.f32.mrf.mxu2 }
 0x175   :  { %1054 = vst.msk [vmem:[%s2257_s3 + $0xe4] sm:$0xf] %vm996_vm0, %v989_v18  ;;  %v958_v21 = vpack.c.bf16 %v894_v19, %v894_v19  ;;  %v685_v22 = vadd.f32 %v1746_v48, %v684_v20  ;;  %v853_v23 = vpop.f32.mrf.mxu3 }
 0x176   :  { %v606_v24 = vpop.f32.mrf.mxu0 }
 0x177   :  { %1023 = vst.msk [vmem:[%s2257_s3 + $0x68] sm:$0xf] %vm996_vm0, %v958_v21  ;;  %v854_v25 = vadd.f32 %v853_v23, %v685_v22  ;;  %v607_v26 = vadd.f32 %v1746_v48, %v606_v24  ;;  %v775_v27 = vpop.f32.mrf.mxu1 }
 0x179   :  { %v926_v28 = vmax.f32 %v854_v25, 0.0  ;;  %v776_v29 = vadd.f32 %v775_v27, %v607_v26 }
 0x17b   :  { %v990_v30 = vpack.c.bf16 %v926_v28, %v926_v28  ;;  %v895_v31 = vmax.f32 %v776_v29, 0.0 }
 0x17c   :  { %v686_v32 = vpop.f32.mrf.mxu2 }
 0x17d   :  { %1055 = vst.msk [vmem:[%s2257_s3 + $0xe8] sm:$0xf] %vm996_vm0, %v990_v30  ;;  %v959_v33 = vpack.c.bf16 %v895_v31, %v895_v31  ;;  %v687_v35 = vadd.f32 %v1482_v34, %v686_v32  ;;  %v855_v36 = vpop.f32.mrf.mxu3 }
 0x17e   :  { %v609_v37 = vpop.f32.mrf.mxu0 }
 0x17f   :  { %1024 = vst.msk [vmem:[%s2257_s3 + $0x6c] sm:$0xf] %vm996_vm0, %v959_v33  ;;  %v856_v48 = vadd.f32 %v855_v36, %v687_v35  ;;  %v610_v38 = vadd.f32 %v1482_v34, %v609_v37  ;;  %v778_v39 = vpop.f32.mrf.mxu1 }
 0x181   :  { %v927_v40 = vmax.f32 %v856_v48, 0.0  ;;  %v779_v41 = vadd.f32 %v778_v39, %v610_v38 }
 0x183   :  { %v991_v42 = vpack.c.bf16 %v927_v40, %v927_v40  ;;  %v896_v43 = vmax.f32 %v779_v41, 0.0 }
 0x184   :  { %v689_v44 = vpop.f32.mrf.mxu2 }
 0x185   :  { %1056 = vst.msk [vmem:[%s2257_s3 + $0xec] sm:$0xf] %vm996_vm0, %v991_v42  ;;  %v960_v45 = vpack.c.bf16 %v896_v43, %v896_v43  ;;  %v690_v46 = vadd.f32 %v1482_v34, %v689_v44  ;;  %v858_v47 = vpop.f32.mrf.mxu3 }
 0x186   :  { %v611_v49 = vpop.f32.mrf.mxu0 }
 0x187   :  { %1025 = vst.msk [vmem:[%s2257_s3 + $0x70] sm:$0xf] %vm996_vm0, %v960_v45  ;;  %v859_v50 = vadd.f32 %v858_v47, %v690_v46  ;;  %v612_v51 = vadd.f32 %v1482_v34, %v611_v49  ;;  %v780_v52 = vpop.f32.mrf.mxu1 }
 0x189   :  { %v928_v53 = vmax.f32 %v859_v50, 0.0  ;;  %v781_v54 = vadd.f32 %v780_v52, %v612_v51 }
 0x18b   :  { %v992_v55 = vpack.c.bf16 %v928_v53, %v928_v53  ;;  %v897_v56 = vmax.f32 %v781_v54, 0.0 }
 0x18c   :  { %v691_v57 = vpop.f32.mrf.mxu2 }
 0x18d   :  { %1057 = vst.msk [vmem:[%s2257_s3 + $0xf0] sm:$0xf] %vm996_vm0, %v992_v55  ;;  %v961_v58 = vpack.c.bf16 %v897_v56, %v897_v56  ;;  %v692_v59 = vadd.f32 %v1482_v34, %v691_v57  ;;  %v860_v60 = vpop.f32.mrf.mxu3 }
 0x18e   :  { %v614_v61 = vpop.f32.mrf.mxu0 }
 0x18f   :  { %1026 = vst.msk [vmem:[%s2257_s3 + $0x74] sm:$0xf] %vm996_vm0, %v961_v58  ;;  %v861_v62 = vadd.f32 %v860_v60, %v692_v59  ;;  %v615_v63 = vadd.f32 %v1482_v34, %v614_v61  ;;  %v783_v0 = vpop.f32.mrf.mxu1 }
 0x191   :  { %v929_v1 = vmax.f32 %v861_v62, 0.0  ;;  %v784_v2 = vadd.f32 %v783_v0, %v615_v63 }
 0x193   :  { %v993_v3 = vpack.c.bf16 %v929_v1, %v929_v1  ;;  %v898_v4 = vmax.f32 %v784_v2, 0.0 }
 0x194   :  { %v694_v5 = vpop.f32.mrf.mxu2 }
 0x195   :  { %1058 = vst.msk [vmem:[%s2257_s3 + $0xf4] sm:$0xf] %vm996_vm0, %v993_v3  ;;  %v962_v6 = vpack.c.bf16 %v898_v4, %v898_v4  ;;  %v695_v7 = vadd.f32 %v1482_v34, %v694_v5  ;;  %v863_v8 = vpop.f32.mrf.mxu3 }
 0x196   :  { %v616_v9 = vpop.f32.mrf.mxu0 }
 0x197   :  { %1027 = vst.msk [vmem:[%s2257_s3 + $0x78] sm:$0xf] %vm996_vm0, %v962_v6  ;;  %v864_v10 = vadd.f32 %v863_v8, %v695_v7  ;;  %v617_v11 = vadd.f32 %v1482_v34, %v616_v9  ;;  %v785_v12 = vpop.f32.mrf.mxu1 }
 0x199   :  { %v930_v13 = vmax.f32 %v864_v10, 0.0  ;;  %v786_v14 = vadd.f32 %v785_v12, %v617_v11 }
 0x19b   :  { %v994_v15 = vpack.c.bf16 %v930_v13, %v930_v13  ;;  %v899_v16 = vmax.f32 %v786_v14, 0.0 }
 0x19c   :  { %v696_v17 = vpop.f32.mrf.mxu2 }
 0x19d   :  { %1059 = vst.msk [vmem:[%s2257_s3 + $0xf8] sm:$0xf] %vm996_vm0, %v994_v15  ;;  %v963_v18 = vpack.c.bf16 %v899_v16, %v899_v16  ;;  %v697_v19 = vadd.f32 %v1482_v34, %v696_v17  ;;  %v865_v20 = vpop.f32.mrf.mxu3 }
 0x19f   :  { %1028 = vst.msk [vmem:[%s2257_s3 + $0x7c] sm:$0xf] %vm996_vm0, %v963_v18  ;;  %v866_v21 = vadd.f32 %v865_v20, %v697_v19 }
 0x1a1   :  { %v931_v22 = vmax.f32 %v866_v21, 0.0 }
 0x1a3   :  { %v995_v23 = vpack.c.bf16 %v931_v22, %v931_v22 }
 0x1a5   :  { %1060 = vst.msk [vmem:[%s2257_s3 + $0xfc] sm:$0xf] %vm996_vm0, %v995_v23 }

// kernel: _lambda_.8
= control target key start
LH: loop header
LB: loop body
LE: loop exit
PB: predicated region body
PF: predicated region fallthrough
CT: control target
= control target key end

     0   :  { %vm871_vm0 = vcmask 519168   ;;  %s1818_s1 = inlined_call_operand.vmem [shape: bf16[640,64], index: 1, kind: input, shape index: {}]   ;;  %s1819_s2 = inlined_call_operand.vmem [shape: f32[1,64], index: 2, kind: input, shape index: {}]   ;;  %s1820_s0 = inlined_call_operand.vmem [shape: bf16[128,640], index: 0, kind: input, shape index: {}]   ;;  %s1821_s3 = inlined_call_operand.vmem [shape: bf16[128,64], index: 3, kind: output, shape index: {}]  }
   0x1   :  { %v1259_v0 = vld [vmem:[%s1818_s1 + $0x38] sm:$0xff]  ;;  %v1258_v1 = vld [vmem:[%s1818_s1 + $0x30] sm:$0xff]  ;;  %v1257_v2 = vld [vmem:[%s1818_s1 + $0x28] sm:$0xff] }
   0x2   :  { %1292 = vmatpush.bf16.msra.mxu1 %v1259_v0  ;;  %1293 = vmatpush.bf16.msra.mxu2 %v1259_v0  ;;  %v1256_v3 = vld [vmem:[%s1818_s1 + $0x20] sm:$0xff]  ;;  %v1255_v4 = vld [vmem:[%s1818_s1 + $0x18] sm:$0xff]  ;;  %v1254_v5 = vld [vmem:[%s1818_s1 + $0x10] sm:$0xff] }
   0x3   :  { %1294 = vmatpush.bf16.msra.mxu3 %v1259_v0  ;;  %594 = vmatpush.bf16.msra.mxu0 %v1259_v0  ;;  %v1253_v6 = vld [vmem:[%s1818_s1 + $0x8] sm:$0xff]  ;;  %v1252_v7 = vld [vmem:[%s1818_s1] sm:$0xff]  ;;  %v934_v8 = vld [vmem:[%s1820_s0 + $0x50] sm:$0xf] }
   0x4   :  { %v1224_v9 = vld [vmem:[%s1820_s0 + $0x60] sm:$0xf0]  ;;  %v974_v10 = vld [vmem:[%s1820_s0 + $0xa0] sm:$0xf]  ;;  %v1234_v11 = vld [vmem:[%s1820_s0 + $0xb0] sm:$0xf0] }
   0x5   :  { %v1014_v12 = vld [vmem:[%s1820_s0 + $0xf0] sm:$0xf]  ;;  %v1244_v13 = vld [vmem:[%s1820_s0 + $0x100] sm:$0xf0]  ;;  %v894_v14 = vld [vmem:[%s1820_s0] sm:$0xf]  ;;  %v935_v18 = vor.u32 %v1224_v9, %v934_v8  ;;  %v975_v19 = vor.u32 %v1234_v11, %v974_v10 }
   0x6   :  { %1295 = vmatpush.bf16.msra.mxu1 %v1258_v1  ;;  %1296 = vmatpush.bf16.msra.mxu2 %v1258_v1  ;;  %v1214_v15 = vld [vmem:[%s1820_s0 + $0x10] sm:$0xf0]  ;;  %v1275_v16 = vld [vmem:[%s1818_s1 + $0xb8] sm:$0xff]  ;;  %v1015_v20 = vor.u32 %v1244_v13, %v1014_v12  ;;  %v1273_v28 = vld [vmem:[%s1818_s1 + $0xa8] sm:$0xff] }
   0x7   :  { %1297 = vmatpush.bf16.msra.mxu3 %v1258_v1  ;;  %595 = vmatpush.bf16.msra.mxu0 %v1258_v1  ;;  %v1267_v17 = vld [vmem:[%s1818_s1 + $0x78] sm:$0xff]  ;;  %v895_v21 = vor.u32 %v1214_v15, %v894_v14  ;;  %v1274_v24 = vld [vmem:[%s1818_s1 + $0xb0] sm:$0xff]  ;;  %v1265_v29 = vld [vmem:[%s1818_s1 + $0x68] sm:$0xff] }
   0x8   :  { %v1283_v22 = vld [vmem:[%s1818_s1 + $0xf8] sm:$0xff]  ;;  %v1266_v25 = vld [vmem:[%s1818_s1 + $0x70] sm:$0xff]  ;;  %v1281_v30 = vld [vmem:[%s1818_s1 + $0xe8] sm:$0xff] }
   0x9   :  { %v1291_v23 = vld [vmem:[%s1818_s1 + $0x138] sm:$0xff]  ;;  %v1282_v26 = vld [vmem:[%s1818_s1 + $0xf0] sm:$0xff]  ;;  %v1289_v31 = vld [vmem:[%s1818_s1 + $0x128] sm:$0xff] }
   0xa   :  { %1298 = vmatpush.bf16.msra.mxu1 %v1257_v2  ;;  %1299 = vmatpush.bf16.msra.mxu2 %v1257_v2  ;;  %v1290_v27 = vld [vmem:[%s1818_s1 + $0x130] sm:$0xff]  ;;  %v1272_v32 = vld [vmem:[%s1818_s1 + $0xa0] sm:$0xff]  ;;  %v954_v36 = vld [vmem:[%s1820_s0 + $0x78] sm:$0xf] }
   0xb   :  { %1300 = vmatpush.bf16.msra.mxu3 %v1257_v2  ;;  %596 = vmatpush.bf16.msra.mxu0 %v1257_v2  ;;  %v1264_v33 = vld [vmem:[%s1818_s1 + $0x60] sm:$0xff]  ;;  %v1229_v37 = vld [vmem:[%s1820_s0 + $0x88] sm:$0xf0]  ;;  %v994_v38 = vld [vmem:[%s1820_s0 + $0xc8] sm:$0xf] }
   0xc   :  { %v1280_v34 = vld [vmem:[%s1818_s1 + $0xe0] sm:$0xff]  ;;  %v1239_v39 = vld [vmem:[%s1820_s0 + $0xd8] sm:$0xf0]  ;;  %v1034_v40 = vld [vmem:[%s1820_s0 + $0x118] sm:$0xf]  ;;  %v955_v46 = vor.u32 %v1229_v37, %v954_v36 }
   0xd   :  { %v1288_v35 = vld [vmem:[%s1818_s1 + $0x120] sm:$0xff]  ;;  %v1249_v41 = vld [vmem:[%s1820_s0 + $0x128] sm:$0xf0]  ;;  %v914_v42 = vld [vmem:[%s1820_s0 + $0x28] sm:$0xf]  ;;  %v995_v47 = vor.u32 %v1239_v39, %v994_v38 }
   0xe   :  { %1301 = vmatpush.bf16.msra.mxu1 %v1256_v3  ;;  %1302 = vmatpush.bf16.msra.mxu2 %v1256_v3  ;;  %v1219_v43 = vld [vmem:[%s1820_s0 + $0x38] sm:$0xf0]  ;;  %v1035_v48 = vor.u32 %v1249_v41, %v1034_v40  ;;  %v1270_v52 = vld [vmem:[%s1818_s1 + $0x90] sm:$0xff]  ;;  %v1269_v56 = vld [vmem:[%s1818_s1 + $0x88] sm:$0xff] }
   0xf   :  { %1303 = vmatpush.bf16.msra.mxu3 %v1256_v3  ;;  %597 = vmatpush.bf16.msra.mxu0 %v1256_v3  ;;  %v1271_v44 = vld [vmem:[%s1818_s1 + $0x98] sm:$0xff]  ;;  %v915_v49 = vor.u32 %v1219_v43, %v914_v42  ;;  %v1262_v53 = vld [vmem:[%s1818_s1 + $0x50] sm:$0xff]  ;;  %v1261_v57 = vld [vmem:[%s1818_s1 + $0x48] sm:$0xff] }
  0x10   :  { %v1263_v45 = vld [vmem:[%s1818_s1 + $0x58] sm:$0xff]  ;;  %v1278_v54 = vld [vmem:[%s1818_s1 + $0xd0] sm:$0xff]  ;;  %v1277_v58 = vld [vmem:[%s1818_s1 + $0xc8] sm:$0xff] }
  0x11   :  { %v1279_v50 = vld [vmem:[%s1818_s1 + $0xd8] sm:$0xff]  ;;  %v1286_v55 = vld [vmem:[%s1818_s1 + $0x110] sm:$0xff]  ;;  %v1285_v59 = vld [vmem:[%s1818_s1 + $0x108] sm:$0xff] }
  0x12   :  { %1304 = vmatpush.bf16.msra.mxu1 %v1255_v4  ;;  %1305 = vmatpush.bf16.msra.mxu2 %v1255_v4  ;;  %v1287_v51 = vld [vmem:[%s1818_s1 + $0x118] sm:$0xff]  ;;  %v1268_v60 = vld [vmem:[%s1818_s1 + $0x80] sm:$0xff]  ;;  %v902_v2 = vld [vmem:[%s1820_s0 + $0x8] sm:$0xf] }
  0x13   :  { %1306 = vmatpush.bf16.msra.mxu3 %v1255_v4  ;;  %598 = vmatpush.bf16.msra.mxu0 %v1255_v4  ;;  %v1260_v61 = vld [vmem:[%s1818_s1 + $0x40] sm:$0xff]  ;;  %v896_v1 = vld [vmem:[%s1820_s0 + $0x14] sm:$0xf0]  ;;  %v1215_v3 = vld [vmem:[%s1820_s0 + $0x18] sm:$0xf0] }
  0x14   :  { %v1276_v62 = vld [vmem:[%s1818_s1 + $0xc0] sm:$0xff]  ;;  %v1213_v4 = vld [vmem:[%s1820_s0 + $0xc] sm:$0xf]  ;;  %v903_v9 = vor.u32 %v1215_v3, %v902_v2  ;;  %v922_v14 = vld [vmem:[%s1820_s0 + $0x30] sm:$0xf] }
  0x15   :  { %v1284_v63 = vld [vmem:[%s1818_s1 + $0x100] sm:$0xff]  ;;  %v1217_v12 = vld [vmem:[%s1820_s0 + $0x2c] sm:$0xf]  ;;  %v1227_v36 = vld [vmem:[%s1820_s0 + $0x7c] sm:$0xf] }
  0x16   :  { %1307 = vmatpush.bf16.msra.mxu1 %v1254_v5  ;;  %1308 = vmatpush.bf16.msra.mxu2 %v1254_v5  ;;  %v1212_v0 = vld [vmem:[%s1820_s0 + $0x4] sm:$0xf]  ;;  %v916_v13 = vld [vmem:[%s1820_s0 + $0x3c] sm:$0xf0]  ;;  %v956_v37 = vld [vmem:[%s1820_s0 + $0x8c] sm:$0xf0] }
  0x17   :  { %1309 = vmatpush.bf16.msra.mxu3 %v1254_v5  ;;  %599 = vmatpush.bf16.msra.mxu0 %v1254_v5  ;;  %v904_v5 = vld [vmem:[%s1820_s0 + $0x1c] sm:$0xf0]  ;;  %v899_v8 = vor.u32 %v1212_v0, %v896_v1  ;;  %v1220_v15 = vld [vmem:[%s1820_s0 + $0x40] sm:$0xf0]  ;;  %v1230_v39 = vld [vmem:[%s1820_s0 + $0x90] sm:$0xf0] }
  0x18   :  { %v907_v10 = vor.u32 %v1213_v4, %v904_v5  ;;  %v962_v38 = vld [vmem:[%s1820_s0 + $0x80] sm:$0xf]  ;;  %v1228_v40 = vld [vmem:[%s1820_s0 + $0x84] sm:$0xf]  ;;  %v964_v41 = vld [vmem:[%s1820_s0 + $0x94] sm:$0xf0] }
  0x19   :  { %v970_v42 = vld [vmem:[%s1820_s0 + $0x88] sm:$0xf]  ;;  %v1231_v43 = vld [vmem:[%s1820_s0 + $0x98] sm:$0xf0]  ;;  %v1238_v0 = vld [vmem:[%s1820_s0 + $0xd4] sm:$0xf] }
  0x1a   :  { %1310 = vmatpush.bf16.msra.mxu1 %v1253_v6  ;;  %1311 = vmatpush.bf16.msra.mxu2 %v1253_v6  ;;  %v1004_v1 = vld [vmem:[%s1820_s0 + $0xe4] sm:$0xf0]  ;;  %v1010_v2 = vld [vmem:[%s1820_s0 + $0xd8] sm:$0xf]  ;;  %v1241_v3 = vld [vmem:[%s1820_s0 + $0xe8] sm:$0xf0] }
  0x1b   :  { %1312 = vmatpush.bf16.msra.mxu3 %v1253_v6  ;;  %600 = vmatpush.bf16.msra.mxu0 %v1253_v6  ;;  %v910_v6 = vld [vmem:[%s1820_s0 + $0x10] sm:$0xf] }
  0x1e   :  { %1313 = vmatpush.bf16.msra.mxu1 %v1252_v7  ;;  %1314 = vmatpush.bf16.msra.mxu2 %v1252_v7 }
  0x1f   :  { %1315 = vmatpush.bf16.msra.mxu3 %v1252_v7  ;;  %601 = vmatpush.bf16.msra.mxu0 %v1252_v7  ;;  %v1216_v7 = vld [vmem:[%s1820_s0 + $0x20] sm:$0xf0] }
  0x20   :  { %v911_v11 = vor.u32 %v1216_v7, %v910_v6  ;;  %v1007_v6 = vor.u32 %v1238_v0, %v1004_v1  ;;  %v1011_v7 = vor.u32 %v1241_v3, %v1010_v2 }
  0x21   :  { %612 = vmatmul.bf16.vlgmr.msra.gmra.mxu1 %v935_v18  ;;  %622 = vmatmul.bf16.vlgmr.msra.gmra.mxu2 %v975_v19  ;;  %v930_v18 = vld [vmem:[%s1820_s0 + $0x38] sm:$0xf]  ;;  %v1221_v19 = vld [vmem:[%s1820_s0 + $0x48] sm:$0xf0] }
  0x22   :  { %692 = vmatpush.bf16.msrb.mxu2 %v1275_v16  ;;  %643 = vmatpush.bf16.msrb.mxu1 %v1267_v17  ;;  %v1218_v16 = vld [vmem:[%s1820_s0 + $0x34] sm:$0xf]  ;;  %v924_v17 = vld [vmem:[%s1820_s0 + $0x44] sm:$0xf0] }
  0x23   :  { %632 = vmatmul.bf16.vlgmr.msra.gmra.mxu3 %v1015_v20  ;;  %602 = vmatmul.bf16.vlgmr.msra.gmra.mxu0 %v895_v21  ;;  %v919_v20 = vor.u32 %v1217_v12, %v916_v13  ;;  %v923_v21 = vor.u32 %v1220_v15, %v922_v14  ;;  %v1243_v12 = vld [vmem:[%s1820_s0 + $0xfc] sm:$0xf]  ;;  %v1024_v13 = vld [vmem:[%s1820_s0 + $0x10c] sm:$0xf0]  ;;  %v1030_v14 = vld [vmem:[%s1820_s0 + $0x100] sm:$0xf] }
  0x24   :  { %741 = vmatpush.bf16.msrb.mxu3 %v1283_v22  ;;  %790 = vmatpush.bf16.msrb.mxu0 %v1291_v23  ;;  %v927_v22 = vor.u32 %v1218_v16, %v924_v17  ;;  %v931_v23 = vor.u32 %v1221_v19, %v930_v18  ;;  %v1246_v15 = vld [vmem:[%s1820_s0 + $0x110] sm:$0xf0]  ;;  %v1027_v19 = vor.u32 %v1243_v12, %v1024_v13 }
  0x26   :  { %693 = vmatpush.bf16.msrb.mxu2 %v1274_v24  ;;  %644 = vmatpush.bf16.msrb.mxu1 %v1266_v25  ;;  %v1222_v24 = vld [vmem:[%s1820_s0 + $0x54] sm:$0xf]  ;;  %v936_v25 = vld [vmem:[%s1820_s0 + $0x64] sm:$0xf0] }
  0x28   :  { %742 = vmatpush.bf16.msrb.mxu3 %v1282_v26  ;;  %791 = vmatpush.bf16.msrb.mxu0 %v1290_v27  ;;  %v942_v26 = vld [vmem:[%s1820_s0 + $0x58] sm:$0xf]  ;;  %v1225_v27 = vld [vmem:[%s1820_s0 + $0x68] sm:$0xf0] }
  0x2a   :  { %694 = vmatpush.bf16.msrb.mxu2 %v1273_v28  ;;  %645 = vmatpush.bf16.msrb.mxu1 %v1265_v29  ;;  %v1223_v28 = vld [vmem:[%s1820_s0 + $0x5c] sm:$0xf]  ;;  %v944_v29 = vld [vmem:[%s1820_s0 + $0x6c] sm:$0xf0] }
  0x2c   :  { %743 = vmatpush.bf16.msrb.mxu3 %v1281_v30  ;;  %792 = vmatpush.bf16.msrb.mxu0 %v1289_v31  ;;  %v950_v30 = vld [vmem:[%s1820_s0 + $0x60] sm:$0xf]  ;;  %v1226_v31 = vld [vmem:[%s1820_s0 + $0x70] sm:$0xf0] }
  0x2e   :  { %695 = vmatpush.bf16.msrb.mxu2 %v1272_v32  ;;  %646 = vmatpush.bf16.msrb.mxu1 %v1264_v33  ;;  %v939_v32 = vor.u32 %v1222_v24, %v936_v25  ;;  %v943_v33 = vor.u32 %v1225_v27, %v942_v26 }
  0x30   :  { %744 = vmatpush.bf16.msrb.mxu3 %v1280_v34  ;;  %793 = vmatpush.bf16.msrb.mxu0 %v1288_v35  ;;  %v947_v34 = vor.u32 %v1223_v28, %v944_v29  ;;  %v951_v35 = vor.u32 %v1226_v31, %v950_v30  ;;  %v1247_v29 = vld [vmem:[%s1820_s0 + $0x11c] sm:$0xf]  ;;  %v1036_v30 = vld [vmem:[%s1820_s0 + $0x12c] sm:$0xf0]  ;;  %v1042_v31 = vld [vmem:[%s1820_s0 + $0x120] sm:$0xf] }
  0x31   :  { %617 = vmatmul.bf16.gmra.mxu1 %v955_v46  ;;  %627 = vmatmul.bf16.gmra.mxu2 %v995_v47  ;;  %v967_v46 = vor.u32 %v1228_v40, %v964_v41  ;;  %v971_v47 = vor.u32 %v1231_v43, %v970_v42  ;;  %v1039_v40 = vor.u32 %v1247_v29, %v1036_v30 }
  0x32   :  { %696 = vmatpush.bf16.msrb.mxu2 %v1271_v44  ;;  %647 = vmatpush.bf16.msrb.mxu1 %v1263_v45  ;;  %v959_v44 = vor.u32 %v1227_v36, %v956_v37  ;;  %v963_v45 = vor.u32 %v1230_v39, %v962_v38  ;;  %v1251_v36 = vld [vmem:[%s1820_s0 + $0x138] sm:$0xf0] }
  0x33   :  { %637 = vmatmul.bf16.gmra.mxu3 %v1035_v48  ;;  %607 = vmatmul.bf16.gmra.mxu0 %v915_v49  ;;  %v1232_v48 = vld [vmem:[%s1820_s0 + $0xa4] sm:$0xf]  ;;  %v976_v49 = vld [vmem:[%s1820_s0 + $0xb4] sm:$0xf0] }
  0x34   :  { %745 = vmatpush.bf16.msrb.mxu3 %v1279_v50  ;;  %794 = vmatpush.bf16.msrb.mxu0 %v1287_v51  ;;  %v982_v50 = vld [vmem:[%s1820_s0 + $0xa8] sm:$0xf]  ;;  %v1235_v51 = vld [vmem:[%s1820_s0 + $0xb8] sm:$0xf0] }
  0x36   :  { %697 = vmatpush.bf16.msrb.mxu2 %v1270_v52  ;;  %648 = vmatpush.bf16.msrb.mxu1 %v1262_v53  ;;  %v1233_v52 = vld [vmem:[%s1820_s0 + $0xac] sm:$0xf]  ;;  %v984_v53 = vld [vmem:[%s1820_s0 + $0xbc] sm:$0xf0] }
  0x38   :  { %746 = vmatpush.bf16.msrb.mxu3 %v1278_v54  ;;  %795 = vmatpush.bf16.msrb.mxu0 %v1286_v55  ;;  %v990_v54 = vld [vmem:[%s1820_s0 + $0xb0] sm:$0xf]  ;;  %v1236_v55 = vld [vmem:[%s1820_s0 + $0xc0] sm:$0xf0] }
  0x3a   :  { %698 = vmatpush.bf16.msrb.mxu2 %v1269_v56  ;;  %649 = vmatpush.bf16.msrb.mxu1 %v1261_v57  ;;  %v979_v56 = vor.u32 %v1232_v48, %v976_v49  ;;  %v983_v57 = vor.u32 %v1235_v51, %v982_v50 }
  0x3c   :  { %747 = vmatpush.bf16.msrb.mxu3 %v1277_v58  ;;  %796 = vmatpush.bf16.msrb.mxu0 %v1285_v59  ;;  %v987_v58 = vor.u32 %v1233_v52, %v984_v53  ;;  %v991_v59 = vor.u32 %v1236_v55, %v990_v54 }
  0x3e   :  { %699 = vmatpush.bf16.msrb.mxu2 %v1268_v60  ;;  %650 = vmatpush.bf16.msrb.mxu1 %v1260_v61  ;;  %v1237_v60 = vld [vmem:[%s1820_s0 + $0xcc] sm:$0xf]  ;;  %v996_v61 = vld [vmem:[%s1820_s0 + $0xdc] sm:$0xf0] }
  0x3f   :  { %v999_v4 = vor.u32 %v1237_v60, %v996_v61 }
  0x40   :  { %748 = vmatpush.bf16.msrb.mxu3 %v1276_v62  ;;  %797 = vmatpush.bf16.msrb.mxu0 %v1284_v63  ;;  %v1002_v62 = vld [vmem:[%s1820_s0 + $0xd0] sm:$0xf]  ;;  %v1240_v63 = vld [vmem:[%s1820_s0 + $0xe0] sm:$0xf0] }
  0x41   :  { %651 = vmatmul.bf16.vlgmr.msrb.gmra.mxu1 %v899_v8  ;;  %700 = vmatmul.bf16.vlgmr.msrb.gmra.mxu2 %v903_v9  ;;  %v1003_v5 = vor.u32 %v1240_v63, %v1002_v62  ;;  %v1242_v8 = vld [vmem:[%s1820_s0 + $0xf4] sm:$0xf]  ;;  %v1016_v9 = vld [vmem:[%s1820_s0 + $0x104] sm:$0xf0] }
  0x42   :  { %v1019_v16 = vor.u32 %v1242_v8, %v1016_v9 }
  0x43   :  { %749 = vmatmul.bf16.vlgmr.msrb.gmra.mxu3 %v907_v10  ;;  %798 = vmatmul.bf16.vlgmr.msrb.gmra.mxu0 %v911_v11  ;;  %v1022_v10 = vld [vmem:[%s1820_s0 + $0xf8] sm:$0xf]  ;;  %v1245_v11 = vld [vmem:[%s1820_s0 + $0x108] sm:$0xf0] }
  0x44   :  { %v1023_v17 = vor.u32 %v1245_v11, %v1022_v10 }
  0x51   :  { %656 = vmatmul.bf16.gmra.mxu1 %v919_v20  ;;  %705 = vmatmul.bf16.gmra.mxu2 %v923_v21  ;;  %v1031_v20 = vor.u32 %v1246_v15, %v1030_v14 }
  0x53   :  { %754 = vmatmul.bf16.gmra.mxu3 %v927_v22  ;;  %803 = vmatmul.bf16.gmra.mxu0 %v931_v23  ;;  %v1678_v22 = vld [vmem:[%s1819_s2] ss:$0 sm:$0xff] }
  0x61   :  { %661 = vmatmul.bf16.gmra.mxu1 %v939_v32  ;;  %710 = vmatmul.bf16.gmra.mxu2 %v943_v33  ;;  %v1250_v32 = vld [vmem:[%s1820_s0 + $0x130] sm:$0xf0]  ;;  %v1248_v33 = vld [vmem:[%s1820_s0 + $0x124] sm:$0xf] }
  0x62   :  { %v1043_v41 = vor.u32 %v1250_v32, %v1042_v31 }
  0x63   :  { %759 = vmatmul.bf16.gmra.mxu3 %v947_v34  ;;  %808 = vmatmul.bf16.gmra.mxu0 %v951_v35  ;;  %v1044_v34 = vld [vmem:[%s1820_s0 + $0x134] sm:$0xf0]  ;;  %v1050_v35 = vld [vmem:[%s1820_s0 + $0x128] sm:$0xf] }
  0x71   :  { %666 = vmatmul.bf16.gmra.mxu1 %v959_v44  ;;  %715 = vmatmul.bf16.gmra.mxu2 %v963_v45  ;;  %v1047_v44 = vor.u32 %v1248_v33, %v1044_v34  ;;  %v1051_v45 = vor.u32 %v1251_v36, %v1050_v35 }
  0x73   :  { %764 = vmatmul.bf16.gmra.mxu3 %v967_v46  ;;  %813 = vmatmul.bf16.gmra.mxu0 %v971_v47 }
  0x81   :  { %671 = vmatmul.bf16.gmra.mxu1 %v979_v56  ;;  %720 = vmatmul.bf16.gmra.mxu2 %v983_v57 }
  0x83   :  { %769 = vmatmul.bf16.gmra.mxu3 %v987_v58  ;;  %818 = vmatmul.bf16.gmra.mxu0 %v991_v59 }
  0x91   :  { %676 = vmatmul.bf16.gmra.mxu1 %v999_v4  ;;  %725 = vmatmul.bf16.gmra.mxu2 %v1003_v5 }
  0x93   :  { %774 = vmatmul.bf16.gmra.mxu3 %v1007_v6  ;;  %823 = vmatmul.bf16.gmra.mxu0 %v1011_v7 }
  0x9e   :  { %v1673_v18 = vpop.f32.mrf.mxu1 }
  0xa0   :  { %v603_v21 = vpop.f32.mrf.mxu0 }
  0xa1   :  { %681 = vmatmul.bf16.gmra.mxu1 %v1019_v16  ;;  %730 = vmatmul.bf16.gmra.mxu2 %v1023_v17  ;;  %v604_v59 = vadd.f32 %v1678_v22, %v603_v21 }
  0xa3   :  { %779 = vmatmul.bf16.gmra.mxu3 %v1027_v19  ;;  %828 = vmatmul.bf16.gmra.mxu0 %v1031_v20 }
  0xa4   :  { %v623_v23 = vpop.f32.mrf.mxu2 }
  0xa5   :  { %v1681_v24 = vadd.f32 %v1678_v22, %v623_v23 }
  0xa6   :  { %v633_v25 = vpop.f32.mrf.mxu3  ;;  %v1686_v27 = vpop.f32.mrf.mxu1 }
  0xa7   :  { %v1684_v26 = vadd.f32 %v1678_v22, %v633_v25 }
  0xa8   :  { %v605_v28 = vpop.f32.mrf.mxu0 }
  0xa9   :  { %v606_v3 = vadd.f32 %v1678_v22, %v605_v28 }
  0xac   :  { %v625_v37 = vpop.f32.mrf.mxu2 }
  0xad   :  { %v1713_v38 = vadd.f32 %v1678_v22, %v625_v37 }
  0xae   :  { %v635_v39 = vpop.f32.mrf.mxu3  ;;  %v1718_v43 = vpop.f32.mrf.mxu1 }
  0xaf   :  { %v1716_v42 = vadd.f32 %v1678_v22, %v635_v39 }
  0xb0   :  { %v608_v46 = vpop.f32.mrf.mxu0 }
  0xb1   :  { %686 = vmatmul.bf16.gmra.mxu1 %v1039_v40  ;;  %735 = vmatmul.bf16.gmra.mxu2 %v1043_v41  ;;  %v609_v14 = vadd.f32 %v1678_v22, %v608_v46 }
  0xb3   :  { %784 = vmatmul.bf16.gmra.mxu3 %v1047_v44  ;;  %833 = vmatmul.bf16.gmra.mxu0 %v1051_v45  ;;  %v614_v44 = vadd.f32 %v1678_v22, %v1673_v18 }
  0xb4   :  { %v628_v47 = vpop.f32.mrf.mxu2 }
  0xb5   :  { %v1721_v48 = vadd.f32 %v1678_v22, %v628_v47 }
  0xb6   :  { %v638_v49 = vpop.f32.mrf.mxu3  ;;  %v1726_v51 = vpop.f32.mrf.mxu1 }
  0xb7   :  { %v1724_v50 = vadd.f32 %v1678_v22, %v638_v49 }
  0xb8   :  { %v610_v52 = vpop.f32.mrf.mxu0 }
  0xb9   :  { %v611_v30 = vadd.f32 %v1678_v22, %v610_v52 }
  0xbc   :  { %v630_v53 = vpop.f32.mrf.mxu2 }
  0xbd   :  { %v1729_v54 = vadd.f32 %v1678_v22, %v630_v53 }
  0xbe   :  { %v640_v55 = vpop.f32.mrf.mxu3  ;;  %v652_v57 = vpop.f32.mrf.mxu1 }
  0xbf   :  { %v1732_v56 = vadd.f32 %v1678_v22, %v640_v55  ;;  %v653_v60 = vadd.f32 %v652_v57, %v604_v59 }
  0xc0   :  { %v799_v58 = vpop.f32.mrf.mxu0 }
  0xc4   :  { %v701_v61 = vpop.f32.mrf.mxu2 }
  0xc5   :  { %v702_v62 = vadd.f32 %v701_v61, %v653_v60  ;;  %v616_v60 = vadd.f32 %v1678_v22, %v1686_v27 }
  0xc6   :  { %v750_v63 = vpop.f32.mrf.mxu3  ;;  %v654_v0 = vpop.f32.mrf.mxu1 }
  0xc7   :  { %v751_v1 = vadd.f32 %v750_v63, %v702_v62  ;;  %v655_v6 = vadd.f32 %v654_v0, %v606_v3 }
  0xc8   :  { %v801_v2 = vpop.f32.mrf.mxu0 }
  0xc9   :  { %v800_v4 = vadd.f32 %v799_v58, %v751_v1 }
  0xcb   :  { %v839_v5 = vmax.f32 %v800_v4, 0.0 }
  0xcc   :  { %v703_v7 = vpop.f32.mrf.mxu2 }
  0xcd   :  { %v855_v8 = vpack.c.bf16 %v839_v5, %v839_v5  ;;  %v704_v9 = vadd.f32 %v703_v7, %v655_v6  ;;  %v619_v6 = vadd.f32 %v1678_v22, %v1718_v43 }
  0xce   :  { %v752_v10 = vpop.f32.mrf.mxu3  ;;  %v657_v11 = vpop.f32.mrf.mxu1 }
  0xcf   :  { %872 = vst.msk [vmem:[%s1821_s3] sm:$0xf] %vm871_vm0, %v855_v8  ;;  %v753_v12 = vadd.f32 %v752_v10, %v704_v9  ;;  %v658_v17 = vadd.f32 %v657_v11, %v609_v14 }
  0xd0   :  { %v804_v13 = vpop.f32.mrf.mxu0 }
  0xd1   :  { %v802_v15 = vadd.f32 %v801_v2, %v753_v12 }
  0xd3   :  { %v840_v16 = vmax.f32 %v802_v15, 0.0 }
  0xd4   :  { %v706_v19 = vpop.f32.mrf.mxu2 }
  0xd5   :  { %v856_v20 = vpack.c.bf16 %v840_v16, %v840_v16  ;;  %v707_v21 = vadd.f32 %v706_v19, %v658_v17  ;;  %v621_v16 = vadd.f32 %v1678_v22, %v1726_v51 }
  0xd6   :  { %v755_v23 = vpop.f32.mrf.mxu3  ;;  %v659_v25 = vpop.f32.mrf.mxu1 }
  0xd7   :  { %873 = vst.msk [vmem:[%s1821_s3 + $0x4] sm:$0xf] %vm871_vm0, %v856_v20  ;;  %v756_v28 = vadd.f32 %v755_v23, %v707_v21  ;;  %v660_v33 = vadd.f32 %v659_v25, %v611_v30 }
  0xd8   :  { %v806_v29 = vpop.f32.mrf.mxu0 }
  0xd9   :  { %v805_v31 = vadd.f32 %v804_v13, %v756_v28 }
  0xdb   :  { %v841_v32 = vmax.f32 %v805_v31, 0.0 }
  0xdc   :  { %v708_v34 = vpop.f32.mrf.mxu2 }
  0xdd   :  { %v857_v35 = vpack.c.bf16 %v841_v32, %v841_v32  ;;  %v709_v36 = vadd.f32 %v708_v34, %v660_v33 }
  0xde   :  { %v757_v37 = vpop.f32.mrf.mxu3  ;;  %v662_v39 = vpop.f32.mrf.mxu1 }
  0xdf   :  { %874 = vst.msk [vmem:[%s1821_s3 + $0x8] sm:$0xf] %vm871_vm0, %v857_v35  ;;  %v758_v40 = vadd.f32 %v757_v37, %v709_v36  ;;  %v663_v47 = vadd.f32 %v662_v39, %v614_v44 }
  0xe0   :  { %v809_v41 = vpop.f32.mrf.mxu0 }
  0xe1   :  { %v807_v45 = vadd.f32 %v806_v29, %v758_v40 }
  0xe3   :  { %v842_v46 = vmax.f32 %v807_v45, 0.0 }
  0xe4   :  { %v711_v49 = vpop.f32.mrf.mxu2 }
  0xe5   :  { %v858_v52 = vpack.c.bf16 %v842_v46, %v842_v46  ;;  %v712_v53 = vadd.f32 %v711_v49, %v663_v47 }
  0xe6   :  { %v760_v55 = vpop.f32.mrf.mxu3  ;;  %v664_v57 = vpop.f32.mrf.mxu1 }
  0xe7   :  { %875 = vst.msk [vmem:[%s1821_s3 + $0xc] sm:$0xf] %vm871_vm0, %v858_v52  ;;  %v761_v58 = vadd.f32 %v760_v55, %v712_v53  ;;  %v665_v62 = vadd.f32 %v664_v57, %v616_v60 }
  0xe8   :  { %v811_v59 = vpop.f32.mrf.mxu0 }
  0xe9   :  { %v810_v61 = vadd.f32 %v809_v41, %v761_v58 }
  0xeb   :  { %v843_v18 = vmax.f32 %v810_v61, 0.0 }
  0xec   :  { %v713_v63 = vpop.f32.mrf.mxu2 }
  0xed   :  { %v859_v0 = vpack.c.bf16 %v843_v18, %v843_v18  ;;  %v714_v1 = vadd.f32 %v713_v63, %v665_v62 }
  0xee   :  { %v762_v2 = vpop.f32.mrf.mxu3  ;;  %v667_v3 = vpop.f32.mrf.mxu1 }
  0xef   :  { %876 = vst.msk [vmem:[%s1821_s3 + $0x10] sm:$0xf] %vm871_vm0, %v859_v0  ;;  %v763_v4 = vadd.f32 %v762_v2, %v714_v1  ;;  %v668_v8 = vadd.f32 %v667_v3, %v619_v6 }
  0xf0   :  { %v814_v5 = vpop.f32.mrf.mxu0 }
  0xf1   :  { %v812_v7 = vadd.f32 %v811_v59, %v763_v4 }
  0xf3   :  { %v844_v27 = vmax.f32 %v812_v7, 0.0 }
  0xf4   :  { %v716_v9 = vpop.f32.mrf.mxu2 }
  0xf5   :  { %v860_v10 = vpack.c.bf16 %v844_v27, %v844_v27  ;;  %v717_v11 = vadd.f32 %v716_v9, %v668_v8 }
  0xf6   :  { %v765_v12 = vpop.f32.mrf.mxu3  ;;  %v669_v13 = vpop.f32.mrf.mxu1 }
  0xf7   :  { %877 = vst.msk [vmem:[%s1821_s3 + $0x14] sm:$0xf] %vm871_vm0, %v860_v10  ;;  %v766_v14 = vadd.f32 %v765_v12, %v717_v11  ;;  %v670_v19 = vadd.f32 %v669_v13, %v621_v16 }
  0xf8   :  { %v816_v15 = vpop.f32.mrf.mxu0 }
  0xf9   :  { %v815_v17 = vadd.f32 %v814_v5, %v766_v14 }
  0xfb   :  { %v845_v43 = vmax.f32 %v815_v17, 0.0 }
  0xfc   :  { %v718_v20 = vpop.f32.mrf.mxu2 }
  0xfd   :  { %v861_v21 = vpack.c.bf16 %v845_v43, %v845_v43  ;;  %v719_v23 = vadd.f32 %v718_v20, %v670_v19 }
  0xfe   :  { %v767_v25 = vpop.f32.mrf.mxu3  ;;  %v672_v28 = vpop.f32.mrf.mxu1 }
  0xff   :  { %878 = vst.msk [vmem:[%s1821_s3 + $0x18] sm:$0xf] %vm871_vm0, %v861_v21  ;;  %v768_v29 = vadd.f32 %v767_v25, %v719_v23  ;;  %v673_v33 = vadd.f32 %v672_v28, %v1681_v24 }
 0x100   :  { %v819_v30 = vpop.f32.mrf.mxu0 }
 0x101   :  { %v817_v31 = vadd.f32 %v816_v15, %v768_v29 }
 0x103   :  { %v846_v32 = vmax.f32 %v817_v31, 0.0 }
 0x104   :  { %v721_v22 = vpop.f32.mrf.mxu2 }
 0x105   :  { %v862_v51 = vpack.c.bf16 %v846_v32, %v846_v32  ;;  %v722_v34 = vadd.f32 %v721_v22, %v673_v33 }
 0x106   :  { %v770_v35 = vpop.f32.mrf.mxu3  ;;  %v674_v36 = vpop.f32.mrf.mxu1 }
 0x107   :  { %879 = vst.msk [vmem:[%s1821_s3 + $0x1c] sm:$0xf] %vm871_vm0, %v862_v51  ;;  %v771_v37 = vadd.f32 %v770_v35, %v722_v34  ;;  %v675_v44 = vadd.f32 %v674_v36, %v1713_v38 }
 0x108   :  { %v821_v39 = vpop.f32.mrf.mxu0 }
 0x109   :  { %v820_v40 = vadd.f32 %v819_v30, %v771_v37 }
 0x10b   :  { %v847_v41 = vmax.f32 %v820_v40, 0.0 }
 0x10c   :  { %v723_v45 = vpop.f32.mrf.mxu2 }
 0x10d   :  { %v863_v46 = vpack.c.bf16 %v847_v41, %v847_v41  ;;  %v724_v47 = vadd.f32 %v723_v45, %v675_v44 }
 0x10e   :  { %v772_v24 = vpop.f32.mrf.mxu3  ;;  %v677_v49 = vpop.f32.mrf.mxu1 }
 0x10f   :  { %880 = vst.msk [vmem:[%s1821_s3 + $0x20] sm:$0xf] %vm871_vm0, %v863_v46  ;;  %v773_v52 = vadd.f32 %v772_v24, %v724_v47  ;;  %v678_v58 = vadd.f32 %v677_v49, %v1721_v48 }
 0x110   :  { %v824_v53 = vpop.f32.mrf.mxu0 }
 0x111   :  { %v822_v55 = vadd.f32 %v821_v39, %v773_v52 }
 0x113   :  { %v848_v57 = vmax.f32 %v822_v55, 0.0 }
 0x114   :  { %v726_v59 = vpop.f32.mrf.mxu2 }
 0x115   :  { %v864_v60 = vpack.c.bf16 %v848_v57, %v848_v57  ;;  %v727_v61 = vadd.f32 %v726_v59, %v678_v58 }
 0x116   :  { %v775_v38 = vpop.f32.mrf.mxu3  ;;  %v679_v18 = vpop.f32.mrf.mxu1 }
 0x117   :  { %881 = vst.msk [vmem:[%s1821_s3 + $0x24] sm:$0xf] %vm871_vm0, %v864_v60  ;;  %v776_v62 = vadd.f32 %v775_v38, %v727_v61  ;;  %v680_v2 = vadd.f32 %v679_v18, %v1729_v54 }
 0x118   :  { %v826_v63 = vpop.f32.mrf.mxu0 }
 0x119   :  { %v825_v0 = vadd.f32 %v824_v53, %v776_v62 }
 0x11b   :  { %v849_v1 = vmax.f32 %v825_v0, 0.0 }
 0x11c   :  { %v728_v3 = vpop.f32.mrf.mxu2 }
 0x11d   :  { %v865_v4 = vpack.c.bf16 %v849_v1, %v849_v1  ;;  %v729_v5 = vadd.f32 %v728_v3, %v680_v2 }
 0x11e   :  { %v777_v48 = vpop.f32.mrf.mxu3  ;;  %v682_v6 = vpop.f32.mrf.mxu1 }
 0x11f   :  { %882 = vst.msk [vmem:[%s1821_s3 + $0x28] sm:$0xf] %vm871_vm0, %v865_v4  ;;  %v778_v7 = vadd.f32 %v777_v48, %v729_v5  ;;  %v683_v10 = vadd.f32 %v682_v6, %v1684_v26 }
 0x120   :  { %v829_v8 = vpop.f32.mrf.mxu0 }
 0x121   :  { %v827_v27 = vadd.f32 %v826_v63, %v778_v7 }
 0x123   :  { %v850_v9 = vmax.f32 %v827_v27, 0.0 }
 0x124   :  { %v731_v11 = vpop.f32.mrf.mxu2 }
 0x125   :  { %v866_v12 = vpack.c.bf16 %v850_v9, %v850_v9  ;;  %v732_v13 = vadd.f32 %v731_v11, %v683_v10 }
 0x126   :  { %v780_v54 = vpop.f32.mrf.mxu3  ;;  %v684_v14 = vpop.f32.mrf.mxu1 }
 0x127   :  { %883 = vst.msk [vmem:[%s1821_s3 + $0x2c] sm:$0xf] %vm871_vm0, %v866_v12  ;;  %v781_v15 = vadd.f32 %v780_v54, %v732_v13  ;;  %v685_v43 = vadd.f32 %v684_v14, %v1716_v42 }
 0x128   :  { %v831_v19 = vpop.f32.mrf.mxu0 }
 0x129   :  { %v830_v16 = vadd.f32 %v829_v8, %v781_v15 }
 0x12b   :  { %v851_v17 = vmax.f32 %v830_v16, 0.0 }
 0x12c   :  { %v733_v20 = vpop.f32.mrf.mxu2 }
 0x12d   :  { %v867_v21 = vpack.c.bf16 %v851_v17, %v851_v17  ;;  %v734_v23 = vadd.f32 %v733_v20, %v685_v43 }
 0x12e   :  { %v782_v26 = vpop.f32.mrf.mxu3  ;;  %v687_v25 = vpop.f32.mrf.mxu1 }
 0x12f   :  { %884 = vst.msk [vmem:[%s1821_s3 + $0x30] sm:$0xf] %vm871_vm0, %v867_v21  ;;  %v783_v28 = vadd.f32 %v782_v26, %v734_v23  ;;  %v688_v31 = vadd.f32 %v687_v25, %v1724_v50 }
 0x130   :  { %v834_v51 = vpop.f32.mrf.mxu0 }
 0x131   :  { %v832_v29 = vadd.f32 %v831_v19, %v783_v28 }
 0x133   :  { %v852_v30 = vmax.f32 %v832_v29, 0.0 }
 0x134   :  { %v736_v32 = vpop.f32.mrf.mxu2 }
 0x135   :  { %v868_v33 = vpack.c.bf16 %v852_v30, %v852_v30  ;;  %v737_v22 = vadd.f32 %v736_v32, %v688_v31 }
 0x136   :  { %v785_v42 = vpop.f32.mrf.mxu3  ;;  %v689_v35 = vpop.f32.mrf.mxu1 }
 0x137   :  { %885 = vst.msk [vmem:[%s1821_s3 + $0x34] sm:$0xf] %vm871_vm0, %v868_v33  ;;  %v786_v34 = vadd.f32 %v785_v42, %v737_v22  ;;  %v690_v39 = vadd.f32 %v689_v35, %v1732_v56 }
 0x138   :  { %v836_v46 = vpop.f32.mrf.mxu0 }
 0x139   :  { %v835_v36 = vadd.f32 %v834_v51, %v786_v34 }
 0x13b   :  { %v853_v37 = vmax.f32 %v835_v36, 0.0 }
 0x13c   :  { %v738_v40 = vpop.f32.mrf.mxu2 }
 0x13d   :  { %v869_v41 = vpack.c.bf16 %v853_v37, %v853_v37  ;;  %v739_v44 = vadd.f32 %v738_v40, %v690_v39 }
 0x13e   :  { %v787_v50 = vpop.f32.mrf.mxu3 }
 0x13f   :  { %886 = vst.msk [vmem:[%s1821_s3 + $0x38] sm:$0xf] %vm871_vm0, %v869_v41  ;;  %v788_v45 = vadd.f32 %v787_v50, %v739_v44 }
 0x141   :  { %v837_v47 = vadd.f32 %v836_v46, %v788_v45 }
 0x143   :  { %v854_v24 = vmax.f32 %v837_v47, 0.0 }
 0x145   :  { %v870_v49 = vpack.c.bf16 %v854_v24, %v854_v24 }
 0x147   :  { %887 = vst.msk [vmem:[%s1821_s3 + $0x3c] sm:$0xf] %vm871_vm0, %v870_v49 }

// kernel: _lambda_.9
= control target key start
LH: loop header
LB: loop body
LE: loop exit
PB: predicated region body
PF: predicated region fallthrough
CT: control target
= control target key end

     0   :  { %vm922_vm0 = vcmask 519168   ;;  %s1937_s1 = inlined_call_operand.vmem [shape: bf16[640,64], index: 1, kind: input, shape index: {}]   ;;  %s1938_s2 = inlined_call_operand.vmem [shape: f32[1,64], index: 2, kind: input, shape index: {}]   ;;  %s1939_s0 = inlined_call_operand.vmem [shape: bf16[128,640], index: 0, kind: input, shape index: {}]   ;;  %s1940_s3 = inlined_call_operand.vmem [shape: bf16[128,64], index: 3, kind: input, shape index: {}]   ;;  %s1941_s4 = inlined_call_operand.vmem [shape: bf16[128,64], index: 4, kind: output, shape index: {}]  }
   0x1   :  { %v1310_v0 = vld [vmem:[%s1937_s1 + $0x38] sm:$0xff]  ;;  %v1309_v1 = vld [vmem:[%s1937_s1 + $0x30] sm:$0xff]  ;;  %v1308_v2 = vld [vmem:[%s1937_s1 + $0x28] sm:$0xff] }
   0x2   :  { %1382 = vmatpush.bf16.msra.mxu1 %v1310_v0  ;;  %1383 = vmatpush.bf16.msra.mxu2 %v1310_v0  ;;  %v1307_v3 = vld [vmem:[%s1937_s1 + $0x20] sm:$0xff]  ;;  %v1306_v4 = vld [vmem:[%s1937_s1 + $0x18] sm:$0xff]  ;;  %v1305_v5 = vld [vmem:[%s1937_s1 + $0x10] sm:$0xff] }
   0x3   :  { %1384 = vmatpush.bf16.msra.mxu3 %v1310_v0  ;;  %597 = vmatpush.bf16.msra.mxu0 %v1310_v0  ;;  %v1304_v6 = vld [vmem:[%s1937_s1 + $0x8] sm:$0xff]  ;;  %v1303_v7 = vld [vmem:[%s1937_s1] sm:$0xff]  ;;  %v985_v8 = vld [vmem:[%s1939_s0 + $0x50] sm:$0xf] }
   0x4   :  { %v1275_v9 = vld [vmem:[%s1939_s0 + $0x60] sm:$0xf0]  ;;  %v1025_v10 = vld [vmem:[%s1939_s0 + $0xa0] sm:$0xf]  ;;  %v1285_v11 = vld [vmem:[%s1939_s0 + $0xb0] sm:$0xf0] }
   0x5   :  { %v1065_v12 = vld [vmem:[%s1939_s0 + $0xf0] sm:$0xf]  ;;  %v1295_v13 = vld [vmem:[%s1939_s0 + $0x100] sm:$0xf0]  ;;  %v945_v14 = vld [vmem:[%s1939_s0] sm:$0xf]  ;;  %v986_v18 = vor.u32 %v1275_v9, %v985_v8  ;;  %v1026_v19 = vor.u32 %v1285_v11, %v1025_v10 }
   0x6   :  { %1385 = vmatpush.bf16.msra.mxu1 %v1309_v1  ;;  %1386 = vmatpush.bf16.msra.mxu2 %v1309_v1  ;;  %v1265_v15 = vld [vmem:[%s1939_s0 + $0x10] sm:$0xf0]  ;;  %v1326_v16 = vld [vmem:[%s1937_s1 + $0xb8] sm:$0xff]  ;;  %v1066_v20 = vor.u32 %v1295_v13, %v1065_v12  ;;  %v1324_v28 = vld [vmem:[%s1937_s1 + $0xa8] sm:$0xff] }
   0x7   :  { %1387 = vmatpush.bf16.msra.mxu3 %v1309_v1  ;;  %598 = vmatpush.bf16.msra.mxu0 %v1309_v1  ;;  %v1318_v17 = vld [vmem:[%s1937_s1 + $0x78] sm:$0xff]  ;;  %v946_v21 = vor.u32 %v1265_v15, %v945_v14  ;;  %v1325_v24 = vld [vmem:[%s1937_s1 + $0xb0] sm:$0xff]  ;;  %v1316_v29 = vld [vmem:[%s1937_s1 + $0x68] sm:$0xff] }
   0x8   :  { %v1334_v22 = vld [vmem:[%s1937_s1 + $0xf8] sm:$0xff]  ;;  %v1317_v25 = vld [vmem:[%s1937_s1 + $0x70] sm:$0xff]  ;;  %v1332_v30 = vld [vmem:[%s1937_s1 + $0xe8] sm:$0xff] }
   0x9   :  { %v1342_v23 = vld [vmem:[%s1937_s1 + $0x138] sm:$0xff]  ;;  %v1333_v26 = vld [vmem:[%s1937_s1 + $0xf0] sm:$0xff]  ;;  %v1340_v31 = vld [vmem:[%s1937_s1 + $0x128] sm:$0xff] }
   0xa   :  { %1388 = vmatpush.bf16.msra.mxu1 %v1308_v2  ;;  %1389 = vmatpush.bf16.msra.mxu2 %v1308_v2  ;;  %v1341_v27 = vld [vmem:[%s1937_s1 + $0x130] sm:$0xff]  ;;  %v1323_v32 = vld [vmem:[%s1937_s1 + $0xa0] sm:$0xff]  ;;  %v1005_v36 = vld [vmem:[%s1939_s0 + $0x78] sm:$0xf] }
   0xb   :  { %1390 = vmatpush.bf16.msra.mxu3 %v1308_v2  ;;  %599 = vmatpush.bf16.msra.mxu0 %v1308_v2  ;;  %v1315_v33 = vld [vmem:[%s1937_s1 + $0x60] sm:$0xff]  ;;  %v1280_v37 = vld [vmem:[%s1939_s0 + $0x88] sm:$0xf0]  ;;  %v1045_v38 = vld [vmem:[%s1939_s0 + $0xc8] sm:$0xf] }
   0xc   :  { %v1331_v34 = vld [vmem:[%s1937_s1 + $0xe0] sm:$0xff]  ;;  %v1290_v39 = vld [vmem:[%s1939_s0 + $0xd8] sm:$0xf0]  ;;  %v1085_v40 = vld [vmem:[%s1939_s0 + $0x118] sm:$0xf]  ;;  %v1006_v46 = vor.u32 %v1280_v37, %v1005_v36 }
   0xd   :  { %v1339_v35 = vld [vmem:[%s1937_s1 + $0x120] sm:$0xff]  ;;  %v1300_v41 = vld [vmem:[%s1939_s0 + $0x128] sm:$0xf0]  ;;  %v965_v42 = vld [vmem:[%s1939_s0 + $0x28] sm:$0xf]  ;;  %v1046_v47 = vor.u32 %v1290_v39, %v1045_v38 }
   0xe   :  { %1391 = vmatpush.bf16.msra.mxu1 %v1307_v3  ;;  %1392 = vmatpush.bf16.msra.mxu2 %v1307_v3  ;;  %v1270_v43 = vld [vmem:[%s1939_s0 + $0x38] sm:$0xf0]  ;;  %v1086_v48 = vor.u32 %v1300_v41, %v1085_v40  ;;  %v1321_v52 = vld [vmem:[%s1937_s1 + $0x90] sm:$0xff]  ;;  %v1320_v56 = vld [vmem:[%s1937_s1 + $0x88] sm:$0xff] }
   0xf   :  { %1393 = vmatpush.bf16.msra.mxu3 %v1307_v3  ;;  %600 = vmatpush.bf16.msra.mxu0 %v1307_v3  ;;  %v1322_v44 = vld [vmem:[%s1937_s1 + $0x98] sm:$0xff]  ;;  %v966_v49 = vor.u32 %v1270_v43, %v965_v42  ;;  %v1313_v53 = vld [vmem:[%s1937_s1 + $0x50] sm:$0xff]  ;;  %v1312_v57 = vld [vmem:[%s1937_s1 + $0x48] sm:$0xff] }
  0x10   :  { %v1314_v45 = vld [vmem:[%s1937_s1 + $0x58] sm:$0xff]  ;;  %v1329_v54 = vld [vmem:[%s1937_s1 + $0xd0] sm:$0xff]  ;;  %v1328_v58 = vld [vmem:[%s1937_s1 + $0xc8] sm:$0xff] }
  0x11   :  { %v1330_v50 = vld [vmem:[%s1937_s1 + $0xd8] sm:$0xff]  ;;  %v1337_v55 = vld [vmem:[%s1937_s1 + $0x110] sm:$0xff]  ;;  %v1336_v59 = vld [vmem:[%s1937_s1 + $0x108] sm:$0xff] }
  0x12   :  { %1394 = vmatpush.bf16.msra.mxu1 %v1306_v4  ;;  %1395 = vmatpush.bf16.msra.mxu2 %v1306_v4  ;;  %v1338_v51 = vld [vmem:[%s1937_s1 + $0x118] sm:$0xff]  ;;  %v1319_v60 = vld [vmem:[%s1937_s1 + $0x80] sm:$0xff]  ;;  %v953_v2 = vld [vmem:[%s1939_s0 + $0x8] sm:$0xf] }
  0x13   :  { %1396 = vmatpush.bf16.msra.mxu3 %v1306_v4  ;;  %601 = vmatpush.bf16.msra.mxu0 %v1306_v4  ;;  %v1311_v61 = vld [vmem:[%s1937_s1 + $0x40] sm:$0xff]  ;;  %v947_v1 = vld [vmem:[%s1939_s0 + $0x14] sm:$0xf0]  ;;  %v1266_v3 = vld [vmem:[%s1939_s0 + $0x18] sm:$0xf0] }
  0x14   :  { %v1327_v62 = vld [vmem:[%s1937_s1 + $0xc0] sm:$0xff]  ;;  %v1264_v4 = vld [vmem:[%s1939_s0 + $0xc] sm:$0xf]  ;;  %v954_v9 = vor.u32 %v1266_v3, %v953_v2  ;;  %v973_v14 = vld [vmem:[%s1939_s0 + $0x30] sm:$0xf] }
  0x15   :  { %v1335_v63 = vld [vmem:[%s1937_s1 + $0x100] sm:$0xff]  ;;  %v1268_v12 = vld [vmem:[%s1939_s0 + $0x2c] sm:$0xf]  ;;  %v1278_v36 = vld [vmem:[%s1939_s0 + $0x7c] sm:$0xf] }
  0x16   :  { %1397 = vmatpush.bf16.msra.mxu1 %v1305_v5  ;;  %1398 = vmatpush.bf16.msra.mxu2 %v1305_v5  ;;  %v1263_v0 = vld [vmem:[%s1939_s0 + $0x4] sm:$0xf]  ;;  %v967_v13 = vld [vmem:[%s1939_s0 + $0x3c] sm:$0xf0]  ;;  %v1007_v37 = vld [vmem:[%s1939_s0 + $0x8c] sm:$0xf0] }
  0x17   :  { %1399 = vmatpush.bf16.msra.mxu3 %v1305_v5  ;;  %602 = vmatpush.bf16.msra.mxu0 %v1305_v5  ;;  %v955_v5 = vld [vmem:[%s1939_s0 + $0x1c] sm:$0xf0]  ;;  %v950_v8 = vor.u32 %v1263_v0, %v947_v1  ;;  %v1271_v15 = vld [vmem:[%s1939_s0 + $0x40] sm:$0xf0]  ;;  %v1281_v39 = vld [vmem:[%s1939_s0 + $0x90] sm:$0xf0] }
  0x18   :  { %v958_v10 = vor.u32 %v1264_v4, %v955_v5  ;;  %v1013_v38 = vld [vmem:[%s1939_s0 + $0x80] sm:$0xf]  ;;  %v1279_v40 = vld [vmem:[%s1939_s0 + $0x84] sm:$0xf]  ;;  %v1015_v41 = vld [vmem:[%s1939_s0 + $0x94] sm:$0xf0] }
  0x19   :  { %v1021_v42 = vld [vmem:[%s1939_s0 + $0x88] sm:$0xf]  ;;  %v1282_v43 = vld [vmem:[%s1939_s0 + $0x98] sm:$0xf0]  ;;  %v1289_v0 = vld [vmem:[%s1939_s0 + $0xd4] sm:$0xf] }
  0x1a   :  { %1400 = vmatpush.bf16.msra.mxu1 %v1304_v6  ;;  %1401 = vmatpush.bf16.msra.mxu2 %v1304_v6  ;;  %v1055_v1 = vld [vmem:[%s1939_s0 + $0xe4] sm:$0xf0]  ;;  %v1061_v2 = vld [vmem:[%s1939_s0 + $0xd8] sm:$0xf]  ;;  %v1292_v3 = vld [vmem:[%s1939_s0 + $0xe8] sm:$0xf0] }
  0x1b   :  { %1402 = vmatpush.bf16.msra.mxu3 %v1304_v6  ;;  %603 = vmatpush.bf16.msra.mxu0 %v1304_v6  ;;  %v961_v6 = vld [vmem:[%s1939_s0 + $0x10] sm:$0xf] }
  0x1e   :  { %1403 = vmatpush.bf16.msra.mxu1 %v1303_v7  ;;  %1404 = vmatpush.bf16.msra.mxu2 %v1303_v7 }
  0x1f   :  { %1405 = vmatpush.bf16.msra.mxu3 %v1303_v7  ;;  %604 = vmatpush.bf16.msra.mxu0 %v1303_v7  ;;  %v1267_v7 = vld [vmem:[%s1939_s0 + $0x20] sm:$0xf0] }
  0x20   :  { %v962_v11 = vor.u32 %v1267_v7, %v961_v6  ;;  %v1058_v6 = vor.u32 %v1289_v0, %v1055_v1  ;;  %v1062_v7 = vor.u32 %v1292_v3, %v1061_v2 }
  0x21   :  { %615 = vmatmul.bf16.vlgmr.msra.gmra.mxu1 %v986_v18  ;;  %625 = vmatmul.bf16.vlgmr.msra.gmra.mxu2 %v1026_v19  ;;  %v981_v18 = vld [vmem:[%s1939_s0 + $0x38] sm:$0xf]  ;;  %v1272_v19 = vld [vmem:[%s1939_s0 + $0x48] sm:$0xf0] }
  0x22   :  { %695 = vmatpush.bf16.msrb.mxu2 %v1326_v16  ;;  %646 = vmatpush.bf16.msrb.mxu1 %v1318_v17  ;;  %v1269_v16 = vld [vmem:[%s1939_s0 + $0x34] sm:$0xf]  ;;  %v975_v17 = vld [vmem:[%s1939_s0 + $0x44] sm:$0xf0] }
  0x23   :  { %635 = vmatmul.bf16.vlgmr.msra.gmra.mxu3 %v1066_v20  ;;  %605 = vmatmul.bf16.vlgmr.msra.gmra.mxu0 %v946_v21  ;;  %v970_v20 = vor.u32 %v1268_v12, %v967_v13  ;;  %v974_v21 = vor.u32 %v1271_v15, %v973_v14  ;;  %v1294_v12 = vld [vmem:[%s1939_s0 + $0xfc] sm:$0xf]  ;;  %v1075_v13 = vld [vmem:[%s1939_s0 + $0x10c] sm:$0xf0]  ;;  %v1081_v14 = vld [vmem:[%s1939_s0 + $0x100] sm:$0xf] }
  0x24   :  { %744 = vmatpush.bf16.msrb.mxu3 %v1334_v22  ;;  %793 = vmatpush.bf16.msrb.mxu0 %v1342_v23  ;;  %v978_v22 = vor.u32 %v1269_v16, %v975_v17  ;;  %v982_v23 = vor.u32 %v1272_v19, %v981_v18  ;;  %v1297_v15 = vld [vmem:[%s1939_s0 + $0x110] sm:$0xf0]  ;;  %v1078_v19 = vor.u32 %v1294_v12, %v1075_v13 }
  0x26   :  { %696 = vmatpush.bf16.msrb.mxu2 %v1325_v24  ;;  %647 = vmatpush.bf16.msrb.mxu1 %v1317_v25  ;;  %v1273_v24 = vld [vmem:[%s1939_s0 + $0x54] sm:$0xf]  ;;  %v987_v25 = vld [vmem:[%s1939_s0 + $0x64] sm:$0xf0] }
  0x28   :  { %745 = vmatpush.bf16.msrb.mxu3 %v1333_v26  ;;  %794 = vmatpush.bf16.msrb.mxu0 %v1341_v27  ;;  %v993_v26 = vld [vmem:[%s1939_s0 + $0x58] sm:$0xf]  ;;  %v1276_v27 = vld [vmem:[%s1939_s0 + $0x68] sm:$0xf0] }
  0x2a   :  { %697 = vmatpush.bf16.msrb.mxu2 %v1324_v28  ;;  %648 = vmatpush.bf16.msrb.mxu1 %v1316_v29  ;;  %v1274_v28 = vld [vmem:[%s1939_s0 + $0x5c] sm:$0xf]  ;;  %v995_v29 = vld [vmem:[%s1939_s0 + $0x6c] sm:$0xf0] }
  0x2c   :  { %746 = vmatpush.bf16.msrb.mxu3 %v1332_v30  ;;  %795 = vmatpush.bf16.msrb.mxu0 %v1340_v31  ;;  %v1001_v30 = vld [vmem:[%s1939_s0 + $0x60] sm:$0xf]  ;;  %v1277_v31 = vld [vmem:[%s1939_s0 + $0x70] sm:$0xf0] }
  0x2e   :  { %698 = vmatpush.bf16.msrb.mxu2 %v1323_v32  ;;  %649 = vmatpush.bf16.msrb.mxu1 %v1315_v33  ;;  %v990_v32 = vor.u32 %v1273_v24, %v987_v25  ;;  %v994_v33 = vor.u32 %v1276_v27, %v993_v26 }
  0x30   :  { %747 = vmatpush.bf16.msrb.mxu3 %v1331_v34  ;;  %796 = vmatpush.bf16.msrb.mxu0 %v1339_v35  ;;  %v998_v34 = vor.u32 %v1274_v28, %v995_v29  ;;  %v1002_v35 = vor.u32 %v1277_v31, %v1001_v30  ;;  %v1298_v29 = vld [vmem:[%s1939_s0 + $0x11c] sm:$0xf]  ;;  %v1087_v30 = vld [vmem:[%s1939_s0 + $0x12c] sm:$0xf0]  ;;  %v1093_v31 = vld [vmem:[%s1939_s0 + $0x120] sm:$0xf] }
  0x31   :  { %620 = vmatmul.bf16.gmra.mxu1 %v1006_v46  ;;  %630 = vmatmul.bf16.gmra.mxu2 %v1046_v47  ;;  %v1018_v46 = vor.u32 %v1279_v40, %v1015_v41  ;;  %v1022_v47 = vor.u32 %v1282_v43, %v1021_v42  ;;  %v1090_v40 = vor.u32 %v1298_v29, %v1087_v30 }
  0x32   :  { %699 = vmatpush.bf16.msrb.mxu2 %v1322_v44  ;;  %650 = vmatpush.bf16.msrb.mxu1 %v1314_v45  ;;  %v1010_v44 = vor.u32 %v1278_v36, %v1007_v37  ;;  %v1014_v45 = vor.u32 %v1281_v39, %v1013_v38  ;;  %v1302_v36 = vld [vmem:[%s1939_s0 + $0x138] sm:$0xf0] }
  0x33   :  { %640 = vmatmul.bf16.gmra.mxu3 %v1086_v48  ;;  %610 = vmatmul.bf16.gmra.mxu0 %v966_v49  ;;  %v1283_v48 = vld [vmem:[%s1939_s0 + $0xa4] sm:$0xf]  ;;  %v1027_v49 = vld [vmem:[%s1939_s0 + $0xb4] sm:$0xf0] }
  0x34   :  { %748 = vmatpush.bf16.msrb.mxu3 %v1330_v50  ;;  %797 = vmatpush.bf16.msrb.mxu0 %v1338_v51  ;;  %v1033_v50 = vld [vmem:[%s1939_s0 + $0xa8] sm:$0xf]  ;;  %v1286_v51 = vld [vmem:[%s1939_s0 + $0xb8] sm:$0xf0] }
  0x36   :  { %700 = vmatpush.bf16.msrb.mxu2 %v1321_v52  ;;  %651 = vmatpush.bf16.msrb.mxu1 %v1313_v53  ;;  %v1284_v52 = vld [vmem:[%s1939_s0 + $0xac] sm:$0xf]  ;;  %v1035_v53 = vld [vmem:[%s1939_s0 + $0xbc] sm:$0xf0] }
  0x38   :  { %749 = vmatpush.bf16.msrb.mxu3 %v1329_v54  ;;  %798 = vmatpush.bf16.msrb.mxu0 %v1337_v55  ;;  %v1041_v54 = vld [vmem:[%s1939_s0 + $0xb0] sm:$0xf]  ;;  %v1287_v55 = vld [vmem:[%s1939_s0 + $0xc0] sm:$0xf0] }
  0x3a   :  { %701 = vmatpush.bf16.msrb.mxu2 %v1320_v56  ;;  %652 = vmatpush.bf16.msrb.mxu1 %v1312_v57  ;;  %v1030_v56 = vor.u32 %v1283_v48, %v1027_v49  ;;  %v1034_v57 = vor.u32 %v1286_v51, %v1033_v50 }
  0x3c   :  { %750 = vmatpush.bf16.msrb.mxu3 %v1328_v58  ;;  %799 = vmatpush.bf16.msrb.mxu0 %v1336_v59  ;;  %v1038_v58 = vor.u32 %v1284_v52, %v1035_v53  ;;  %v1042_v59 = vor.u32 %v1287_v55, %v1041_v54 }
  0x3e   :  { %702 = vmatpush.bf16.msrb.mxu2 %v1319_v60  ;;  %653 = vmatpush.bf16.msrb.mxu1 %v1311_v61  ;;  %v1288_v60 = vld [vmem:[%s1939_s0 + $0xcc] sm:$0xf]  ;;  %v1047_v61 = vld [vmem:[%s1939_s0 + $0xdc] sm:$0xf0] }
  0x3f   :  { %v1050_v4 = vor.u32 %v1288_v60, %v1047_v61 }
  0x40   :  { %751 = vmatpush.bf16.msrb.mxu3 %v1327_v62  ;;  %800 = vmatpush.bf16.msrb.mxu0 %v1335_v63  ;;  %v1053_v62 = vld [vmem:[%s1939_s0 + $0xd0] sm:$0xf]  ;;  %v1291_v63 = vld [vmem:[%s1939_s0 + $0xe0] sm:$0xf0] }
  0x41   :  { %654 = vmatmul.bf16.vlgmr.msrb.gmra.mxu1 %v950_v8  ;;  %703 = vmatmul.bf16.vlgmr.msrb.gmra.mxu2 %v954_v9  ;;  %v1054_v5 = vor.u32 %v1291_v63, %v1053_v62  ;;  %v1293_v8 = vld [vmem:[%s1939_s0 + $0xf4] sm:$0xf]  ;;  %v1067_v9 = vld [vmem:[%s1939_s0 + $0x104] sm:$0xf0]  ;;  %v1344_v62 = vld [vmem:[%s1940_s3] sm:$0xff]  }
  0x42   :  { %v1070_v16 = vor.u32 %v1293_v8, %v1067_v9  ;;  %v1345_v3 = vunpack.c.l.bf16 %v1344_v62 }
  0x43   :  { %752 = vmatmul.bf16.vlgmr.msrb.gmra.mxu3 %v958_v10  ;;  %801 = vmatmul.bf16.vlgmr.msrb.gmra.mxu0 %v962_v11  ;;  %v1073_v10 = vld [vmem:[%s1939_s0 + $0xf8] sm:$0xf]  ;;  %v1296_v11 = vld [vmem:[%s1939_s0 + $0x108] sm:$0xf0] }
  0x44   :  { %v1074_v17 = vor.u32 %v1296_v11, %v1073_v10 }
  0x51   :  { %659 = vmatmul.bf16.gmra.mxu1 %v970_v20  ;;  %708 = vmatmul.bf16.gmra.mxu2 %v974_v21  ;;  %v1082_v20 = vor.u32 %v1297_v15, %v1081_v14 }
  0x53   :  { %757 = vmatmul.bf16.gmra.mxu3 %v978_v22  ;;  %806 = vmatmul.bf16.gmra.mxu0 %v982_v23  ;;  %v1773_v22 = vld [vmem:[%s1938_s2] ss:$0 sm:$0xff] }
  0x61   :  { %664 = vmatmul.bf16.gmra.mxu1 %v990_v32  ;;  %713 = vmatmul.bf16.gmra.mxu2 %v994_v33  ;;  %v1301_v32 = vld [vmem:[%s1939_s0 + $0x130] sm:$0xf0]  ;;  %v1299_v33 = vld [vmem:[%s1939_s0 + $0x124] sm:$0xf] }
  0x62   :  { %v1094_v41 = vor.u32 %v1301_v32, %v1093_v31 }
  0x63   :  { %762 = vmatmul.bf16.gmra.mxu3 %v998_v34  ;;  %811 = vmatmul.bf16.gmra.mxu0 %v1002_v35  ;;  %v1095_v34 = vld [vmem:[%s1939_s0 + $0x134] sm:$0xf0]  ;;  %v1101_v35 = vld [vmem:[%s1939_s0 + $0x128] sm:$0xf] }
  0x71   :  { %669 = vmatmul.bf16.gmra.mxu1 %v1010_v44  ;;  %718 = vmatmul.bf16.gmra.mxu2 %v1014_v45  ;;  %v1098_v44 = vor.u32 %v1299_v33, %v1095_v34  ;;  %v1102_v45 = vor.u32 %v1302_v36, %v1101_v35 }
  0x73   :  { %767 = vmatmul.bf16.gmra.mxu3 %v1018_v46  ;;  %816 = vmatmul.bf16.gmra.mxu0 %v1022_v47 }
  0x81   :  { %674 = vmatmul.bf16.gmra.mxu1 %v1030_v56  ;;  %723 = vmatmul.bf16.gmra.mxu2 %v1034_v57 }
  0x83   :  { %772 = vmatmul.bf16.gmra.mxu3 %v1038_v58  ;;  %821 = vmatmul.bf16.gmra.mxu0 %v1042_v59 }
  0x91   :  { %679 = vmatmul.bf16.gmra.mxu1 %v1050_v4  ;;  %728 = vmatmul.bf16.gmra.mxu2 %v1054_v5 }
  0x93   :  { %777 = vmatmul.bf16.gmra.mxu3 %v1058_v6  ;;  %826 = vmatmul.bf16.gmra.mxu0 %v1062_v7 }
  0x9e   :  { %v1768_v18 = vpop.f32.mrf.mxu1 }
  0xa0   :  { %v606_v21 = vpop.f32.mrf.mxu0 }
  0xa1   :  { %684 = vmatmul.bf16.gmra.mxu1 %v1070_v16  ;;  %733 = vmatmul.bf16.gmra.mxu2 %v1074_v17  ;;  %v607_v59 = vadd.f32 %v1773_v22, %v606_v21  ;;  %v1346_v16 = vunpack.c.h.bf16 %v1344_v62 }
  0xa3   :  { %782 = vmatmul.bf16.gmra.mxu3 %v1078_v19  ;;  %831 = vmatmul.bf16.gmra.mxu0 %v1082_v20 }
  0xa4   :  { %v626_v23 = vpop.f32.mrf.mxu2 }
  0xa5   :  { %v1776_v24 = vadd.f32 %v1773_v22, %v626_v23 }
  0xa6   :  { %v636_v25 = vpop.f32.mrf.mxu3  ;;  %v1781_v27 = vpop.f32.mrf.mxu1 }
  0xa7   :  { %v1779_v26 = vadd.f32 %v1773_v22, %v636_v25 }
  0xa8   :  { %v608_v28 = vpop.f32.mrf.mxu0 }
  0xa9   :  { %v609_v5 = vadd.f32 %v1773_v22, %v608_v28  ;;  %v1375_v28 = vld [vmem:[%s1940_s3 + $0x8] sm:$0xff]  }
  0xaa   :  { %v1349_v35 = vunpack.c.l.bf16 %v1375_v28 }
  0xac   :  { %v628_v37 = vpop.f32.mrf.mxu2 }
  0xad   :  { %v1808_v38 = vadd.f32 %v1773_v22, %v628_v37 }
  0xae   :  { %v638_v39 = vpop.f32.mrf.mxu3  ;;  %v1813_v43 = vpop.f32.mrf.mxu1 }
  0xaf   :  { %v1811_v42 = vadd.f32 %v1773_v22, %v638_v39 }
  0xb0   :  { %v611_v46 = vpop.f32.mrf.mxu0 }
  0xb1   :  { %689 = vmatmul.bf16.gmra.mxu1 %v1090_v40  ;;  %738 = vmatmul.bf16.gmra.mxu2 %v1094_v41  ;;  %v612_v19 = vadd.f32 %v1773_v22, %v611_v46 }
  0xb3   :  { %787 = vmatmul.bf16.gmra.mxu3 %v1098_v44  ;;  %836 = vmatmul.bf16.gmra.mxu0 %v1102_v45 }
  0xb4   :  { %v631_v47 = vpop.f32.mrf.mxu2 }
  0xb5   :  { %v1816_v48 = vadd.f32 %v1773_v22, %v631_v47 }
  0xb6   :  { %v641_v49 = vpop.f32.mrf.mxu3  ;;  %v1821_v51 = vpop.f32.mrf.mxu1 }
  0xb7   :  { %v1819_v50 = vadd.f32 %v1773_v22, %v641_v49 }
  0xb8   :  { %v613_v52 = vpop.f32.mrf.mxu0 }
  0xb9   :  { %v614_v37 = vadd.f32 %v1773_v22, %v613_v52  ;;  %v617_v52 = vadd.f32 %v1773_v22, %v1768_v18 }
  0xbc   :  { %v633_v53 = vpop.f32.mrf.mxu2 }
  0xbd   :  { %v1824_v54 = vadd.f32 %v1773_v22, %v633_v53 }
  0xbe   :  { %v643_v55 = vpop.f32.mrf.mxu3  ;;  %v655_v57 = vpop.f32.mrf.mxu1 }
  0xbf   :  { %v1827_v56 = vadd.f32 %v1773_v22, %v643_v55  ;;  %v656_v60 = vadd.f32 %v655_v57, %v607_v59  ;;  %v1350_v57 = vunpack.c.h.bf16 %v1375_v28 }
  0xc0   :  { %v802_v58 = vpop.f32.mrf.mxu0 }
  0xc4   :  { %v704_v61 = vpop.f32.mrf.mxu2 }
  0xc5   :  { %v705_v63 = vadd.f32 %v704_v61, %v656_v60 }
  0xc6   :  { %v753_v0 = vpop.f32.mrf.mxu3  ;;  %v657_v1 = vpop.f32.mrf.mxu1 }
  0xc7   :  { %v754_v2 = vadd.f32 %v753_v0, %v705_v63  ;;  %v658_v8 = vadd.f32 %v657_v1, %v609_v5  ;;  %v1376_v63 = vld [vmem:[%s1940_s3 + $0x10] sm:$0xff]  }
  0xc8   :  { %v804_v4 = vpop.f32.mrf.mxu0  ;;  %v1353_v18 = vunpack.c.l.bf16 %v1376_v63 }
  0xc9   :  { %v803_v6 = vadd.f32 %v802_v58, %v754_v2 }
  0xcb   :  { %v874_v7 = vadd.f32 %v1345_v3, %v803_v6 }
  0xcc   :  { %v706_v9 = vpop.f32.mrf.mxu2 }
  0xcd   :  { %v890_v10 = vmax.f32 %v874_v7, 0.0  ;;  %v707_v11 = vadd.f32 %v706_v9, %v658_v8  ;;  %v619_v7 = vadd.f32 %v1773_v22, %v1781_v27  ;;  %v622_v27 = vadd.f32 %v1773_v22, %v1813_v43 }
  0xce   :  { %v755_v12 = vpop.f32.mrf.mxu3  ;;  %v660_v13 = vpop.f32.mrf.mxu1 }
  0xcf   :  { %v906_v14 = vpack.c.bf16 %v890_v10, %v890_v10  ;;  %v756_v15 = vadd.f32 %v755_v12, %v707_v11  ;;  %v661_v23 = vadd.f32 %v660_v13, %v612_v19  ;;  %v1354_v19 = vunpack.c.h.bf16 %v1376_v63 }
  0xd0   :  { %v807_v17 = vpop.f32.mrf.mxu0 }
  0xd1   :  { %923 = vst.msk [vmem:[%s1941_s4] sm:$0xf] %vm922_vm0, %v906_v14  ;;  %v805_v20 = vadd.f32 %v804_v4, %v756_v15 }
  0xd3   :  { %v875_v21 = vadd.f32 %v1346_v16, %v805_v20 }
  0xd4   :  { %v709_v25 = vpop.f32.mrf.mxu2 }
  0xd5   :  { %v891_v29 = vmax.f32 %v875_v21, 0.0  ;;  %v710_v30 = vadd.f32 %v709_v25, %v661_v23 }
  0xd6   :  { %v758_v31 = vpop.f32.mrf.mxu3  ;;  %v662_v32 = vpop.f32.mrf.mxu1 }
  0xd7   :  { %v907_v33 = vpack.c.bf16 %v891_v29, %v891_v29  ;;  %v759_v34 = vadd.f32 %v758_v31, %v710_v30  ;;  %v663_v41 = vadd.f32 %v662_v32, %v614_v37  ;;  %v1377_v29 = vld [vmem:[%s1940_s3 + $0x18] sm:$0xff]   ;;  %v624_v37 = vadd.f32 %v1773_v22, %v1821_v51 }
  0xd8   :  { %v809_v36 = vpop.f32.mrf.mxu0  ;;  %v1357_v43 = vunpack.c.l.bf16 %v1377_v29 }
  0xd9   :  { %924 = vst.msk [vmem:[%s1941_s4 + $0x4] sm:$0xf] %vm922_vm0, %v907_v33  ;;  %v808_v39 = vadd.f32 %v807_v17, %v759_v34 }
  0xdb   :  { %v876_v40 = vadd.f32 %v1349_v35, %v808_v39 }
  0xdc   :  { %v711_v44 = vpop.f32.mrf.mxu2 }
  0xdd   :  { %v892_v45 = vmax.f32 %v876_v40, 0.0  ;;  %v712_v46 = vadd.f32 %v711_v44, %v663_v41 }
  0xde   :  { %v760_v47 = vpop.f32.mrf.mxu3  ;;  %v665_v49 = vpop.f32.mrf.mxu1 }
  0xdf   :  { %v908_v53 = vpack.c.bf16 %v892_v45, %v892_v45  ;;  %v761_v55 = vadd.f32 %v760_v47, %v712_v46  ;;  %v666_v61 = vadd.f32 %v665_v49, %v617_v52 }
  0xe0   :  { %v812_v58 = vpop.f32.mrf.mxu0 }
  0xe1   :  { %925 = vst.msk [vmem:[%s1941_s4 + $0x8] sm:$0xf] %vm922_vm0, %v908_v53  ;;  %v810_v59 = vadd.f32 %v809_v36, %v761_v55 }
  0xe3   :  { %v877_v60 = vadd.f32 %v1350_v57, %v810_v59  ;;  %v1358_v57 = vunpack.c.h.bf16 %v1377_v29 }
  0xe4   :  { %v714_v62 = vpop.f32.mrf.mxu2 }
  0xe5   :  { %v893_v0 = vmax.f32 %v877_v60, 0.0  ;;  %v715_v1 = vadd.f32 %v714_v62, %v666_v61  ;;  %v1378_v60 = vld [vmem:[%s1940_s3 + $0x20] sm:$0xff]  }
  0xe6   :  { %v763_v2 = vpop.f32.mrf.mxu3  ;;  %v667_v3 = vpop.f32.mrf.mxu1 }
  0xe7   :  { %v909_v4 = vpack.c.bf16 %v893_v0, %v893_v0  ;;  %v764_v5 = vadd.f32 %v763_v2, %v715_v1  ;;  %v668_v10 = vadd.f32 %v667_v3, %v619_v7  ;;  %v1361_v3 = vunpack.c.l.bf16 %v1378_v60 }
  0xe8   :  { %v814_v6 = vpop.f32.mrf.mxu0 }
  0xe9   :  { %926 = vst.msk [vmem:[%s1941_s4 + $0xc] sm:$0xf] %vm922_vm0, %v909_v4  ;;  %v813_v8 = vadd.f32 %v812_v58, %v764_v5 }
  0xeb   :  { %v878_v9 = vadd.f32 %v1353_v18, %v813_v8 }
  0xec   :  { %v716_v11 = vpop.f32.mrf.mxu2 }
  0xed   :  { %v894_v12 = vmax.f32 %v878_v9, 0.0  ;;  %v717_v13 = vadd.f32 %v716_v11, %v668_v10 }
  0xee   :  { %v765_v14 = vpop.f32.mrf.mxu3  ;;  %v670_v15 = vpop.f32.mrf.mxu1 }
  0xef   :  { %v910_v16 = vpack.c.bf16 %v894_v12, %v894_v12  ;;  %v766_v17 = vadd.f32 %v765_v14, %v717_v13  ;;  %v671_v25 = vadd.f32 %v670_v15, %v622_v27  ;;  %v1362_v13 = vunpack.c.h.bf16 %v1378_v60 }
  0xf0   :  { %v817_v20 = vpop.f32.mrf.mxu0 }
  0xf1   :  { %927 = vst.msk [vmem:[%s1941_s4 + $0x10] sm:$0xf] %vm922_vm0, %v910_v16  ;;  %v815_v21 = vadd.f32 %v814_v6, %v766_v17 }
  0xf3   :  { %v879_v23 = vadd.f32 %v1354_v19, %v815_v21 }
  0xf4   :  { %v719_v28 = vpop.f32.mrf.mxu2 }
  0xf5   :  { %v895_v30 = vmax.f32 %v879_v23, 0.0  ;;  %v720_v31 = vadd.f32 %v719_v28, %v671_v25 }
  0xf6   :  { %v768_v32 = vpop.f32.mrf.mxu3  ;;  %v672_v33 = vpop.f32.mrf.mxu1 }
  0xf7   :  { %v911_v34 = vpack.c.bf16 %v895_v30, %v895_v30  ;;  %v769_v35 = vadd.f32 %v768_v32, %v720_v31  ;;  %v673_v41 = vadd.f32 %v672_v33, %v624_v37 }
  0xf8   :  { %v819_v36 = vpop.f32.mrf.mxu0 }
  0xf9   :  { %928 = vst.msk [vmem:[%s1941_s4 + $0x14] sm:$0xf] %vm922_vm0, %v911_v34  ;;  %v818_v39 = vadd.f32 %v817_v20, %v769_v35 }
  0xfb   :  { %v880_v40 = vadd.f32 %v1357_v43, %v818_v39 }
  0xfc   :  { %v721_v44 = vpop.f32.mrf.mxu2 }
  0xfd   :  { %v896_v45 = vmax.f32 %v880_v40, 0.0  ;;  %v722_v46 = vadd.f32 %v721_v44, %v673_v41 }
  0xfe   :  { %v770_v47 = vpop.f32.mrf.mxu3  ;;  %v675_v49 = vpop.f32.mrf.mxu1 }
  0xff   :  { %v912_v53 = vpack.c.bf16 %v896_v45, %v896_v45  ;;  %v771_v55 = vadd.f32 %v770_v47, %v722_v46  ;;  %v676_v52 = vadd.f32 %v675_v49, %v1776_v24 }
 0x100   :  { %v822_v58 = vpop.f32.mrf.mxu0 }
 0x101   :  { %929 = vst.msk [vmem:[%s1941_s4 + $0x18] sm:$0xf] %vm922_vm0, %v912_v53  ;;  %v820_v22 = vadd.f32 %v819_v36, %v771_v55 }
 0x103   :  { %v881_v51 = vadd.f32 %v1358_v57, %v820_v22 }
 0x104   :  { %v724_v59 = vpop.f32.mrf.mxu2 }
 0x105   :  { %v897_v61 = vmax.f32 %v881_v51, 0.0  ;;  %v725_v62 = vadd.f32 %v724_v59, %v676_v52 }
 0x106   :  { %v773_v63 = vpop.f32.mrf.mxu3  ;;  %v677_v0 = vpop.f32.mrf.mxu1 }
 0x107   :  { %v913_v1 = vpack.c.bf16 %v897_v61, %v897_v61  ;;  %v774_v2 = vadd.f32 %v773_v63, %v725_v62  ;;  %v678_v18 = vadd.f32 %v677_v0, %v1808_v38  ;;  %v1379_v38 = vld [vmem:[%s1940_s3 + $0x28] sm:$0xff]  }
 0x108   :  { %v824_v4 = vpop.f32.mrf.mxu0  ;;  %v1365_v29 = vunpack.c.l.bf16 %v1379_v38  ;;  %v1366_v40 = vunpack.c.h.bf16 %v1379_v38 }
 0x109   :  { %930 = vst.msk [vmem:[%s1941_s4 + $0x1c] sm:$0xf] %vm922_vm0, %v913_v1  ;;  %v823_v5 = vadd.f32 %v822_v58, %v774_v2 }
 0x10b   :  { %v882_v24 = vadd.f32 %v1361_v3, %v823_v5 }
 0x10c   :  { %v726_v6 = vpop.f32.mrf.mxu2 }
 0x10d   :  { %v898_v7 = vmax.f32 %v882_v24, 0.0  ;;  %v727_v8 = vadd.f32 %v726_v6, %v678_v18 }
 0x10e   :  { %v775_v9 = vpop.f32.mrf.mxu3  ;;  %v680_v10 = vpop.f32.mrf.mxu1 }
 0x10f   :  { %v914_v11 = vpack.c.bf16 %v898_v7, %v898_v7  ;;  %v776_v12 = vadd.f32 %v775_v9, %v727_v8  ;;  %v681_v17 = vadd.f32 %v680_v10, %v1816_v48 }
 0x110   :  { %v827_v14 = vpop.f32.mrf.mxu0 }
 0x111   :  { %931 = vst.msk [vmem:[%s1941_s4 + $0x20] sm:$0xf] %vm922_vm0, %v914_v11  ;;  %v825_v15 = vadd.f32 %v824_v4, %v776_v12 }
 0x113   :  { %v883_v16 = vadd.f32 %v1362_v13, %v825_v15 }
 0x114   :  { %v729_v19 = vpop.f32.mrf.mxu2 }
 0x115   :  { %v899_v20 = vmax.f32 %v883_v16, 0.0  ;;  %v730_v27 = vadd.f32 %v729_v19, %v681_v17 }
 0x116   :  { %v778_v21 = vpop.f32.mrf.mxu3  ;;  %v682_v23 = vpop.f32.mrf.mxu1 }
 0x117   :  { %v915_v25 = vpack.c.bf16 %v899_v20, %v899_v20  ;;  %v779_v28 = vadd.f32 %v778_v21, %v730_v27  ;;  %v683_v32 = vadd.f32 %v682_v23, %v1824_v54  ;;  %v1380_v54 = vld [vmem:[%s1940_s3 + $0x30] sm:$0xff]  }
 0x118   :  { %v829_v30 = vpop.f32.mrf.mxu0  ;;  %v1369_v51 = vunpack.c.l.bf16 %v1380_v54  ;;  %v1370_v4 = vunpack.c.h.bf16 %v1380_v54 }
 0x119   :  { %932 = vst.msk [vmem:[%s1941_s4 + $0x24] sm:$0xf] %vm922_vm0, %v915_v25  ;;  %v828_v31 = vadd.f32 %v827_v14, %v779_v28 }
 0x11b   :  { %v884_v48 = vadd.f32 %v1365_v29, %v828_v31 }
 0x11c   :  { %v731_v33 = vpop.f32.mrf.mxu2 }
 0x11d   :  { %v900_v34 = vmax.f32 %v884_v48, 0.0  ;;  %v732_v35 = vadd.f32 %v731_v33, %v683_v32 }
 0x11e   :  { %v780_v43 = vpop.f32.mrf.mxu3  ;;  %v685_v36 = vpop.f32.mrf.mxu1 }
 0x11f   :  { %v916_v37 = vpack.c.bf16 %v900_v34, %v900_v34  ;;  %v781_v39 = vadd.f32 %v780_v43, %v732_v35  ;;  %v686_v46 = vadd.f32 %v685_v36, %v1779_v26 }
 0x120   :  { %v832_v44 = vpop.f32.mrf.mxu0 }
 0x121   :  { %933 = vst.msk [vmem:[%s1941_s4 + $0x28] sm:$0xf] %vm922_vm0, %v916_v37  ;;  %v830_v41 = vadd.f32 %v829_v30, %v781_v39 }
 0x123   :  { %v885_v45 = vadd.f32 %v1366_v40, %v830_v41 }
 0x124   :  { %v734_v47 = vpop.f32.mrf.mxu2 }
 0x125   :  { %v901_v49 = vmax.f32 %v885_v45, 0.0  ;;  %v735_v53 = vadd.f32 %v734_v47, %v686_v46 }
 0x126   :  { %v783_v55 = vpop.f32.mrf.mxu3  ;;  %v687_v57 = vpop.f32.mrf.mxu1 }
 0x127   :  { %v917_v58 = vpack.c.bf16 %v901_v49, %v901_v49  ;;  %v784_v22 = vadd.f32 %v783_v55, %v735_v53  ;;  %v688_v26 = vadd.f32 %v687_v57, %v1811_v42  ;;  %v1381_v42 = vld [vmem:[%s1940_s3 + $0x38] sm:$0xff]  }
 0x128   :  { %v834_v60 = vpop.f32.mrf.mxu0  ;;  %v1373_v13 = vunpack.c.l.bf16 %v1381_v42  ;;  %v1374_v23 = vunpack.c.h.bf16 %v1381_v42 }
 0x129   :  { %934 = vst.msk [vmem:[%s1941_s4 + $0x2c] sm:$0xf] %vm922_vm0, %v917_v58  ;;  %v833_v52 = vadd.f32 %v832_v44, %v784_v22 }
 0x12b   :  { %v886_v59 = vadd.f32 %v1369_v51, %v833_v52 }
 0x12c   :  { %v736_v61 = vpop.f32.mrf.mxu2 }
 0x12d   :  { %v902_v62 = vmax.f32 %v886_v59, 0.0  ;;  %v737_v63 = vadd.f32 %v736_v61, %v688_v26 }
 0x12e   :  { %v785_v0 = vpop.f32.mrf.mxu3  ;;  %v690_v1 = vpop.f32.mrf.mxu1 }
 0x12f   :  { %v918_v2 = vpack.c.bf16 %v902_v62, %v902_v62  ;;  %v786_v3 = vadd.f32 %v785_v0, %v737_v63  ;;  %v691_v18 = vadd.f32 %v690_v1, %v1819_v50 }
 0x130   :  { %v837_v10 = vpop.f32.mrf.mxu0 }
 0x131   :  { %935 = vst.msk [vmem:[%s1941_s4 + $0x30] sm:$0xf] %vm922_vm0, %v918_v2  ;;  %v835_v5 = vadd.f32 %v834_v60, %v786_v3 }
 0x133   :  { %v887_v24 = vadd.f32 %v1370_v4, %v835_v5 }
 0x134   :  { %v739_v6 = vpop.f32.mrf.mxu2 }
 0x135   :  { %v903_v7 = vmax.f32 %v887_v24, 0.0  ;;  %v740_v8 = vadd.f32 %v739_v6, %v691_v18 }
 0x136   :  { %v788_v9 = vpop.f32.mrf.mxu3  ;;  %v692_v14 = vpop.f32.mrf.mxu1 }
 0x137   :  { %v919_v11 = vpack.c.bf16 %v903_v7, %v903_v7  ;;  %v789_v12 = vadd.f32 %v788_v9, %v740_v8  ;;  %v693_v16 = vadd.f32 %v692_v14, %v1827_v56 }
 0x138   :  { %v839_v25 = vpop.f32.mrf.mxu0 }
 0x139   :  { %936 = vst.msk [vmem:[%s1941_s4 + $0x34] sm:$0xf] %vm922_vm0, %v919_v11  ;;  %v838_v15 = vadd.f32 %v837_v10, %v789_v12 }
 0x13b   :  { %v888_v50 = vadd.f32 %v1373_v13, %v838_v15 }
 0x13c   :  { %v741_v17 = vpop.f32.mrf.mxu2 }
 0x13d   :  { %v904_v19 = vmax.f32 %v888_v50, 0.0  ;;  %v742_v38 = vadd.f32 %v741_v17, %v693_v16 }
 0x13e   :  { %v790_v20 = vpop.f32.mrf.mxu3 }
 0x13f   :  { %v920_v27 = vpack.c.bf16 %v904_v19, %v904_v19  ;;  %v791_v21 = vadd.f32 %v790_v20, %v742_v38 }
 0x141   :  { %937 = vst.msk [vmem:[%s1941_s4 + $0x38] sm:$0xf] %vm922_vm0, %v920_v27  ;;  %v840_v28 = vadd.f32 %v839_v25, %v791_v21 }
 0x143   :  { %v889_v29 = vadd.f32 %v1374_v23, %v840_v28 }
 0x145   :  { %v905_v30 = vmax.f32 %v889_v29, 0.0 }
 0x147   :  { %v921_v31 = vpack.c.bf16 %v905_v30, %v905_v30 }
 0x149   :  { %938 = vst.msk [vmem:[%s1941_s4 + $0x3c] sm:$0xf] %vm922_vm0, %v921_v31 }

// kernel: _lambda_.12
= control target key start
LH: loop header
LB: loop body
LE: loop exit
PB: predicated region body
PF: predicated region fallthrough
CT: control target
= control target key end

     0   :  { %vm1015_vm0 = vcmask 519168   ;;  %s2142_s1 = inlined_call_operand.vmem [shape: bf16[640,64], index: 1, kind: input, shape index: {}]   ;;  %s2143_s2 = inlined_call_operand.vmem [shape: f32[1,64], index: 2, kind: input, shape index: {}]   ;;  %s2144_s0 = inlined_call_operand.vmem [shape: bf16[168,640], index: 0, kind: input, shape index: {}]   ;;  %s2145_s3 = inlined_call_operand.vmem [shape: bf16[168,64], index: 3, kind: output, shape index: {}]  }
   0x1   :  { %v1458_v0 = vld [vmem:[%s2142_s1 + $0x38] sm:$0xff]  ;;  %v1457_v1 = vld [vmem:[%s2142_s1 + $0x30] sm:$0xff]  ;;  %v1456_v2 = vld [vmem:[%s2142_s1 + $0x28] sm:$0xff] }
   0x2   :  { %679 = vmatpush.bf16.msra.mxu0 %v1458_v0  ;;  %1491 = vmatpush.bf16.msra.mxu1 %v1458_v0  ;;  %v1455_v3 = vld [vmem:[%s2142_s1 + $0x20] sm:$0xff]  ;;  %v1454_v4 = vld [vmem:[%s2142_s1 + $0x18] sm:$0xff]  ;;  %v1453_v5 = vld [vmem:[%s2142_s1 + $0x10] sm:$0xff] }
   0x3   :  { %1493 = vmatpush.bf16.msra.mxu3 %v1458_v0  ;;  %1492 = vmatpush.bf16.msra.mxu2 %v1458_v0  ;;  %v1452_v6 = vld [vmem:[%s2142_s1 + $0x8] sm:$0xff]  ;;  %v1451_v7 = vld [vmem:[%s2142_s1] sm:$0xff]  ;;  %v1403_v9 = vld [vmem:[%s2144_s0 + $0x10] sm:$0xf0] }
   0x4   :  { %v1043_v8 = vld [vmem:[%s2144_s0] sm:$0xf]  ;;  %v1103_v10 = vld [vmem:[%s2144_s0 + $0x78] sm:$0xf]  ;;  %v1418_v11 = vld [vmem:[%s2144_s0 + $0x88] sm:$0xf0] }
   0x5   :  { %v1203_v12 = vld [vmem:[%s2144_s0 + $0x140] sm:$0xf]  ;;  %v1443_v13 = vld [vmem:[%s2144_s0 + $0x150] sm:$0xf0]  ;;  %v1466_v14 = vld [vmem:[%s2142_s1 + $0x78] sm:$0xff]  ;;  %v1044_v18 = vor.u32 %v1403_v9, %v1043_v8  ;;  %v1104_v19 = vor.u32 %v1418_v11, %v1103_v10 }
   0x6   :  { %680 = vmatpush.bf16.msra.mxu0 %v1457_v1  ;;  %1494 = vmatpush.bf16.msra.mxu1 %v1457_v1  ;;  %v1482_v15 = vld [vmem:[%s2142_s1 + $0xf8] sm:$0xff]  ;;  %v1163_v16 = vld [vmem:[%s2144_s0 + $0xf0] sm:$0xf]  ;;  %v1433_v17 = vld [vmem:[%s2144_s0 + $0x100] sm:$0xf0]  ;;  %v1204_v20 = vor.u32 %v1443_v13, %v1203_v12 }
   0x7   :  { %1496 = vmatpush.bf16.msra.mxu3 %v1457_v1  ;;  %1495 = vmatpush.bf16.msra.mxu2 %v1457_v1  ;;  %v1490_v21 = vld [vmem:[%s2142_s1 + $0x138] sm:$0xff]  ;;  %v1164_v22 = vor.u32 %v1433_v17, %v1163_v16  ;;  %v1465_v23 = vld [vmem:[%s2142_s1 + $0x70] sm:$0xff]  ;;  %v1464_v27 = vld [vmem:[%s2142_s1 + $0x68] sm:$0xff] }
   0x8   :  { %v1481_v24 = vld [vmem:[%s2142_s1 + $0xf0] sm:$0xff]  ;;  %v1474_v25 = vld [vmem:[%s2142_s1 + $0xb8] sm:$0xff]  ;;  %v1480_v29 = vld [vmem:[%s2142_s1 + $0xe8] sm:$0xff] }
   0x9   :  { %v1489_v26 = vld [vmem:[%s2142_s1 + $0x130] sm:$0xff]  ;;  %v1488_v30 = vld [vmem:[%s2142_s1 + $0x128] sm:$0xff]  ;;  %v1463_v31 = vld [vmem:[%s2142_s1 + $0x60] sm:$0xff] }
   0xa   :  { %681 = vmatpush.bf16.msra.mxu0 %v1456_v2  ;;  %1497 = vmatpush.bf16.msra.mxu1 %v1456_v2  ;;  %v1473_v28 = vld [vmem:[%s2142_s1 + $0xb0] sm:$0xff]  ;;  %v1472_v32 = vld [vmem:[%s2142_s1 + $0xa8] sm:$0xff]  ;;  %v1479_v33 = vld [vmem:[%s2142_s1 + $0xe0] sm:$0xff] }
   0xb   :  { %1499 = vmatpush.bf16.msra.mxu3 %v1456_v2  ;;  %1498 = vmatpush.bf16.msra.mxu2 %v1456_v2  ;;  %v1063_v34 = vld [vmem:[%s2144_s0 + $0x28] sm:$0xf]  ;;  %v1408_v35 = vld [vmem:[%s2144_s0 + $0x38] sm:$0xf0]  ;;  %v1123_v36 = vld [vmem:[%s2144_s0 + $0xa0] sm:$0xf] }
   0xc   :  { %v1423_v37 = vld [vmem:[%s2144_s0 + $0xb0] sm:$0xf0]  ;;  %v1223_v38 = vld [vmem:[%s2144_s0 + $0x168] sm:$0xf]  ;;  %v1487_v39 = vld [vmem:[%s2142_s1 + $0x120] sm:$0xff]  ;;  %v1064_v46 = vor.u32 %v1408_v35, %v1063_v34 }
   0xd   :  { %v1448_v40 = vld [vmem:[%s2144_s0 + $0x178] sm:$0xf0]  ;;  %v1471_v41 = vld [vmem:[%s2142_s1 + $0xa0] sm:$0xff]  ;;  %v1183_v43 = vld [vmem:[%s2144_s0 + $0x118] sm:$0xf]  ;;  %v1124_v47 = vor.u32 %v1423_v37, %v1123_v36 }
   0xe   :  { %682 = vmatpush.bf16.msra.mxu0 %v1455_v3  ;;  %1500 = vmatpush.bf16.msra.mxu1 %v1455_v3  ;;  %v1462_v42 = vld [vmem:[%s2142_s1 + $0x58] sm:$0xff]  ;;  %v1438_v44 = vld [vmem:[%s2144_s0 + $0x128] sm:$0xf0]  ;;  %v1224_v48 = vor.u32 %v1448_v40, %v1223_v38  ;;  %v1461_v51 = vld [vmem:[%s2142_s1 + $0x50] sm:$0xff] }
   0xf   :  { %1502 = vmatpush.bf16.msra.mxu3 %v1455_v3  ;;  %1501 = vmatpush.bf16.msra.mxu2 %v1455_v3  ;;  %v1478_v45 = vld [vmem:[%s2142_s1 + $0xd8] sm:$0xff]  ;;  %v1184_v50 = vor.u32 %v1438_v44, %v1183_v43  ;;  %v1477_v53 = vld [vmem:[%s2142_s1 + $0xd0] sm:$0xff]  ;;  %v1460_v55 = vld [vmem:[%s2142_s1 + $0x48] sm:$0xff] }
  0x10   :  { %v1486_v49 = vld [vmem:[%s2142_s1 + $0x118] sm:$0xff]  ;;  %v1485_v54 = vld [vmem:[%s2142_s1 + $0x110] sm:$0xff]  ;;  %v1476_v57 = vld [vmem:[%s2142_s1 + $0xc8] sm:$0xff] }
  0x11   :  { %v1470_v52 = vld [vmem:[%s2142_s1 + $0x98] sm:$0xff]  ;;  %v1469_v56 = vld [vmem:[%s2142_s1 + $0x90] sm:$0xff]  ;;  %v1484_v58 = vld [vmem:[%s2142_s1 + $0x108] sm:$0xff] }
  0x12   :  { %683 = vmatpush.bf16.msra.mxu0 %v1454_v4  ;;  %1503 = vmatpush.bf16.msra.mxu1 %v1454_v4  ;;  %v1692_v59 = vld [vmem:[%s2144_s0 + $0x190] sm:$0xff]  ;;  %v1459_v60 = vld [vmem:[%s2142_s1 + $0x40] sm:$0xff]  ;;  %v1468_v61 = vld [vmem:[%s2142_s1 + $0x88] sm:$0xff] }
  0x13   :  { %1505 = vmatpush.bf16.msra.mxu3 %v1454_v4  ;;  %1504 = vmatpush.bf16.msra.mxu2 %v1454_v4  ;;  %v1475_v62 = vld [vmem:[%s2142_s1 + $0xc0] sm:$0xff]  ;;  %v1083_v63 = vld [vmem:[%s2144_s0 + $0x50] sm:$0xf]  ;;  %v1143_v1 = vld [vmem:[%s2144_s0 + $0xc8] sm:$0xf]  ;;  %v324_v3 = vunpack.c.l.b16 %v1692_v59 }
  0x14   :  { %v1413_v0 = vld [vmem:[%s2144_s0 + $0x60] sm:$0xf0]  ;;  %v1428_v2 = vld [vmem:[%s2144_s0 + $0xd8] sm:$0xf0]  ;;  %v1045_v13 = vld [vmem:[%s2144_s0 + $0x14] sm:$0xf0] }
  0x15   :  { %v1483_v4 = vld [vmem:[%s2142_s1 + $0x100] sm:$0xff]  ;;  %v1084_v8 = vor.u32 %v1413_v0, %v1083_v63  ;;  %v1144_v9 = vor.u32 %v1428_v2, %v1143_v1  ;;  %v379_v10 = vpack.c.b16 %v324_v3, %v324_v3  ;;  %v1402_v16 = vld [vmem:[%s2144_s0 + $0xc] sm:$0xf]  ;;  %v1411_v36 = vld [vmem:[%s2144_s0 + $0x54] sm:$0xf] }
  0x16   :  { %684 = vmatpush.bf16.msra.mxu0 %v1453_v5  ;;  %1506 = vmatpush.bf16.msra.mxu1 %v1453_v5  ;;  %v1401_v12 = vld [vmem:[%s2144_s0 + $0x4] sm:$0xf]  ;;  %v1053_v17 = vld [vmem:[%s2144_s0 + $0x1c] sm:$0xf0]  ;;  %v1085_v37 = vld [vmem:[%s2144_s0 + $0x64] sm:$0xf0] }
  0x17   :  { %1508 = vmatpush.bf16.msra.mxu3 %v1453_v5  ;;  %1507 = vmatpush.bf16.msra.mxu2 %v1453_v5  ;;  %v1467_v5 = vld [vmem:[%s2142_s1 + $0x80] sm:$0xff]  ;;  %v1412_v40 = vld [vmem:[%s2144_s0 + $0x5c] sm:$0xf]  ;;  %v1419_v43 = vld [vmem:[%s2144_s0 + $0x90] sm:$0xf0]  ;;  %v1088_v44 = vor.u32 %v1411_v36, %v1085_v37 }
  0x18   :  { %v1099_v38 = vld [vmem:[%s2144_s0 + $0x60] sm:$0xf]  ;;  %v1139_v63 = vld [vmem:[%s2144_s0 + $0xb0] sm:$0xf]  ;;  %v1425_v0 = vld [vmem:[%s2144_s0 + $0xc0] sm:$0xf0] }
  0x19   :  { %v1422_v1 = vld [vmem:[%s2144_s0 + $0xac] sm:$0xf]  ;;  %v1133_v2 = vld [vmem:[%s2144_s0 + $0xbc] sm:$0xf0]  ;;  %v1151_v3 = vld [vmem:[%s2144_s0 + $0xd0] sm:$0xf] }
  0x1a   :  { %685 = vmatpush.bf16.msra.mxu0 %v1452_v6  ;;  %1509 = vmatpush.bf16.msra.mxu1 %v1452_v6  ;;  %v1191_v36 = vld [vmem:[%s2144_s0 + $0x120] sm:$0xf]  ;;  %v1439_v37 = vld [vmem:[%s2144_s0 + $0x130] sm:$0xf0] }
  0x1b   :  { %1511 = vmatpush.bf16.msra.mxu3 %v1452_v6  ;;  %1510 = vmatpush.bf16.msra.mxu2 %v1452_v6  ;;  %v1051_v6 = vld [vmem:[%s2144_s0 + $0x8] sm:$0xf] }
  0x1e   :  { %686 = vmatpush.bf16.msra.mxu0 %v1451_v7  ;;  %1512 = vmatpush.bf16.msra.mxu1 %v1451_v7 }
  0x1f   :  { %1514 = vmatpush.bf16.msra.mxu3 %v1451_v7  ;;  %1513 = vmatpush.bf16.msra.mxu2 %v1451_v7  ;;  %v1404_v7 = vld [vmem:[%s2144_s0 + $0x18] sm:$0xf0] }
  0x20   :  { %v1052_v11 = vor.u32 %v1404_v7, %v1051_v6  ;;  %v1140_v6 = vor.u32 %v1425_v0, %v1139_v63  ;;  %v1136_v7 = vor.u32 %v1422_v1, %v1133_v2  ;;  %v1211_v63 = vld [vmem:[%s2144_s0 + $0x148] sm:$0xf]  ;;  %v1444_v0 = vld [vmem:[%s2144_s0 + $0x158] sm:$0xf0] }
  0x21   :  { %687 = vmatmul.bf16.vlgmr.msra.gmra.mxu0 %v1044_v18  ;;  %702 = vmatmul.bf16.vlgmr.msra.gmra.mxu1 %v1104_v19  ;;  %v1071_v18 = vld [vmem:[%s2144_s0 + $0x30] sm:$0xf]  ;;  %v1409_v19 = vld [vmem:[%s2144_s0 + $0x40] sm:$0xf0] }
  0x22   :  { %742 = vmatpush.bf16.msrb.mxu1 %v1466_v14  ;;  %727 = vmatmul.bf16.vlgmr.msra.gmra.mxu3 %v1204_v20  ;;  %v1059_v14 = vld [vmem:[%s2144_s0 + $0x10] sm:$0xf]  ;;  %v1048_v20 = vor.u32 %v1401_v12, %v1045_v13  ;;  %v1430_v12 = vld [vmem:[%s2144_s0 + $0xe8] sm:$0xf0]  ;;  %v1427_v13 = vld [vmem:[%s2144_s0 + $0xd4] sm:$0xf] }
  0x23   :  { %868 = vmatpush.bf16.msrb.mxu3 %v1482_v15  ;;  %931 = vmatpush.bf16.msrb.mxu0 %v1490_v21  ;;  %v1405_v15 = vld [vmem:[%s2144_s0 + $0x20] sm:$0xf0] }
  0x24   :  { %717 = vmatmul.bf16.vlgmr.msra.gmra.mxu2 %v1164_v22  ;;  %v1060_v21 = vor.u32 %v1405_v15, %v1059_v14  ;;  %v1056_v22 = vor.u32 %v1402_v16, %v1053_v17  ;;  %v1153_v14 = vld [vmem:[%s2144_s0 + $0xe4] sm:$0xf0]  ;;  %v1171_v15 = vld [vmem:[%s2144_s0 + $0xf8] sm:$0xf]  ;;  %v1434_v16 = vld [vmem:[%s2144_s0 + $0x108] sm:$0xf0] }
  0x25   :  { %805 = vmatpush.bf16.msrb.mxu2 %v1474_v25  ;;  %v1065_v25 = vld [vmem:[%s2144_s0 + $0x3c] sm:$0xf0] }
  0x26   :  { %743 = vmatpush.bf16.msrb.mxu1 %v1465_v23  ;;  %v1072_v23 = vor.u32 %v1409_v19, %v1071_v18 }
  0x27   :  { %869 = vmatpush.bf16.msrb.mxu3 %v1481_v24  ;;  %932 = vmatpush.bf16.msrb.mxu0 %v1489_v26  ;;  %v1406_v24 = vld [vmem:[%s2144_s0 + $0x2c] sm:$0xf]  ;;  %v1079_v26 = vld [vmem:[%s2144_s0 + $0x38] sm:$0xf] }
  0x29   :  { %806 = vmatpush.bf16.msrb.mxu2 %v1473_v28  ;;  %v1407_v28 = vld [vmem:[%s2144_s0 + $0x34] sm:$0xf] }
  0x2a   :  { %744 = vmatpush.bf16.msrb.mxu1 %v1464_v27  ;;  %v1410_v27 = vld [vmem:[%s2144_s0 + $0x48] sm:$0xf0] }
  0x2b   :  { %870 = vmatpush.bf16.msrb.mxu3 %v1480_v29  ;;  %933 = vmatpush.bf16.msrb.mxu0 %v1488_v30  ;;  %v1073_v29 = vld [vmem:[%s2144_s0 + $0x44] sm:$0xf0]  ;;  %v1091_v30 = vld [vmem:[%s2144_s0 + $0x58] sm:$0xf] }
  0x2c   :  { %v1076_v34 = vor.u32 %v1407_v28, %v1073_v29 }
  0x2d   :  { %807 = vmatpush.bf16.msrb.mxu2 %v1472_v32  ;;  %v1068_v32 = vor.u32 %v1406_v24, %v1065_v25 }
  0x2e   :  { %745 = vmatpush.bf16.msrb.mxu1 %v1463_v31  ;;  %v1414_v31 = vld [vmem:[%s2144_s0 + $0x68] sm:$0xf0] }
  0x2f   :  { %871 = vmatpush.bf16.msrb.mxu3 %v1479_v33  ;;  %934 = vmatpush.bf16.msrb.mxu0 %v1487_v39  ;;  %v1080_v33 = vor.u32 %v1410_v27, %v1079_v26  ;;  %v1092_v35 = vor.u32 %v1414_v31, %v1091_v30  ;;  %v1415_v39 = vld [vmem:[%s2144_s0 + $0x70] sm:$0xf0]  ;;  %v1165_v31 = vld [vmem:[%s2144_s0 + $0x104] sm:$0xf0] }
  0x30   :  { %v1431_v30 = vld [vmem:[%s2144_s0 + $0xf4] sm:$0xf] }
  0x31   :  { %808 = vmatpush.bf16.msrb.mxu2 %v1471_v41  ;;  %692 = vmatmul.bf16.gmra.mxu0 %v1064_v46  ;;  %v1093_v41 = vld [vmem:[%s2144_s0 + $0x6c] sm:$0xf0] }
  0x32   :  { %746 = vmatpush.bf16.msrb.mxu1 %v1462_v42  ;;  %732 = vmatmul.bf16.gmra.mxu3 %v1224_v48  ;;  %v1111_v42 = vld [vmem:[%s2144_s0 + $0x80] sm:$0xf]  ;;  %v1096_v46 = vor.u32 %v1412_v40, %v1093_v41  ;;  %v1416_v48 = vld [vmem:[%s2144_s0 + $0x7c] sm:$0xf] }
  0x33   :  { %872 = vmatpush.bf16.msrb.mxu3 %v1478_v45  ;;  %707 = vmatmul.bf16.gmra.mxu1 %v1124_v47  ;;  %v1100_v45 = vor.u32 %v1415_v39, %v1099_v38  ;;  %v1112_v47 = vor.u32 %v1419_v43, %v1111_v42  ;;  %v1168_v39 = vor.u32 %v1431_v30, %v1165_v31  ;;  %v1213_v30 = vld [vmem:[%s2144_s0 + $0x15c] sm:$0xf0]  ;;  %v1231_v31 = vld [vmem:[%s2144_s0 + $0x170] sm:$0xf] }
  0x34   :  { %935 = vmatpush.bf16.msrb.mxu0 %v1486_v49  ;;  %722 = vmatmul.bf16.gmra.mxu2 %v1184_v50  ;;  %v1105_v49 = vld [vmem:[%s2144_s0 + $0x8c] sm:$0xf0]  ;;  %v1119_v50 = vld [vmem:[%s2144_s0 + $0x88] sm:$0xf] }
  0x35   :  { %809 = vmatpush.bf16.msrb.mxu2 %v1470_v52  ;;  %v1417_v52 = vld [vmem:[%s2144_s0 + $0x84] sm:$0xf] }
  0x36   :  { %747 = vmatpush.bf16.msrb.mxu1 %v1461_v51  ;;  %v1420_v51 = vld [vmem:[%s2144_s0 + $0x98] sm:$0xf0] }
  0x37   :  { %873 = vmatpush.bf16.msrb.mxu3 %v1477_v53  ;;  %v1113_v53 = vld [vmem:[%s2144_s0 + $0x94] sm:$0xf0] }
  0x38   :  { %936 = vmatpush.bf16.msrb.mxu0 %v1485_v54  ;;  %v1131_v54 = vld [vmem:[%s2144_s0 + $0xa8] sm:$0xf] }
  0x39   :  { %810 = vmatpush.bf16.msrb.mxu2 %v1469_v56  ;;  %v1108_v56 = vor.u32 %v1416_v48, %v1105_v49 }
  0x3a   :  { %748 = vmatpush.bf16.msrb.mxu1 %v1460_v55  ;;  %v1424_v55 = vld [vmem:[%s2144_s0 + $0xb8] sm:$0xf0] }
  0x3b   :  { %874 = vmatpush.bf16.msrb.mxu3 %v1476_v57  ;;  %v1120_v57 = vor.u32 %v1420_v51, %v1119_v50 }
  0x3c   :  { %937 = vmatpush.bf16.msrb.mxu0 %v1484_v58  ;;  %v1116_v58 = vor.u32 %v1417_v52, %v1113_v53 }
  0x3d   :  { %811 = vmatpush.bf16.msrb.mxu2 %v1468_v61  ;;  %v1421_v61 = vld [vmem:[%s2144_s0 + $0xa4] sm:$0xf] }
  0x3e   :  { %749 = vmatpush.bf16.msrb.mxu1 %v1459_v60  ;;  %v1132_v60 = vor.u32 %v1424_v55, %v1131_v54 }
  0x3f   :  { %875 = vmatpush.bf16.msrb.mxu3 %v1475_v62  ;;  %v1125_v62 = vld [vmem:[%s2144_s0 + $0xb4] sm:$0xf0] }
  0x40   :  { %938 = vmatpush.bf16.msrb.mxu0 %v1483_v4  ;;  %v1429_v4 = vld [vmem:[%s2144_s0 + $0xe0] sm:$0xf0] }
  0x41   :  { %812 = vmatpush.bf16.msrb.mxu2 %v1467_v5  ;;  %697 = vmatmul.bf16.gmra.mxu0 %v1084_v8  ;;  %v1128_v5 = vor.u32 %v1421_v61, %v1125_v62  ;;  %v1152_v8 = vor.u32 %v1429_v4, %v1151_v3  ;;  %v1437_v61 = vld [vmem:[%s2144_s0 + $0x124] sm:$0xf]  ;;  %v1193_v62 = vld [vmem:[%s2144_s0 + $0x134] sm:$0xf0] }
  0x42   :  { %737 = vmatmul.bf16.gmra.mxu3 %v379_v10  ;;  %v1145_v10 = vld [vmem:[%s2144_s0 + $0xdc] sm:$0xf0] }
  0x43   :  { %712 = vmatmul.bf16.gmra.mxu1 %v1144_v9  ;;  %v1426_v9 = vld [vmem:[%s2144_s0 + $0xcc] sm:$0xf] }
  0x44   :  { %813 = vmatmul.bf16.vlgmr.msrb.gmra.mxu2 %v1052_v11  ;;  %v1159_v11 = vld [vmem:[%s2144_s0 + $0xd8] sm:$0xf]  ;;  %v1148_v17 = vor.u32 %v1426_v9, %v1145_v10  ;;  %v1212_v10 = vor.u32 %v1444_v0, %v1211_v63  ;;  %v1450_v0 = vld [vmem:[%s2144_s0 + $0x188] sm:$0xf0] }
  0x45   :  { %v1160_v18 = vor.u32 %v1430_v12, %v1159_v11  ;;  %v1239_v63 = vld [vmem:[%s2144_s0 + $0x178] sm:$0xf] }
  0x51   :  { %939 = vmatmul.bf16.vlgmr.msrb.gmra.mxu0 %v1060_v21  ;;  %v1156_v21 = vor.u32 %v1427_v13, %v1153_v14 }
  0x52   :  { %876 = vmatmul.bf16.vlgmr.msrb.gmra.mxu3 %v1056_v22  ;;  %v1172_v22 = vor.u32 %v1434_v16, %v1171_v15 }
  0x53   :  { %750 = vmatmul.bf16.vlgmr.msrb.gmra.mxu1 %v1048_v20 }
  0x54   :  { %818 = vmatmul.bf16.gmra.mxu2 %v1072_v23  ;;  %v1879_v23 = vld [vmem:[%s2143_s2] ss:$0 sm:$0xff] }
  0x61   :  { %944 = vmatmul.bf16.gmra.mxu0 %v1080_v33  ;;  %v1435_v33 = vld [vmem:[%s2144_s0 + $0x110] sm:$0xf0] }
  0x62   :  { %881 = vmatmul.bf16.gmra.mxu3 %v1076_v34  ;;  %v1432_v34 = vld [vmem:[%s2144_s0 + $0xfc] sm:$0xf] }
  0x63   :  { %755 = vmatmul.bf16.gmra.mxu1 %v1068_v32  ;;  %v1179_v32 = vld [vmem:[%s2144_s0 + $0x100] sm:$0xf] }
  0x64   :  { %823 = vmatmul.bf16.gmra.mxu2 %v1092_v35  ;;  %v1173_v35 = vld [vmem:[%s2144_s0 + $0x10c] sm:$0xf0]  ;;  %v1180_v40 = vor.u32 %v1435_v33, %v1179_v32  ;;  %v1449_v32 = vld [vmem:[%s2144_s0 + $0x180] sm:$0xf0] }
  0x71   :  { %949 = vmatmul.bf16.gmra.mxu0 %v1100_v45 }
  0x72   :  { %886 = vmatmul.bf16.gmra.mxu3 %v1096_v46 }
  0x73   :  { %760 = vmatmul.bf16.gmra.mxu1 %v1088_v44  ;;  %v1176_v44 = vor.u32 %v1432_v34, %v1173_v35 }
  0x74   :  { %828 = vmatmul.bf16.gmra.mxu2 %v1112_v47  ;;  %v1192_v47 = vor.u32 %v1439_v37, %v1191_v36 }
  0x81   :  { %954 = vmatmul.bf16.gmra.mxu0 %v1120_v57  ;;  %v1185_v57 = vld [vmem:[%s2144_s0 + $0x12c] sm:$0xf0] }
  0x82   :  { %891 = vmatmul.bf16.gmra.mxu3 %v1116_v58  ;;  %v1199_v58 = vld [vmem:[%s2144_s0 + $0x128] sm:$0xf] }
  0x83   :  { %765 = vmatmul.bf16.gmra.mxu1 %v1108_v56  ;;  %v1436_v56 = vld [vmem:[%s2144_s0 + $0x11c] sm:$0xf] }
  0x84   :  { %833 = vmatmul.bf16.gmra.mxu2 %v1132_v60  ;;  %v1440_v60 = vld [vmem:[%s2144_s0 + $0x138] sm:$0xf0]  ;;  %v1188_v2 = vor.u32 %v1436_v56, %v1185_v57 }
  0x85   :  { %v1200_v3 = vor.u32 %v1440_v60, %v1199_v58  ;;  %v75_v60 = vld [vmem:[%s2144_s0 + $0x198] sm:$0xff] }
  0x91   :  { %959 = vmatmul.bf16.gmra.mxu0 %v1140_v6 }
  0x92   :  { %896 = vmatmul.bf16.gmra.mxu3 %v1136_v7  ;;  %v1196_v7 = vor.u32 %v1437_v61, %v1193_v62  ;;  %v1446_v61 = vld [vmem:[%s2144_s0 + $0x16c] sm:$0xf] }
  0x93   :  { %770 = vmatmul.bf16.gmra.mxu1 %v1128_v5 }
  0x94   :  { %838 = vmatmul.bf16.gmra.mxu2 %v1152_v8 }
  0x9e   :  { %v1872_v19 = vpop.f32.mrf.mxu0  ;;  %v1874_v20 = vpop.f32.mrf.mxu1 }
  0x9f   :  { %v689_v36 = vadd.f32 %v1879_v23, %v1872_v19 }
  0xa1   :  { %964 = vmatmul.bf16.gmra.mxu0 %v1160_v18  ;;  %v1441_v18 = vld [vmem:[%s2144_s0 + $0x144] sm:$0xf] }
  0xa2   :  { %901 = vmatmul.bf16.gmra.mxu3 %v1156_v21  ;;  %v1205_v21 = vld [vmem:[%s2144_s0 + $0x154] sm:$0xf0] }
  0xa3   :  { %775 = vmatmul.bf16.gmra.mxu1 %v1148_v17  ;;  %v1208_v34 = vor.u32 %v1441_v18, %v1205_v21 }
  0xa4   :  { %843 = vmatmul.bf16.gmra.mxu2 %v1172_v22  ;;  %v1219_v22 = vld [vmem:[%s2144_s0 + $0x150] sm:$0xf] }
  0xa5   :  { %v728_v24 = vpop.f32.mrf.mxu3 }
  0xa6   :  { %v1882_v25 = vadd.f32 %v1879_v23, %v728_v24  ;;  %v1884_v26 = vpop.f32.mrf.mxu0  ;;  %v1886_v27 = vpop.f32.mrf.mxu1  ;;  %v1445_v24 = vld [vmem:[%s2144_s0 + $0x160] sm:$0xf0] }
  0xa7   :  { %v718_v28 = vpop.f32.mrf.mxu2  ;;  %v1220_v35 = vor.u32 %v1445_v24, %v1219_v22 }
  0xa8   :  { %v1889_v29 = vadd.f32 %v1879_v23, %v718_v28  ;;  %v1442_v28 = vld [vmem:[%s2144_s0 + $0x14c] sm:$0xf] }
  0xad   :  { %v730_v38 = vpop.f32.mrf.mxu3 }
  0xae   :  { %v1916_v41 = vadd.f32 %v1879_v23, %v730_v38  ;;  %v1918_v42 = vpop.f32.mrf.mxu0 }
  0xaf   :  { %v720_v46 = vpop.f32.mrf.mxu2 }
  0xb0   :  { %v708_v43 = vpop.f32.mrf.mxu1  ;;  %v1924_v48 = vadd.f32 %v1879_v23, %v720_v46 }
  0xb1   :  { %v1921_v45 = vadd.f32 %v1879_v23, %v708_v43  ;;  %969 = vmatmul.bf16.gmra.mxu0 %v1180_v40  ;;  %v1232_v43 = vor.u32 %v1449_v32, %v1231_v31 }
  0xb2   :  { %906 = vmatmul.bf16.gmra.mxu3 %v1176_v44 }
  0xb3   :  { %780 = vmatmul.bf16.gmra.mxu1 %v1168_v39  ;;  %v1216_v39 = vor.u32 %v1442_v28, %v1213_v30 }
  0xb4   :  { %848 = vmatmul.bf16.gmra.mxu2 %v1192_v47 }
  0xb5   :  { %v733_v49 = vpop.f32.mrf.mxu3 }
  0xb6   :  { %v1927_v50 = vadd.f32 %v1879_v23, %v733_v49  ;;  %v1929_v51 = vpop.f32.mrf.mxu0  ;;  %v691_v49 = vadd.f32 %v1879_v23, %v1884_v26  ;;  %v1225_v26 = vld [vmem:[%s2144_s0 + $0x17c] sm:$0xf0] }
  0xb7   :  { %v723_v54 = vpop.f32.mrf.mxu2 }
  0xb8   :  { %v710_v52 = vpop.f32.mrf.mxu1  ;;  %v1935_v55 = vadd.f32 %v1879_v23, %v723_v54 }
  0xb9   :  { %v1932_v53 = vadd.f32 %v1879_v23, %v710_v52 }
  0xbd   :  { %v735_v1 = vpop.f32.mrf.mxu3 }
  0xbe   :  { %v1962_v4 = vadd.f32 %v1879_v23, %v735_v1  ;;  %v1964_v5 = vpop.f32.mrf.mxu0  ;;  %v1447_v1 = vld [vmem:[%s2144_s0 + $0x174] sm:$0xf] }
  0xbf   :  { %v725_v9 = vpop.f32.mrf.mxu2 }
  0xc0   :  { %v713_v6 = vpop.f32.mrf.mxu1  ;;  %v1970_v11 = vadd.f32 %v1879_v23, %v725_v9  ;;  %v1228_v9 = vor.u32 %v1446_v61, %v1225_v26 }
  0xc1   :  { %v1967_v8 = vadd.f32 %v1879_v23, %v713_v6  ;;  %974 = vmatmul.bf16.gmra.mxu0 %v1200_v3  ;;  %v326_v3 = vunpack.c.l.b16 %v75_v60 }
  0xc2   :  { %911 = vmatmul.bf16.gmra.mxu3 %v1196_v7 }
  0xc3   :  { %785 = vmatmul.bf16.gmra.mxu1 %v1188_v2  ;;  %v1233_v2 = vld [vmem:[%s2144_s0 + $0x184] sm:$0xf0]  ;;  %v381_v24 = vpack.c.b16 %v326_v3, %v326_v3 }
  0xc4   :  { %853 = vmatmul.bf16.gmra.mxu2 %v1212_v10  ;;  %v1240_v10 = vor.u32 %v1450_v0, %v1239_v63  ;;  %v1236_v21 = vor.u32 %v1447_v1, %v1233_v2 }
  0xc5   :  { %v738_v12 = vpop.f32.mrf.mxu3 }
  0xc6   :  { %v1973_v13 = vadd.f32 %v1879_v23, %v738_v12  ;;  %v1975_v14 = vpop.f32.mrf.mxu0  ;;  %v694_v12 = vadd.f32 %v1879_v23, %v1918_v42 }
  0xc7   :  { %v814_v17 = vpop.f32.mrf.mxu2 }
  0xc8   :  { %v715_v15 = vpop.f32.mrf.mxu1 }
  0xc9   :  { %v1978_v16 = vadd.f32 %v1879_v23, %v715_v15 }
  0xcd   :  { %v740_v33 = vpop.f32.mrf.mxu3 }
  0xce   :  { %v940_v38 = vpop.f32.mrf.mxu0  ;;  %v696_v33 = vadd.f32 %v1879_v23, %v1929_v51 }
  0xcf   :  { %v816_v40 = vpop.f32.mrf.mxu2 }
  0xd0   :  { %v751_v37 = vpop.f32.mrf.mxu1 }
  0xd1   :  { %v752_v44 = vadd.f32 %v751_v37, %v689_v36  ;;  %979 = vmatmul.bf16.gmra.mxu0 %v1220_v35  ;;  %v76_v37 = vld [vmem:[%s2144_s0 + $0x1a0] sm:$0xf] }
  0xd2   :  { %916 = vmatmul.bf16.gmra.mxu3 %v1216_v39 }
  0xd3   :  { %790 = vmatmul.bf16.gmra.mxu1 %v1208_v34  ;;  %v815_v46 = vadd.f32 %v814_v17, %v752_v44  ;;  %v328_v44 = vunpack.c.l.b16 %v76_v37 }
  0xd4   :  { %858 = vmatmul.bf16.gmra.mxu2 %v1232_v43  ;;  %v325_v43 = vunpack.c.h.b16 %v1692_v59 }
  0xd5   :  { %v877_v47 = vpop.f32.mrf.mxu3 }
  0xd6   :  { %v878_v52 = vadd.f32 %v877_v47, %v815_v46  ;;  %v942_v56 = vpop.f32.mrf.mxu0  ;;  %v327_v47 = vunpack.c.h.b16 %v75_v60 }
  0xd7   :  { %v819_v57 = vpop.f32.mrf.mxu2 }
  0xd8   :  { %v753_v54 = vpop.f32.mrf.mxu1  ;;  %v941_v19 = vadd.f32 %v940_v38, %v878_v52  ;;  %v380_v52 = vpack.c.b16 %v325_v43, %v325_v43  ;;  %v382_v61 = vpack.c.b16 %v327_v47, %v327_v47 }
  0xd9   :  { %v754_v58 = vadd.f32 %v753_v54, %v691_v49  ;;  %v383_v54 = vpack.c.b16 %v328_v44, %v328_v44 }
  0xda   :  { %v994_v62 = vpack.c.bf16 %v941_v19, %v941_v19 }
  0xdb   :  { %v817_v6 = vadd.f32 %v816_v40, %v754_v58 }
  0xdc   :  { %1016 = vst.msk [vmem:[%s2145_s3] sm:$0xf] %vm1015_vm0, %v994_v62 }
  0xdd   :  { %v879_v7 = vpop.f32.mrf.mxu3 }
  0xde   :  { %v880_v15 = vadd.f32 %v879_v7, %v817_v6  ;;  %v945_v18 = vpop.f32.mrf.mxu0 }
  0xdf   :  { %v821_v22 = vpop.f32.mrf.mxu2 }
  0xe0   :  { %v756_v17 = vpop.f32.mrf.mxu1  ;;  %v943_v28 = vadd.f32 %v942_v56, %v880_v15  ;;  %v699_v56 = vadd.f32 %v1879_v23, %v1964_v5  ;;  %v701_v5 = vadd.f32 %v1879_v23, %v1975_v14 }
  0xe1   :  { %v757_v30 = vadd.f32 %v756_v17, %v694_v12  ;;  %984 = vmatmul.bf16.gmra.mxu0 %v1240_v10  ;;  %v704_v17 = vadd.f32 %v1879_v23, %v1874_v20 }
  0xe2   :  { %v995_v31 = vpack.c.bf16 %v943_v28, %v943_v28  ;;  %921 = vmatmul.bf16.gmra.mxu3 %v1236_v21 }
  0xe3   :  { %795 = vmatmul.bf16.gmra.mxu1 %v1228_v9  ;;  %v820_v32 = vadd.f32 %v819_v57, %v757_v30 }
  0xe4   :  { %863 = vmatmul.bf16.gmra.mxu2 %v381_v24  ;;  %1017 = vst.msk [vmem:[%s2145_s3 + $0x4] sm:$0xf] %vm1015_vm0, %v995_v31 }
  0xe5   :  { %v882_v42 = vpop.f32.mrf.mxu3 }
  0xe6   :  { %v883_v34 = vadd.f32 %v882_v42, %v820_v32  ;;  %v947_v36 = vpop.f32.mrf.mxu0  ;;  %v706_v42 = vadd.f32 %v1879_v23, %v1886_v27 }
  0xe7   :  { %v824_v38 = vpop.f32.mrf.mxu2 }
  0xe8   :  { %v758_v35 = vpop.f32.mrf.mxu1  ;;  %v946_v39 = vadd.f32 %v945_v18, %v883_v34 }
  0xe9   :  { %v759_v40 = vadd.f32 %v758_v35, %v696_v33 }
  0xea   :  { %v996_v46 = vpack.c.bf16 %v946_v39, %v946_v39 }
  0xeb   :  { %v822_v51 = vadd.f32 %v821_v22, %v759_v40 }
  0xec   :  { %1018 = vst.msk [vmem:[%s2145_s3 + $0x8] sm:$0xf] %vm1015_vm0, %v996_v46 }
  0xed   :  { %v884_v49 = vpop.f32.mrf.mxu3 }
  0xee   :  { %v885_v57 = vadd.f32 %v884_v49, %v822_v51  ;;  %v950_v58 = vpop.f32.mrf.mxu0 }
  0xef   :  { %v826_v59 = vpop.f32.mrf.mxu2 }
  0xf0   :  { %v761_v19 = vpop.f32.mrf.mxu1  ;;  %v948_v62 = vadd.f32 %v947_v36, %v885_v57 }
  0xf1   :  { %v762_v26 = vadd.f32 %v761_v19, %v699_v56  ;;  %989 = vmatmul.bf16.gmra.mxu0 %v383_v54 }
  0xf2   :  { %v997_v60 = vpack.c.bf16 %v948_v62, %v948_v62  ;;  %926 = vmatmul.bf16.gmra.mxu3 %v382_v61 }
  0xf3   :  { %800 = vmatmul.bf16.gmra.mxu1 %v380_v52  ;;  %v825_v63 = vadd.f32 %v824_v38, %v762_v26 }
  0xf4   :  { %1019 = vst.msk [vmem:[%s2145_s3 + $0xc] sm:$0xf] %vm1015_vm0, %v997_v60 }
  0xf5   :  { %v887_v0 = vpop.f32.mrf.mxu3 }
  0xf6   :  { %v888_v1 = vadd.f32 %v887_v0, %v825_v63  ;;  %v952_v3 = vpop.f32.mrf.mxu0 }
  0xf7   :  { %v829_v6 = vpop.f32.mrf.mxu2 }
  0xf8   :  { %v763_v2 = vpop.f32.mrf.mxu1  ;;  %v951_v7 = vadd.f32 %v950_v58, %v888_v1 }
  0xf9   :  { %v764_v9 = vadd.f32 %v763_v2, %v701_v5 }
  0xfa   :  { %v998_v10 = vpack.c.bf16 %v951_v7, %v951_v7 }
  0xfb   :  { %v827_v12 = vadd.f32 %v826_v59, %v764_v9 }
  0xfc   :  { %1020 = vst.msk [vmem:[%s2145_s3 + $0x10] sm:$0xf] %vm1015_vm0, %v998_v10 }
  0xfd   :  { %v889_v15 = vpop.f32.mrf.mxu3 }
  0xfe   :  { %v890_v18 = vadd.f32 %v889_v15, %v827_v12  ;;  %v955_v14 = vpop.f32.mrf.mxu0 }
  0xff   :  { %v831_v22 = vpop.f32.mrf.mxu2 }
 0x100   :  { %v766_v21 = vpop.f32.mrf.mxu1  ;;  %v953_v24 = vadd.f32 %v952_v3, %v890_v18 }
 0x101   :  { %v767_v28 = vadd.f32 %v766_v21, %v704_v17 }
 0x102   :  { %v999_v30 = vpack.c.bf16 %v953_v24, %v953_v24 }
 0x103   :  { %v830_v31 = vadd.f32 %v829_v6, %v767_v28 }
 0x104   :  { %1021 = vst.msk [vmem:[%s2145_s3 + $0x14] sm:$0xf] %vm1015_vm0, %v999_v30 }
 0x105   :  { %v892_v32 = vpop.f32.mrf.mxu3 }
 0x106   :  { %v893_v33 = vadd.f32 %v892_v32, %v830_v31  ;;  %v957_v20 = vpop.f32.mrf.mxu0 }
 0x107   :  { %v834_v35 = vpop.f32.mrf.mxu2 }
 0x108   :  { %v768_v34 = vpop.f32.mrf.mxu1  ;;  %v956_v36 = vadd.f32 %v955_v14, %v893_v33 }
 0x109   :  { %v769_v37 = vadd.f32 %v768_v34, %v706_v42 }
 0x10a   :  { %v1000_v38 = vpack.c.bf16 %v956_v36, %v956_v36 }
 0x10b   :  { %v832_v39 = vadd.f32 %v831_v22, %v769_v37 }
 0x10c   :  { %1022 = vst.msk [vmem:[%s2145_s3 + $0x18] sm:$0xf] %vm1015_vm0, %v1000_v38 }
 0x10d   :  { %v894_v40 = vpop.f32.mrf.mxu3 }
 0x10e   :  { %v895_v43 = vadd.f32 %v894_v40, %v832_v39  ;;  %v960_v46 = vpop.f32.mrf.mxu0 }
 0x10f   :  { %v836_v47 = vpop.f32.mrf.mxu2 }
 0x110   :  { %v771_v44 = vpop.f32.mrf.mxu1  ;;  %v958_v51 = vadd.f32 %v957_v20, %v895_v43 }
 0x111   :  { %v772_v23 = vadd.f32 %v771_v44, %v1921_v45 }
 0x112   :  { %v1001_v27 = vpack.c.bf16 %v958_v51, %v958_v51 }
 0x113   :  { %v835_v49 = vadd.f32 %v834_v35, %v772_v23 }
 0x114   :  { %1023 = vst.msk [vmem:[%s2145_s3 + $0x1c] sm:$0xf] %vm1015_vm0, %v1001_v27 }
 0x115   :  { %v897_v52 = vpop.f32.mrf.mxu3 }
 0x116   :  { %v898_v54 = vadd.f32 %v897_v52, %v835_v49  ;;  %v962_v57 = vpop.f32.mrf.mxu0 }
 0x117   :  { %v839_v19 = vpop.f32.mrf.mxu2 }
 0x118   :  { %v773_v56 = vpop.f32.mrf.mxu1  ;;  %v961_v58 = vadd.f32 %v960_v46, %v898_v54 }
 0x119   :  { %v774_v61 = vadd.f32 %v773_v56, %v1932_v53 }
 0x11a   :  { %v1002_v59 = vpack.c.bf16 %v961_v58, %v961_v58 }
 0x11b   :  { %v837_v45 = vadd.f32 %v836_v47, %v774_v61 }
 0x11c   :  { %1024 = vst.msk [vmem:[%s2145_s3 + $0x20] sm:$0xf] %vm1015_vm0, %v1002_v59 }
 0x11d   :  { %v899_v62 = vpop.f32.mrf.mxu3 }
 0x11e   :  { %v900_v26 = vadd.f32 %v899_v62, %v837_v45  ;;  %v965_v63 = vpop.f32.mrf.mxu0 }
 0x11f   :  { %v841_v0 = vpop.f32.mrf.mxu2 }
 0x120   :  { %v776_v60 = vpop.f32.mrf.mxu1  ;;  %v963_v5 = vadd.f32 %v962_v57, %v900_v26 }
 0x121   :  { %v777_v1 = vadd.f32 %v776_v60, %v1967_v8 }
 0x122   :  { %v1003_v2 = vpack.c.bf16 %v963_v5, %v963_v5 }
 0x123   :  { %v840_v53 = vadd.f32 %v839_v19, %v777_v1 }
 0x124   :  { %1025 = vst.msk [vmem:[%s2145_s3 + $0x24] sm:$0xf] %vm1015_vm0, %v1003_v2 }
 0x125   :  { %v902_v3 = vpop.f32.mrf.mxu3 }
 0x126   :  { %v903_v6 = vadd.f32 %v902_v3, %v840_v53  ;;  %v967_v9 = vpop.f32.mrf.mxu0 }
 0x127   :  { %v844_v10 = vpop.f32.mrf.mxu2 }
 0x128   :  { %v778_v7 = vpop.f32.mrf.mxu1  ;;  %v966_v12 = vadd.f32 %v965_v63, %v903_v6 }
 0x129   :  { %v779_v15 = vadd.f32 %v778_v7, %v1978_v16 }
 0x12a   :  { %v1004_v17 = vpack.c.bf16 %v966_v12, %v966_v12 }
 0x12b   :  { %v842_v8 = vadd.f32 %v841_v0, %v779_v15 }
 0x12c   :  { %1026 = vst.msk [vmem:[%s2145_s3 + $0x28] sm:$0xf] %vm1015_vm0, %v1004_v17 }
 0x12d   :  { %v904_v18 = vpop.f32.mrf.mxu3 }
 0x12e   :  { %v905_v21 = vadd.f32 %v904_v18, %v842_v8  ;;  %v970_v22 = vpop.f32.mrf.mxu0 }
 0x12f   :  { %v846_v24 = vpop.f32.mrf.mxu2 }
 0x130   :  { %v781_v14 = vpop.f32.mrf.mxu1  ;;  %v968_v28 = vadd.f32 %v967_v9, %v905_v21 }
 0x131   :  { %v782_v30 = vadd.f32 %v781_v14, %v1889_v29 }
 0x132   :  { %v1005_v31 = vpack.c.bf16 %v968_v28, %v968_v28 }
 0x133   :  { %v845_v16 = vadd.f32 %v844_v10, %v782_v30 }
 0x134   :  { %1027 = vst.msk [vmem:[%s2145_s3 + $0x2c] sm:$0xf] %vm1015_vm0, %v1005_v31 }
 0x135   :  { %v907_v32 = vpop.f32.mrf.mxu3 }
 0x136   :  { %v908_v42 = vadd.f32 %v907_v32, %v845_v16  ;;  %v972_v34 = vpop.f32.mrf.mxu0 }
 0x137   :  { %v849_v20 = vpop.f32.mrf.mxu2 }
 0x138   :  { %v783_v33 = vpop.f32.mrf.mxu1  ;;  %v971_v35 = vadd.f32 %v970_v22, %v908_v42 }
 0x139   :  { %v784_v36 = vadd.f32 %v783_v33, %v1924_v48 }
 0x13a   :  { %v1006_v37 = vpack.c.bf16 %v971_v35, %v971_v35 }
 0x13b   :  { %v847_v29 = vadd.f32 %v846_v24, %v784_v36 }
 0x13c   :  { %1028 = vst.msk [vmem:[%s2145_s3 + $0x30] sm:$0xf] %vm1015_vm0, %v1006_v37 }
 0x13d   :  { %v909_v38 = vpop.f32.mrf.mxu3 }
 0x13e   :  { %v910_v39 = vadd.f32 %v909_v38, %v847_v29  ;;  %v975_v43 = vpop.f32.mrf.mxu0 }
 0x13f   :  { %v851_v44 = vpop.f32.mrf.mxu2 }
 0x140   :  { %v786_v40 = vpop.f32.mrf.mxu1  ;;  %v973_v46 = vadd.f32 %v972_v34, %v910_v39 }
 0x141   :  { %v787_v47 = vadd.f32 %v786_v40, %v1935_v55 }
 0x142   :  { %v1007_v51 = vpack.c.bf16 %v973_v46, %v973_v46 }
 0x143   :  { %v850_v48 = vadd.f32 %v849_v20, %v787_v47 }
 0x144   :  { %1029 = vst.msk [vmem:[%s2145_s3 + $0x34] sm:$0xf] %vm1015_vm0, %v1007_v51 }
 0x145   :  { %v912_v23 = vpop.f32.mrf.mxu3 }
 0x146   :  { %v913_v27 = vadd.f32 %v912_v23, %v850_v48  ;;  %v977_v52 = vpop.f32.mrf.mxu0 }
 0x147   :  { %v854_v54 = vpop.f32.mrf.mxu2 }
 0x148   :  { %v788_v49 = vpop.f32.mrf.mxu1  ;;  %v976_v56 = vadd.f32 %v975_v43, %v913_v27 }
 0x149   :  { %v789_v57 = vadd.f32 %v788_v49, %v1970_v11 }
 0x14a   :  { %v1008_v19 = vpack.c.bf16 %v976_v56, %v976_v56 }
 0x14b   :  { %v852_v55 = vadd.f32 %v851_v44, %v789_v57 }
 0x14c   :  { %1030 = vst.msk [vmem:[%s2145_s3 + $0x38] sm:$0xf] %vm1015_vm0, %v1008_v19 }
 0x14d   :  { %v914_v58 = vpop.f32.mrf.mxu3 }
 0x14e   :  { %v915_v61 = vadd.f32 %v914_v58, %v852_v55  ;;  %v980_v45 = vpop.f32.mrf.mxu0 }
 0x14f   :  { %v856_v62 = vpop.f32.mrf.mxu2 }
 0x150   :  { %v791_v59 = vpop.f32.mrf.mxu1  ;;  %v978_v26 = vadd.f32 %v977_v52, %v915_v61 }
 0x151   :  { %v792_v60 = vadd.f32 %v791_v59, %v1882_v25 }
 0x152   :  { %v1009_v63 = vpack.c.bf16 %v978_v26, %v978_v26 }
 0x153   :  { %v855_v11 = vadd.f32 %v854_v54, %v792_v60 }
 0x154   :  { %1031 = vst.msk [vmem:[%s2145_s3 + $0x3c] sm:$0xf] %vm1015_vm0, %v1009_v63 }
 0x155   :  { %v917_v0 = vpop.f32.mrf.mxu3 }
 0x156   :  { %v918_v5 = vadd.f32 %v917_v0, %v855_v11  ;;  %v982_v2 = vpop.f32.mrf.mxu0 }
 0x157   :  { %v859_v53 = vpop.f32.mrf.mxu2 }
 0x158   :  { %v793_v1 = vpop.f32.mrf.mxu1  ;;  %v981_v3 = vadd.f32 %v980_v45, %v918_v5 }
 0x159   :  { %v794_v6 = vadd.f32 %v793_v1, %v1916_v41 }
 0x15a   :  { %v1010_v7 = vpack.c.bf16 %v981_v3, %v981_v3 }
 0x15b   :  { %v857_v25 = vadd.f32 %v856_v62, %v794_v6 }
 0x15c   :  { %1032 = vst.msk [vmem:[%s2145_s3 + $0x40] sm:$0xf] %vm1015_vm0, %v1010_v7 }
 0x15d   :  { %v919_v9 = vpop.f32.mrf.mxu3 }
 0x15e   :  { %v920_v10 = vadd.f32 %v919_v9, %v857_v25  ;;  %v985_v15 = vpop.f32.mrf.mxu0 }
 0x15f   :  { %v861_v17 = vpop.f32.mrf.mxu2 }
 0x160   :  { %v796_v12 = vpop.f32.mrf.mxu1  ;;  %v983_v8 = vadd.f32 %v982_v2, %v920_v10 }
 0x161   :  { %v797_v18 = vadd.f32 %v796_v12, %v1927_v50 }
 0x162   :  { %v1011_v21 = vpack.c.bf16 %v983_v8, %v983_v8 }
 0x163   :  { %v860_v41 = vadd.f32 %v859_v53, %v797_v18 }
 0x164   :  { %1033 = vst.msk [vmem:[%s2145_s3 + $0x44] sm:$0xf] %vm1015_vm0, %v1011_v21 }
 0x165   :  { %v922_v14 = vpop.f32.mrf.mxu3 }
 0x166   :  { %v923_v22 = vadd.f32 %v922_v14, %v860_v41  ;;  %v987_v28 = vpop.f32.mrf.mxu0 }
 0x167   :  { %v864_v30 = vpop.f32.mrf.mxu2 }
 0x168   :  { %v798_v24 = vpop.f32.mrf.mxu1  ;;  %v986_v31 = vadd.f32 %v985_v15, %v923_v22 }
 0x169   :  { %v799_v16 = vadd.f32 %v798_v24, %v1962_v4 }
 0x16a   :  { %v1012_v32 = vpack.c.bf16 %v986_v31, %v986_v31 }
 0x16b   :  { %v862_v50 = vadd.f32 %v861_v17, %v799_v16 }
 0x16c   :  { %1034 = vst.msk [vmem:[%s2145_s3 + $0x48] sm:$0xf] %vm1015_vm0, %v1012_v32 }
 0x16d   :  { %v924_v42 = vpop.f32.mrf.mxu3 }
 0x16e   :  { %v925_v33 = vadd.f32 %v924_v42, %v862_v50  ;;  %v990_v20 = vpop.f32.mrf.mxu0 }
 0x16f   :  { %v866_v35 = vpop.f32.mrf.mxu2 }
 0x170   :  { %v801_v34 = vpop.f32.mrf.mxu1  ;;  %v988_v36 = vadd.f32 %v987_v28, %v925_v33 }
 0x171   :  { %v802_v37 = vadd.f32 %v801_v34, %v1973_v13 }
 0x172   :  { %v1013_v29 = vpack.c.bf16 %v988_v36, %v988_v36 }
 0x173   :  { %v865_v4 = vadd.f32 %v864_v30, %v802_v37 }
 0x174   :  { %1035 = vst.msk [vmem:[%s2145_s3 + $0x4c] sm:$0xf] %vm1015_vm0, %v1013_v29 }
 0x175   :  { %v927_v38 = vpop.f32.mrf.mxu3 }
 0x176   :  { %v928_v39 = vadd.f32 %v927_v38, %v865_v4  ;;  %v992_v43 = vpop.f32.mrf.mxu0 }
 0x178   :  { %v803_v40 = vpop.f32.mrf.mxu1  ;;  %v991_v44 = vadd.f32 %v990_v20, %v928_v39 }
 0x17a   :  { %v1014_v46 = vpack.c.bf16 %v991_v44, %v991_v44 }
 0x17c   :  { %1036 = vst.msk [vmem:[%s2145_s3 + $0x50] sm:$0xf] %vm1015_vm0, %v1014_v46 }
 0x17d   :  { %v929_v47 = vpop.f32.mrf.mxu3 }

// kernel: _lambda_.13
= control target key start
LH: loop header
LB: loop body
LE: loop exit
PB: predicated region body
PF: predicated region fallthrough
CT: control target
= control target key end

     0   :  { %vm2948_vm0 = vcmask 519168   ;;  %s6019_s1 = inlined_call_operand.vmem [shape: bf16[2304,64], index: 1, kind: input, shape index: {}]   ;;  %s6020_s2 = inlined_call_operand.vmem [shape: f32[1,64], index: 2, kind: input, shape index: {}]   ;;  %s6021_s0 = inlined_call_operand.vmem [shape: bf16[128,2304], index: 0, kind: input, shape index: {}]   ;;  %s6022_s3 = inlined_call_operand.vmem [shape: bf16[128,64], index: 3, kind: output, shape index: {}]  }
   0x1   :  { %v4272_v0 = vld [vmem:[%s6019_s1 + $0x38] sm:$0xff]  ;;  %v4271_v2 = vld [vmem:[%s6019_s1 + $0x30] sm:$0xff]  ;;  %v4270_v4 = vld [vmem:[%s6019_s1 + $0x28] sm:$0xff] }
   0x2   :  { %v4280_v1 = vld [vmem:[%s6019_s1 + $0x78] sm:$0xff]  ;;  %4409 = vmatpush.bf16.msra.mxu2 %v4272_v0  ;;  %v4279_v3 = vld [vmem:[%s6019_s1 + $0x70] sm:$0xff]  ;;  %2034 = vmatpush.bf16.msra.mxu0 %v4272_v0  ;;  %v4278_v5 = vld [vmem:[%s6019_s1 + $0x68] sm:$0xff] }
   0x3   :  { %4417 = vmatpush.bf16.msra.mxu3 %v4280_v1  ;;  %2083 = vmatpush.bf16.msra.mxu1 %v4280_v1  ;;  %v4269_v6 = vld [vmem:[%s6019_s1 + $0x20] sm:$0xff]  ;;  %v4268_v8 = vld [vmem:[%s6019_s1 + $0x18] sm:$0xff]  ;;  %v4267_v10 = vld [vmem:[%s6019_s1 + $0x10] sm:$0xff] }
   0x4   :  { %v4277_v7 = vld [vmem:[%s6019_s1 + $0x60] sm:$0xff]  ;;  %v4276_v9 = vld [vmem:[%s6019_s1 + $0x58] sm:$0xff]  ;;  %v4275_v11 = vld [vmem:[%s6019_s1 + $0x50] sm:$0xff] }
   0x5   :  { %v4266_v12 = vld [vmem:[%s6019_s1 + $0x8] sm:$0xff]  ;;  %v4265_v14 = vld [vmem:[%s6019_s1] sm:$0xff]  ;;  %v4288_v20 = vld [vmem:[%s6019_s1 + $0xb8] sm:$0xff] }
   0x6   :  { %4410 = vmatpush.bf16.msra.mxu2 %v4271_v2  ;;  %2035 = vmatpush.bf16.msra.mxu0 %v4271_v2  ;;  %v4274_v13 = vld [vmem:[%s6019_s1 + $0x48] sm:$0xff]  ;;  %v4273_v15 = vld [vmem:[%s6019_s1 + $0x40] sm:$0xff]  ;;  %v4296_v23 = vld [vmem:[%s6019_s1 + $0xf8] sm:$0xff] }
   0x7   :  { %4418 = vmatpush.bf16.msra.mxu3 %v4279_v3  ;;  %2084 = vmatpush.bf16.msra.mxu1 %v4279_v3  ;;  %v3259_v16 = vld [vmem:[%s6021_s0 + $0x240] sm:$0xf]  ;;  %v4202_v17 = vld [vmem:[%s6021_s0 + $0x284] sm:$0xf0]  ;;  %v4193_v18 = vld [vmem:[%s6021_s0 + $0x244] sm:$0xf] }
   0x8   :  { %v3261_v19 = vld [vmem:[%s6021_s0 + $0x288] sm:$0xf0]  ;;  %v2971_v21 = vld [vmem:[%s6021_s0] sm:$0xf]  ;;  %v4130_v22 = vld [vmem:[%s6021_s0 + $0x44] sm:$0xf0]  ;;  %v3260_v26 = vor.u32 %v4202_v17, %v3259_v16 }
   0x9   :  { %v4121_v24 = vld [vmem:[%s6021_s0 + $0x4] sm:$0xf]  ;;  %v2973_v25 = vld [vmem:[%s6021_s0 + $0x48] sm:$0xf0]  ;;  %v3264_v27 = vor.u32 %v4193_v18, %v3261_v19  ;;  %v2972_v28 = vor.u32 %v4130_v22, %v2971_v21  ;;  %v4312_v29 = vld [vmem:[%s6019_s1 + $0x178] sm:$0xff] }
   0xa   :  { %4411 = vmatpush.bf16.msra.mxu2 %v4270_v4  ;;  %2036 = vmatpush.bf16.msra.mxu0 %v4270_v4  ;;  %v2976_v30 = vor.u32 %v4121_v24, %v2973_v25  ;;  %v4287_v31 = vld [vmem:[%s6019_s1 + $0xb0] sm:$0xff]  ;;  %v4304_v33 = vld [vmem:[%s6019_s1 + $0x138] sm:$0xff]  ;;  %v4286_v35 = vld [vmem:[%s6019_s1 + $0xa8] sm:$0xff] }
   0xb   :  { %4419 = vmatpush.bf16.msra.mxu3 %v4278_v5  ;;  %2085 = vmatpush.bf16.msra.mxu1 %v4278_v5  ;;  %v4295_v32 = vld [vmem:[%s6019_s1 + $0xf0] sm:$0xff]  ;;  %v4294_v36 = vld [vmem:[%s6019_s1 + $0xe8] sm:$0xff]  ;;  %v4285_v39 = vld [vmem:[%s6019_s1 + $0xa0] sm:$0xff] }
   0xc   :  { %v4311_v34 = vld [vmem:[%s6019_s1 + $0x170] sm:$0xff]  ;;  %v4310_v38 = vld [vmem:[%s6019_s1 + $0x168] sm:$0xff]  ;;  %v4293_v40 = vld [vmem:[%s6019_s1 + $0xe0] sm:$0xff] }
   0xd   :  { %v4303_v37 = vld [vmem:[%s6019_s1 + $0x130] sm:$0xff]  ;;  %v4302_v41 = vld [vmem:[%s6019_s1 + $0x128] sm:$0xff]  ;;  %v4220_v43 = vld [vmem:[%s6021_s0 + $0x314] sm:$0xf0] }
   0xe   :  { %4412 = vmatpush.bf16.msra.mxu2 %v4269_v6  ;;  %2037 = vmatpush.bf16.msra.mxu0 %v4269_v6  ;;  %v3331_v42 = vld [vmem:[%s6021_s0 + $0x2d0] sm:$0xf]  ;;  %v4211_v44 = vld [vmem:[%s6021_s0 + $0x2d4] sm:$0xf]  ;;  %v3333_v45 = vld [vmem:[%s6021_s0 + $0x318] sm:$0xf0] }
   0xf   :  { %4420 = vmatpush.bf16.msra.mxu3 %v4277_v7  ;;  %2086 = vmatpush.bf16.msra.mxu1 %v4277_v7  ;;  %v3043_v46 = vld [vmem:[%s6021_s0 + $0x90] sm:$0xf]  ;;  %v4309_v47 = vld [vmem:[%s6019_s1 + $0x160] sm:$0xff]  ;;  %v4148_v48 = vld [vmem:[%s6021_s0 + $0xd4] sm:$0xf0]  ;;  %v3332_v54 = vor.u32 %v4220_v43, %v3331_v42  ;;  %v3336_v55 = vor.u32 %v4211_v44, %v3333_v45 }
  0x10   :  { %v4139_v49 = vld [vmem:[%s6021_s0 + $0x94] sm:$0xf]  ;;  %v4284_v50 = vld [vmem:[%s6019_s1 + $0x98] sm:$0xff]  ;;  %v4301_v53 = vld [vmem:[%s6019_s1 + $0x120] sm:$0xff]  ;;  %v3044_v56 = vor.u32 %v4148_v48, %v3043_v46 }
  0x11   :  { %v3045_v51 = vld [vmem:[%s6021_s0 + $0xd8] sm:$0xf0]  ;;  %v4283_v59 = vld [vmem:[%s6019_s1 + $0x90] sm:$0xff]  ;;  %v4282_v62 = vld [vmem:[%s6019_s1 + $0x88] sm:$0xff] }
  0x12   :  { %4413 = vmatpush.bf16.msra.mxu2 %v4268_v8  ;;  %2038 = vmatpush.bf16.msra.mxu0 %v4268_v8  ;;  %v4292_v52 = vld [vmem:[%s6019_s1 + $0xd8] sm:$0xff]  ;;  %v3048_v58 = vor.u32 %v4139_v49, %v3045_v51  ;;  %v4291_v60 = vld [vmem:[%s6019_s1 + $0xd0] sm:$0xff]  ;;  %v4290_v0 = vld [vmem:[%s6019_s1 + $0xc8] sm:$0xff] }
  0x13   :  { %4421 = vmatpush.bf16.msra.mxu3 %v4276_v9  ;;  %2087 = vmatpush.bf16.msra.mxu1 %v4276_v9  ;;  %v4308_v57 = vld [vmem:[%s6019_s1 + $0x158] sm:$0xff]  ;;  %v4307_v63 = vld [vmem:[%s6019_s1 + $0x150] sm:$0xff]  ;;  %v4306_v2 = vld [vmem:[%s6019_s1 + $0x148] sm:$0xff] }
  0x14   :  { %v4300_v61 = vld [vmem:[%s6019_s1 + $0x118] sm:$0xff]  ;;  %v4299_v1 = vld [vmem:[%s6019_s1 + $0x110] sm:$0xff]  ;;  %v4281_v3 = vld [vmem:[%s6019_s1 + $0x80] sm:$0xff] }
  0x15   :  { %v4289_v4 = vld [vmem:[%s6019_s1 + $0xc0] sm:$0xff]  ;;  %v4298_v5 = vld [vmem:[%s6019_s1 + $0x108] sm:$0xff]  ;;  %v4328_v21 = vld [vmem:[%s6019_s1 + $0x1f8] sm:$0xff] }
  0x16   :  { %4414 = vmatpush.bf16.msra.mxu2 %v4267_v10  ;;  %2039 = vmatpush.bf16.msra.mxu0 %v4267_v10  ;;  %v3403_v6 = vld [vmem:[%s6021_s0 + $0x360] sm:$0xf]  ;;  %v4238_v7 = vld [vmem:[%s6021_s0 + $0x3a4] sm:$0xf0]  ;;  %v4229_v8 = vld [vmem:[%s6021_s0 + $0x364] sm:$0xf] }
  0x17   :  { %4422 = vmatpush.bf16.msra.mxu3 %v4275_v11  ;;  %2088 = vmatpush.bf16.msra.mxu1 %v4275_v11  ;;  %v3405_v9 = vld [vmem:[%s6021_s0 + $0x3a8] sm:$0xf0]  ;;  %v3115_v10 = vld [vmem:[%s6021_s0 + $0x120] sm:$0xf]  ;;  %v4166_v11 = vld [vmem:[%s6021_s0 + $0x164] sm:$0xf0] }
  0x18   :  { %v3408_v16 = vor.u32 %v4229_v8, %v3405_v9  ;;  %v3116_v17 = vor.u32 %v4166_v11, %v3115_v10  ;;  %v4305_v19 = vld [vmem:[%s6019_s1 + $0x140] sm:$0xff]  ;;  %v4336_v22 = vld [vmem:[%s6019_s1 + $0x238] sm:$0xff]  ;;  %v3475_v24 = vld [vmem:[%s6021_s0 + $0x3f0] sm:$0xf] }
  0x19   :  { %v4256_v25 = vld [vmem:[%s6021_s0 + $0x434] sm:$0xf0]  ;;  %v4122_v42 = vld [vmem:[%s6021_s0 + $0xc] sm:$0xf]  ;;  %v2981_v43 = vld [vmem:[%s6021_s0 + $0x50] sm:$0xf0] }
  0x1a   :  { %4415 = vmatpush.bf16.msra.mxu2 %v4266_v12  ;;  %2040 = vmatpush.bf16.msra.mxu0 %v4266_v12  ;;  %v4157_v12 = vld [vmem:[%s6021_s0 + $0x124] sm:$0xf]  ;;  %v2987_v44 = vld [vmem:[%s6021_s0 + $0x10] sm:$0xf]  ;;  %v4132_v45 = vld [vmem:[%s6021_s0 + $0x54] sm:$0xf0]  ;;  %v2984_v49 = vor.u32 %v4122_v42, %v2981_v43 }
  0x1b   :  { %4423 = vmatpush.bf16.msra.mxu3 %v4274_v13  ;;  %2089 = vmatpush.bf16.msra.mxu1 %v4274_v13  ;;  %v3117_v13 = vld [vmem:[%s6021_s0 + $0x168] sm:$0xf0]  ;;  %v4123_v46 = vld [vmem:[%s6021_s0 + $0x14] sm:$0xf]  ;;  %v3123_v8 = vld [vmem:[%s6021_s0 + $0x128] sm:$0xf] }
  0x1c   :  { %v3120_v18 = vor.u32 %v4157_v12, %v3117_v13  ;;  %v4167_v9 = vld [vmem:[%s6021_s0 + $0x16c] sm:$0xf0]  ;;  %v4158_v10 = vld [vmem:[%s6021_s0 + $0x12c] sm:$0xf]  ;;  %v3125_v11 = vld [vmem:[%s6021_s0 + $0x170] sm:$0xf0] }
  0x1d   :  { %v3131_v12 = vld [vmem:[%s6021_s0 + $0x130] sm:$0xf]  ;;  %v4168_v13 = vld [vmem:[%s6021_s0 + $0x174] sm:$0xf0] }
  0x1e   :  { %4416 = vmatpush.bf16.msra.mxu2 %v4265_v14  ;;  %2041 = vmatpush.bf16.msra.mxu0 %v4265_v14  ;;  %v4297_v14 = vld [vmem:[%s6019_s1 + $0x100] sm:$0xff]  ;;  %v4331_v42 = vld [vmem:[%s6019_s1 + $0x210] sm:$0xff] }
  0x1f   :  { %4424 = vmatpush.bf16.msra.mxu3 %v4273_v15  ;;  %2090 = vmatpush.bf16.msra.mxu1 %v4273_v15  ;;  %v3404_v15 = vor.u32 %v4238_v7, %v3403_v6  ;;  %v4333_v6 = vld [vmem:[%s6019_s1 + $0x220] sm:$0xff]  ;;  %v3275_v43 = vld [vmem:[%s6021_s0 + $0x250] sm:$0xf] }
  0x20   :  { %v4341_v7 = vld [vmem:[%s6019_s1 + $0x260] sm:$0xff] }
  0x21   :  { %2062 = vmatmul.bf16.vlgmr.msra.gmra.mxu2 %v3260_v26  ;;  %2042 = vmatmul.bf16.vlgmr.msra.gmra.mxu0 %v2972_v28  ;;  %v4247_v26 = vld [vmem:[%s6021_s0 + $0x3f4] sm:$0xf]  ;;  %v3187_v28 = vld [vmem:[%s6021_s0 + $0x1b0] sm:$0xf] }
  0x22   :  { %2132 = vmatpush.bf16.msrb.mxu2 %v4288_v20  ;;  %2111 = vmatmul.bf16.vlgmr.msra.gmra.mxu3 %v3264_v27  ;;  %v4320_v20 = vld [vmem:[%s6019_s1 + $0x1b8] sm:$0xff] }
  0x23   :  { %2181 = vmatpush.bf16.msrb.mxu3 %v4296_v23  ;;  %2279 = vmatpush.bf16.msrb.mxu1 %v4312_v29  ;;  %v4344_v23 = vld [vmem:[%s6019_s1 + $0x278] sm:$0xff] }
  0x24   :  { %2091 = vmatmul.bf16.vlgmr.msra.gmra.mxu1 %v2976_v30  ;;  %2230 = vmatpush.bf16.msrb.mxu0 %v4304_v33  ;;  %v3477_v27 = vld [vmem:[%s6021_s0 + $0x438] sm:$0xf0]  ;;  %v4184_v29 = vld [vmem:[%s6021_s0 + $0x1f4] sm:$0xf0]  ;;  %v4175_v30 = vld [vmem:[%s6021_s0 + $0x1b4] sm:$0xf] }
  0x25   :  { %v3480_v33 = vor.u32 %v4247_v26, %v3477_v27  ;;  %v4332_v26 = vld [vmem:[%s6019_s1 + $0x218] sm:$0xff]  ;;  %v3203_v27 = vld [vmem:[%s6021_s0 + $0x1c0] sm:$0xf] }
  0x26   :  { %2133 = vmatpush.bf16.msrb.mxu2 %v4287_v31  ;;  %v3189_v31 = vld [vmem:[%s6021_s0 + $0x1f8] sm:$0xf0] }
  0x27   :  { %2182 = vmatpush.bf16.msrb.mxu3 %v4295_v32  ;;  %2280 = vmatpush.bf16.msrb.mxu1 %v4311_v34  ;;  %v3476_v32 = vor.u32 %v4256_v25, %v3475_v24  ;;  %v3188_v34 = vor.u32 %v4184_v29, %v3187_v28  ;;  %v4176_v24 = vld [vmem:[%s6021_s0 + $0x1bc] sm:$0xf]  ;;  %v3197_v25 = vld [vmem:[%s6021_s0 + $0x200] sm:$0xf0]  ;;  %v4186_v28 = vld [vmem:[%s6021_s0 + $0x204] sm:$0xf0] }
  0x28   :  { %2231 = vmatpush.bf16.msrb.mxu0 %v4303_v37  ;;  %v4327_v37 = vld [vmem:[%s6019_s1 + $0x1f0] sm:$0xff]  ;;  %v4177_v29 = vld [vmem:[%s6021_s0 + $0x1c4] sm:$0xf] }
  0x2a   :  { %2134 = vmatpush.bf16.msrb.mxu2 %v4286_v35  ;;  %v3192_v35 = vor.u32 %v4175_v30, %v3189_v31  ;;  %v3205_v30 = vld [vmem:[%s6021_s0 + $0x208] sm:$0xf0] }
  0x2b   :  { %2183 = vmatpush.bf16.msrb.mxu3 %v4294_v36  ;;  %2281 = vmatpush.bf16.msrb.mxu1 %v4310_v38  ;;  %v4319_v36 = vld [vmem:[%s6019_s1 + $0x1b0] sm:$0xff] }
  0x2c   :  { %2232 = vmatpush.bf16.msrb.mxu0 %v4302_v41  ;;  %v4335_v38 = vld [vmem:[%s6019_s1 + $0x230] sm:$0xff] }
  0x2d   :  { %v4131_v41 = vld [vmem:[%s6021_s0 + $0x4c] sm:$0xf0] }
  0x2e   :  { %2135 = vmatpush.bf16.msrb.mxu2 %v4285_v39  ;;  %v4343_v39 = vld [vmem:[%s6019_s1 + $0x270] sm:$0xff] }
  0x2f   :  { %2184 = vmatpush.bf16.msrb.mxu3 %v4293_v40  ;;  %2282 = vmatpush.bf16.msrb.mxu1 %v4309_v47  ;;  %v2979_v40 = vld [vmem:[%s6021_s0 + $0x8] sm:$0xf]  ;;  %v2989_v47 = vld [vmem:[%s6021_s0 + $0x58] sm:$0xf0] }
  0x30   :  { %2233 = vmatpush.bf16.msrb.mxu0 %v4301_v53  ;;  %v2980_v48 = vor.u32 %v4131_v41, %v2979_v40  ;;  %v2992_v51 = vor.u32 %v4123_v46, %v2989_v47  ;;  %v4326_v53 = vld [vmem:[%s6019_s1 + $0x1e8] sm:$0xff]  ;;  %v3269_v41 = vld [vmem:[%s6021_s0 + $0x290] sm:$0xf0]  ;;  %v3277_v46 = vld [vmem:[%s6021_s0 + $0x298] sm:$0xf0] }
  0x31   :  { %2067 = vmatmul.bf16.gmra.mxu2 %v3332_v54  ;;  %2047 = vmatmul.bf16.gmra.mxu0 %v3044_v56  ;;  %v4334_v54 = vld [vmem:[%s6019_s1 + $0x228] sm:$0xff]  ;;  %v3051_v56 = vld [vmem:[%s6021_s0 + $0x98] sm:$0xf] }
  0x32   :  { %2136 = vmatpush.bf16.msrb.mxu2 %v4284_v50  ;;  %2116 = vmatmul.bf16.gmra.mxu3 %v3336_v55  ;;  %v2988_v50 = vor.u32 %v4132_v45, %v2987_v44  ;;  %v4342_v55 = vld [vmem:[%s6019_s1 + $0x268] sm:$0xff]  ;;  %v4204_v44 = vld [vmem:[%s6021_s0 + $0x294] sm:$0xf0]  ;;  %v4195_v45 = vld [vmem:[%s6021_s0 + $0x254] sm:$0xf] }
  0x33   :  { %2185 = vmatpush.bf16.msrb.mxu3 %v4292_v52  ;;  %2283 = vmatpush.bf16.msrb.mxu1 %v4308_v57  ;;  %v4318_v52 = vld [vmem:[%s6019_s1 + $0x1a8] sm:$0xff]  ;;  %v4149_v57 = vld [vmem:[%s6021_s0 + $0xdc] sm:$0xf0] }
  0x34   :  { %2096 = vmatmul.bf16.gmra.mxu1 %v3048_v58  ;;  %2234 = vmatpush.bf16.msrb.mxu0 %v4300_v61  ;;  %v4140_v58 = vld [vmem:[%s6021_s0 + $0x9c] sm:$0xf]  ;;  %v4150_v61 = vld [vmem:[%s6021_s0 + $0xe4] sm:$0xf0]  ;;  %v4194_v40 = vld [vmem:[%s6021_s0 + $0x24c] sm:$0xf] }
  0x36   :  { %2137 = vmatpush.bf16.msrb.mxu2 %v4283_v59  ;;  %v3053_v59 = vld [vmem:[%s6021_s0 + $0xe0] sm:$0xf0] }
  0x37   :  { %2186 = vmatpush.bf16.msrb.mxu3 %v4291_v60  ;;  %2284 = vmatpush.bf16.msrb.mxu1 %v4307_v63  ;;  %v3059_v60 = vld [vmem:[%s6021_s0 + $0xa0] sm:$0xf]  ;;  %v3061_v63 = vld [vmem:[%s6021_s0 + $0xe8] sm:$0xf0] }
  0x38   :  { %2235 = vmatpush.bf16.msrb.mxu0 %v4299_v1  ;;  %v3056_v1 = vor.u32 %v4140_v58, %v3053_v59  ;;  %v4322_v58 = vld [vmem:[%s6019_s1 + $0x1c8] sm:$0xff] }
  0x3a   :  { %2138 = vmatpush.bf16.msrb.mxu2 %v4282_v62  ;;  %v4141_v62 = vld [vmem:[%s6021_s0 + $0xa4] sm:$0xf] }
  0x3b   :  { %2187 = vmatpush.bf16.msrb.mxu3 %v4290_v0  ;;  %2285 = vmatpush.bf16.msrb.mxu1 %v4306_v2  ;;  %v3052_v0 = vor.u32 %v4149_v57, %v3051_v56  ;;  %v3060_v2 = vor.u32 %v4150_v61, %v3059_v60  ;;  %v4314_v56 = vld [vmem:[%s6019_s1 + $0x188] sm:$0xff] }
  0x3c   :  { %2236 = vmatpush.bf16.msrb.mxu0 %v4298_v5  ;;  %v4325_v5 = vld [vmem:[%s6019_s1 + $0x1e0] sm:$0xff] }
  0x3e   :  { %2139 = vmatpush.bf16.msrb.mxu2 %v4281_v3  ;;  %v3064_v3 = vor.u32 %v4141_v62, %v3061_v63 }
  0x3f   :  { %2188 = vmatpush.bf16.msrb.mxu3 %v4289_v4  ;;  %2286 = vmatpush.bf16.msrb.mxu1 %v4305_v19  ;;  %v4317_v4 = vld [vmem:[%s6019_s1 + $0x1a0] sm:$0xff] }
  0x40   :  { %2237 = vmatpush.bf16.msrb.mxu0 %v4297_v14  ;;  %v4159_v14 = vld [vmem:[%s6021_s0 + $0x134] sm:$0xf] }
  0x41   :  { %2072 = vmatmul.bf16.gmra.mxu2 %v3404_v15  ;;  %2052 = vmatmul.bf16.gmra.mxu0 %v3116_v17  ;;  %v3133_v15 = vld [vmem:[%s6021_s0 + $0x178] sm:$0xf0]  ;;  %v3128_v17 = vor.u32 %v4158_v10, %v3125_v11 }
  0x42   :  { %2121 = vmatmul.bf16.gmra.mxu3 %v3408_v16  ;;  %2328 = vmatpush.bf16.msra.mxu2 %v4320_v20  ;;  %v3124_v16 = vor.u32 %v4167_v9, %v3123_v8  ;;  %v3136_v19 = vor.u32 %v4159_v14, %v3133_v15  ;;  %v4316_v20 = vld [vmem:[%s6019_s1 + $0x198] sm:$0xff]  ;;  %v3347_v8 = vld [vmem:[%s6021_s0 + $0x2e0] sm:$0xf]  ;;  %v4222_v9 = vld [vmem:[%s6021_s0 + $0x324] sm:$0xf0] }
  0x43   :  { %2377 = vmatpush.bf16.msra.mxu3 %v4328_v21  ;;  %2475 = vmatpush.bf16.msra.mxu1 %v4344_v23  ;;  %v4324_v21 = vld [vmem:[%s6019_s1 + $0x1d8] sm:$0xff]  ;;  %v4185_v23 = vld [vmem:[%s6021_s0 + $0x1fc] sm:$0xf0] }
  0x44   :  { %2101 = vmatmul.bf16.gmra.mxu1 %v3120_v18  ;;  %2426 = vmatpush.bf16.msra.mxu0 %v4336_v22  ;;  %v3132_v18 = vor.u32 %v4168_v13, %v3131_v12  ;;  %v3195_v22 = vld [vmem:[%s6021_s0 + $0x1b8] sm:$0xf]  ;;  %v4213_v12 = vld [vmem:[%s6021_s0 + $0x2e4] sm:$0xf]  ;;  %v3349_v13 = vld [vmem:[%s6021_s0 + $0x328] sm:$0xf0] }
  0x45   :  { %v3196_v31 = vor.u32 %v4185_v23, %v3195_v22 }
  0x46   :  { %2329 = vmatpush.bf16.msra.mxu2 %v4319_v36  ;;  %v4315_v36 = vld [vmem:[%s6019_s1 + $0x190] sm:$0xff] }
  0x47   :  { %2378 = vmatpush.bf16.msra.mxu3 %v4327_v37  ;;  %2476 = vmatpush.bf16.msra.mxu1 %v4343_v39  ;;  %v4323_v37 = vld [vmem:[%s6019_s1 + $0x1d0] sm:$0xff] }
  0x48   :  { %2427 = vmatpush.bf16.msra.mxu0 %v4335_v38  ;;  %v3267_v38 = vld [vmem:[%s6021_s0 + $0x248] sm:$0xf]  ;;  %v4203_v39 = vld [vmem:[%s6021_s0 + $0x28c] sm:$0xf0] }
  0x49   :  { %v3268_v47 = vor.u32 %v4203_v39, %v3267_v38  ;;  %v3413_v38 = vld [vmem:[%s6021_s0 + $0x3b0] sm:$0xf0]  ;;  %v4329_v39 = vld [vmem:[%s6019_s1 + $0x200] sm:$0xff] }
  0x4a   :  { %2330 = vmatpush.bf16.msra.mxu2 %v4318_v52  ;;  %v3280_v52 = vor.u32 %v4195_v45, %v3277_v46  ;;  %v3421_v45 = vld [vmem:[%s6021_s0 + $0x3b8] sm:$0xf0] }
  0x4b   :  { %2379 = vmatpush.bf16.msra.mxu3 %v4326_v53  ;;  %2477 = vmatpush.bf16.msra.mxu1 %v4342_v55  ;;  %v4339_v53 = vld [vmem:[%s6019_s1 + $0x250] sm:$0xff] }
  0x4c   :  { %2428 = vmatpush.bf16.msra.mxu0 %v4334_v54 }
  0x4e   :  { %2331 = vmatpush.bf16.msra.mxu2 %v4317_v4 }
  0x4f   :  { %2380 = vmatpush.bf16.msra.mxu3 %v4325_v5  ;;  %2478 = vmatpush.bf16.msra.mxu1 %v4341_v7  ;;  %v4212_v5 = vld [vmem:[%s6021_s0 + $0x2dc] sm:$0xf]  ;;  %v4330_v7 = vld [vmem:[%s6019_s1 + $0x208] sm:$0xff] }
  0x50   :  { %2429 = vmatpush.bf16.msra.mxu0 %v4333_v6  ;;  %v3341_v6 = vld [vmem:[%s6021_s0 + $0x320] sm:$0xf0] }
  0x51   :  { %2077 = vmatmul.bf16.gmra.mxu2 %v3476_v32  ;;  %2057 = vmatmul.bf16.gmra.mxu0 %v3188_v34  ;;  %v3200_v32 = vor.u32 %v4176_v24, %v3197_v25  ;;  %v3208_v34 = vor.u32 %v4177_v29, %v3205_v30  ;;  %v4313_v24 = vld [vmem:[%s6019_s1 + $0x180] sm:$0xff] }
  0x52   :  { %2126 = vmatmul.bf16.gmra.mxu3 %v3480_v33  ;;  %2332 = vmatpush.bf16.msra.mxu2 %v4316_v20  ;;  %v3204_v33 = vor.u32 %v4186_v28, %v3203_v27  ;;  %v3352_v20 = vor.u32 %v4213_v12, %v3349_v13  ;;  %v3491_v12 = vld [vmem:[%s6021_s0 + $0x400] sm:$0xf]  ;;  %v4258_v13 = vld [vmem:[%s6021_s0 + $0x444] sm:$0xf0] }
  0x53   :  { %2381 = vmatpush.bf16.msra.mxu3 %v4324_v21  ;;  %v4338_v21 = vld [vmem:[%s6019_s1 + $0x248] sm:$0xff] }
  0x54   :  { %2106 = vmatmul.bf16.gmra.mxu1 %v3192_v35  ;;  %2430 = vmatpush.bf16.msra.mxu0 %v4332_v26  ;;  %v4340_v35 = vld [vmem:[%s6019_s1 + $0x258] sm:$0xff]  ;;  %v4321_v26 = vld [vmem:[%s6019_s1 + $0x1c0] sm:$0xff] }
  0x55   :  { %2479 = vmatpush.bf16.msra.mxu1 %v4340_v35  ;;  %v4239_v35 = vld [vmem:[%s6021_s0 + $0x3ac] sm:$0xf0] }
  0x56   :  { %2333 = vmatpush.bf16.msra.mxu2 %v4315_v36 }
  0x57   :  { %2382 = vmatpush.bf16.msra.mxu3 %v4323_v37  ;;  %v4230_v37 = vld [vmem:[%s6021_s0 + $0x36c] sm:$0xf] }
  0x58   :  { %2431 = vmatpush.bf16.msra.mxu0 %v4331_v42 }
  0x59   :  { %2480 = vmatpush.bf16.msra.mxu1 %v4339_v53 }
  0x5a   :  { %2334 = vmatpush.bf16.msra.mxu2 %v4314_v56 }
  0x5b   :  { %2383 = vmatpush.bf16.msra.mxu3 %v4322_v58  ;;  %v4352_v58 = vld [vmem:[%s6019_s1 + $0x2b8] sm:$0xff] }
  0x5c   :  { %2432 = vmatpush.bf16.msra.mxu0 %v4330_v7  ;;  %v4368_v7 = vld [vmem:[%s6019_s1 + $0x338] sm:$0xff] }
  0x5d   :  { %2481 = vmatpush.bf16.msra.mxu1 %v4338_v21 }
  0x5e   :  { %2335 = vmatpush.bf16.msra.mxu2 %v4313_v24 }
  0x5f   :  { %2384 = vmatpush.bf16.msra.mxu3 %v4321_v26 }
  0x60   :  { %2433 = vmatpush.bf16.msra.mxu0 %v4329_v39 }
  0x61   :  { %2140 = vmatmul.bf16.vlgmr.msrb.gmra.mxu2 %v2980_v48  ;;  %2238 = vmatmul.bf16.vlgmr.msrb.gmra.mxu0 %v2988_v50  ;;  %v3272_v48 = vor.u32 %v4194_v40, %v3269_v41  ;;  %v3276_v50 = vor.u32 %v4204_v44, %v3275_v43  ;;  %v3419_v40 = vld [vmem:[%s6021_s0 + $0x370] sm:$0xf]  ;;  %v4240_v41 = vld [vmem:[%s6021_s0 + $0x3b4] sm:$0xf0]  ;;  %v4231_v44 = vld [vmem:[%s6021_s0 + $0x374] sm:$0xf] }
  0x62   :  { %2189 = vmatmul.bf16.vlgmr.msrb.gmra.mxu3 %v2984_v49  ;;  %v4878_v49 = vld [vmem:[%s6020_s2] ss:$0 sm:$0xff]  ;;  %v3424_v53 = vor.u32 %v4231_v44, %v3421_v45  ;;  %2524 = vmatpush.bf16.msrb.mxu2 %v4352_v58 }
  0x63   :  { %v4133_v45 = vld [vmem:[%s6021_s0 + $0x5c] sm:$0xf0] }
  0x64   :  { %2287 = vmatmul.bf16.vlgmr.msrb.gmra.mxu1 %v2992_v51  ;;  %2622 = vmatpush.bf16.msrb.mxu0 %v4368_v7 }
  0x71   :  { %2145 = vmatmul.bf16.gmra.mxu2 %v3052_v0  ;;  %2243 = vmatmul.bf16.gmra.mxu0 %v3060_v2  ;;  %v3339_v2 = vld [vmem:[%s6021_s0 + $0x2d8] sm:$0xf] }
  0x72   :  { %2194 = vmatmul.bf16.gmra.mxu3 %v3056_v1 }
  0x74   :  { %2292 = vmatmul.bf16.gmra.mxu1 %v3064_v3  ;;  %v4221_v3 = vld [vmem:[%s6021_s0 + $0x31c] sm:$0xf0] }
  0x75   :  { %v3340_v15 = vor.u32 %v4221_v3, %v3339_v2 }
  0x81   :  { %2150 = vmatmul.bf16.gmra.mxu2 %v3124_v16  ;;  %2248 = vmatmul.bf16.gmra.mxu0 %v3132_v18  ;;  %v3344_v16 = vor.u32 %v4212_v5, %v3341_v6  ;;  %v3483_v6 = vld [vmem:[%s6021_s0 + $0x3f8] sm:$0xf] }
  0x82   :  { %2199 = vmatmul.bf16.gmra.mxu3 %v3128_v17  ;;  %v3348_v17 = vor.u32 %v4222_v9, %v3347_v8  ;;  %v4257_v9 = vld [vmem:[%s6021_s0 + $0x43c] sm:$0xf0] }
  0x84   :  { %2297 = vmatmul.bf16.gmra.mxu1 %v3136_v19 }
  0x91   :  { %2155 = vmatmul.bf16.gmra.mxu2 %v3196_v31  ;;  %2253 = vmatmul.bf16.gmra.mxu0 %v3204_v33 }
  0x92   :  { %2204 = vmatmul.bf16.gmra.mxu3 %v3200_v32 }
  0x94   :  { %2302 = vmatmul.bf16.gmra.mxu1 %v3208_v34  ;;  %v3411_v34 = vld [vmem:[%s6021_s0 + $0x368] sm:$0xf] }
  0x9e   :  { %v2043_v51 = vpop.f32.mrf.mxu0 }
  0x9f   :  { %v2044_v54 = vadd.f32 %v4878_v49, %v2043_v51 }
  0xa1   :  { %v2092_v55 = vpop.f32.mrf.mxu1  ;;  %2160 = vmatmul.bf16.gmra.mxu2 %v3268_v47  ;;  %2258 = vmatmul.bf16.gmra.mxu0 %v3276_v50  ;;  %v3412_v47 = vor.u32 %v4239_v35, %v3411_v34  ;;  %v3420_v50 = vor.u32 %v4240_v41, %v3419_v40 }
  0xa2   :  { %2209 = vmatmul.bf16.gmra.mxu3 %v3272_v48  ;;  %v4887_v57 = vadd.f32 %v2092_v55, %v2044_v54  ;;  %v3416_v48 = vor.u32 %v4230_v37, %v3413_v38  ;;  %v4337_v54 = vld [vmem:[%s6019_s1 + $0x240] sm:$0xff] }
  0xa3   :  { %2482 = vmatpush.bf16.msra.mxu1 %v4337_v54  ;;  %v4125_v54 = vld [vmem:[%s6021_s0 + $0x24] sm:$0xf] }
  0xa4   :  { %2307 = vmatmul.bf16.gmra.mxu1 %v3280_v52  ;;  %v2063_v59 = vpop.f32.mrf.mxu2 }
  0xa5   :  { %v2112_v60 = vpop.f32.mrf.mxu3  ;;  %v2064_v61 = vadd.f32 %v4878_v49, %v2063_v59 }
  0xa6   :  { %v2045_v63 = vpop.f32.mrf.mxu0 }
  0xa7   :  { %v4893_v62 = vadd.f32 %v2112_v60, %v2064_v61  ;;  %v2046_v0 = vadd.f32 %v4878_v49, %v2045_v63  ;;  %v4360_v60 = vld [vmem:[%s6019_s1 + $0x2f8] sm:$0xff] }
  0xa8   :  { %2573 = vmatpush.bf16.msrb.mxu3 %v4360_v60 }
  0xa9   :  { %v2094_v1 = vpop.f32.mrf.mxu1 }
  0xaa   :  { %v4902_v4 = vadd.f32 %v2094_v1, %v2046_v0 }
  0xac   :  { %v2065_v10 = vpop.f32.mrf.mxu2 }
  0xad   :  { %v2114_v11 = vpop.f32.mrf.mxu3  ;;  %v2066_v14 = vadd.f32 %v4878_v49, %v2065_v10  ;;  %v4248_v10 = vld [vmem:[%s6021_s0 + $0x3fc] sm:$0xf] }
  0xae   :  { %v2048_v19 = vpop.f32.mrf.mxu0 }
  0xaf   :  { %v4926_v18 = vadd.f32 %v2114_v11, %v2066_v14  ;;  %v2049_v22 = vadd.f32 %v4878_v49, %v2048_v19  ;;  %v3485_v11 = vld [vmem:[%s6021_s0 + $0x440] sm:$0xf0] }
  0xb0   :  { %v3488_v21 = vor.u32 %v4248_v10, %v3485_v11 }
  0xb1   :  { %v2097_v23 = vpop.f32.mrf.mxu1  ;;  %2165 = vmatmul.bf16.gmra.mxu2 %v3340_v15  ;;  %2263 = vmatmul.bf16.gmra.mxu0 %v3348_v17  ;;  %v3493_v17 = vld [vmem:[%s6021_s0 + $0x448] sm:$0xf0] }
  0xb2   :  { %2214 = vmatmul.bf16.gmra.mxu3 %v3344_v16  ;;  %v4935_v25 = vadd.f32 %v2097_v23, %v2049_v22  ;;  %v4249_v16 = vld [vmem:[%s6021_s0 + $0x404] sm:$0xf]  ;;  %v3492_v22 = vor.u32 %v4258_v13, %v3491_v12 }
  0xb3   :  { %v3496_v26 = vor.u32 %v4249_v16, %v3493_v17  ;;  %v4366_v16 = vld [vmem:[%s6019_s1 + $0x328] sm:$0xff]  ;;  %v4151_v17 = vld [vmem:[%s6021_s0 + $0xec] sm:$0xf0] }
  0xb4   :  { %2312 = vmatmul.bf16.gmra.mxu1 %v3352_v20  ;;  %v2068_v27 = vpop.f32.mrf.mxu2  ;;  %v3484_v20 = vor.u32 %v4257_v9, %v3483_v6  ;;  %v4350_v6 = vld [vmem:[%s6019_s1 + $0x2a8] sm:$0xff] }
  0xb5   :  { %v2117_v28 = vpop.f32.mrf.mxu3  ;;  %v2069_v29 = vadd.f32 %v4878_v49, %v2068_v27 }
  0xb6   :  { %v2050_v31 = vpop.f32.mrf.mxu0 }
  0xb7   :  { %v4941_v30 = vadd.f32 %v2117_v28, %v2069_v29  ;;  %v2051_v32 = vadd.f32 %v4878_v49, %v2050_v31  ;;  %v4376_v29 = vld [vmem:[%s6019_s1 + $0x378] sm:$0xff]  ;;  %v4351_v31 = vld [vmem:[%s6019_s1 + $0x2b0] sm:$0xff] }
  0xb8   :  { %2525 = vmatpush.bf16.msrb.mxu2 %v4351_v31  ;;  %2671 = vmatpush.bf16.msrb.mxu1 %v4376_v29 }
  0xb9   :  { %v2099_v33 = vpop.f32.mrf.mxu1 }
  0xba   :  { %v4950_v36 = vadd.f32 %v2099_v33, %v2051_v32  ;;  %v4359_v33 = vld [vmem:[%s6019_s1 + $0x2f0] sm:$0xff] }
  0xbb   :  { %2574 = vmatpush.bf16.msrb.mxu3 %v4359_v33 }
  0xbc   :  { %v2070_v42 = vpop.f32.mrf.mxu2  ;;  %2526 = vmatpush.bf16.msrb.mxu2 %v4350_v6  ;;  %v4161_v6 = vld [vmem:[%s6021_s0 + $0x144] sm:$0xf] }
  0xbd   :  { %v2119_v43 = vpop.f32.mrf.mxu3  ;;  %v2071_v46 = vadd.f32 %v4878_v49, %v2070_v42  ;;  %v2995_v42 = vld [vmem:[%s6021_s0 + $0x18] sm:$0xf] }
  0xbe   :  { %v2053_v52 = vpop.f32.mrf.mxu0  ;;  %v2996_v58 = vor.u32 %v4133_v45, %v2995_v42  ;;  %v4374_v42 = vld [vmem:[%s6019_s1 + $0x368] sm:$0xff] }
  0xbf   :  { %v4974_v51 = vadd.f32 %v2119_v43, %v2071_v46  ;;  %v2054_v55 = vadd.f32 %v4878_v49, %v2053_v52  ;;  %v4367_v43 = vld [vmem:[%s6019_s1 + $0x330] sm:$0xff]  ;;  %v4124_v46 = vld [vmem:[%s6021_s0 + $0x1c] sm:$0xf] }
  0xc0   :  { %2623 = vmatpush.bf16.msrb.mxu0 %v4367_v43  ;;  %v4349_v43 = vld [vmem:[%s6019_s1 + $0x2a0] sm:$0xff] }
  0xc1   :  { %v2102_v56 = vpop.f32.mrf.mxu1  ;;  %2170 = vmatmul.bf16.gmra.mxu2 %v3412_v47  ;;  %2268 = vmatmul.bf16.gmra.mxu0 %v3420_v50  ;;  %v2997_v47 = vld [vmem:[%s6021_s0 + $0x60] sm:$0xf0]  ;;  %v4134_v50 = vld [vmem:[%s6021_s0 + $0x64] sm:$0xf0] }
  0xc2   :  { %2219 = vmatmul.bf16.gmra.mxu3 %v3416_v48  ;;  %v4983_v59 = vadd.f32 %v2102_v56, %v2054_v55  ;;  %v3003_v48 = vld [vmem:[%s6021_s0 + $0x20] sm:$0xf]  ;;  %v3005_v55 = vld [vmem:[%s6021_s0 + $0x68] sm:$0xf0]  ;;  %v3000_v60 = vor.u32 %v4124_v46, %v2997_v47  ;;  %2527 = vmatpush.bf16.msrb.mxu2 %v4349_v43  ;;  %v4179_v43 = vld [vmem:[%s6021_s0 + $0x1d4] sm:$0xf] }
  0xc4   :  { %2317 = vmatmul.bf16.gmra.mxu1 %v3424_v53  ;;  %v2073_v61 = vpop.f32.mrf.mxu2  ;;  %2624 = vmatpush.bf16.msrb.mxu0 %v4366_v16 }
  0xc5   :  { %v2122_v63 = vpop.f32.mrf.mxu3  ;;  %v2074_v0 = vadd.f32 %v4878_v49, %v2073_v61  ;;  %v3004_v61 = vor.u32 %v4134_v50, %v3003_v48 }
  0xc6   :  { %v2055_v2 = vpop.f32.mrf.mxu0 }
  0xc7   :  { %v4989_v1 = vadd.f32 %v2122_v63, %v2074_v0  ;;  %v2056_v3 = vadd.f32 %v4878_v49, %v2055_v2  ;;  %v3008_v2 = vor.u32 %v4125_v54, %v3005_v55  ;;  %v3139_v55 = vld [vmem:[%s6021_s0 + $0x138] sm:$0xf] }
  0xc9   :  { %v2104_v5 = vpop.f32.mrf.mxu1 }
  0xca   :  { %v4998_v8 = vadd.f32 %v2104_v5, %v2056_v3  ;;  %v4375_v5 = vld [vmem:[%s6019_s1 + $0x370] sm:$0xff] }
  0xcb   :  { %2672 = vmatpush.bf16.msrb.mxu1 %v4375_v5 }
  0xcc   :  { %v2075_v14 = vpop.f32.mrf.mxu2 }
  0xcd   :  { %v2124_v15 = vpop.f32.mrf.mxu3  ;;  %v2076_v19 = vadd.f32 %v4878_v49, %v2075_v14 }
  0xce   :  { %v2058_v24 = vpop.f32.mrf.mxu0 }
  0xcf   :  { %v5022_v23 = vadd.f32 %v2124_v15, %v2076_v19  ;;  %v2059_v27 = vadd.f32 %v4878_v49, %v2058_v24  ;;  %v3067_v15 = vld [vmem:[%s6021_s0 + $0xa8] sm:$0xf]  ;;  %v3069_v19 = vld [vmem:[%s6021_s0 + $0xf0] sm:$0xf0]  ;;  %2673 = vmatpush.bf16.msrb.mxu1 %v4374_v42 }
  0xd0   :  { %v3068_v31 = vor.u32 %v4151_v17, %v3067_v15  ;;  %v4373_v17 = vld [vmem:[%s6019_s1 + $0x360] sm:$0xff] }
  0xd1   :  { %v2107_v28 = vpop.f32.mrf.mxu1  ;;  %2175 = vmatmul.bf16.gmra.mxu2 %v3484_v20  ;;  %2273 = vmatmul.bf16.gmra.mxu0 %v3492_v22  ;;  %v3075_v20 = vld [vmem:[%s6021_s0 + $0xb0] sm:$0xf] }
  0xd2   :  { %2224 = vmatmul.bf16.gmra.mxu3 %v3488_v21  ;;  %v5031_v32 = vadd.f32 %v2107_v28, %v2059_v27  ;;  %v4152_v21 = vld [vmem:[%s6021_s0 + $0xf4] sm:$0xf0]  ;;  %v4143_v27 = vld [vmem:[%s6021_s0 + $0xb4] sm:$0xf]  ;;  %v3077_v28 = vld [vmem:[%s6021_s0 + $0xf8] sm:$0xf0] }
  0xd3   :  { %2674 = vmatpush.bf16.msrb.mxu1 %v4373_v17 }
  0xd4   :  { %2322 = vmatmul.bf16.gmra.mxu1 %v3496_v26  ;;  %v2078_v34 = vpop.f32.mrf.mxu2 }
  0xd5   :  { %v2127_v35 = vpop.f32.mrf.mxu3  ;;  %v2079_v37 = vadd.f32 %v4878_v49, %v2078_v34  ;;  %v3076_v34 = vor.u32 %v4152_v21, %v3075_v20 }
  0xd6   :  { %v2060_v39 = vpop.f32.mrf.mxu0 }
  0xd7   :  { %v5037_v38 = vadd.f32 %v2127_v35, %v2079_v37  ;;  %v2061_v40 = vadd.f32 %v4878_v49, %v2060_v39  ;;  %v3080_v39 = vor.u32 %v4143_v27, %v3077_v28 }
  0xd9   :  { %v2109_v41 = vpop.f32.mrf.mxu1 }
  0xda   :  { %v5046_v44 = vadd.f32 %v2109_v41, %v2061_v40 }
  0xdc   :  { %v2080_v52 = vpop.f32.mrf.mxu2 }
  0xdd   :  { %v2129_v53 = vpop.f32.mrf.mxu3  ;;  %v2081_v56 = vadd.f32 %v4878_v49, %v2080_v52  ;;  %v4358_v49 = vld [vmem:[%s6019_s1 + $0x2e8] sm:$0xff] }
  0xde   :  { %v2239_v0 = vpop.f32.mrf.mxu0  ;;  %2575 = vmatpush.bf16.msrb.mxu3 %v4358_v49  ;;  %v3149_v49 = vld [vmem:[%s6021_s0 + $0x188] sm:$0xf0] }
  0xdf   :  { %v5070_v63 = vadd.f32 %v2129_v53, %v2081_v56  ;;  %v4365_v56 = vld [vmem:[%s6019_s1 + $0x320] sm:$0xff] }
  0xe0   :  { %2625 = vmatpush.bf16.msrb.mxu0 %v4365_v56 }
  0xe1   :  { %v2288_v3 = vpop.f32.mrf.mxu1  ;;  %2336 = vmatmul.bf16.vlgmr.msra.gmra.mxu2 %v2996_v58  ;;  %2434 = vmatmul.bf16.vlgmr.msra.gmra.mxu0 %v3004_v61  ;;  %v4169_v58 = vld [vmem:[%s6021_s0 + $0x17c] sm:$0xf0] }
  0xe2   :  { %2385 = vmatmul.bf16.vlgmr.msra.gmra.mxu3 %v3000_v60  ;;  %v3141_v60 = vld [vmem:[%s6021_s0 + $0x180] sm:$0xf0]  ;;  %v3147_v61 = vld [vmem:[%s6021_s0 + $0x140] sm:$0xf] }
  0xe4   :  { %2483 = vmatmul.bf16.vlgmr.msra.gmra.mxu1 %v3008_v2  ;;  %v2141_v7 = vpop.f32.mrf.mxu2 }
  0xe5   :  { %v2190_v9 = vpop.f32.mrf.mxu3  ;;  %v2142_v10 = vadd.f32 %v2141_v7, %v4887_v57  ;;  %v4142_v57 = vld [vmem:[%s6021_s0 + $0xac] sm:$0xf] }
  0xe6   :  { %v2241_v12 = vpop.f32.mrf.mxu0  ;;  %v3072_v33 = vor.u32 %v4142_v57, %v3069_v19  ;;  %v4348_v57 = vld [vmem:[%s6019_s1 + $0x298] sm:$0xff] }
  0xe7   :  { %v2191_v11 = vadd.f32 %v2190_v9, %v2142_v10  ;;  %v3140_v9 = vor.u32 %v4169_v58, %v3139_v55  ;;  %2528 = vmatpush.bf16.msrb.mxu2 %v4348_v57  ;;  %v4372_v58 = vld [vmem:[%s6019_s1 + $0x358] sm:$0xff]  ;;  %v4197_v57 = vld [vmem:[%s6021_s0 + $0x264] sm:$0xf] }
  0xe8   :  { %2675 = vmatpush.bf16.msrb.mxu1 %v4372_v58 }
  0xe9   :  { %v2290_v13 = vpop.f32.mrf.mxu1  ;;  %v2240_v14 = vadd.f32 %v2239_v0, %v2191_v11  ;;  %v4170_v0 = vld [vmem:[%s6021_s0 + $0x184] sm:$0xf0] }
  0xea   :  { %v3148_v11 = vor.u32 %v4170_v0, %v3147_v61 }
  0xeb   :  { %v5103_v22 = vadd.f32 %v2288_v3, %v2240_v14  ;;  %v3152_v14 = vor.u32 %v4161_v6, %v3149_v49 }
  0xec   :  { %v2143_v24 = vpop.f32.mrf.mxu2 }
  0xed   :  { %v2192_v26 = vpop.f32.mrf.mxu3  ;;  %v2144_v29 = vadd.f32 %v2143_v24, %v4902_v4  ;;  %v4357_v4 = vld [vmem:[%s6019_s1 + $0x2e0] sm:$0xff] }
  0xee   :  { %v2244_v37 = vpop.f32.mrf.mxu0  ;;  %2576 = vmatpush.bf16.msrb.mxu3 %v4357_v4  ;;  %v3221_v4 = vld [vmem:[%s6021_s0 + $0x218] sm:$0xf0] }
  0xef   :  { %v2193_v35 = vadd.f32 %v2192_v26, %v2144_v29 }
  0xf1   :  { %v2293_v40 = vpop.f32.mrf.mxu1  ;;  %v2242_v41 = vadd.f32 %v2241_v12, %v2193_v35  ;;  %2341 = vmatmul.bf16.gmra.mxu2 %v3068_v31  ;;  %2439 = vmatmul.bf16.gmra.mxu0 %v3076_v34  ;;  %v3211_v31 = vld [vmem:[%s6021_s0 + $0x1c8] sm:$0xf]  ;;  %v4187_v34 = vld [vmem:[%s6021_s0 + $0x20c] sm:$0xf0]  ;;  %v3213_v35 = vld [vmem:[%s6021_s0 + $0x210] sm:$0xf0] }
  0xf2   :  { %2390 = vmatmul.bf16.gmra.mxu3 %v3072_v33  ;;  %v4364_v33 = vld [vmem:[%s6019_s1 + $0x318] sm:$0xff] }
  0xf3   :  { %v5121_v45 = vadd.f32 %v2290_v13, %v2242_v41  ;;  %2626 = vmatpush.bf16.msrb.mxu0 %v4364_v33 }
  0xf4   :  { %2488 = vmatmul.bf16.gmra.mxu1 %v3080_v39  ;;  %v2146_v46 = vpop.f32.mrf.mxu2  ;;  %v4188_v39 = vld [vmem:[%s6021_s0 + $0x214] sm:$0xf0] }
  0xf5   :  { %v2195_v47 = vpop.f32.mrf.mxu3  ;;  %v2147_v48 = vadd.f32 %v2146_v46, %v4935_v25  ;;  %v4160_v25 = vld [vmem:[%s6021_s0 + $0x13c] sm:$0xf] }
  0xf6   :  { %v2246_v52 = vpop.f32.mrf.mxu0  ;;  %v3144_v10 = vor.u32 %v4160_v25, %v3141_v60  ;;  %v4347_v25 = vld [vmem:[%s6019_s1 + $0x290] sm:$0xff] }
  0xf7   :  { %v2196_v50 = vadd.f32 %v2195_v47, %v2147_v48  ;;  %v3212_v47 = vor.u32 %v4187_v34, %v3211_v31  ;;  %2529 = vmatpush.bf16.msrb.mxu2 %v4347_v25  ;;  %v4371_v34 = vld [vmem:[%s6019_s1 + $0x350] sm:$0xff] }
  0xf8   :  { %2676 = vmatpush.bf16.msrb.mxu1 %v4371_v34  ;;  %v4215_v25 = vld [vmem:[%s6021_s0 + $0x2f4] sm:$0xf] }
  0xf9   :  { %v2295_v53 = vpop.f32.mrf.mxu1  ;;  %v2245_v54 = vadd.f32 %v2244_v37, %v2196_v50  ;;  %v3219_v37 = vld [vmem:[%s6021_s0 + $0x1d0] sm:$0xf] }
  0xfa   :  { %v3220_v50 = vor.u32 %v4188_v39, %v3219_v37 }
  0xfb   :  { %v5145_v2 = vadd.f32 %v2293_v40, %v2245_v54  ;;  %v3224_v54 = vor.u32 %v4179_v43, %v3221_v4 }
  0xfc   :  { %v2148_v3 = vpop.f32.mrf.mxu2 }
  0xfd   :  { %v2197_v5 = vpop.f32.mrf.mxu3  ;;  %v2149_v7 = vadd.f32 %v2148_v3, %v4950_v36  ;;  %v4356_v36 = vld [vmem:[%s6019_s1 + $0x2d8] sm:$0xff] }
  0xfe   :  { %v2249_v13 = vpop.f32.mrf.mxu0  ;;  %2577 = vmatpush.bf16.msrb.mxu3 %v4356_v36  ;;  %v3293_v36 = vld [vmem:[%s6021_s0 + $0x2a8] sm:$0xf0] }
  0xff   :  { %v2198_v12 = vadd.f32 %v2197_v5, %v2149_v7 }
 0x101   :  { %v2298_v15 = vpop.f32.mrf.mxu1  ;;  %v2247_v16 = vadd.f32 %v2246_v52, %v2198_v12  ;;  %2346 = vmatmul.bf16.gmra.mxu2 %v3140_v9  ;;  %2444 = vmatmul.bf16.gmra.mxu0 %v3148_v11  ;;  %v3283_v9 = vld [vmem:[%s6021_s0 + $0x258] sm:$0xf]  ;;  %v4205_v11 = vld [vmem:[%s6021_s0 + $0x29c] sm:$0xf0]  ;;  %v3285_v12 = vld [vmem:[%s6021_s0 + $0x2a0] sm:$0xf0] }
 0x102   :  { %2395 = vmatmul.bf16.gmra.mxu3 %v3144_v10  ;;  %v4363_v10 = vld [vmem:[%s6019_s1 + $0x310] sm:$0xff] }
 0x103   :  { %v5163_v19 = vadd.f32 %v2295_v53, %v2247_v16  ;;  %2627 = vmatpush.bf16.msrb.mxu0 %v4363_v10 }
 0x104   :  { %2493 = vmatmul.bf16.gmra.mxu1 %v3152_v14  ;;  %v2151_v20 = vpop.f32.mrf.mxu2  ;;  %v4206_v14 = vld [vmem:[%s6021_s0 + $0x2a4] sm:$0xf0] }
 0x105   :  { %v2200_v21 = vpop.f32.mrf.mxu3  ;;  %v2152_v24 = vadd.f32 %v2151_v20, %v4983_v59  ;;  %v4178_v59 = vld [vmem:[%s6021_s0 + $0x1cc] sm:$0xf] }
 0x106   :  { %v2251_v27 = vpop.f32.mrf.mxu0  ;;  %v3216_v48 = vor.u32 %v4178_v59, %v3213_v35  ;;  %v4346_v59 = vld [vmem:[%s6019_s1 + $0x288] sm:$0xff] }
 0x107   :  { %v2201_v26 = vadd.f32 %v2200_v21, %v2152_v24  ;;  %v3284_v21 = vor.u32 %v4205_v11, %v3283_v9  ;;  %2530 = vmatpush.bf16.msrb.mxu2 %v4346_v59  ;;  %v4370_v11 = vld [vmem:[%s6019_s1 + $0x348] sm:$0xff]  ;;  %v4233_v59 = vld [vmem:[%s6021_s0 + $0x384] sm:$0xf] }
 0x108   :  { %2677 = vmatpush.bf16.msrb.mxu1 %v4370_v11 }
 0x109   :  { %v2300_v28 = vpop.f32.mrf.mxu1  ;;  %v2250_v29 = vadd.f32 %v2249_v13, %v2201_v26  ;;  %v3291_v13 = vld [vmem:[%s6021_s0 + $0x260] sm:$0xf] }
 0x10a   :  { %v3292_v26 = vor.u32 %v4206_v14, %v3291_v13 }
 0x10b   :  { %v5187_v40 = vadd.f32 %v2298_v15, %v2250_v29  ;;  %v3296_v29 = vor.u32 %v4197_v57, %v3293_v36 }
 0x10c   :  { %v2153_v41 = vpop.f32.mrf.mxu2 }
 0x10d   :  { %v2202_v42 = vpop.f32.mrf.mxu3  ;;  %v2154_v46 = vadd.f32 %v2153_v41, %v4998_v8  ;;  %v4355_v8 = vld [vmem:[%s6019_s1 + $0x2d0] sm:$0xff] }
 0x10e   :  { %v2254_v53 = vpop.f32.mrf.mxu0  ;;  %2578 = vmatpush.bf16.msrb.mxu3 %v4355_v8  ;;  %v3365_v8 = vld [vmem:[%s6021_s0 + $0x338] sm:$0xf0] }
 0x10f   :  { %v2203_v52 = vadd.f32 %v2202_v42, %v2154_v46 }
 0x111   :  { %v2303_v55 = vpop.f32.mrf.mxu1  ;;  %v2252_v56 = vadd.f32 %v2251_v27, %v2203_v52  ;;  %2351 = vmatmul.bf16.gmra.mxu2 %v3212_v47  ;;  %2449 = vmatmul.bf16.gmra.mxu0 %v3220_v50  ;;  %v3355_v47 = vld [vmem:[%s6021_s0 + $0x2e8] sm:$0xf]  ;;  %v4223_v50 = vld [vmem:[%s6021_s0 + $0x32c] sm:$0xf0]  ;;  %v3357_v52 = vld [vmem:[%s6021_s0 + $0x330] sm:$0xf0] }
 0x112   :  { %2400 = vmatmul.bf16.gmra.mxu3 %v3216_v48  ;;  %v4362_v48 = vld [vmem:[%s6019_s1 + $0x308] sm:$0xff] }
 0x113   :  { %v5205_v60 = vadd.f32 %v2300_v28, %v2252_v56  ;;  %2628 = vmatpush.bf16.msrb.mxu0 %v4362_v48  ;;  %v4369_v48 = vld [vmem:[%s6019_s1 + $0x340] sm:$0xff] }
 0x114   :  { %2498 = vmatmul.bf16.gmra.mxu1 %v3224_v54  ;;  %v2156_v61 = vpop.f32.mrf.mxu2  ;;  %v4224_v54 = vld [vmem:[%s6021_s0 + $0x334] sm:$0xf0] }
 0x115   :  { %v2205_v0 = vpop.f32.mrf.mxu3  ;;  %v2157_v3 = vadd.f32 %v2156_v61, %v5031_v32  ;;  %v4196_v32 = vld [vmem:[%s6021_s0 + $0x25c] sm:$0xf]  ;;  %2678 = vmatpush.bf16.msrb.mxu1 %v4369_v48 }
 0x116   :  { %v2256_v6 = vpop.f32.mrf.mxu0  ;;  %v3288_v24 = vor.u32 %v4196_v32, %v3285_v12  ;;  %v4345_v32 = vld [vmem:[%s6019_s1 + $0x280] sm:$0xff] }
 0x117   :  { %v2206_v5 = vadd.f32 %v2205_v0, %v2157_v3  ;;  %v3356_v0 = vor.u32 %v4223_v50, %v3355_v47  ;;  %2531 = vmatpush.bf16.msrb.mxu2 %v4345_v32  ;;  %v4251_v32 = vld [vmem:[%s6021_s0 + $0x414] sm:$0xf] }
 0x119   :  { %v2305_v49 = vpop.f32.mrf.mxu1  ;;  %v2255_v7 = vadd.f32 %v2254_v53, %v2206_v5  ;;  %v3363_v53 = vld [vmem:[%s6021_s0 + $0x2f0] sm:$0xf] }
 0x11a   :  { %v3364_v5 = vor.u32 %v4224_v54, %v3363_v53 }
 0x11b   :  { %v5229_v15 = vadd.f32 %v2303_v55, %v2255_v7  ;;  %v3368_v7 = vor.u32 %v4215_v25, %v3365_v8 }
 0x11c   :  { %v2158_v16 = vpop.f32.mrf.mxu2 }
 0x11d   :  { %v2207_v17 = vpop.f32.mrf.mxu3  ;;  %v2159_v20 = vadd.f32 %v2158_v16, %v5046_v44  ;;  %v4354_v44 = vld [vmem:[%s6019_s1 + $0x2c8] sm:$0xff] }
 0x11e   :  { %v2259_v28 = vpop.f32.mrf.mxu0  ;;  %2579 = vmatpush.bf16.msrb.mxu3 %v4354_v44  ;;  %v3437_v44 = vld [vmem:[%s6021_s0 + $0x3c8] sm:$0xf0] }
 0x11f   :  { %v2208_v27 = vadd.f32 %v2207_v17, %v2159_v20 }
 0x121   :  { %v2308_v31 = vpop.f32.mrf.mxu1  ;;  %v2257_v33 = vadd.f32 %v2256_v6, %v2208_v27  ;;  %2356 = vmatmul.bf16.gmra.mxu2 %v3284_v21  ;;  %2454 = vmatmul.bf16.gmra.mxu0 %v3292_v26  ;;  %v3427_v21 = vld [vmem:[%s6021_s0 + $0x378] sm:$0xf]  ;;  %v4241_v26 = vld [vmem:[%s6021_s0 + $0x3bc] sm:$0xf0]  ;;  %v3429_v27 = vld [vmem:[%s6021_s0 + $0x3c0] sm:$0xf0] }
 0x122   :  { %2405 = vmatmul.bf16.gmra.mxu3 %v3288_v24  ;;  %v4361_v24 = vld [vmem:[%s6019_s1 + $0x300] sm:$0xff] }
 0x123   :  { %v5247_v35 = vadd.f32 %v2305_v49, %v2257_v33  ;;  %2629 = vmatpush.bf16.msrb.mxu0 %v4361_v24 }
 0x124   :  { %2503 = vmatmul.bf16.gmra.mxu1 %v3296_v29  ;;  %v2161_v37 = vpop.f32.mrf.mxu2  ;;  %v4242_v29 = vld [vmem:[%s6021_s0 + $0x3c4] sm:$0xf0] }
 0x125   :  { %v2210_v39 = vpop.f32.mrf.mxu3  ;;  %v2162_v41 = vadd.f32 %v2161_v37, %v4893_v62  ;;  %v4214_v62 = vld [vmem:[%s6021_s0 + $0x2ec] sm:$0xf] }
 0x126   :  { %v2261_v43 = vpop.f32.mrf.mxu0  ;;  %v3360_v3 = vor.u32 %v4214_v62, %v3357_v52  ;;  %v4384_v62 = vld [vmem:[%s6019_s1 + $0x3b8] sm:$0xff] }
 0x127   :  { %v2211_v42 = vadd.f32 %v2210_v39, %v2162_v41  ;;  %v3428_v39 = vor.u32 %v4241_v26, %v3427_v21  ;;  %2720 = vmatpush.bf16.msra.mxu2 %v4384_v62  ;;  %v4408_v26 = vld [vmem:[%s6019_s1 + $0x478] sm:$0xff]  ;;  %v4127_v62 = vld [vmem:[%s6021_s0 + $0x34] sm:$0xf] }
 0x128   :  { %2867 = vmatpush.bf16.msra.mxu1 %v4408_v26 }
 0x129   :  { %v2310_v4 = vpop.f32.mrf.mxu1  ;;  %v2260_v46 = vadd.f32 %v2259_v28, %v2211_v42  ;;  %v3435_v28 = vld [vmem:[%s6021_s0 + $0x380] sm:$0xf] }
 0x12a   :  { %v3436_v42 = vor.u32 %v4242_v29, %v3435_v28 }
 0x12b   :  { %v5271_v55 = vadd.f32 %v2308_v31, %v2260_v46  ;;  %v3440_v46 = vor.u32 %v4233_v59, %v3437_v44 }
 0x12c   :  { %v2163_v56 = vpop.f32.mrf.mxu2 }
 0x12d   :  { %v2212_v58 = vpop.f32.mrf.mxu3  ;;  %v2164_v61 = vadd.f32 %v2163_v56, %v4926_v18  ;;  %v4353_v18 = vld [vmem:[%s6019_s1 + $0x2c0] sm:$0xff] }
 0x12e   :  { %v2264_v49 = vpop.f32.mrf.mxu0  ;;  %2580 = vmatpush.bf16.msrb.mxu3 %v4353_v18  ;;  %v3509_v18 = vld [vmem:[%s6021_s0 + $0x458] sm:$0xf0] }
 0x12f   :  { %v2213_v6 = vadd.f32 %v2212_v58, %v2164_v61 }
 0x131   :  { %v2313_v9 = vpop.f32.mrf.mxu1  ;;  %v2262_v10 = vadd.f32 %v2261_v43, %v2213_v6  ;;  %2361 = vmatmul.bf16.gmra.mxu2 %v3356_v0  ;;  %2459 = vmatmul.bf16.gmra.mxu0 %v3364_v5  ;;  %v3499_v0 = vld [vmem:[%s6021_s0 + $0x408] sm:$0xf]  ;;  %v4259_v5 = vld [vmem:[%s6021_s0 + $0x44c] sm:$0xf0]  ;;  %v3501_v6 = vld [vmem:[%s6021_s0 + $0x450] sm:$0xf0] }
 0x132   :  { %2410 = vmatmul.bf16.gmra.mxu3 %v3360_v3  ;;  %v4400_v3 = vld [vmem:[%s6019_s1 + $0x438] sm:$0xff] }
 0x133   :  { %v5289_v12 = vadd.f32 %v2310_v4, %v2262_v10  ;;  %2818 = vmatpush.bf16.msra.mxu0 %v4400_v3 }
 0x134   :  { %2508 = vmatmul.bf16.gmra.mxu1 %v3368_v7  ;;  %v2166_v13 = vpop.f32.mrf.mxu2  ;;  %v4260_v7 = vld [vmem:[%s6021_s0 + $0x454] sm:$0xf0] }
 0x135   :  { %v2215_v14 = vpop.f32.mrf.mxu3  ;;  %v2167_v16 = vadd.f32 %v2166_v13, %v4941_v30  ;;  %v4232_v30 = vld [vmem:[%s6021_s0 + $0x37c] sm:$0xf] }
 0x136   :  { %v2266_v57 = vpop.f32.mrf.mxu0  ;;  %v3432_v41 = vor.u32 %v4232_v30, %v3429_v27  ;;  %v4383_v30 = vld [vmem:[%s6019_s1 + $0x3b0] sm:$0xff] }
 0x137   :  { %v2216_v17 = vadd.f32 %v2215_v14, %v2167_v16  ;;  %v3500_v14 = vor.u32 %v4259_v5, %v3499_v0  ;;  %2721 = vmatpush.bf16.msra.mxu2 %v4383_v30  ;;  %v4407_v5 = vld [vmem:[%s6019_s1 + $0x470] sm:$0xff]  ;;  %v4145_v30 = vld [vmem:[%s6021_s0 + $0xc4] sm:$0xf] }
 0x138   :  { %2868 = vmatpush.bf16.msra.mxu1 %v4407_v5 }
 0x139   :  { %v2315_v36 = vpop.f32.mrf.mxu1  ;;  %v2265_v20 = vadd.f32 %v2264_v49, %v2216_v17  ;;  %v3507_v49 = vld [vmem:[%s6021_s0 + $0x410] sm:$0xf] }
 0x13a   :  { %v3508_v17 = vor.u32 %v4260_v7, %v3507_v49 }
 0x13b   :  { %v5313_v31 = vadd.f32 %v2313_v9, %v2265_v20  ;;  %v3512_v20 = vor.u32 %v4251_v32, %v3509_v18 }
 0x13c   :  { %v2168_v33 = vpop.f32.mrf.mxu2 }
 0x13d   :  { %v2217_v34 = vpop.f32.mrf.mxu3  ;;  %v2169_v37 = vadd.f32 %v2168_v33, %v4974_v51  ;;  %v4392_v51 = vld [vmem:[%s6019_s1 + $0x3f8] sm:$0xff] }
 0x13e   :  { %v2269_v4 = vpop.f32.mrf.mxu0  ;;  %2769 = vmatpush.bf16.msra.mxu3 %v4392_v51  ;;  %v3021_v51 = vld [vmem:[%s6021_s0 + $0x78] sm:$0xf0] }
 0x13f   :  { %v2218_v43 = vadd.f32 %v2217_v34, %v2169_v37 }
 0x141   :  { %v2318_v47 = vpop.f32.mrf.mxu1  ;;  %v2267_v50 = vadd.f32 %v2266_v57, %v2218_v43  ;;  %2366 = vmatmul.bf16.gmra.mxu2 %v3428_v39  ;;  %2464 = vmatmul.bf16.gmra.mxu0 %v3436_v42  ;;  %v3011_v39 = vld [vmem:[%s6021_s0 + $0x28] sm:$0xf]  ;;  %v4135_v42 = vld [vmem:[%s6021_s0 + $0x6c] sm:$0xf0]  ;;  %v3013_v43 = vld [vmem:[%s6021_s0 + $0x70] sm:$0xf0] }
 0x142   :  { %2415 = vmatmul.bf16.gmra.mxu3 %v3432_v41  ;;  %v4399_v41 = vld [vmem:[%s6019_s1 + $0x430] sm:$0xff] }
 0x143   :  { %v5331_v52 = vadd.f32 %v2315_v36, %v2267_v50  ;;  %2819 = vmatpush.bf16.msra.mxu0 %v4399_v41 }
 0x144   :  { %2513 = vmatmul.bf16.gmra.mxu1 %v3440_v46  ;;  %v2171_v53 = vpop.f32.mrf.mxu2  ;;  %v4136_v46 = vld [vmem:[%s6021_s0 + $0x74] sm:$0xf0] }
 0x145   :  { %v2220_v54 = vpop.f32.mrf.mxu3  ;;  %v2172_v56 = vadd.f32 %v2171_v53, %v4989_v1  ;;  %v4250_v1 = vld [vmem:[%s6021_s0 + $0x40c] sm:$0xf] }
 0x146   :  { %v2271_v25 = vpop.f32.mrf.mxu0  ;;  %v3504_v16 = vor.u32 %v4250_v1, %v3501_v6  ;;  %v4382_v1 = vld [vmem:[%s6019_s1 + $0x3a8] sm:$0xff] }
 0x147   :  { %v2221_v58 = vadd.f32 %v2220_v54, %v2172_v56  ;;  %v3012_v54 = vor.u32 %v4135_v42, %v3011_v39  ;;  %2722 = vmatpush.bf16.msra.mxu2 %v4382_v1  ;;  %v4406_v42 = vld [vmem:[%s6019_s1 + $0x468] sm:$0xff]  ;;  %v4163_v1 = vld [vmem:[%s6021_s0 + $0x154] sm:$0xf] }
 0x148   :  { %2869 = vmatpush.bf16.msra.mxu1 %v4406_v42 }
 0x149   :  { %v2320_v8 = vpop.f32.mrf.mxu1  ;;  %v2270_v61 = vadd.f32 %v2269_v4, %v2221_v58  ;;  %v3019_v4 = vld [vmem:[%s6021_s0 + $0x30] sm:$0xf] }
 0x14a   :  { %v3020_v58 = vor.u32 %v4136_v46, %v3019_v4 }
 0x14b   :  { %v5355_v9 = vadd.f32 %v2318_v47, %v2270_v61  ;;  %v3024_v61 = vor.u32 %v4127_v62, %v3021_v51 }
 0x14c   :  { %v2173_v10 = vpop.f32.mrf.mxu2 }
 0x14d   :  { %v2222_v11 = vpop.f32.mrf.mxu3  ;;  %v2174_v13 = vadd.f32 %v2173_v10, %v5022_v23  ;;  %v4391_v23 = vld [vmem:[%s6019_s1 + $0x3f0] sm:$0xff] }
 0x14e   :  { %v2274_v36 = vpop.f32.mrf.mxu0  ;;  %2770 = vmatpush.bf16.msra.mxu3 %v4391_v23  ;;  %v3093_v23 = vld [vmem:[%s6021_s0 + $0x108] sm:$0xf0] }
 0x14f   :  { %v2223_v57 = vadd.f32 %v2222_v11, %v2174_v13 }
 0x151   :  { %v2323_v21 = vpop.f32.mrf.mxu1  ;;  %v2272_v24 = vadd.f32 %v2271_v25, %v2223_v57  ;;  %2371 = vmatmul.bf16.gmra.mxu2 %v3500_v14  ;;  %2469 = vmatmul.bf16.gmra.mxu0 %v3508_v17  ;;  %v3083_v14 = vld [vmem:[%s6021_s0 + $0xb8] sm:$0xf]  ;;  %v4153_v17 = vld [vmem:[%s6021_s0 + $0xfc] sm:$0xf0]  ;;  %v3085_v57 = vld [vmem:[%s6021_s0 + $0x100] sm:$0xf0] }
 0x152   :  { %2420 = vmatmul.bf16.gmra.mxu3 %v3504_v16  ;;  %v4398_v16 = vld [vmem:[%s6019_s1 + $0x428] sm:$0xff] }
 0x153   :  { %v5373_v27 = vadd.f32 %v2320_v8, %v2272_v24  ;;  %2820 = vmatpush.bf16.msra.mxu0 %v4398_v16 }
 0x154   :  { %2518 = vmatmul.bf16.gmra.mxu1 %v3512_v20  ;;  %v2176_v28 = vpop.f32.mrf.mxu2  ;;  %v4154_v20 = vld [vmem:[%s6021_s0 + $0x104] sm:$0xf0] }
 0x155   :  { %v2225_v29 = vpop.f32.mrf.mxu3  ;;  %v2177_v33 = vadd.f32 %v2176_v28, %v5037_v38  ;;  %v4126_v38 = vld [vmem:[%s6021_s0 + $0x2c] sm:$0xf] }
 0x156   :  { %v2276_v59 = vpop.f32.mrf.mxu0  ;;  %v3016_v56 = vor.u32 %v4126_v38, %v3013_v43  ;;  %v4381_v38 = vld [vmem:[%s6019_s1 + $0x3a0] sm:$0xff] }
 0x157   :  { %v2226_v34 = vadd.f32 %v2225_v29, %v2177_v33  ;;  %v3084_v29 = vor.u32 %v4153_v17, %v3083_v14  ;;  %2723 = vmatpush.bf16.msra.mxu2 %v4381_v38  ;;  %v4405_v17 = vld [vmem:[%s6019_s1 + $0x460] sm:$0xff] }
 0x158   :  { %2870 = vmatpush.bf16.msra.mxu1 %v4405_v17  ;;  %v4181_v38 = vld [vmem:[%s6021_s0 + $0x1e4] sm:$0xf] }
 0x159   :  { %v2325_v44 = vpop.f32.mrf.mxu1  ;;  %v2275_v37 = vadd.f32 %v2274_v36, %v2226_v34  ;;  %v3091_v36 = vld [vmem:[%s6021_s0 + $0xc0] sm:$0xf] }
 0x15a   :  { %v3092_v34 = vor.u32 %v4154_v20, %v3091_v36 }
 0x15b   :  { %v5397_v47 = vadd.f32 %v2323_v21, %v2275_v37  ;;  %v3096_v37 = vor.u32 %v4145_v30, %v3093_v23 }
 0x15c   :  { %v2178_v48 = vpop.f32.mrf.mxu2 }
 0x15d   :  { %v2227_v50 = vpop.f32.mrf.mxu3  ;;  %v2179_v53 = vadd.f32 %v2178_v48, %v5070_v63  ;;  %v4390_v63 = vld [vmem:[%s6019_s1 + $0x3e8] sm:$0xff] }
 0x15e   :  { %v2435_v8 = vpop.f32.mrf.mxu0  ;;  %2771 = vmatpush.bf16.msra.mxu3 %v4390_v63  ;;  %v3165_v63 = vld [vmem:[%s6021_s0 + $0x198] sm:$0xf0] }
 0x15f   :  { %v2228_v25 = vadd.f32 %v2227_v50, %v2179_v53 }
 0x161   :  { %v2484_v0 = vpop.f32.mrf.mxu1  ;;  %v2277_v3 = vadd.f32 %v2276_v59, %v2228_v25  ;;  %2532 = vmatmul.bf16.vlgmr.msrb.gmra.mxu2 %v3012_v54  ;;  %2630 = vmatmul.bf16.vlgmr.msrb.gmra.mxu0 %v3020_v58  ;;  %v3155_v54 = vld [vmem:[%s6021_s0 + $0x148] sm:$0xf]  ;;  %v4171_v58 = vld [vmem:[%s6021_s0 + $0x18c] sm:$0xf0]  ;;  %v3157_v25 = vld [vmem:[%s6021_s0 + $0x190] sm:$0xf0] }
 0x162   :  { %2581 = vmatmul.bf16.vlgmr.msrb.gmra.mxu3 %v3016_v56  ;;  %v4397_v56 = vld [vmem:[%s6019_s1 + $0x420] sm:$0xff] }
 0x163   :  { %v5415_v6 = vadd.f32 %v2325_v44, %v2277_v3  ;;  %2821 = vmatpush.bf16.msra.mxu0 %v4397_v56 }
 0x164   :  { %2679 = vmatmul.bf16.vlgmr.msrb.gmra.mxu1 %v3024_v61  ;;  %v2337_v49 = vpop.f32.mrf.mxu2  ;;  %v4172_v61 = vld [vmem:[%s6021_s0 + $0x194] sm:$0xf0] }
 0x165   :  { %v2386_v7 = vpop.f32.mrf.mxu3  ;;  %v2338_v10 = vadd.f32 %v2337_v49, %v5103_v22  ;;  %v4144_v22 = vld [vmem:[%s6021_s0 + $0xbc] sm:$0xf] }
 0x166   :  { %v2437_v32 = vpop.f32.mrf.mxu0  ;;  %v3088_v33 = vor.u32 %v4144_v22, %v3085_v57  ;;  %v4380_v22 = vld [vmem:[%s6019_s1 + $0x398] sm:$0xff] }
 0x167   :  { %v2387_v11 = vadd.f32 %v2386_v7, %v2338_v10  ;;  %v3156_v7 = vor.u32 %v4171_v58, %v3155_v54  ;;  %2724 = vmatpush.bf16.msra.mxu2 %v4380_v22  ;;  %v4404_v58 = vld [vmem:[%s6019_s1 + $0x458] sm:$0xff]  ;;  %v4199_v22 = vld [vmem:[%s6021_s0 + $0x274] sm:$0xf] }
 0x168   :  { %2871 = vmatpush.bf16.msra.mxu1 %v4404_v58 }
 0x169   :  { %v2486_v18 = vpop.f32.mrf.mxu1  ;;  %v2436_v13 = vadd.f32 %v2435_v8, %v2387_v11  ;;  %v3163_v8 = vld [vmem:[%s6021_s0 + $0x150] sm:$0xf] }
 0x16a   :  { %v3164_v11 = vor.u32 %v4172_v61, %v3163_v8 }
 0x16b   :  { %v5439_v21 = vadd.f32 %v2484_v0, %v2436_v13  ;;  %v3168_v13 = vor.u32 %v4163_v1, %v3165_v63 }
 0x16c   :  { %v2339_v24 = vpop.f32.mrf.mxu2 }
 0x16d   :  { %v2388_v26 = vpop.f32.mrf.mxu3  ;;  %v2340_v28 = vadd.f32 %v2339_v24, %v5121_v45  ;;  %v4389_v45 = vld [vmem:[%s6019_s1 + $0x3e0] sm:$0xff] }
 0x16e   :  { %v2440_v44 = vpop.f32.mrf.mxu0  ;;  %2772 = vmatpush.bf16.msra.mxu3 %v4389_v45  ;;  %v3237_v45 = vld [vmem:[%s6021_s0 + $0x228] sm:$0xf0] }
 0x16f   :  { %v2389_v59 = vadd.f32 %v2388_v26, %v2340_v28 }
 0x171   :  { %v2489_v39 = vpop.f32.mrf.mxu1  ;;  %v2438_v41 = vadd.f32 %v2437_v32, %v2389_v59  ;;  %2537 = vmatmul.bf16.gmra.mxu2 %v3084_v29  ;;  %2635 = vmatmul.bf16.gmra.mxu0 %v3092_v34  ;;  %v3227_v29 = vld [vmem:[%s6021_s0 + $0x1d8] sm:$0xf]  ;;  %v4189_v34 = vld [vmem:[%s6021_s0 + $0x21c] sm:$0xf0]  ;;  %v3229_v59 = vld [vmem:[%s6021_s0 + $0x220] sm:$0xf0] }
 0x172   :  { %2586 = vmatmul.bf16.gmra.mxu3 %v3088_v33  ;;  %v4396_v33 = vld [vmem:[%s6019_s1 + $0x418] sm:$0xff] }
 0x173   :  { %v5457_v43 = vadd.f32 %v2486_v18, %v2438_v41  ;;  %2822 = vmatpush.bf16.msra.mxu0 %v4396_v33 }
 0x174   :  { %2684 = vmatmul.bf16.gmra.mxu1 %v3096_v37  ;;  %v2342_v4 = vpop.f32.mrf.mxu2  ;;  %v4190_v37 = vld [vmem:[%s6021_s0 + $0x224] sm:$0xf0] }
 0x175   :  { %v2391_v46 = vpop.f32.mrf.mxu3  ;;  %v2343_v48 = vadd.f32 %v2342_v4, %v5145_v2  ;;  %v4162_v2 = vld [vmem:[%s6021_s0 + $0x14c] sm:$0xf] }
 0x176   :  { %v2442_v62 = vpop.f32.mrf.mxu0  ;;  %v3160_v10 = vor.u32 %v4162_v2, %v3157_v25  ;;  %v4379_v2 = vld [vmem:[%s6019_s1 + $0x390] sm:$0xff] }
 0x177   :  { %v2392_v50 = vadd.f32 %v2391_v46, %v2343_v48  ;;  %v3228_v46 = vor.u32 %v4189_v34, %v3227_v29  ;;  %2725 = vmatpush.bf16.msra.mxu2 %v4379_v2  ;;  %v4403_v34 = vld [vmem:[%s6019_s1 + $0x450] sm:$0xff]  ;;  %v4217_v2 = vld [vmem:[%s6021_s0 + $0x304] sm:$0xf] }
 0x178   :  { %2872 = vmatpush.bf16.msra.mxu1 %v4403_v34 }
 0x179   :  { %v2491_v51 = vpop.f32.mrf.mxu1  ;;  %v2441_v53 = vadd.f32 %v2440_v44, %v2392_v50  ;;  %v3235_v44 = vld [vmem:[%s6021_s0 + $0x1e0] sm:$0xf] }
 0x17a   :  { %v3236_v50 = vor.u32 %v4190_v37, %v3235_v44 }
 0x17b   :  { %v5481_v0 = vadd.f32 %v2489_v39, %v2441_v53  ;;  %v3240_v53 = vor.u32 %v4181_v38, %v3237_v45 }
 0x17c   :  { %v2344_v3 = vpop.f32.mrf.mxu2 }
 0x17d   :  { %v2393_v5 = vpop.f32.mrf.mxu3  ;;  %v2345_v49 = vadd.f32 %v2344_v3, %v5163_v19  ;;  %v4388_v19 = vld [vmem:[%s6019_s1 + $0x3d8] sm:$0xff] }
 0x17e   :  { %v2445_v18 = vpop.f32.mrf.mxu0  ;;  %2773 = vmatpush.bf16.msra.mxu3 %v4388_v19  ;;  %v3309_v19 = vld [vmem:[%s6021_s0 + $0x2b8] sm:$0xf0] }
 0x17f   :  { %v2394_v32 = vadd.f32 %v2393_v5, %v2345_v49 }
 0x181   :  { %v2494_v14 = vpop.f32.mrf.mxu1  ;;  %v2443_v16 = vadd.f32 %v2442_v62, %v2394_v32  ;;  %2542 = vmatmul.bf16.gmra.mxu2 %v3156_v7  ;;  %2640 = vmatmul.bf16.gmra.mxu0 %v3164_v11  ;;  %v3299_v7 = vld [vmem:[%s6021_s0 + $0x268] sm:$0xf]  ;;  %v4207_v11 = vld [vmem:[%s6021_s0 + $0x2ac] sm:$0xf0]  ;;  %v3301_v32 = vld [vmem:[%s6021_s0 + $0x2b0] sm:$0xf0] }
 0x182   :  { %2591 = vmatmul.bf16.gmra.mxu3 %v3160_v10  ;;  %v4395_v10 = vld [vmem:[%s6019_s1 + $0x410] sm:$0xff] }
 0x183   :  { %v5499_v57 = vadd.f32 %v2491_v51, %v2443_v16  ;;  %2823 = vmatpush.bf16.msra.mxu0 %v4395_v10 }
 0x184   :  { %2689 = vmatmul.bf16.gmra.mxu1 %v3168_v13  ;;  %v2347_v36 = vpop.f32.mrf.mxu2  ;;  %v4208_v13 = vld [vmem:[%s6021_s0 + $0x2b4] sm:$0xf0] }
 0x185   :  { %v2396_v20 = vpop.f32.mrf.mxu3  ;;  %v2348_v24 = vadd.f32 %v2347_v36, %v5187_v40  ;;  %v4180_v40 = vld [vmem:[%s6021_s0 + $0x1dc] sm:$0xf] }
 0x186   :  { %v2447_v30 = vpop.f32.mrf.mxu0  ;;  %v3232_v48 = vor.u32 %v4180_v40, %v3229_v59  ;;  %v4378_v40 = vld [vmem:[%s6019_s1 + $0x388] sm:$0xff] }
 0x187   :  { %v2397_v26 = vadd.f32 %v2396_v20, %v2348_v24  ;;  %v3300_v20 = vor.u32 %v4207_v11, %v3299_v7  ;;  %2726 = vmatpush.bf16.msra.mxu2 %v4378_v40  ;;  %v4402_v11 = vld [vmem:[%s6019_s1 + $0x448] sm:$0xff]  ;;  %v4235_v40 = vld [vmem:[%s6021_s0 + $0x394] sm:$0xf] }
 0x188   :  { %2873 = vmatpush.bf16.msra.mxu1 %v4402_v11 }
 0x189   :  { %v2496_v23 = vpop.f32.mrf.mxu1  ;;  %v2446_v28 = vadd.f32 %v2445_v18, %v2397_v26  ;;  %v3307_v18 = vld [vmem:[%s6021_s0 + $0x270] sm:$0xf] }
 0x18a   :  { %v3308_v26 = vor.u32 %v4208_v13, %v3307_v18 }
 0x18b   :  { %v5523_v39 = vadd.f32 %v2494_v14, %v2446_v28  ;;  %v3312_v28 = vor.u32 %v4199_v22, %v3309_v19 }
 0x18c   :  { %v2349_v41 = vpop.f32.mrf.mxu2 }
 0x18d   :  { %v2398_v42 = vpop.f32.mrf.mxu3  ;;  %v2350_v4 = vadd.f32 %v2349_v41, %v5205_v60  ;;  %v4387_v60 = vld [vmem:[%s6019_s1 + $0x3d0] sm:$0xff] }
 0x18e   :  { %v2450_v51 = vpop.f32.mrf.mxu0  ;;  %2774 = vmatpush.bf16.msra.mxu3 %v4387_v60  ;;  %v3381_v60 = vld [vmem:[%s6021_s0 + $0x348] sm:$0xf0] }
 0x18f   :  { %v2399_v62 = vadd.f32 %v2398_v42, %v2350_v4 }
 0x191   :  { %v2499_v54 = vpop.f32.mrf.mxu1  ;;  %v2448_v56 = vadd.f32 %v2447_v30, %v2399_v62  ;;  %2547 = vmatmul.bf16.gmra.mxu2 %v3228_v46  ;;  %2645 = vmatmul.bf16.gmra.mxu0 %v3236_v50  ;;  %v3371_v46 = vld [vmem:[%s6021_s0 + $0x2f8] sm:$0xf]  ;;  %v4225_v50 = vld [vmem:[%s6021_s0 + $0x33c] sm:$0xf0]  ;;  %v3373_v62 = vld [vmem:[%s6021_s0 + $0x340] sm:$0xf0] }
 0x192   :  { %2596 = vmatmul.bf16.gmra.mxu3 %v3232_v48  ;;  %v4394_v48 = vld [vmem:[%s6019_s1 + $0x408] sm:$0xff] }
 0x193   :  { %v5541_v25 = vadd.f32 %v2496_v23, %v2448_v56  ;;  %2824 = vmatpush.bf16.msra.mxu0 %v4394_v48  ;;  %v4401_v48 = vld [vmem:[%s6019_s1 + $0x440] sm:$0xff] }
 0x194   :  { %2694 = vmatmul.bf16.gmra.mxu1 %v3240_v53  ;;  %v2352_v8 = vpop.f32.mrf.mxu2  ;;  %v4226_v53 = vld [vmem:[%s6021_s0 + $0x344] sm:$0xf0] }
 0x195   :  { %v2401_v61 = vpop.f32.mrf.mxu3  ;;  %v2353_v3 = vadd.f32 %v2352_v8, %v5229_v15  ;;  %v4198_v15 = vld [vmem:[%s6021_s0 + $0x26c] sm:$0xf]  ;;  %2874 = vmatpush.bf16.msra.mxu1 %v4401_v48 }
 0x196   :  { %v2452_v1 = vpop.f32.mrf.mxu0  ;;  %v3304_v24 = vor.u32 %v4198_v15, %v3301_v32  ;;  %v4377_v15 = vld [vmem:[%s6019_s1 + $0x380] sm:$0xff] }
 0x197   :  { %v2402_v5 = vadd.f32 %v2401_v61, %v2353_v3  ;;  %v3372_v61 = vor.u32 %v4225_v50, %v3371_v46  ;;  %2727 = vmatpush.bf16.msra.mxu2 %v4377_v15 }
 0x199   :  { %v2501_v63 = vpop.f32.mrf.mxu1  ;;  %v2451_v49 = vadd.f32 %v2450_v51, %v2402_v5  ;;  %v3379_v51 = vld [vmem:[%s6021_s0 + $0x300] sm:$0xf] }
 0x19a   :  { %v3380_v5 = vor.u32 %v4226_v53, %v3379_v51 }
 0x19b   :  { %v5565_v14 = vadd.f32 %v2499_v54, %v2451_v49  ;;  %v3384_v49 = vor.u32 %v4217_v2, %v3381_v60  ;;  %v3515_v60 = vld [vmem:[%s6021_s0 + $0x418] sm:$0xf] }
 0x19c   :  { %v2354_v16 = vpop.f32.mrf.mxu2 }
 0x19d   :  { %v2403_v17 = vpop.f32.mrf.mxu3  ;;  %v2355_v36 = vadd.f32 %v2354_v16, %v5247_v35  ;;  %v4386_v35 = vld [vmem:[%s6019_s1 + $0x3c8] sm:$0xff] }
 0x19e   :  { %v2455_v23 = vpop.f32.mrf.mxu0  ;;  %2775 = vmatpush.bf16.msra.mxu3 %v4386_v35  ;;  %v3453_v35 = vld [vmem:[%s6021_s0 + $0x3d8] sm:$0xf0] }
 0x19f   :  { %v2404_v30 = vadd.f32 %v2403_v17, %v2355_v36 }
 0x1a1   :  { %v2504_v29 = vpop.f32.mrf.mxu1  ;;  %v2453_v33 = vadd.f32 %v2452_v1, %v2404_v30  ;;  %2552 = vmatmul.bf16.gmra.mxu2 %v3300_v20  ;;  %2650 = vmatmul.bf16.gmra.mxu0 %v3308_v26  ;;  %v3443_v20 = vld [vmem:[%s6021_s0 + $0x388] sm:$0xf]  ;;  %v4243_v26 = vld [vmem:[%s6021_s0 + $0x3cc] sm:$0xf0]  ;;  %v3445_v30 = vld [vmem:[%s6021_s0 + $0x3d0] sm:$0xf0] }
 0x1a2   :  { %2601 = vmatmul.bf16.gmra.mxu3 %v3304_v24  ;;  %v4393_v24 = vld [vmem:[%s6019_s1 + $0x400] sm:$0xff] }
 0x1a3   :  { %v5583_v59 = vadd.f32 %v2501_v63, %v2453_v33  ;;  %2825 = vmatpush.bf16.msra.mxu0 %v4393_v24 }
 0x1a4   :  { %2699 = vmatmul.bf16.gmra.mxu1 %v3312_v28  ;;  %v2357_v44 = vpop.f32.mrf.mxu2  ;;  %v4244_v28 = vld [vmem:[%s6021_s0 + $0x3d4] sm:$0xf0] }
 0x1a5   :  { %v2406_v37 = vpop.f32.mrf.mxu3  ;;  %v2358_v41 = vadd.f32 %v2357_v44, %v5271_v55  ;;  %v4216_v55 = vld [vmem:[%s6021_s0 + $0x2fc] sm:$0xf] }
 0x1a6   :  { %v2457_v38 = vpop.f32.mrf.mxu0  ;;  %v3376_v3 = vor.u32 %v4216_v55, %v3373_v62 }
 0x1a7   :  { %v2407_v42 = vadd.f32 %v2406_v37, %v2358_v41  ;;  %v3444_v37 = vor.u32 %v4243_v26, %v3443_v20 }
 0x1a9   :  { %v2506_v45 = vpop.f32.mrf.mxu1  ;;  %v2456_v4 = vadd.f32 %v2455_v23, %v2407_v42  ;;  %v3451_v23 = vld [vmem:[%s6021_s0 + $0x390] sm:$0xf] }
 0x1aa   :  { %v3452_v42 = vor.u32 %v4244_v28, %v3451_v23  ;;  %v3027_v28 = vld [vmem:[%s6021_s0 + $0x38] sm:$0xf] }
 0x1ab   :  { %v5607_v54 = vadd.f32 %v2504_v29, %v2456_v4  ;;  %v3456_v4 = vor.u32 %v4235_v40, %v3453_v35  ;;  %v3035_v40 = vld [vmem:[%s6021_s0 + $0x40] sm:$0xf]  ;;  %v4138_v35 = vld [vmem:[%s6021_s0 + $0x84] sm:$0xf0] }
 0x1ac   :  { %v2359_v56 = vpop.f32.mrf.mxu2  ;;  %v3036_v48 = vor.u32 %v4138_v35, %v3035_v40  ;;  %v3171_v40 = vld [vmem:[%s6021_s0 + $0x158] sm:$0xf]  ;;  %v4173_v35 = vld [vmem:[%s6021_s0 + $0x19c] sm:$0xf0] }
 0x1ad   :  { %v2408_v58 = vpop.f32.mrf.mxu3  ;;  %v2360_v8 = vadd.f32 %v2359_v56, %v5289_v12  ;;  %v4385_v12 = vld [vmem:[%s6019_s1 + $0x3c0] sm:$0xff] }
 0x1ae   :  { %v2460_v63 = vpop.f32.mrf.mxu0  ;;  %2776 = vmatpush.bf16.msra.mxu3 %v4385_v12 }
 0x1af   :  { %v2409_v1 = vadd.f32 %v2408_v58, %v2360_v8  ;;  %v4261_v8 = vld [vmem:[%s6021_s0 + $0x45c] sm:$0xf0] }
 0x1b0   :  { %v3516_v15 = vor.u32 %v4261_v8, %v3515_v60 }
 0x1b1   :  { %v2509_v7 = vpop.f32.mrf.mxu1  ;;  %v2458_v10 = vadd.f32 %v2457_v38, %v2409_v1  ;;  %2557 = vmatmul.bf16.gmra.mxu2 %v3372_v61  ;;  %2655 = vmatmul.bf16.gmra.mxu0 %v3380_v5  ;;  %v4252_v61 = vld [vmem:[%s6021_s0 + $0x41c] sm:$0xf]  ;;  %v4262_v5 = vld [vmem:[%s6021_s0 + $0x464] sm:$0xf0] }
 0x1b2   :  { %2606 = vmatmul.bf16.gmra.mxu3 %v3376_v3  ;;  %v3523_v3 = vld [vmem:[%s6021_s0 + $0x420] sm:$0xf] }
 0x1b3   :  { %v5625_v32 = vadd.f32 %v2506_v45, %v2458_v10  ;;  %v3525_v10 = vld [vmem:[%s6021_s0 + $0x468] sm:$0xf0] }
 0x1b4   :  { %2704 = vmatmul.bf16.gmra.mxu1 %v3384_v49  ;;  %v2362_v18 = vpop.f32.mrf.mxu2 }
 0x1b5   :  { %v2411_v13 = vpop.f32.mrf.mxu3  ;;  %v2363_v16 = vadd.f32 %v2362_v18, %v5313_v31  ;;  %v4234_v31 = vld [vmem:[%s6021_s0 + $0x38c] sm:$0xf]  ;;  %v3524_v18 = vor.u32 %v4262_v5, %v3523_v3  ;;  %v3099_v3 = vld [vmem:[%s6021_s0 + $0xc8] sm:$0xf]  ;;  %v4155_v5 = vld [vmem:[%s6021_s0 + $0x10c] sm:$0xf0] }
 0x1b6   :  { %v2462_v22 = vpop.f32.mrf.mxu0  ;;  %v3448_v41 = vor.u32 %v4234_v31, %v3445_v30 }
 0x1b7   :  { %v2412_v17 = vadd.f32 %v2411_v13, %v2363_v16 }
 0x1b9   :  { %v2511_v19 = vpop.f32.mrf.mxu1  ;;  %v2461_v36 = vadd.f32 %v2460_v63, %v2412_v17 }
 0x1bb   :  { %v5649_v29 = vadd.f32 %v2509_v7, %v2461_v36  ;;  %v4253_v7 = vld [vmem:[%s6021_s0 + $0x424] sm:$0xf] }
 0x1bc   :  { %v2364_v33 = vpop.f32.mrf.mxu2  ;;  %v3528_v17 = vor.u32 %v4253_v7, %v3525_v10  ;;  %v4156_v7 = vld [vmem:[%s6021_s0 + $0x114] sm:$0xf0] }
 0x1bd   :  { %v2413_v34 = vpop.f32.mrf.mxu3  ;;  %v2365_v44 = vadd.f32 %v2364_v33, %v5331_v52  ;;  %v4137_v33 = vld [vmem:[%s6021_s0 + $0x7c] sm:$0xf0] }
 0x1be   :  { %v2465_v45 = vpop.f32.mrf.mxu0 }
 0x1bf   :  { %v2414_v38 = vadd.f32 %v2413_v34, %v2365_v44  ;;  %v4128_v34 = vld [vmem:[%s6021_s0 + $0x3c] sm:$0xf] }
 0x1c1   :  { %v2514_v46 = vpop.f32.mrf.mxu1  ;;  %v2463_v50 = vadd.f32 %v2462_v22, %v2414_v38  ;;  %2562 = vmatmul.bf16.gmra.mxu2 %v3444_v37  ;;  %2660 = vmatmul.bf16.gmra.mxu0 %v3452_v42  ;;  %v4129_v42 = vld [vmem:[%s6021_s0 + $0x44] sm:$0xf]  ;;  %v3037_v38 = vld [vmem:[%s6021_s0 + $0x88] sm:$0xf0] }
 0x1c2   :  { %2611 = vmatmul.bf16.gmra.mxu3 %v3448_v41 }
 0x1c3   :  { %v5661_v55 = vadd.f32 %v2511_v19, %v2463_v50 }
 0x1c4   :  { %2709 = vmatmul.bf16.gmra.mxu1 %v3456_v4  ;;  %v2367_v52 = vpop.f32.mrf.mxu2  ;;  %v3028_v4 = vor.u32 %v4137_v33, %v3027_v28 }
 0x1c5   :  { %v2416_v62 = vpop.f32.mrf.mxu3  ;;  %v2368_v51 = vadd.f32 %v2367_v52, %v5355_v9  ;;  %v3517_v9 = vld [vmem:[%s6021_s0 + $0x460] sm:$0xf0] }
 0x1c6   :  { %v2467_v56 = vpop.f32.mrf.mxu0  ;;  %v3520_v12 = vor.u32 %v4252_v61, %v3517_v9 }
 0x1c7   :  { %v2417_v53 = vadd.f32 %v2416_v62, %v2368_v51  ;;  %v3040_v62 = vor.u32 %v4129_v42, %v3037_v38  ;;  %v4174_v42 = vld [vmem:[%s6021_s0 + $0x1a4] sm:$0xf0] }
 0x1c9   :  { %v2516_v58 = vpop.f32.mrf.mxu1  ;;  %v2466_v2 = vadd.f32 %v2465_v45, %v2417_v53 }
 0x1cb   :  { %v5682_v1 = vadd.f32 %v2514_v46, %v2466_v2 }
 0x1cc   :  { %v2369_v63 = vpop.f32.mrf.mxu2 }
 0x1cd   :  { %v2418_v49 = vpop.f32.mrf.mxu3  ;;  %v2370_v11 = vadd.f32 %v2369_v63, %v5373_v27  ;;  %v4146_v63 = vld [vmem:[%s6021_s0 + $0xcc] sm:$0xf] }
 0x1ce   :  { %v2470_v16 = vpop.f32.mrf.mxu0 }
 0x1cf   :  { %v2419_v13 = vadd.f32 %v2418_v49, %v2370_v11  ;;  %v3107_v49 = vld [vmem:[%s6021_s0 + $0xd0] sm:$0xf] }
 0x1d1   :  { %v2519_v22 = vpop.f32.mrf.mxu1  ;;  %v2468_v19 = vadd.f32 %v2467_v56, %v2419_v13  ;;  %2567 = vmatmul.bf16.gmra.mxu2 %v3516_v15  ;;  %2665 = vmatmul.bf16.gmra.mxu0 %v3524_v18  ;;  %v3109_v18 = vld [vmem:[%s6021_s0 + $0x118] sm:$0xf0] }
 0x1d2   :  { %2616 = vmatmul.bf16.gmra.mxu3 %v3520_v12  ;;  %v4147_v12 = vld [vmem:[%s6021_s0 + $0xd4] sm:$0xf] }
 0x1d3   :  { %v5691_v36 = vadd.f32 %v2516_v58, %v2468_v19 }
 0x1d4   :  { %2714 = vmatmul.bf16.gmra.mxu1 %v3528_v17  ;;  %v2372_v20 = vpop.f32.mrf.mxu2 }
 0x1d5   :  { %v2421_v24 = vpop.f32.mrf.mxu3  ;;  %v2373_v26 = vadd.f32 %v2372_v20, %v5397_v47  ;;  %v3029_v47 = vld [vmem:[%s6021_s0 + $0x80] sm:$0xf0] }
 0x1d6   :  { %v2472_v27 = vpop.f32.mrf.mxu0  ;;  %v3032_v46 = vor.u32 %v4128_v34, %v3029_v47 }
 0x1d7   :  { %v2422_v31 = vadd.f32 %v2421_v24, %v2373_v26  ;;  %v3112_v24 = vor.u32 %v4147_v12, %v3109_v18  ;;  %v4192_v12 = vld [vmem:[%s6021_s0 + $0x234] sm:$0xf0] }
 0x1d9   :  { %v2521_v30 = vpop.f32.mrf.mxu1  ;;  %v2471_v23 = vadd.f32 %v2470_v16, %v2422_v31  ;;  %v3100_v16 = vor.u32 %v4155_v5, %v3099_v3 }
 0x1db   :  { %v5712_v44 = vadd.f32 %v2519_v22, %v2471_v23  ;;  %v3108_v22 = vor.u32 %v4156_v7, %v3107_v49  ;;  %v3243_v49 = vld [vmem:[%s6021_s0 + $0x1e8] sm:$0xf]  ;;  %v4191_v7 = vld [vmem:[%s6021_s0 + $0x22c] sm:$0xf0] }
 0x1dc   :  { %v2374_v37 = vpop.f32.mrf.mxu2 }
 0x1dd   :  { %v2423_v41 = vpop.f32.mrf.mxu3  ;;  %v2375_v45 = vadd.f32 %v2374_v37, %v5415_v6  ;;  %v4164_v37 = vld [vmem:[%s6021_s0 + $0x15c] sm:$0xf] }
 0x1de   :  { %v2631_v52 = vpop.f32.mrf.mxu0 }
 0x1df   :  { %v2424_v50 = vadd.f32 %v2423_v41, %v2375_v45  ;;  %v3179_v41 = vld [vmem:[%s6021_s0 + $0x160] sm:$0xf] }
 0x1e1   :  { %v2680_v51 = vpop.f32.mrf.mxu1  ;;  %v2473_v53 = vadd.f32 %v2472_v27, %v2424_v50  ;;  %2728 = vmatmul.bf16.vlgmr.msra.gmra.mxu2 %v3028_v4  ;;  %2826 = vmatmul.bf16.vlgmr.msra.gmra.mxu0 %v3036_v48  ;;  %v3181_v48 = vld [vmem:[%s6021_s0 + $0x1a8] sm:$0xf0] }
 0x1e2   :  { %2777 = vmatmul.bf16.vlgmr.msra.gmra.mxu3 %v3032_v46  ;;  %v4165_v46 = vld [vmem:[%s6021_s0 + $0x164] sm:$0xf] }
 0x1e3   :  { %v5721_v56 = vadd.f32 %v2521_v30, %v2473_v53 }
 0x1e4   :  { %2875 = vmatmul.bf16.vlgmr.msra.gmra.mxu1 %v3040_v62  ;;  %v2533_v58 = vpop.f32.mrf.mxu2 }
 0x1e5   :  { %v2582_v2 = vpop.f32.mrf.mxu3  ;;  %v2534_v60 = vadd.f32 %v2533_v58, %v5439_v21  ;;  %v3101_v21 = vld [vmem:[%s6021_s0 + $0x110] sm:$0xf0] }
 0x1e6   :  { %v2633_v6 = vpop.f32.mrf.mxu0  ;;  %v3104_v17 = vor.u32 %v4146_v63, %v3101_v21 }
 0x1e7   :  { %v2583_v8 = vadd.f32 %v2582_v2, %v2534_v60  ;;  %v3184_v2 = vor.u32 %v4165_v46, %v3181_v48  ;;  %v4210_v46 = vld [vmem:[%s6021_s0 + $0x2c4] sm:$0xf0] }
 0x1e9   :  { %v2682_v61 = vpop.f32.mrf.mxu1  ;;  %v2632_v9 = vadd.f32 %v2631_v52, %v2583_v8  ;;  %v3172_v52 = vor.u32 %v4173_v35, %v3171_v40 }
 0x1eb   :  { %v5742_v10 = vadd.f32 %v2680_v51, %v2632_v9  ;;  %v3180_v51 = vor.u32 %v4174_v42, %v3179_v41  ;;  %v3315_v41 = vld [vmem:[%s6021_s0 + $0x278] sm:$0xf]  ;;  %v4209_v42 = vld [vmem:[%s6021_s0 + $0x2bc] sm:$0xf0] }
 0x1ec   :  { %v2535_v11 = vpop.f32.mrf.mxu2 }
 0x1ed   :  { %v2584_v15 = vpop.f32.mrf.mxu3  ;;  %v2536_v13 = vadd.f32 %v2535_v11, %v5457_v43  ;;  %v4182_v11 = vld [vmem:[%s6021_s0 + $0x1ec] sm:$0xf] }
 0x1ee   :  { %v2636_v20 = vpop.f32.mrf.mxu0 }
 0x1ef   :  { %v2585_v19 = vadd.f32 %v2584_v15, %v2536_v13  ;;  %v3251_v15 = vld [vmem:[%s6021_s0 + $0x1f0] sm:$0xf] }
 0x1f1   :  { %v2685_v26 = vpop.f32.mrf.mxu1  ;;  %v2634_v31 = vadd.f32 %v2633_v6, %v2585_v19  ;;  %2733 = vmatmul.bf16.gmra.mxu2 %v3100_v16  ;;  %2831 = vmatmul.bf16.gmra.mxu0 %v3108_v22  ;;  %v3253_v22 = vld [vmem:[%s6021_s0 + $0x238] sm:$0xf0] }
 0x1f2   :  { %2782 = vmatmul.bf16.gmra.mxu3 %v3104_v17  ;;  %v4183_v17 = vld [vmem:[%s6021_s0 + $0x1f4] sm:$0xf] }
 0x1f3   :  { %v5751_v27 = vadd.f32 %v2682_v61, %v2634_v31 }
 0x1f4   :  { %2880 = vmatmul.bf16.gmra.mxu1 %v3112_v24  ;;  %v2538_v30 = vpop.f32.mrf.mxu2 }
 0x1f5   :  { %v2587_v23 = vpop.f32.mrf.mxu3  ;;  %v2539_v28 = vadd.f32 %v2538_v30, %v5481_v0  ;;  %v3173_v0 = vld [vmem:[%s6021_s0 + $0x1a0] sm:$0xf0] }
 0x1f6   :  { %v2638_v43 = vpop.f32.mrf.mxu0  ;;  %v3176_v62 = vor.u32 %v4164_v37, %v3173_v0 }
 0x1f7   :  { %v2588_v33 = vadd.f32 %v2587_v23, %v2539_v28  ;;  %v3256_v23 = vor.u32 %v4183_v17, %v3253_v22  ;;  %v4228_v17 = vld [vmem:[%s6021_s0 + $0x354] sm:$0xf0] }
 0x1f9   :  { %v2687_v34 = vpop.f32.mrf.mxu1  ;;  %v2637_v47 = vadd.f32 %v2636_v20, %v2588_v33  ;;  %v3244_v20 = vor.u32 %v4191_v7, %v3243_v49 }
 0x1fb   :  { %v5772_v38 = vadd.f32 %v2685_v26, %v2637_v47  ;;  %v3252_v26 = vor.u32 %v4192_v12, %v3251_v15  ;;  %v3387_v15 = vld [vmem:[%s6021_s0 + $0x308] sm:$0xf]  ;;  %v4227_v12 = vld [vmem:[%s6021_s0 + $0x34c] sm:$0xf0] }
 0x1fc   :  { %v2540_v45 = vpop.f32.mrf.mxu2 }
 0x1fd   :  { %v2589_v4 = vpop.f32.mrf.mxu3  ;;  %v2541_v50 = vadd.f32 %v2540_v45, %v5499_v57  ;;  %v4200_v45 = vld [vmem:[%s6021_s0 + $0x27c] sm:$0xf] }
 0x1fe   :  { %v2641_v58 = vpop.f32.mrf.mxu0 }
 0x1ff   :  { %v2590_v53 = vadd.f32 %v2589_v4, %v2541_v50  ;;  %v3323_v4 = vld [vmem:[%s6021_s0 + $0x280] sm:$0xf] }
 0x201   :  { %v2690_v60 = vpop.f32.mrf.mxu1  ;;  %v2639_v8 = vadd.f32 %v2638_v43, %v2590_v53  ;;  %2738 = vmatmul.bf16.gmra.mxu2 %v3172_v52  ;;  %2836 = vmatmul.bf16.gmra.mxu0 %v3180_v51  ;;  %v3325_v51 = vld [vmem:[%s6021_s0 + $0x2c8] sm:$0xf0] }
 0x202   :  { %2787 = vmatmul.bf16.gmra.mxu3 %v3176_v62  ;;  %v4201_v62 = vld [vmem:[%s6021_s0 + $0x284] sm:$0xf] }
 0x203   :  { %v5781_v6 = vadd.f32 %v2687_v34, %v2639_v8 }
 0x204   :  { %2885 = vmatmul.bf16.gmra.mxu1 %v3184_v2  ;;  %v2543_v61 = vpop.f32.mrf.mxu2 }
 0x205   :  { %v2592_v9 = vpop.f32.mrf.mxu3  ;;  %v2544_v3 = vadd.f32 %v2543_v61, %v5523_v39  ;;  %v3245_v39 = vld [vmem:[%s6021_s0 + $0x230] sm:$0xf0] }
 0x206   :  { %v2643_v57 = vpop.f32.mrf.mxu0  ;;  %v3248_v24 = vor.u32 %v4182_v11, %v3245_v39 }
 0x207   :  { %v2593_v5 = vadd.f32 %v2592_v9, %v2544_v3  ;;  %v3328_v9 = vor.u32 %v4201_v62, %v3325_v51  ;;  %v4246_v62 = vld [vmem:[%s6021_s0 + $0x3e4] sm:$0xf0] }
 0x209   :  { %v2692_v63 = vpop.f32.mrf.mxu1  ;;  %v2642_v21 = vadd.f32 %v2641_v58, %v2593_v5  ;;  %v3316_v58 = vor.u32 %v4209_v42, %v3315_v41 }
 0x20b   :  { %v5802_v18 = vadd.f32 %v2690_v60, %v2642_v21  ;;  %v3324_v60 = vor.u32 %v4210_v46, %v3323_v4  ;;  %v3459_v4 = vld [vmem:[%s6021_s0 + $0x398] sm:$0xf]  ;;  %v4245_v46 = vld [vmem:[%s6021_s0 + $0x3dc] sm:$0xf0] }
 0x20c   :  { %v2545_v13 = vpop.f32.mrf.mxu2 }
 0x20d   :  { %v2594_v16 = vpop.f32.mrf.mxu3  ;;  %v2546_v19 = vadd.f32 %v2545_v13, %v5541_v25  ;;  %v4218_v13 = vld [vmem:[%s6021_s0 + $0x30c] sm:$0xf] }
 0x20e   :  { %v2646_v30 = vpop.f32.mrf.mxu0 }
 0x20f   :  { %v2595_v31 = vadd.f32 %v2594_v16, %v2546_v19  ;;  %v3395_v16 = vld [vmem:[%s6021_s0 + $0x310] sm:$0xf] }
 0x211   :  { %v2695_v28 = vpop.f32.mrf.mxu1  ;;  %v2644_v33 = vadd.f32 %v2643_v57, %v2595_v31  ;;  %2743 = vmatmul.bf16.gmra.mxu2 %v3244_v20  ;;  %2841 = vmatmul.bf16.gmra.mxu0 %v3252_v26  ;;  %v3397_v26 = vld [vmem:[%s6021_s0 + $0x358] sm:$0xf0] }
 0x212   :  { %2792 = vmatmul.bf16.gmra.mxu3 %v3248_v24  ;;  %v4219_v24 = vld [vmem:[%s6021_s0 + $0x314] sm:$0xf] }
 0x213   :  { %v5811_v43 = vadd.f32 %v2692_v63, %v2644_v33 }
 0x214   :  { %2890 = vmatmul.bf16.gmra.mxu1 %v3256_v23  ;;  %v2548_v34 = vpop.f32.mrf.mxu2 }
 0x215   :  { %v2597_v47 = vpop.f32.mrf.mxu3  ;;  %v2549_v40 = vadd.f32 %v2548_v34, %v5565_v14  ;;  %v3317_v14 = vld [vmem:[%s6021_s0 + $0x2c0] sm:$0xf0] }
 0x216   :  { %v2648_v25 = vpop.f32.mrf.mxu0  ;;  %v3320_v2 = vor.u32 %v4200_v45, %v3317_v14 }
 0x217   :  { %v2598_v35 = vadd.f32 %v2597_v47, %v2549_v40  ;;  %v3400_v47 = vor.u32 %v4219_v24, %v3397_v26  ;;  %v4264_v24 = vld [vmem:[%s6021_s0 + $0x474] sm:$0xf0] }
 0x219   :  { %v2697_v37 = vpop.f32.mrf.mxu1  ;;  %v2647_v0 = vadd.f32 %v2646_v30, %v2598_v35  ;;  %v3388_v30 = vor.u32 %v4227_v12, %v3387_v15 }
 0x21b   :  { %v5832_v48 = vadd.f32 %v2695_v28, %v2647_v0  ;;  %v3396_v28 = vor.u32 %v4228_v17, %v3395_v16  ;;  %v3531_v16 = vld [vmem:[%s6021_s0 + $0x428] sm:$0xf]  ;;  %v4263_v17 = vld [vmem:[%s6021_s0 + $0x46c] sm:$0xf0] }
 0x21c   :  { %v2550_v50 = vpop.f32.mrf.mxu2 }
 0x21d   :  { %v2599_v52 = vpop.f32.mrf.mxu3  ;;  %v2551_v53 = vadd.f32 %v2550_v50, %v5583_v59  ;;  %v4236_v50 = vld [vmem:[%s6021_s0 + $0x39c] sm:$0xf] }
 0x21e   :  { %v2651_v61 = vpop.f32.mrf.mxu0 }
 0x21f   :  { %v2600_v8 = vadd.f32 %v2599_v52, %v2551_v53  ;;  %v3467_v52 = vld [vmem:[%s6021_s0 + $0x3a0] sm:$0xf] }
 0x221   :  { %v2700_v3 = vpop.f32.mrf.mxu1  ;;  %v2649_v5 = vadd.f32 %v2648_v25, %v2600_v8  ;;  %2748 = vmatmul.bf16.gmra.mxu2 %v3316_v58  ;;  %2846 = vmatmul.bf16.gmra.mxu0 %v3324_v60  ;;  %v3469_v60 = vld [vmem:[%s6021_s0 + $0x3e8] sm:$0xf0] }
 0x222   :  { %2797 = vmatmul.bf16.gmra.mxu3 %v3320_v2  ;;  %v4237_v2 = vld [vmem:[%s6021_s0 + $0x3a4] sm:$0xf] }
 0x223   :  { %v5841_v57 = vadd.f32 %v2697_v37, %v2649_v5 }
 0x224   :  { %2895 = vmatmul.bf16.gmra.mxu1 %v3328_v9  ;;  %v2553_v63 = vpop.f32.mrf.mxu2 }
 0x225   :  { %v2602_v21 = vpop.f32.mrf.mxu3  ;;  %v2554_v49 = vadd.f32 %v2553_v63, %v5607_v54  ;;  %v3389_v54 = vld [vmem:[%s6021_s0 + $0x350] sm:$0xf0] }
 0x226   :  { %v2653_v59 = vpop.f32.mrf.mxu0  ;;  %v3392_v23 = vor.u32 %v4218_v13, %v3389_v54 }
 0x227   :  { %v2603_v7 = vadd.f32 %v2602_v21, %v2554_v49  ;;  %v3472_v21 = vor.u32 %v4237_v2, %v3469_v60 }
 0x229   :  { %v2702_v11 = vpop.f32.mrf.mxu1  ;;  %v2652_v39 = vadd.f32 %v2651_v61, %v2603_v7  ;;  %v3460_v61 = vor.u32 %v4245_v46, %v3459_v4 }
 0x22b   :  { %v5862_v22 = vadd.f32 %v2700_v3, %v2652_v39  ;;  %v3468_v3 = vor.u32 %v4246_v62, %v3467_v52 }
 0x22c   :  { %v2555_v19 = vpop.f32.mrf.mxu2 }
 0x22d   :  { %v2604_v20 = vpop.f32.mrf.mxu3  ;;  %v2556_v31 = vadd.f32 %v2555_v19, %v5625_v32  ;;  %v4254_v19 = vld [vmem:[%s6021_s0 + $0x42c] sm:$0xf] }
 0x22e   :  { %v2656_v34 = vpop.f32.mrf.mxu0 }
 0x22f   :  { %v2605_v33 = vadd.f32 %v2604_v20, %v2556_v31  ;;  %v3539_v20 = vld [vmem:[%s6021_s0 + $0x430] sm:$0xf] }
 0x231   :  { %v2705_v40 = vpop.f32.mrf.mxu1  ;;  %v2654_v35 = vadd.f32 %v2653_v59, %v2605_v33  ;;  %2753 = vmatmul.bf16.gmra.mxu2 %v3388_v30  ;;  %2851 = vmatmul.bf16.gmra.mxu0 %v3396_v28  ;;  %v3541_v28 = vld [vmem:[%s6021_s0 + $0x478] sm:$0xf0] }
 0x232   :  { %2802 = vmatmul.bf16.gmra.mxu3 %v3392_v23  ;;  %v4255_v23 = vld [vmem:[%s6021_s0 + $0x434] sm:$0xf] }
 0x233   :  { %v5871_v25 = vadd.f32 %v2702_v11, %v2654_v35 }
 0x234   :  { %2900 = vmatmul.bf16.gmra.mxu1 %v3400_v47  ;;  %v2558_v37 = vpop.f32.mrf.mxu2 }
 0x235   :  { %v2607_v0 = vpop.f32.mrf.mxu3  ;;  %v2559_v41 = vadd.f32 %v2558_v37, %v5649_v29  ;;  %v3461_v29 = vld [vmem:[%s6021_s0 + $0x3e0] sm:$0xf0] }
 0x236   :  { %v2658_v32 = vpop.f32.mrf.mxu0  ;;  %v3464_v9 = vor.u32 %v4236_v50, %v3461_v29 }
 0x237   :  { %v2608_v42 = vadd.f32 %v2607_v0, %v2559_v41  ;;  %v3544_v0 = vor.u32 %v4255_v23, %v3541_v28 }
 0x239   :  { %v2707_v45 = vpop.f32.mrf.mxu1  ;;  %v2657_v14 = vadd.f32 %v2656_v34, %v2608_v42  ;;  %v3532_v34 = vor.u32 %v4263_v17, %v3531_v16 }
 0x23b   :  { %v5892_v51 = vadd.f32 %v2705_v40, %v2657_v14  ;;  %v3540_v40 = vor.u32 %v4264_v24, %v3539_v20 }
 0x23c   :  { %v2560_v53 = vpop.f32.mrf.mxu2 }
 0x23d   :  { %v2609_v58 = vpop.f32.mrf.mxu3  ;;  %v2561_v8 = vadd.f32 %v2560_v53, %v5661_v55 }
 0x23e   :  { %v2661_v63 = vpop.f32.mrf.mxu0 }
 0x23f   :  { %v2610_v5 = vadd.f32 %v2609_v58, %v2561_v8 }
 0x241   :  { %v2710_v49 = vpop.f32.mrf.mxu1  ;;  %v2659_v7 = vadd.f32 %v2658_v32, %v2610_v5  ;;  %2758 = vmatmul.bf16.gmra.mxu2 %v3460_v61  ;;  %2856 = vmatmul.bf16.gmra.mxu0 %v3468_v3 }
 0x242   :  { %2807 = vmatmul.bf16.gmra.mxu3 %v3464_v9 }
 0x243   :  { %v5901_v59 = vadd.f32 %v2707_v45, %v2659_v7 }
 0x244   :  { %2905 = vmatmul.bf16.gmra.mxu1 %v3472_v21  ;;  %v2563_v11 = vpop.f32.mrf.mxu2 }
 0x245   :  { %v2612_v39 = vpop.f32.mrf.mxu3  ;;  %v2564_v15 = vadd.f32 %v2563_v11, %v5682_v1  ;;  %v3533_v1 = vld [vmem:[%s6021_s0 + $0x470] sm:$0xf0] }
 0x246   :  { %v2663_v55 = vpop.f32.mrf.mxu0  ;;  %v3536_v47 = vor.u32 %v4254_v19, %v3533_v1 }
 0x247   :  { %v2613_v12 = vadd.f32 %v2612_v39, %v2564_v15 }
 0x249   :  { %v2712_v13 = vpop.f32.mrf.mxu1  ;;  %v2662_v54 = vadd.f32 %v2661_v63, %v2613_v12 }
 0x24b   :  { %v5922_v26 = vadd.f32 %v2710_v49, %v2662_v54 }
 0x24c   :  { %v2565_v31 = vpop.f32.mrf.mxu2 }
 0x24d   :  { %v2614_v30 = vpop.f32.mrf.mxu3  ;;  %v2566_v33 = vadd.f32 %v2565_v31, %v5691_v36 }
 0x24e   :  { %v2666_v37 = vpop.f32.mrf.mxu0 }
 0x24f   :  { %v2615_v35 = vadd.f32 %v2614_v30, %v2566_v33 }
 0x251   :  { %v2715_v41 = vpop.f32.mrf.mxu1  ;;  %v2664_v42 = vadd.f32 %v2663_v55, %v2615_v35  ;;  %2763 = vmatmul.bf16.gmra.mxu2 %v3532_v34  ;;  %2861 = vmatmul.bf16.gmra.mxu0 %v3540_v40 }
 0x252   :  { %2812 = vmatmul.bf16.gmra.mxu3 %v3536_v47 }
 0x253   :  { %v5931_v32 = vadd.f32 %v2712_v13, %v2664_v42 }
 0x254   :  { %2910 = vmatmul.bf16.gmra.mxu1 %v3544_v0  ;;  %v2568_v45 = vpop.f32.mrf.mxu2 }
 0x255   :  { %v2617_v14 = vpop.f32.mrf.mxu3  ;;  %v2569_v4 = vadd.f32 %v2568_v45, %v5712_v44 }
 0x256   :  { %v2668_v36 = vpop.f32.mrf.mxu0 }
 0x257   :  { %v2618_v46 = vadd.f32 %v2617_v14, %v2569_v4 }
 0x259   :  { %v2717_v50 = vpop.f32.mrf.mxu1  ;;  %v2667_v29 = vadd.f32 %v2666_v37, %v2618_v46 }
 0x25b   :  { %v5934_v52 = vadd.f32 %v2715_v41, %v2667_v29 }
 0x25c   :  { %v2570_v62 = vpop.f32.mrf.mxu2 }
 0x25d   :  { %v2619_v53 = vpop.f32.mrf.mxu3  ;;  %v2571_v58 = vadd.f32 %v2570_v62, %v5721_v56 }
 0x25e   :  { %v2827_v60 = vpop.f32.mrf.mxu0 }
 0x25f   :  { %v2620_v2 = vadd.f32 %v2619_v53, %v2571_v58 }
 0x261   :  { %v2876_v8 = vpop.f32.mrf.mxu1  ;;  %v2669_v61 = vadd.f32 %v2668_v36, %v2620_v2 }
 0x263   :  { %v5937_v9 = vadd.f32 %v2717_v50, %v2669_v61 }
 0x264   :  { %v2729_v3 = vpop.f32.mrf.mxu2 }
 0x265   :  { %v2778_v5 = vpop.f32.mrf.mxu3  ;;  %v2730_v44 = vadd.f32 %v2729_v3, %v5742_v10 }
 0x266   :  { %v2829_v21 = vpop.f32.mrf.mxu0 }
 0x267   :  { %v2779_v63 = vadd.f32 %v2778_v5, %v2730_v44 }
 0x269   :  { %v2878_v49 = vpop.f32.mrf.mxu1  ;;  %v2828_v7 = vadd.f32 %v2827_v60, %v2779_v63 }
 0x26b   :  { %v2877_v11 = vadd.f32 %v2876_v8, %v2828_v7 }
 0x26c   :  { %v2731_v39 = vpop.f32.mrf.mxu2 }
 0x26d   :  { %v2780_v15 = vpop.f32.mrf.mxu3  ;;  %v2916_v12 = vmax.f32 %v2877_v11, 0.0  ;;  %v2732_v56 = vadd.f32 %v2731_v39, %v5751_v27 }
 0x26e   :  { %v2832_v54 = vpop.f32.mrf.mxu0 }
 0x26f   :  { %v2932_v55 = vpack.c.bf16 %v2916_v12, %v2916_v12  ;;  %v2781_v13 = vadd.f32 %v2780_v15, %v2732_v56 }
 0x271   :  { %v2881_v16 = vpop.f32.mrf.mxu1  ;;  %2949 = vst.msk [vmem:[%s6022_s3] sm:$0xf] %vm2948_vm0, %v2932_v55  ;;  %v2830_v10 = vadd.f32 %v2829_v21, %v2781_v13 }
 0x273   :  { %v2879_v17 = vadd.f32 %v2878_v49, %v2830_v10 }
 0x274   :  { %v2734_v19 = vpop.f32.mrf.mxu2 }
 0x275   :  { %v2783_v1 = vpop.f32.mrf.mxu3  ;;  %v2917_v20 = vmax.f32 %v2879_v17, 0.0  ;;  %v2735_v24 = vadd.f32 %v2734_v19, %v5772_v38 }
 0x276   :  { %v2834_v27 = vpop.f32.mrf.mxu0 }
 0x277   :  { %v2933_v31 = vpack.c.bf16 %v2917_v20, %v2917_v20  ;;  %v2784_v30 = vadd.f32 %v2783_v1, %v2735_v24 }
 0x279   :  { %v2883_v23 = vpop.f32.mrf.mxu1  ;;  %2950 = vst.msk [vmem:[%s6022_s3 + $0x4] sm:$0xf] %vm2948_vm0, %v2933_v31  ;;  %v2833_v28 = vadd.f32 %v2832_v54, %v2784_v30 }
 0x27b   :  { %v2882_v33 = vadd.f32 %v2881_v16, %v2833_v28 }
 0x27c   :  { %v2736_v34 = vpop.f32.mrf.mxu2 }
 0x27d   :  { %v2785_v47 = vpop.f32.mrf.mxu3  ;;  %v2918_v40 = vmax.f32 %v2882_v33, 0.0  ;;  %v2737_v35 = vadd.f32 %v2736_v34, %v5781_v6 }
 0x27e   :  { %v2837_v41 = vpop.f32.mrf.mxu0 }
 0x27f   :  { %v2934_v37 = vpack.c.bf16 %v2918_v40, %v2918_v40  ;;  %v2786_v0 = vadd.f32 %v2785_v47, %v2737_v35 }
 0x281   :  { %v2886_v38 = vpop.f32.mrf.mxu1  ;;  %2951 = vst.msk [vmem:[%s6022_s3 + $0x8] sm:$0xf] %vm2948_vm0, %v2934_v37  ;;  %v2835_v42 = vadd.f32 %v2834_v27, %v2786_v0 }
 0x283   :  { %v2884_v45 = vadd.f32 %v2883_v23, %v2835_v42 }
 0x284   :  { %v2739_v14 = vpop.f32.mrf.mxu2 }
 0x285   :  { %v2788_v4 = vpop.f32.mrf.mxu3  ;;  %v2919_v46 = vmax.f32 %v2884_v45, 0.0  ;;  %v2740_v36 = vadd.f32 %v2739_v14, %v5802_v18 }
 0x286   :  { %v2839_v62 = vpop.f32.mrf.mxu0 }
 0x287   :  { %v2935_v50 = vpack.c.bf16 %v2919_v46, %v2919_v46  ;;  %v2789_v29 = vadd.f32 %v2788_v4, %v2740_v36 }
 0x289   :  { %v2888_v6 = vpop.f32.mrf.mxu1  ;;  %2952 = vst.msk [vmem:[%s6022_s3 + $0xc] sm:$0xf] %vm2948_vm0, %v2935_v50  ;;  %v2838_v53 = vadd.f32 %v2837_v41, %v2789_v29 }
 0x28b   :  { %v2887_v58 = vadd.f32 %v2886_v38, %v2838_v53 }
 0x28c   :  { %v2741_v2 = vpop.f32.mrf.mxu2 }
 0x28d   :  { %v2790_v60 = vpop.f32.mrf.mxu3  ;;  %v2920_v8 = vmax.f32 %v2887_v58, 0.0  ;;  %v2742_v61 = vadd.f32 %v2741_v2, %v5811_v43 }
 0x28e   :  { %v2842_v44 = vpop.f32.mrf.mxu0 }
 0x28f   :  { %v2936_v3 = vpack.c.bf16 %v2920_v8, %v2920_v8  ;;  %v2791_v5 = vadd.f32 %v2790_v60, %v2742_v61 }
 0x291   :  { %v2891_v18 = vpop.f32.mrf.mxu1  ;;  %2953 = vst.msk [vmem:[%s6022_s3 + $0x10] sm:$0xf] %vm2948_vm0, %v2936_v3  ;;  %v2840_v63 = vadd.f32 %v2839_v62, %v2791_v5 }
 0x293   :  { %v2889_v21 = vadd.f32 %v2888_v6, %v2840_v63 }
 0x294   :  { %v2744_v49 = vpop.f32.mrf.mxu2 }
 0x295   :  { %v2793_v7 = vpop.f32.mrf.mxu3  ;;  %v2921_v11 = vmax.f32 %v2889_v21, 0.0  ;;  %v2745_v39 = vadd.f32 %v2744_v49, %v5832_v48 }
 0x296   :  { %v2844_v56 = vpop.f32.mrf.mxu0 }
 0x297   :  { %v2937_v15 = vpack.c.bf16 %v2921_v11, %v2921_v11  ;;  %v2794_v12 = vadd.f32 %v2793_v7, %v2745_v39 }
 0x299   :  { %v2893_v43 = vpop.f32.mrf.mxu1  ;;  %2954 = vst.msk [vmem:[%s6022_s3 + $0x14] sm:$0xf] %vm2948_vm0, %v2937_v15  ;;  %v2843_v55 = vadd.f32 %v2842_v44, %v2794_v12 }
 0x29b   :  { %v2892_v13 = vadd.f32 %v2891_v18, %v2843_v55 }
 0x29c   :  { %v2746_v54 = vpop.f32.mrf.mxu2 }
 0x29d   :  { %v2795_v16 = vpop.f32.mrf.mxu3  ;;  %v2922_v10 = vmax.f32 %v2892_v13, 0.0  ;;  %v2747_v17 = vadd.f32 %v2746_v54, %v5841_v57 }
 0x29e   :  { %v2847_v20 = vpop.f32.mrf.mxu0 }
 0x29f   :  { %v2938_v19 = vpack.c.bf16 %v2922_v10, %v2922_v10  ;;  %v2796_v1 = vadd.f32 %v2795_v16, %v2747_v17 }
 0x2a1   :  { %v2896_v48 = vpop.f32.mrf.mxu1  ;;  %2955 = vst.msk [vmem:[%s6022_s3 + $0x18] sm:$0xf] %vm2948_vm0, %v2938_v19  ;;  %v2845_v24 = vadd.f32 %v2844_v56, %v2796_v1 }
 0x2a3   :  { %v2894_v31 = vadd.f32 %v2893_v43, %v2845_v24 }
 0x2a4   :  { %v2749_v30 = vpop.f32.mrf.mxu2 }
 0x2a5   :  { %v2798_v27 = vpop.f32.mrf.mxu3  ;;  %v2923_v23 = vmax.f32 %v2894_v31, 0.0  ;;  %v2750_v28 = vadd.f32 %v2749_v30, %v5862_v22 }
 0x2a6   :  { %v2849_v47 = vpop.f32.mrf.mxu0 }
 0x2a7   :  { %v2939_v33 = vpack.c.bf16 %v2923_v23, %v2923_v23  ;;  %v2799_v34 = vadd.f32 %v2798_v27, %v2750_v28 }
 0x2a9   :  { %v2898_v57 = vpop.f32.mrf.mxu1  ;;  %2956 = vst.msk [vmem:[%s6022_s3 + $0x1c] sm:$0xf] %vm2948_vm0, %v2939_v33  ;;  %v2848_v40 = vadd.f32 %v2847_v20, %v2799_v34 }
 0x2ab   :  { %v2897_v35 = vadd.f32 %v2896_v48, %v2848_v40 }
 0x2ac   :  { %v2751_v37 = vpop.f32.mrf.mxu2 }
 0x2ad   :  { %v2800_v0 = vpop.f32.mrf.mxu3  ;;  %v2924_v41 = vmax.f32 %v2897_v35, 0.0  ;;  %v2752_v38 = vadd.f32 %v2751_v37, %v5871_v25 }
 0x2ae   :  { %v2852_v14 = vpop.f32.mrf.mxu0 }
 0x2af   :  { %v2940_v42 = vpack.c.bf16 %v2924_v41, %v2924_v41  ;;  %v2801_v45 = vadd.f32 %v2800_v0, %v2752_v38 }
 0x2b1   :  { %v2901_v22 = vpop.f32.mrf.mxu1  ;;  %2957 = vst.msk [vmem:[%s6022_s3 + $0x20] sm:$0xf] %vm2948_vm0, %v2940_v42  ;;  %v2850_v4 = vadd.f32 %v2849_v47, %v2801_v45 }
 0x2b3   :  { %v2899_v46 = vadd.f32 %v2898_v57, %v2850_v4 }
 0x2b4   :  { %v2754_v36 = vpop.f32.mrf.mxu2 }
 0x2b5   :  { %v2803_v50 = vpop.f32.mrf.mxu3  ;;  %v2925_v29 = vmax.f32 %v2899_v46, 0.0  ;;  %v2755_v62 = vadd.f32 %v2754_v36, %v5892_v51 }
 0x2b6   :  { %v2854_v58 = vpop.f32.mrf.mxu0 }
 0x2b7   :  { %v2941_v6 = vpack.c.bf16 %v2925_v29, %v2925_v29  ;;  %v2804_v53 = vadd.f32 %v2803_v50, %v2755_v62 }
 0x2b9   :  { %2958 = vst.msk [vmem:[%s6022_s3 + $0x24] sm:$0xf] %vm2948_vm0, %v2941_v6  ;;  %v2853_v25 = vadd.f32 %v2852_v14, %v2804_v53  ;;  %v2903_v2 = vpop.f32.mrf.mxu1 }
 0x2bb   :  { %v2902_v60 = vadd.f32 %v2901_v22, %v2853_v25 }
 0x2bc   :  { %v2756_v8 = vpop.f32.mrf.mxu2 }
 0x2bd   :  { %v2805_v61 = vpop.f32.mrf.mxu3  ;;  %v2926_v3 = vmax.f32 %v2902_v60, 0.0  ;;  %v2757_v5 = vadd.f32 %v2756_v8, %v5901_v59 }
 0x2be   :  { %v2857_v63 = vpop.f32.mrf.mxu0 }
 0x2bf   :  { %v2942_v44 = vpack.c.bf16 %v2926_v3, %v2926_v3  ;;  %v2806_v18 = vadd.f32 %v2805_v61, %v2757_v5 }
 0x2c1   :  { %2959 = vst.msk [vmem:[%s6022_s3 + $0x28] sm:$0xf] %vm2948_vm0, %v2942_v44  ;;  %v2855_v51 = vadd.f32 %v2854_v58, %v2806_v18  ;;  %v2906_v49 = vpop.f32.mrf.mxu1 }
 0x2c3   :  { %v2904_v21 = vadd.f32 %v2903_v2, %v2855_v51 }
 0x2c4   :  { %v2759_v7 = vpop.f32.mrf.mxu2 }
 0x2c5   :  { %v2808_v11 = vpop.f32.mrf.mxu3  ;;  %v2927_v39 = vmax.f32 %v2904_v21, 0.0  ;;  %v2760_v15 = vadd.f32 %v2759_v7, %v5922_v26 }
 0x2c6   :  { %v2859_v55 = vpop.f32.mrf.mxu0 }
 0x2c7   :  { %v2943_v12 = vpack.c.bf16 %v2927_v39, %v2927_v39  ;;  %v2809_v56 = vadd.f32 %v2808_v11, %v2760_v15 }
 0x2c9   :  { %2960 = vst.msk [vmem:[%s6022_s3 + $0x2c] sm:$0xf] %vm2948_vm0, %v2943_v12  ;;  %v2858_v59 = vadd.f32 %v2857_v63, %v2809_v56  ;;  %v2908_v17 = vpop.f32.mrf.mxu1 }
 0x2cb   :  { %v2907_v43 = vadd.f32 %v2906_v49, %v2858_v59 }
 0x2cc   :  { %v2761_v13 = vpop.f32.mrf.mxu2 }
 0x2cd   :  { %v2810_v54 = vpop.f32.mrf.mxu3  ;;  %v2928_v16 = vmax.f32 %v2907_v43, 0.0  ;;  %v2762_v10 = vadd.f32 %v2761_v13, %v5931_v32 }
 0x2ce   :  { %v2862_v27 = vpop.f32.mrf.mxu0 }
 0x2cf   :  { %v2944_v19 = vpack.c.bf16 %v2928_v16, %v2928_v16  ;;  %v2811_v1 = vadd.f32 %v2810_v54, %v2762_v10 }
 0x2d1   :  { %2961 = vst.msk [vmem:[%s6022_s3 + $0x30] sm:$0xf] %vm2948_vm0, %v2944_v19  ;;  %v2860_v26 = vadd.f32 %v2859_v55, %v2811_v1  ;;  %v2911_v33 = vpop.f32.mrf.mxu1 }
 0x2d3   :  { %v2909_v20 = vadd.f32 %v2908_v17, %v2860_v26 }
 0x2d4   :  { %v2764_v48 = vpop.f32.mrf.mxu2 }
 0x2d5   :  { %v2813_v24 = vpop.f32.mrf.mxu3  ;;  %v2929_v31 = vmax.f32 %v2909_v20, 0.0  ;;  %v2765_v30 = vadd.f32 %v2764_v48, %v5934_v52 }
 0x2d6   :  { %v2864_v41 = vpop.f32.mrf.mxu0 }
 0x2d7   :  { %v2945_v23 = vpack.c.bf16 %v2929_v31, %v2929_v31  ;;  %v2814_v28 = vadd.f32 %v2813_v24, %v2765_v30 }
 0x2d9   :  { %2962 = vst.msk [vmem:[%s6022_s3 + $0x34] sm:$0xf] %vm2948_vm0, %v2945_v23  ;;  %v2863_v32 = vadd.f32 %v2862_v27, %v2814_v28  ;;  %v2913_v38 = vpop.f32.mrf.mxu1 }
 0x2db   :  { %v2912_v34 = vadd.f32 %v2911_v33, %v2863_v32 }
 0x2dc   :  { %v2766_v47 = vpop.f32.mrf.mxu2 }
 0x2dd   :  { %v2930_v57 = vmax.f32 %v2912_v34, 0.0  ;;  %v2767_v40 = vadd.f32 %v2766_v47, %v5937_v9  ;;  %v2815_v35 = vpop.f32.mrf.mxu3 }
 0x2df   :  { %v2946_v37 = vpack.c.bf16 %v2930_v57, %v2930_v57  ;;  %v2816_v0 = vadd.f32 %v2815_v35, %v2767_v40 }
 0x2e1   :  { %2963 = vst.msk [vmem:[%s6022_s3 + $0x38] sm:$0xf] %vm2948_vm0, %v2946_v37  ;;  %v2865_v52 = vadd.f32 %v2864_v41, %v2816_v0 }
 0x2e3   :  { %v2914_v42 = vadd.f32 %v2913_v38, %v2865_v52 }
 0x2e5   :  { %v2931_v45 = vmax.f32 %v2914_v42, 0.0 }
 0x2e7   :  { %v2947_v14 = vpack.c.bf16 %v2931_v45, %v2931_v45 }
 0x2e9   :  { %2964 = vst.msk [vmem:[%s6022_s3 + $0x3c] sm:$0xf] %vm2948_vm0, %v2947_v14 }

</bundles_post_ra>
